<compile_context>
chip_gen: v5e
topology: v5e:2x2
jax: 0.10.0
libtpu: 0.0.40
codegen_flags: <defaults>
</compile_context>

<pallas_src>
import functools

import jax
import jax.numpy as jnp
from jax.experimental import pallas as pl
from jax.experimental.pallas import tpu as pltpu

LANES = 128
_EPS = 1e-5


def _round_up(x, m):
    return ((x + m - 1) // m) * m


@functools.lru_cache(maxsize=None)
def _vmem_limit_bytes():
    """Generation-aware VMEM limit: ~3/4 of physical, capped at 100 MiB.
    Falls back to a conservative 48 MiB if the query is unavailable."""
    try:
        cap = getattr(pltpu.get_tpu_info(), "vmem_capacity_bytes", None)
    except Exception:
        cap = None
    if not cap:
        return 48 * 1024 * 1024
    return int(min(cap * 3 // 4, 100 * 1024 * 1024))


# ----------------------------------------------------------------------------
# Fused conv kernel: per-tap (Ho*Wo, Cin) @ (Cin, Cb) MXU matmuls
#   [+ optional InstanceNorm(affine, eps=1e-5) + LeakyReLU(0.2) epilogue]
# ----------------------------------------------------------------------------
def _make_conv_kernel(k, fuse_norm):
    def conv_acc(x_ref, w_ref, Ho, Wo, Cb):
        # x_ref : (1, Hp, Wp, Cin) bf16 (spatially pre-padded input)
        # w_ref : (k*k, Cin, Cb)   bf16 (tap-major weights)
        # Spatial dims flattened into the MXU M dimension: one dot per tap.
        _, Cin, _ = w_ref.shape
        acc = jnp.zeros((Ho * Wo, Cb), jnp.float32)
        for di in range(k):
            for dj in range(k):
                xs = x_ref[0, di:di + Ho, dj:dj + Wo, :].reshape(Ho * Wo, Cin)
                acc = acc + jnp.dot(xs, w_ref[di * k + dj],
                                    preferred_element_type=jnp.float32)
        return acc

    if fuse_norm:
        def kernel(x_ref, w_ref, g_ref, bt_ref, o_ref):
            _, Ho, Wo, Cb = o_ref.shape
            acc = conv_acc(x_ref, w_ref, Ho, Wo, Cb)          # (Ho*Wo, Cb) f32
            inv_n = 1.0 / float(Ho * Wo)
            mean = jnp.sum(acc, axis=0, keepdims=True) * inv_n
            c = acc - mean
            var = jnp.sum(c * c, axis=0, keepdims=True) * inv_n
            y = c * (jax.lax.rsqrt(var + _EPS) * g_ref[...]) + bt_ref[...]
            y = jnp.where(y >= 0.0, y, 0.2 * y)               # LeakyReLU(0.2)
            o_ref[0] = y.reshape(Ho, Wo, Cb).astype(o_ref.dtype)
    else:
        def kernel(x_ref, w_ref, b_ref, o_ref):
            _, Ho, Wo, Cb = o_ref.shape
            acc = conv_acc(x_ref, w_ref, Ho, Wo, Cb)
            y = acc + b_ref[...]                              # bias added once
            o_ref[0] = y.reshape(Ho, Wo, Cb).astype(o_ref.dtype)

    return kernel


def _conv_block(x, w, *, k, bias=None, gamma=None, beta=None,
                out_dtype=jnp.bfloat16):
    """x: (N, Hp, Wp, Cin) spatially pre-padded NHWC bf16 (true Cin, no lane pad).
    w: (k*k, Cin, Coutp) bf16.  bias/gamma/beta: (1, Coutp) f32 (lane-dense)."""
    N, Hp, Wp, Cin = x.shape
    taps, cin_w, coutp = w.shape
    assert taps == k * k and cin_w == Cin and coutp % LANES == 0
    Ho, Wo = Hp - k + 1, Wp - k + 1
    fuse_norm = gamma is not None
    # 256-lane Cout blocks when possible (fills v6e/v7x's 256-wide MXU).
    cb = 256 if coutp % 256 == 0 else LANES
    n_cb = coutp // cb

    in_specs = [
        pl.BlockSpec((1, Hp, Wp, Cin), lambda n, c: (n, 0, 0, 0)),
        pl.BlockSpec((taps, Cin, cb), lambda n, c: (0, 0, c)),
    ]
    args = [x, w]
    if fuse_norm:
        in_specs += [pl.BlockSpec((1, cb), lambda n, c: (0, c)),
                     pl.BlockSpec((1, cb), lambda n, c: (0, c))]
        args += [gamma, beta]
    else:
        in_specs.append(pl.BlockSpec((1, cb), lambda n, c: (0, c)))
        args.append(bias)

    return pl.pallas_call(
        _make_conv_kernel(k, fuse_norm),
        out_shape=jax.ShapeDtypeStruct((N, Ho, Wo, coutp), out_dtype),
        grid=(N, n_cb),
        in_specs=in_specs,
        out_specs=pl.BlockSpec((1, Ho, Wo, cb), lambda n, c: (n, 0, 0, c)),
        compiler_params=pltpu.CompilerParams(
            dimension_semantics=("parallel", "parallel"),
            vmem_limit_bytes=_vmem_limit_bytes()),
    )(*args)


# ----------------------------------------------------------------------------
# conv_out head (Cout=1): VPU multiply-accumulate + ONE lane reduce at the end
# ----------------------------------------------------------------------------
def _make_head_kernel(k):
    def kernel(x_ref, w_ref, b_ref, o_ref):
        # x_ref: (1, Hh, Wh, Cp) bf16 ; w_ref: (k*k, Cp) f32 ; b_ref: (1, 1) f32
        _, Ho, Wo, _ = o_ref.shape
        Cp = x_ref.shape[-1]
        acc = jnp.zeros((Ho * Wo, Cp), jnp.float32)
        for di in range(k):
            for dj in range(k):
                xs = x_ref[0, di:di + Ho, dj:dj + Wo, :].reshape(Ho * Wo, Cp)
                wt = w_ref[di * k + dj:di * k + dj + 1, :]        # (1, Cp)
                acc = acc + xs.astype(jnp.float32) * wt
        out = jnp.sum(acc, axis=-1, keepdims=True) + b_ref[...]  # single reduce
        o_ref[0] = out.reshape(Ho, Wo, 1)
    return kernel


def _head_block(x, w, b, *, k):
    N, Hh, Wh, Cp = x.shape
    Ho, Wo = Hh - k + 1, Wh - k + 1
    return pl.pallas_call(
        _make_head_kernel(k),
        out_shape=jax.ShapeDtypeStruct((N, Ho, Wo, 1), jnp.float32),
        grid=(N,),
        in_specs=[pl.BlockSpec((1, Hh, Wh, Cp), lambda n: (n, 0, 0, 0)),
                  pl.BlockSpec((k * k, Cp), lambda n: (0, 0)),
                  pl.BlockSpec((1, 1), lambda n: (0, 0))],
        out_specs=pl.BlockSpec((1, Ho, Wo, 1), lambda n: (n, 0, 0, 0)),
        compiler_params=pltpu.CompilerParams(
            dimension_semantics=("parallel",),
            vmem_limit_bytes=_vmem_limit_bytes()),
    )(x, w, b)


# ----------------------------------------------------------------------------
# Layout helper (plain JAX glue; pad + reshape + transpose fuse into one copy)
# ----------------------------------------------------------------------------
def _pad_and_space_to_depth(x):
    """Spatial pad=1 then 2x2 space-to-depth.  Turns the DownBlock k=4/s=2/p=1
    conv into a k=2/s=1 conv so the Pallas kernel never needs strided reads.
    Requires even H, W (asserted by the caller)."""
    x = jnp.pad(x, ((0, 0), (1, 1), (1, 1), (0, 0)))
    N, H, W, C = x.shape                     # H, W even after +2 pad of even dims
    x = x.reshape(N, H // 2, 2, W // 2, 2, C).transpose(0, 1, 3, 2, 4, 5)
    return x.reshape(N, H // 2, W // 2, 4 * C)


# ----------------------------------------------------------------------------
# Parameters: raw (PyTorch-layout) init + one-time kernel-ready preprocessing
# ----------------------------------------------------------------------------
def init_critic_params(key, in_channels, block_out_channels=(64,)):
    def nxt():
        nonlocal key
        key, sub = jax.random.split(key)
        return sub

    c0 = block_out_channels[0]
    params = {
        "conv_in_w": 0.1 * jax.random.normal(nxt(), (c0, in_channels, 3, 3), jnp.float32),
        "conv_in_b": 0.1 * jax.random.normal(nxt(), (c0,), jnp.float32),
    }
    # TODO(synk): `StackBlock` source was not provided; assuming diffusers-style
    # stacking: one DownBlock per entry, block i maps
    # block_out_channels[max(i-1, 0)] -> block_out_channels[i].
    blocks = []
    in_ch = c0
    for out_ch in block_out_channels:
        blocks.append({
            "conv_w": 0.1 * jax.random.normal(nxt(), (out_ch, in_ch, 4, 4), jnp.float32),
            "gamma": 1.0 + 0.1 * jax.random.normal(nxt(), (out_ch,), jnp.float32),
            "beta": 0.1 * jax.random.normal(nxt(), (out_ch,), jnp.float32),
        })
        in_ch = out_ch
    params["down_blocks"] = blocks
    c_last = block_out_channels[-1]
    params["conv_out_w"] = 0.1 * jax.random.normal(nxt(), (1, c_last, 4, 4), jnp.float32)
    params["conv_out_b"] = 0.1 * jax.random.normal(nxt(), (1,), jnp.float32)
    return params


def prepare_critic_params(raw, in_channels):
    """One-time prep (hoisted out of the forward pass): tap-major weight layout,
    output-channel padding to 128 lanes (input channels of conv_in stay true),
    space-to-depth rearrangement of DownBlock weights, bf16 casting."""
    # conv_in (k=3, s=1, p=1, bias=True): weights (9, Cin, C0p), Cin UNPADDED.
    w = raw["conv_in_w"]                                   # (c0, Cin, 3, 3)
    c0 = w.shape[0]
    c0_p = _round_up(c0, LANES)
    wt = jnp.transpose(w, (2, 3, 1, 0)).reshape(9, in_channels, c0)
    conv_in_w = jnp.zeros((9, in_channels, c0_p), jnp.bfloat16)
    conv_in_w = conv_in_w.at[:, :, :c0].set(wt.astype(jnp.bfloat16))
    conv_in_b = jnp.zeros((1, c0_p), jnp.float32).at[0, :c0].set(raw["conv_in_b"])

    # DownBlocks: rearrange k=4/s=2 weights for the 2x2 space-to-depth conv.
    blocks = []
    prev_p = c0_p
    for blk in raw["down_blocks"]:
        w = blk["conv_w"]                                  # (Cout, Cin, 4, 4)
        cout, cin = w.shape[0], w.shape[1]
        cout_p = _round_up(cout, LANES)
        w2 = jnp.zeros((4, 4 * prev_p, cout_p), jnp.float32)
        for bi in range(2):
            for bj in range(2):
                for pi in range(2):
                    for pj in range(2):
                        tap = bi * 2 + bj
                        ch0 = (pi * 2 + pj) * prev_p
                        w_tap = jnp.transpose(w[:, :, 2 * bi + pi, 2 * bj + pj], (1, 0))
                        w2 = w2.at[tap, ch0:ch0 + cin, :cout].set(w_tap)
        blocks.append({
            "w": w2.astype(jnp.bfloat16),                   # conv bias=False
            "gamma": jnp.zeros((1, cout_p), jnp.float32).at[0, :cout].set(blk["gamma"]),
            "beta": jnp.zeros((1, cout_p), jnp.float32).at[0, :cout].set(blk["beta"]),
        })
        prev_p = cout_p

    # conv_out head (k=4, s=1, p=0, Cout=1) -> VPU reduction, kept in f32.
    w = raw["conv_out_w"]                                  # (1, C_last, 4, 4)
    c_last = w.shape[1]
    head_w = jnp.zeros((16, prev_p), jnp.float32)
    for di in range(4):
        for dj in range(4):
            head_w = head_w.at[di * 4 + dj, :c_last].set(w[0, :, di, dj])
    head_b = raw["conv_out_b"].reshape(1, 1).astype(jnp.float32)

    return {"conv_in_w": conv_in_w, "conv_in_b": conv_in_b,
            "down_blocks": blocks, "head_w": head_w, "head_b": head_b}


# ----------------------------------------------------------------------------
# Forward
# ----------------------------------------------------------------------------
def critic_forward(params, x):
    """x: (N, Cin, H, W) float32 NCHW -> logits (N*Ho*Wo, 1) float32."""
    # NCHW -> NHWC (true Cin, no lane padding) + p=1 spatial pad for conv_in;
    # single fused XLA copy, bf16 afterwards.
    h = jnp.transpose(x, (0, 2, 3, 1)).astype(jnp.bfloat16)
    h = jnp.pad(h, ((0, 0), (1, 1), (1, 1), (0, 0)))

    # conv_in: k=3, s=1, p=1 (bias fused, per-tap MXU matmuls).
    h = _conv_block(h, params["conv_in_w"], bias=params["conv_in_b"], k=3)

    # DownBlocks: Conv(k=4,s=2,p=1,no bias) + InstanceNorm(affine) + LeakyReLU,
    # fused into one Pallas kernel per block (conv done as a k=2/s=1 conv on the
    # space-to-depth rearranged input).
    for blk in params["down_blocks"]:
        assert h.shape[1] % 2 == 0 and h.shape[2] % 2 == 0, (
            "DownBlock (k=4, s=2, p=1) via 2x2 space-to-depth needs even H, W")
        hs = _pad_and_space_to_depth(h)
        h = _conv_block(hs, blk["w"], gamma=blk["gamma"], beta=blk["beta"], k=2)

    # conv_out: k=4, s=1, p=0, Cout=1 -> VPU multiply + single lane reduce.
    logits = _head_block(h, params["head_w"], params["head_b"], k=4)
    return logits.reshape(-1, 1)


# ----------------------------------------------------------------------------
# Pure-JAX f32 reference (for a loose numerical check of the bf16 pipeline)
# ----------------------------------------------------------------------------
def _reference_forward(raw, x):
    def conv(x, w, b, stride, pad):
        out = jax.lax.conv_general_dilated(
            x, w, (stride, stride), [(pad, pad), (pad, pad)],
            dimension_numbers=("NCHW", "OIHW", "NCHW"))
        if b is not None:
            out = out + b[None, :, None, None]
        return out

    h = conv(x, raw["conv_in_w"], raw["conv_in_b"], 1, 1)
    for blk in raw["down_blocks"]:
        h = conv(h, blk["conv_w"], None, 2, 1)
        mean = jnp.mean(h, axis=(2, 3), keepdims=True)
        var = jnp.mean(jnp.square(h - mean), axis=(2, 3), keepdims=True)
        h = (h - mean) * jax.lax.rsqrt(var + _EPS)
        h = h * blk["gamma"][None, :, None, None] + blk["beta"][None, :, None, None]
        h = jnp.where(h >= 0.0, h, 0.2 * h)
    out = conv(h, raw["conv_out_w"], raw["conv_out_b"], 1, 0)
    return out.reshape(-1, 1)


if __name__ == "__main__":
    key = jax.random.PRNGKey(0)
    key_x, key_p = jax.random.split(key)

    batch, in_channels, spatial = 2, 4, 16
    block_out_channels = (8, 16)

    x = jax.random.normal(key_x, (batch, in_channels, spatial, spatial), jnp.float32)
    raw = init_critic_params(key_p, in_channels, block_out_channels)
    params = prepare_critic_params(raw, in_channels)

    fwd = jax.jit(critic_forward)
    logits = jax.block_until_ready(fwd(params, x))

    # 16x16 -> conv_in 16x16 -> down 8x8 -> down 4x4 -> conv_out(k=4) 1x1
    assert logits.shape == (batch * 1 * 1, 1), logits.shape
    assert logits.dtype == jnp.float32
    assert bool(jnp.all(jnp.isfinite(logits)))

    # Loose check vs the f32 reference (bf16 activations/weights in the kernels).
    ref = _reference_forward(raw, x)
    scale = float(jnp.max(jnp.abs(ref)))
    err = float(jnp.max(jnp.abs(logits - ref)))
    assert err < 0.1 + 0.1 * scale, f"mismatch vs reference: {err} (scale {scale})"

    print("KERNEL_OK")
</pallas_src>

<mosaic_0001>
module attributes {stable_mosaic.version = 11 : i64} {
  func.func @kernel(%arg0: i32, %arg1: i32, %arg2: memref<1x18x18x4xbf16, #tpu.memory_space<vmem>>, %arg3: memref<9x4x128xbf16, #tpu.memory_space<vmem>>, %arg4: memref<1x128xf32, #tpu.memory_space<vmem>>, %arg5: memref<1x16x16x128xbf16, #tpu.memory_space<vmem>>) attributes {dimension_semantics = [#tpu.dimension_semantics<parallel>, #tpu.dimension_semantics<parallel>], iteration_bounds = array<i64: 2, 1>, scalar_prefetch = 0 : i64, scratch_operands = 0 : i64, tpu.core_type = #tpu.core_type<tc>, window_params = [{transform_indices = @transform_0, window_bounds = array<i64: 1, 18, 18, 4>}, {transform_indices = @transform_1, window_bounds = array<i64: 9, 4, 128>}, {transform_indices = @transform_2, window_bounds = array<i64: 1, 128>}, {transform_indices = @transform_3, window_bounds = array<i64: 1, 16, 16, 128>}]} {
    %cst = arith.constant 0.000000e+00 : f32
    %0 = vector.broadcast %cst : f32 to vector<256x128xf32>
    %c0 = arith.constant 0 : index
    %c0_0 = arith.constant 0 : index
    %c0_1 = arith.constant 0 : index
    %c0_2 = arith.constant 0 : index
    %1 = vector.load %arg2[%c0, %c0_0, %c0_1, %c0_2] : memref<1x18x18x4xbf16, #tpu.memory_space<vmem>>, vector<1x16x16x4xbf16>
    %2 = vector.shape_cast %1 : vector<1x16x16x4xbf16> to vector<16x16x4xbf16>
    %3 = vector.shape_cast %2 : vector<16x16x4xbf16> to vector<256x4xbf16>
    %c0_3 = arith.constant 0 : index
    %c0_4 = arith.constant 0 : index
    %c0_5 = arith.constant 0 : index
    %4 = vector.load %arg3[%c0_3, %c0_4, %c0_5] : memref<9x4x128xbf16, #tpu.memory_space<vmem>>, vector<1x4x128xbf16>
    %5 = vector.shape_cast %4 : vector<1x4x128xbf16> to vector<4x128xbf16>
    %cst_6 = arith.constant dense<0.000000e+00> : vector<256x128xf32>
    %6 = tpu.matmul %3, %5, %cst_6 {dimension_numbers = #tpu.dot_dimension_numbers<[1], [0], [0], [1], [0, 0, 1, 1], [], []>} : vector<256x4xbf16>, vector<4x128xbf16>, vector<256x128xf32> -> vector<256x128xf32>
    %7 = arith.addf %0, %6 : vector<256x128xf32>
    %c0_7 = arith.constant 0 : index
    %c0_8 = arith.constant 0 : index
    %c1 = arith.constant 1 : index
    %c0_9 = arith.constant 0 : index
    %8 = vector.load %arg2[%c0_7, %c0_8, %c1, %c0_9] : memref<1x18x18x4xbf16, #tpu.memory_space<vmem>>, vector<1x16x16x4xbf16>
    %9 = vector.shape_cast %8 : vector<1x16x16x4xbf16> to vector<16x16x4xbf16>
    %10 = vector.shape_cast %9 : vector<16x16x4xbf16> to vector<256x4xbf16>
    %c1_10 = arith.constant 1 : index
    %c0_11 = arith.constant 0 : index
    %c0_12 = arith.constant 0 : index
    %11 = vector.load %arg3[%c1_10, %c0_11, %c0_12] : memref<9x4x128xbf16, #tpu.memory_space<vmem>>, vector<1x4x128xbf16>
    %12 = vector.shape_cast %11 : vector<1x4x128xbf16> to vector<4x128xbf16>
    %cst_13 = arith.constant dense<0.000000e+00> : vector<256x128xf32>
    %13 = tpu.matmul %10, %12, %cst_13 {dimension_numbers = #tpu.dot_dimension_numbers<[1], [0], [0], [1], [0, 0, 1, 1], [], []>} : vector<256x4xbf16>, vector<4x128xbf16>, vector<256x128xf32> -> vector<256x128xf32>
    %14 = arith.addf %7, %13 : vector<256x128xf32>
    %c0_14 = arith.constant 0 : index
    %c0_15 = arith.constant 0 : index
    %c2 = arith.constant 2 : index
    %c0_16 = arith.constant 0 : index
    %15 = vector.load %arg2[%c0_14, %c0_15, %c2, %c0_16] : memref<1x18x18x4xbf16, #tpu.memory_space<vmem>>, vector<1x16x16x4xbf16>
    %16 = vector.shape_cast %15 : vector<1x16x16x4xbf16> to vector<16x16x4xbf16>
    %17 = vector.shape_cast %16 : vector<16x16x4xbf16> to vector<256x4xbf16>
    %c2_17 = arith.constant 2 : index
    %c0_18 = arith.constant 0 : index
    %c0_19 = arith.constant 0 : index
    %18 = vector.load %arg3[%c2_17, %c0_18, %c0_19] : memref<9x4x128xbf16, #tpu.memory_space<vmem>>, vector<1x4x128xbf16>
    %19 = vector.shape_cast %18 : vector<1x4x128xbf16> to vector<4x128xbf16>
    %cst_20 = arith.constant dense<0.000000e+00> : vector<256x128xf32>
    %20 = tpu.matmul %17, %19, %cst_20 {dimension_numbers = #tpu.dot_dimension_numbers<[1], [0], [0], [1], [0, 0, 1, 1], [], []>} : vector<256x4xbf16>, vector<4x128xbf16>, vector<256x128xf32> -> vector<256x128xf32>
    %21 = arith.addf %14, %20 : vector<256x128xf32>
    %c0_21 = arith.constant 0 : index
    %c1_22 = arith.constant 1 : index
    %c0_23 = arith.constant 0 : index
    %c0_24 = arith.constant 0 : index
    %22 = vector.load %arg2[%c0_21, %c1_22, %c0_23, %c0_24] : memref<1x18x18x4xbf16, #tpu.memory_space<vmem>>, vector<1x16x16x4xbf16>
    %23 = vector.shape_cast %22 : vector<1x16x16x4xbf16> to vector<16x16x4xbf16>
    %24 = vector.shape_cast %23 : vector<16x16x4xbf16> to vector<256x4xbf16>
    %c3 = arith.constant 3 : index
    %c0_25 = arith.constant 0 : index
    %c0_26 = arith.constant 0 : index
    %25 = vector.load %arg3[%c3, %c0_25, %c0_26] : memref<9x4x128xbf16, #tpu.memory_space<vmem>>, vector<1x4x128xbf16>
    %26 = vector.shape_cast %25 : vector<1x4x128xbf16> to vector<4x128xbf16>
    %cst_27 = arith.constant dense<0.000000e+00> : vector<256x128xf32>
    %27 = tpu.matmul %24, %26, %cst_27 {dimension_numbers = #tpu.dot_dimension_numbers<[1], [0], [0], [1], [0, 0, 1, 1], [], []>} : vector<256x4xbf16>, vector<4x128xbf16>, vector<256x128xf32> -> vector<256x128xf32>
    %28 = arith.addf %21, %27 : vector<256x128xf32>
    %c0_28 = arith.constant 0 : index
    %c1_29 = arith.constant 1 : index
    %c1_30 = arith.constant 1 : index
    %c0_31 = arith.constant 0 : index
    %29 = vector.load %arg2[%c0_28, %c1_29, %c1_30, %c0_31] : memref<1x18x18x4xbf16, #tpu.memory_space<vmem>>, vector<1x16x16x4xbf16>
    %30 = vector.shape_cast %29 : vector<1x16x16x4xbf16> to vector<16x16x4xbf16>
    %31 = vector.shape_cast %30 : vector<16x16x4xbf16> to vector<256x4xbf16>
    %c4 = arith.constant 4 : index
    %c0_32 = arith.constant 0 : index
    %c0_33 = arith.constant 0 : index
    %32 = vector.load %arg3[%c4, %c0_32, %c0_33] : memref<9x4x128xbf16, #tpu.memory_space<vmem>>, vector<1x4x128xbf16>
    %33 = vector.shape_cast %32 : vector<1x4x128xbf16> to vector<4x128xbf16>
    %cst_34 = arith.constant dense<0.000000e+00> : vector<256x128xf32>
    %34 = tpu.matmul %31, %33, %cst_34 {dimension_numbers = #tpu.dot_dimension_numbers<[1], [0], [0], [1], [0, 0, 1, 1], [], []>} : vector<256x4xbf16>, vector<4x128xbf16>, vector<256x128xf32> -> vector<256x128xf32>
    %35 = arith.addf %28, %34 : vector<256x128xf32>
    %c0_35 = arith.constant 0 : index
    %c1_36 = arith.constant 1 : index
    %c2_37 = arith.constant 2 : index
    %c0_38 = arith.constant 0 : index
    %36 = vector.load %arg2[%c0_35, %c1_36, %c2_37, %c0_38] : memref<1x18x18x4xbf16, #tpu.memory_space<vmem>>, vector<1x16x16x4xbf16>
    %37 = vector.shape_cast %36 : vector<1x16x16x4xbf16> to vector<16x16x4xbf16>
    %38 = vector.shape_cast %37 : vector<16x16x4xbf16> to vector<256x4xbf16>
    %c5 = arith.constant 5 : index
    %c0_39 = arith.constant 0 : index
    %c0_40 = arith.constant 0 : index
    %39 = vector.load %arg3[%c5, %c0_39, %c0_40] : memref<9x4x128xbf16, #tpu.memory_space<vmem>>, vector<1x4x128xbf16>
    %40 = vector.shape_cast %39 : vector<1x4x128xbf16> to vector<4x128xbf16>
    %cst_41 = arith.constant dense<0.000000e+00> : vector<256x128xf32>
    %41 = tpu.matmul %38, %40, %cst_41 {dimension_numbers = #tpu.dot_dimension_numbers<[1], [0], [0], [1], [0, 0, 1, 1], [], []>} : vector<256x4xbf16>, vector<4x128xbf16>, vector<256x128xf32> -> vector<256x128xf32>
    %42 = arith.addf %35, %41 : vector<256x128xf32>
    %c0_42 = arith.constant 0 : index
    %c2_43 = arith.constant 2 : index
    %c0_44 = arith.constant 0 : index
    %c0_45 = arith.constant 0 : index
    %43 = vector.load %arg2[%c0_42, %c2_43, %c0_44, %c0_45] : memref<1x18x18x4xbf16, #tpu.memory_space<vmem>>, vector<1x16x16x4xbf16>
    %44 = vector.shape_cast %43 : vector<1x16x16x4xbf16> to vector<16x16x4xbf16>
    %45 = vector.shape_cast %44 : vector<16x16x4xbf16> to vector<256x4xbf16>
    %c6 = arith.constant 6 : index
    %c0_46 = arith.constant 0 : index
    %c0_47 = arith.constant 0 : index
    %46 = vector.load %arg3[%c6, %c0_46, %c0_47] : memref<9x4x128xbf16, #tpu.memory_space<vmem>>, vector<1x4x128xbf16>
    %47 = vector.shape_cast %46 : vector<1x4x128xbf16> to vector<4x128xbf16>
    %cst_48 = arith.constant dense<0.000000e+00> : vector<256x128xf32>
    %48 = tpu.matmul %45, %47, %cst_48 {dimension_numbers = #tpu.dot_dimension_numbers<[1], [0], [0], [1], [0, 0, 1, 1], [], []>} : vector<256x4xbf16>, vector<4x128xbf16>, vector<256x128xf32> -> vector<256x128xf32>
    %49 = arith.addf %42, %48 : vector<256x128xf32>
    %c0_49 = arith.constant 0 : index
    %c2_50 = arith.constant 2 : index
    %c1_51 = arith.constant 1 : index
    %c0_52 = arith.constant 0 : index
    %50 = vector.load %arg2[%c0_49, %c2_50, %c1_51, %c0_52] : memref<1x18x18x4xbf16, #tpu.memory_space<vmem>>, vector<1x16x16x4xbf16>
    %51 = vector.shape_cast %50 : vector<1x16x16x4xbf16> to vector<16x16x4xbf16>
    %52 = vector.shape_cast %51 : vector<16x16x4xbf16> to vector<256x4xbf16>
    %c7 = arith.constant 7 : index
    %c0_53 = arith.constant 0 : index
    %c0_54 = arith.constant 0 : index
    %53 = vector.load %arg3[%c7, %c0_53, %c0_54] : memref<9x4x128xbf16, #tpu.memory_space<vmem>>, vector<1x4x128xbf16>
    %54 = vector.shape_cast %53 : vector<1x4x128xbf16> to vector<4x128xbf16>
    %cst_55 = arith.constant dense<0.000000e+00> : vector<256x128xf32>
    %55 = tpu.matmul %52, %54, %cst_55 {dimension_numbers = #tpu.dot_dimension_numbers<[1], [0], [0], [1], [0, 0, 1, 1], [], []>} : vector<256x4xbf16>, vector<4x128xbf16>, vector<256x128xf32> -> vector<256x128xf32>
    %56 = arith.addf %49, %55 : vector<256x128xf32>
    %c0_56 = arith.constant 0 : index
    %c2_57 = arith.constant 2 : index
    %c2_58 = arith.constant 2 : index
    %c0_59 = arith.constant 0 : index
    %57 = vector.load %arg2[%c0_56, %c2_57, %c2_58, %c0_59] : memref<1x18x18x4xbf16, #tpu.memory_space<vmem>>, vector<1x16x16x4xbf16>
    %58 = vector.shape_cast %57 : vector<1x16x16x4xbf16> to vector<16x16x4xbf16>
    %59 = vector.shape_cast %58 : vector<16x16x4xbf16> to vector<256x4xbf16>
    %c8 = arith.constant 8 : index
    %c0_60 = arith.constant 0 : index
    %c0_61 = arith.constant 0 : index
    %60 = vector.load %arg3[%c8, %c0_60, %c0_61] : memref<9x4x128xbf16, #tpu.memory_space<vmem>>, vector<1x4x128xbf16>
    %61 = vector.shape_cast %60 : vector<1x4x128xbf16> to vector<4x128xbf16>
    %cst_62 = arith.constant dense<0.000000e+00> : vector<256x128xf32>
    %62 = tpu.matmul %59, %61, %cst_62 {dimension_numbers = #tpu.dot_dimension_numbers<[1], [0], [0], [1], [0, 0, 1, 1], [], []>} : vector<256x4xbf16>, vector<4x128xbf16>, vector<256x128xf32> -> vector<256x128xf32>
    %63 = arith.addf %56, %62 : vector<256x128xf32>
    %c0_63 = arith.constant 0 : index
    %c0_64 = arith.constant 0 : index
    %64 = vector.load %arg4[%c0_63, %c0_64] : memref<1x128xf32, #tpu.memory_space<vmem>>, vector<1x128xf32>
    %65 = vector.broadcast %64 : vector<1x128xf32> to vector<256x128xf32>
    %66 = arith.addf %63, %65 : vector<256x128xf32>
    %67 = vector.shape_cast %66 : vector<256x128xf32> to vector<16x16x128xf32>
    %68 = arith.truncf %67 : vector<16x16x128xf32> to vector<16x16x128xbf16>
    %c0_65 = arith.constant 0 : index
    %c0_66 = arith.constant 0 : index
    %c0_67 = arith.constant 0 : index
    %c0_68 = arith.constant 0 : index
    %69 = vector.load %arg5[%c0_65, %c0_66, %c0_67, %c0_68] : memref<1x16x16x128xbf16, #tpu.memory_space<vmem>>, vector<1x16x16x128xbf16>
    %70 = vector.shape_cast %69 : vector<1x16x16x128xbf16> to vector<16x16x128xbf16>
    %71 = vector.shape_cast %68 : vector<16x16x128xbf16> to vector<1x16x16x128xbf16>
    tpu.vector_store %arg5[%c0_65, %c0_66, %c0_67, %c0_68], %71 {strides = array<i32>} : memref<1x16x16x128xbf16, #tpu.memory_space<vmem>>, vector<1x16x16x128xbf16>,
    return
  }
  func.func @transform_0(%arg0: i32, %arg1: i32) -> (i32, i32, i32, i32) {
    %c0_i32 = arith.constant 0 : i32
    %c0_i32_0 = arith.constant 0 : i32
    %c0_i32_1 = arith.constant 0 : i32
    %c0_i32_2 = arith.constant 0 : i32
    return %arg0, %c0_i32, %c0_i32_0, %c0_i32_1 : i32, i32, i32, i32
  }
  func.func @transform_1(%arg0: i32, %arg1: i32) -> (i32, i32, i32) {
    %c0_i32 = arith.constant 0 : i32
    %c0_i32_0 = arith.constant 0 : i32
    %c0_i32_1 = arith.constant 0 : i32
    return %c0_i32, %c0_i32_0, %arg1 : i32, i32, i32
  }
  func.func @transform_2(%arg0: i32, %arg1: i32) -> (i32, i32) {
    %c0_i32 = arith.constant 0 : i32
    %c0_i32_0 = arith.constant 0 : i32
    return %c0_i32, %arg1 : i32, i32
  }
  func.func @transform_3(%arg0: i32, %arg1: i32) -> (i32, i32, i32, i32) {
    %c0_i32 = arith.constant 0 : i32
    %c0_i32_0 = arith.constant 0 : i32
    %c0_i32_1 = arith.constant 0 : i32
    return %arg0, %c0_i32, %c0_i32_0, %arg1 : i32, i32, i32, i32
  }
}

module attributes {stable_mosaic.version = 11 : i64} {
  func.func @kernel(%arg0: i32, %arg1: i32, %arg2: memref<1x9x9x512xbf16, #tpu.memory_space<vmem>>, %arg3: memref<4x512x128xbf16, #tpu.memory_space<vmem>>, %arg4: memref<1x128xf32, #tpu.memory_space<vmem>>, %arg5: memref<1x128xf32, #tpu.memory_space<vmem>>, %arg6: memref<1x8x8x128xbf16, #tpu.memory_space<vmem>>) attributes {dimension_semantics = [#tpu.dimension_semantics<parallel>, #tpu.dimension_semantics<parallel>], iteration_bounds = array<i64: 2, 1>, scalar_prefetch = 0 : i64, scratch_operands = 0 : i64, tpu.core_type = #tpu.core_type<tc>, window_params = [{transform_indices = @transform_0, window_bounds = array<i64: 1, 9, 9, 512>}, {transform_indices = @transform_1, window_bounds = array<i64: 4, 512, 128>}, {transform_indices = @transform_2, window_bounds = array<i64: 1, 128>}, {transform_indices = @transform_3, window_bounds = array<i64: 1, 128>}, {transform_indices = @transform_4, window_bounds = array<i64: 1, 8, 8, 128>}]} {
    %cst = arith.constant 0.000000e+00 : f32
    %0 = vector.broadcast %cst : f32 to vector<64x128xf32>
    %c0 = arith.constant 0 : index
    %c0_0 = arith.constant 0 : index
    %c0_1 = arith.constant 0 : index
    %c0_2 = arith.constant 0 : index
    %1 = vector.load %arg2[%c0, %c0_0, %c0_1, %c0_2] : memref<1x9x9x512xbf16, #tpu.memory_space<vmem>>, vector<1x8x8x512xbf16>
    %2 = vector.shape_cast %1 : vector<1x8x8x512xbf16> to vector<8x8x512xbf16>
    %3 = vector.shape_cast %2 : vector<8x8x512xbf16> to vector<64x512xbf16>
    %c0_3 = arith.constant 0 : index
    %c0_4 = arith.constant 0 : index
    %c0_5 = arith.constant 0 : index
    %4 = vector.load %arg3[%c0_3, %c0_4, %c0_5] : memref<4x512x128xbf16, #tpu.memory_space<vmem>>, vector<1x512x128xbf16>
    %5 = vector.shape_cast %4 : vector<1x512x128xbf16> to vector<512x128xbf16>
    %cst_6 = arith.constant dense<0.000000e+00> : vector<64x128xf32>
    %6 = tpu.matmul %3, %5, %cst_6 {dimension_numbers = #tpu.dot_dimension_numbers<[1], [0], [0], [1], [0, 0, 1, 1], [], []>} : vector<64x512xbf16>, vector<512x128xbf16>, vector<64x128xf32> -> vector<64x128xf32>
    %7 = arith.addf %0, %6 : vector<64x128xf32>
    %c0_7 = arith.constant 0 : index
    %c0_8 = arith.constant 0 : index
    %c1 = arith.constant 1 : index
    %c0_9 = arith.constant 0 : index
    %8 = vector.load %arg2[%c0_7, %c0_8, %c1, %c0_9] : memref<1x9x9x512xbf16, #tpu.memory_space<vmem>>, vector<1x8x8x512xbf16>
    %9 = vector.shape_cast %8 : vector<1x8x8x512xbf16> to vector<8x8x512xbf16>
    %10 = vector.shape_cast %9 : vector<8x8x512xbf16> to vector<64x512xbf16>
    %c1_10 = arith.constant 1 : index
    %c0_11 = arith.constant 0 : index
    %c0_12 = arith.constant 0 : index
    %11 = vector.load %arg3[%c1_10, %c0_11, %c0_12] : memref<4x512x128xbf16, #tpu.memory_space<vmem>>, vector<1x512x128xbf16>
    %12 = vector.shape_cast %11 : vector<1x512x128xbf16> to vector<512x128xbf16>
    %cst_13 = arith.constant dense<0.000000e+00> : vector<64x128xf32>
    %13 = tpu.matmul %10, %12, %cst_13 {dimension_numbers = #tpu.dot_dimension_numbers<[1], [0], [0], [1], [0, 0, 1, 1], [], []>} : vector<64x512xbf16>, vector<512x128xbf16>, vector<64x128xf32> -> vector<64x128xf32>
    %14 = arith.addf %7, %13 : vector<64x128xf32>
    %c0_14 = arith.constant 0 : index
    %c1_15 = arith.constant 1 : index
    %c0_16 = arith.constant 0 : index
    %c0_17 = arith.constant 0 : index
    %15 = vector.load %arg2[%c0_14, %c1_15, %c0_16, %c0_17] : memref<1x9x9x512xbf16, #tpu.memory_space<vmem>>, vector<1x8x8x512xbf16>
    %16 = vector.shape_cast %15 : vector<1x8x8x512xbf16> to vector<8x8x512xbf16>
    %17 = vector.shape_cast %16 : vector<8x8x512xbf16> to vector<64x512xbf16>
    %c2 = arith.constant 2 : index
    %c0_18 = arith.constant 0 : index
    %c0_19 = arith.constant 0 : index
    %18 = vector.load %arg3[%c2, %c0_18, %c0_19] : memref<4x512x128xbf16, #tpu.memory_space<vmem>>, vector<1x512x128xbf16>
    %19 = vector.shape_cast %18 : vector<1x512x128xbf16> to vector<512x128xbf16>
    %cst_20 = arith.constant dense<0.000000e+00> : vector<64x128xf32>
    %20 = tpu.matmul %17, %19, %cst_20 {dimension_numbers = #tpu.dot_dimension_numbers<[1], [0], [0], [1], [0, 0, 1, 1], [], []>} : vector<64x512xbf16>, vector<512x128xbf16>, vector<64x128xf32> -> vector<64x128xf32>
    %21 = arith.addf %14, %20 : vector<64x128xf32>
    %c0_21 = arith.constant 0 : index
    %c1_22 = arith.constant 1 : index
    %c1_23 = arith.constant 1 : index
    %c0_24 = arith.constant 0 : index
    %22 = vector.load %arg2[%c0_21, %c1_22, %c1_23, %c0_24] : memref<1x9x9x512xbf16, #tpu.memory_space<vmem>>, vector<1x8x8x512xbf16>
    %23 = vector.shape_cast %22 : vector<1x8x8x512xbf16> to vector<8x8x512xbf16>
    %24 = vector.shape_cast %23 : vector<8x8x512xbf16> to vector<64x512xbf16>
    %c3 = arith.constant 3 : index
    %c0_25 = arith.constant 0 : index
    %c0_26 = arith.constant 0 : index
    %25 = vector.load %arg3[%c3, %c0_25, %c0_26] : memref<4x512x128xbf16, #tpu.memory_space<vmem>>, vector<1x512x128xbf16>
    %26 = vector.shape_cast %25 : vector<1x512x128xbf16> to vector<512x128xbf16>
    %cst_27 = arith.constant dense<0.000000e+00> : vector<64x128xf32>
    %27 = tpu.matmul %24, %26, %cst_27 {dimension_numbers = #tpu.dot_dimension_numbers<[1], [0], [0], [1], [0, 0, 1, 1], [], []>} : vector<64x512xbf16>, vector<512x128xbf16>, vector<64x128xf32> -> vector<64x128xf32>
    %28 = arith.addf %21, %27 : vector<64x128xf32>
    %cst_28 = arith.constant dense<0.000000e+00> : vector<128xf32>
    %29 = vector.multi_reduction <add>, %28, %cst_28 [0] : vector<64x128xf32> to vector<128xf32>
    %30 = vector.shape_cast %29 : vector<128xf32> to vector<1x128xf32>
    %cst_29 = arith.constant 1.562500e-02 : f32
    %31 = vector.broadcast %cst_29 : f32 to vector<1x128xf32>
    %32 = arith.mulf %30, %31 : vector<1x128xf32>
    %33 = vector.broadcast %32 : vector<1x128xf32> to vector<64x128xf32>
    %34 = arith.subf %28, %33 : vector<64x128xf32>
    %35 = arith.mulf %34, %34 : vector<64x128xf32>
    %cst_30 = arith.constant dense<0.000000e+00> : vector<128xf32>
    %36 = vector.multi_reduction <add>, %35, %cst_30 [0] : vector<64x128xf32> to vector<128xf32>
    %37 = vector.shape_cast %36 : vector<128xf32> to vector<1x128xf32>
    %cst_31 = arith.constant 1.562500e-02 : f32
    %38 = vector.broadcast %cst_31 : f32 to vector<1x128xf32>
    %39 = arith.mulf %37, %38 : vector<1x128xf32>
    %cst_32 = arith.constant 9.99999974E-6 : f32
    %40 = vector.broadcast %cst_32 : f32 to vector<1x128xf32>
    %41 = arith.addf %39, %40 : vector<1x128xf32>
    %42 = math.rsqrt %41 : vector<1x128xf32>
    %c0_33 = arith.constant 0 : index
    %c0_34 = arith.constant 0 : index
    %43 = vector.load %arg4[%c0_33, %c0_34] : memref<1x128xf32, #tpu.memory_space<vmem>>, vector<1x128xf32>
    %44 = arith.mulf %42, %43 : vector<1x128xf32>
    %45 = vector.broadcast %44 : vector<1x128xf32> to vector<64x128xf32>
    %46 = arith.mulf %34, %45 : vector<64x128xf32>
    %c0_35 = arith.constant 0 : index
    %c0_36 = arith.constant 0 : index
    %47 = vector.load %arg5[%c0_35, %c0_36] : memref<1x128xf32, #tpu.memory_space<vmem>>, vector<1x128xf32>
    %48 = vector.broadcast %47 : vector<1x128xf32> to vector<64x128xf32>
    %49 = arith.addf %46, %48 : vector<64x128xf32>
    %cst_37 = arith.constant 0.000000e+00 : f32
    %50 = vector.broadcast %cst_37 : f32 to vector<64x128xf32>
    %51 = arith.cmpf oge, %49, %50 : vector<64x128xf32>
    %cst_38 = arith.constant 2.000000e-01 : f32
    %52 = vector.broadcast %cst_38 : f32 to vector<64x128xf32>
    %53 = arith.mulf %52, %49 : vector<64x128xf32>
    %54 = arith.select %51, %49, %53 : vector<64x128xi1>, vector<64x128xf32>
    %55 = vector.shape_cast %54 : vector<64x128xf32> to vector<8x8x128xf32>
    %56 = arith.truncf %55 : vector<8x8x128xf32> to vector<8x8x128xbf16>
    %c0_39 = arith.constant 0 : index
    %c0_40 = arith.constant 0 : index
    %c0_41 = arith.constant 0 : index
    %c0_42 = arith.constant 0 : index
    %57 = vector.load %arg6[%c0_39, %c0_40, %c0_41, %c0_42] : memref<1x8x8x128xbf16, #tpu.memory_space<vmem>>, vector<1x8x8x128xbf16>
    %58 = vector.shape_cast %57 : vector<1x8x8x128xbf16> to vector<8x8x128xbf16>
    %59 = vector.shape_cast %56 : vector<8x8x128xbf16> to vector<1x8x8x128xbf16>
    tpu.vector_store %arg6[%c0_39, %c0_40, %c0_41, %c0_42], %59 {strides = array<i32>} : memref<1x8x8x128xbf16, #tpu.memory_space<vmem>>, vector<1x8x8x128xbf16>,
    return
  }
  func.func @transform_0(%arg0: i32, %arg1: i32) -> (i32, i32, i32, i32) {
    %c0_i32 = arith.constant 0 : i32
    %c0_i32_0 = arith.constant 0 : i32
    %c0_i32_1 = arith.constant 0 : i32
    %c0_i32_2 = arith.constant 0 : i32
    return %arg0, %c0_i32, %c0_i32_0, %c0_i32_1 : i32, i32, i32, i32
  }
  func.func @transform_1(%arg0: i32, %arg1: i32) -> (i32, i32, i32) {
    %c0_i32 = arith.constant 0 : i32
    %c0_i32_0 = arith.constant 0 : i32
    %c0_i32_1 = arith.constant 0 : i32
    return %c0_i32, %c0_i32_0, %arg1 : i32, i32, i32
  }
  func.func @transform_2(%arg0: i32, %arg1: i32) -> (i32, i32) {
    %c0_i32 = arith.constant 0 : i32
    %c0_i32_0 = arith.constant 0 : i32
    return %c0_i32, %arg1 : i32, i32
  }
  func.func @transform_3(%arg0: i32, %arg1: i32) -> (i32, i32) {
    %c0_i32 = arith.constant 0 : i32
    %c0_i32_0 = arith.constant 0 : i32
    return %c0_i32, %arg1 : i32, i32
  }
  func.func @transform_4(%arg0: i32, %arg1: i32) -> (i32, i32, i32, i32) {
    %c0_i32 = arith.constant 0 : i32
    %c0_i32_0 = arith.constant 0 : i32
    %c0_i32_1 = arith.constant 0 : i32
    return %arg0, %c0_i32, %c0_i32_0, %arg1 : i32, i32, i32, i32
  }
}

module attributes {stable_mosaic.version = 11 : i64} {
  func.func @kernel(%arg0: i32, %arg1: memref<1x4x4x128xbf16, #tpu.memory_space<vmem>>, %arg2: memref<16x128xf32, #tpu.memory_space<vmem>>, %arg3: memref<1x1xf32, #tpu.memory_space<vmem>>, %arg4: memref<1x1x1x1xf32, #tpu.memory_space<vmem>>) attributes {dimension_semantics = [#tpu.dimension_semantics<parallel>], iteration_bounds = array<i64: 2>, scalar_prefetch = 0 : i64, scratch_operands = 0 : i64, tpu.core_type = #tpu.core_type<tc>, window_params = [{transform_indices = @transform_0, window_bounds = array<i64: 1, 4, 4, 128>}, {pipeline_mode = #tpu.pipeline_mode<synchronous>, transform_indices = @transform_1, window_bounds = array<i64: 16, 128>}, {pipeline_mode = #tpu.pipeline_mode<synchronous>, transform_indices = @transform_2, window_bounds = array<i64: 1, 1>}, {transform_indices = @transform_3, window_bounds = array<i64: 1, 1, 1, 1>}]} {
    %cst = arith.constant 0.000000e+00 : f32
    %0 = vector.broadcast %cst : f32 to vector<1x128xf32>
    %c0 = arith.constant 0 : index
    %c0_0 = arith.constant 0 : index
    %c0_1 = arith.constant 0 : index
    %c0_2 = arith.constant 0 : index
    %1 = vector.load %arg1[%c0, %c0_0, %c0_1, %c0_2] : memref<1x4x4x128xbf16, #tpu.memory_space<vmem>>, vector<1x1x1x128xbf16>
    %2 = vector.shape_cast %1 : vector<1x1x1x128xbf16> to vector<1x1x128xbf16>
    %3 = vector.shape_cast %2 : vector<1x1x128xbf16> to vector<1x128xbf16>
    %c0_3 = arith.constant 0 : index
    %c0_4 = arith.constant 0 : index
    %4 = vector.load %arg2[%c0_3, %c0_4] : memref<16x128xf32, #tpu.memory_space<vmem>>, vector<1x128xf32>
    %5 = arith.extf %3 : vector<1x128xbf16> to vector<1x128xf32>
    %6 = arith.mulf %5, %4 : vector<1x128xf32>
    %7 = arith.addf %0, %6 : vector<1x128xf32>
    %c0_5 = arith.constant 0 : index
    %c0_6 = arith.constant 0 : index
    %c1 = arith.constant 1 : index
    %c0_7 = arith.constant 0 : index
    %8 = vector.load %arg1[%c0_5, %c0_6, %c1, %c0_7] : memref<1x4x4x128xbf16, #tpu.memory_space<vmem>>, vector<1x1x1x128xbf16>
    %9 = vector.shape_cast %8 : vector<1x1x1x128xbf16> to vector<1x1x128xbf16>
    %10 = vector.shape_cast %9 : vector<1x1x128xbf16> to vector<1x128xbf16>
    %c1_8 = arith.constant 1 : index
    %c0_9 = arith.constant 0 : index
    %11 = vector.load %arg2[%c1_8, %c0_9] : memref<16x128xf32, #tpu.memory_space<vmem>>, vector<1x128xf32>
    %12 = arith.extf %10 : vector<1x128xbf16> to vector<1x128xf32>
    %13 = arith.mulf %12, %11 : vector<1x128xf32>
    %14 = arith.addf %7, %13 : vector<1x128xf32>
    %c0_10 = arith.constant 0 : index
    %c0_11 = arith.constant 0 : index
    %c2 = arith.constant 2 : index
    %c0_12 = arith.constant 0 : index
    %15 = vector.load %arg1[%c0_10, %c0_11, %c2, %c0_12] : memref<1x4x4x128xbf16, #tpu.memory_space<vmem>>, vector<1x1x1x128xbf16>
    %16 = vector.shape_cast %15 : vector<1x1x1x128xbf16> to vector<1x1x128xbf16>
    %17 = vector.shape_cast %16 : vector<1x1x128xbf16> to vector<1x128xbf16>
    %c2_13 = arith.constant 2 : index
    %c0_14 = arith.constant 0 : index
    %18 = vector.load %arg2[%c2_13, %c0_14] : memref<16x128xf32, #tpu.memory_space<vmem>>, vector<1x128xf32>
    %19 = arith.extf %17 : vector<1x128xbf16> to vector<1x128xf32>
    %20 = arith.mulf %19, %18 : vector<1x128xf32>
    %21 = arith.addf %14, %20 : vector<1x128xf32>
    %c0_15 = arith.constant 0 : index
    %c0_16 = arith.constant 0 : index
    %c3 = arith.constant 3 : index
    %c0_17 = arith.constant 0 : index
    %22 = vector.load %arg1[%c0_15, %c0_16, %c3, %c0_17] : memref<1x4x4x128xbf16, #tpu.memory_space<vmem>>, vector<1x1x1x128xbf16>
    %23 = vector.shape_cast %22 : vector<1x1x1x128xbf16> to vector<1x1x128xbf16>
    %24 = vector.shape_cast %23 : vector<1x1x128xbf16> to vector<1x128xbf16>
    %c3_18 = arith.constant 3 : index
    %c0_19 = arith.constant 0 : index
    %25 = vector.load %arg2[%c3_18, %c0_19] : memref<16x128xf32, #tpu.memory_space<vmem>>, vector<1x128xf32>
    %26 = arith.extf %24 : vector<1x128xbf16> to vector<1x128xf32>
    %27 = arith.mulf %26, %25 : vector<1x128xf32>
    %28 = arith.addf %21, %27 : vector<1x128xf32>
    %c0_20 = arith.constant 0 : index
    %c1_21 = arith.constant 1 : index
    %c0_22 = arith.constant 0 : index
    %c0_23 = arith.constant 0 : index
    %29 = vector.load %arg1[%c0_20, %c1_21, %c0_22, %c0_23] : memref<1x4x4x128xbf16, #tpu.memory_space<vmem>>, vector<1x1x1x128xbf16>
    %30 = vector.shape_cast %29 : vector<1x1x1x128xbf16> to vector<1x1x128xbf16>
    %31 = vector.shape_cast %30 : vector<1x1x128xbf16> to vector<1x128xbf16>
    %c4 = arith.constant 4 : index
    %c0_24 = arith.constant 0 : index
    %32 = vector.load %arg2[%c4, %c0_24] : memref<16x128xf32, #tpu.memory_space<vmem>>, vector<1x128xf32>
    %33 = arith.extf %31 : vector<1x128xbf16> to vector<1x128xf32>
    %34 = arith.mulf %33, %32 : vector<1x128xf32>
    %35 = arith.addf %28, %34 : vector<1x128xf32>
    %c0_25 = arith.constant 0 : index
    %c1_26 = arith.constant 1 : index
    %c1_27 = arith.constant 1 : index
    %c0_28 = arith.constant 0 : index
    %36 = vector.load %arg1[%c0_25, %c1_26, %c1_27, %c0_28] : memref<1x4x4x128xbf16, #tpu.memory_space<vmem>>, vector<1x1x1x128xbf16>
    %37 = vector.shape_cast %36 : vector<1x1x1x128xbf16> to vector<1x1x128xbf16>
    %38 = vector.shape_cast %37 : vector<1x1x128xbf16> to vector<1x128xbf16>
    %c5 = arith.constant 5 : index
    %c0_29 = arith.constant 0 : index
    %39 = vector.load %arg2[%c5, %c0_29] : memref<16x128xf32, #tpu.memory_space<vmem>>, vector<1x128xf32>
    %40 = arith.extf %38 : vector<1x128xbf16> to vector<1x128xf32>
    %41 = arith.mulf %40, %39 : vector<1x128xf32>
    %42 = arith.addf %35, %41 : vector<1x128xf32>
    %c0_30 = arith.constant 0 : index
    %c1_31 = arith.constant 1 : index
    %c2_32 = arith.constant 2 : index
    %c0_33 = arith.constant 0 : index
    %43 = vector.load %arg1[%c0_30, %c1_31, %c2_32, %c0_33] : memref<1x4x4x128xbf16, #tpu.memory_space<vmem>>, vector<1x1x1x128xbf16>
    %44 = vector.shape_cast %43 : vector<1x1x1x128xbf16> to vector<1x1x128xbf16>
    %45 = vector.shape_cast %44 : vector<1x1x128xbf16> to vector<1x128xbf16>
    %c6 = arith.constant 6 : index
    %c0_34 = arith.constant 0 : index
    %46 = vector.load %arg2[%c6, %c0_34] : memref<16x128xf32, #tpu.memory_space<vmem>>, vector<1x128xf32>
    %47 = arith.extf %45 : vector<1x128xbf16> to vector<1x128xf32>
    %48 = arith.mulf %47, %46 : vector<1x128xf32>
    %49 = arith.addf %42, %48 : vector<1x128xf32>
    %c0_35 = arith.constant 0 : index
    %c1_36 = arith.constant 1 : index
    %c3_37 = arith.constant 3 : index
    %c0_38 = arith.constant 0 : index
    %50 = vector.load %arg1[%c0_35, %c1_36, %c3_37, %c0_38] : memref<1x4x4x128xbf16, #tpu.memory_space<vmem>>, vector<1x1x1x128xbf16>
    %51 = vector.shape_cast %50 : vector<1x1x1x128xbf16> to vector<1x1x128xbf16>
    %52 = vector.shape_cast %51 : vector<1x1x128xbf16> to vector<1x128xbf16>
    %c7 = arith.constant 7 : index
    %c0_39 = arith.constant 0 : index
    %53 = vector.load %arg2[%c7, %c0_39] : memref<16x128xf32, #tpu.memory_space<vmem>>, vector<1x128xf32>
    %54 = arith.extf %52 : vector<1x128xbf16> to vector<1x128xf32>
    %55 = arith.mulf %54, %53 : vector<1x128xf32>
    %56 = arith.addf %49, %55 : vector<1x128xf32>
    %c0_40 = arith.constant 0 : index
    %c2_41 = arith.constant 2 : index
    %c0_42 = arith.constant 0 : index
    %c0_43 = arith.constant 0 : index
    %57 = vector.load %arg1[%c0_40, %c2_41, %c0_42, %c0_43] : memref<1x4x4x128xbf16, #tpu.memory_space<vmem>>, vector<1x1x1x128xbf16>
    %58 = vector.shape_cast %57 : vector<1x1x1x128xbf16> to vector<1x1x128xbf16>
    %59 = vector.shape_cast %58 : vector<1x1x128xbf16> to vector<1x128xbf16>
    %c8 = arith.constant 8 : index
    %c0_44 = arith.constant 0 : index
    %60 = vector.load %arg2[%c8, %c0_44] : memref<16x128xf32, #tpu.memory_space<vmem>>, vector<1x128xf32>
    %61 = arith.extf %59 : vector<1x128xbf16> to vector<1x128xf32>
    %62 = arith.mulf %61, %60 : vector<1x128xf32>
    %63 = arith.addf %56, %62 : vector<1x128xf32>
    %c0_45 = arith.constant 0 : index
    %c2_46 = arith.constant 2 : index
    %c1_47 = arith.constant 1 : index
    %c0_48 = arith.constant 0 : index
    %64 = vector.load %arg1[%c0_45, %c2_46, %c1_47, %c0_48] : memref<1x4x4x128xbf16, #tpu.memory_space<vmem>>, vector<1x1x1x128xbf16>
    %65 = vector.shape_cast %64 : vector<1x1x1x128xbf16> to vector<1x1x128xbf16>
    %66 = vector.shape_cast %65 : vector<1x1x128xbf16> to vector<1x128xbf16>
    %c9 = arith.constant 9 : index
    %c0_49 = arith.constant 0 : index
    %67 = vector.load %arg2[%c9, %c0_49] : memref<16x128xf32, #tpu.memory_space<vmem>>, vector<1x128xf32>
    %68 = arith.extf %66 : vector<1x128xbf16> to vector<1x128xf32>
    %69 = arith.mulf %68, %67 : vector<1x128xf32>
    %70 = arith.addf %63, %69 : vector<1x128xf32>
    %c0_50 = arith.constant 0 : index
    %c2_51 = arith.constant 2 : index
    %c2_52 = arith.constant 2 : index
    %c0_53 = arith.constant 0 : index
    %71 = vector.load %arg1[%c0_50, %c2_51, %c2_52, %c0_53] : memref<1x4x4x128xbf16, #tpu.memory_space<vmem>>, vector<1x1x1x128xbf16>
    %72 = vector.shape_cast %71 : vector<1x1x1x128xbf16> to vector<1x1x128xbf16>
    %73 = vector.shape_cast %72 : vector<1x1x128xbf16> to vector<1x128xbf16>
    %c10 = arith.constant 10 : index
    %c0_54 = arith.constant 0 : index
    %74 = vector.load %arg2[%c10, %c0_54] : memref<16x128xf32, #tpu.memory_space<vmem>>, vector<1x128xf32>
    %75 = arith.extf %73 : vector<1x128xbf16> to vector<1x128xf32>
    %76 = arith.mulf %75, %74 : vector<1x128xf32>
    %77 = arith.addf %70, %76 : vector<1x128xf32>
    %c0_55 = arith.constant 0 : index
    %c2_56 = arith.constant 2 : index
    %c3_57 = arith.constant 3 : index
    %c0_58 = arith.constant 0 : index
    %78 = vector.load %arg1[%c0_55, %c2_56, %c3_57, %c0_58] : memref<1x4x4x128xbf16, #tpu.memory_space<vmem>>, vector<1x1x1x128xbf16>
    %79 = vector.shape_cast %78 : vector<1x1x1x128xbf16> to vector<1x1x128xbf16>
    %80 = vector.shape_cast %79 : vector<1x1x128xbf16> to vector<1x128xbf16>
    %c11 = arith.constant 11 : index
    %c0_59 = arith.constant 0 : index
    %81 = vector.load %arg2[%c11, %c0_59] : memref<16x128xf32, #tpu.memory_space<vmem>>, vector<1x128xf32>
    %82 = arith.extf %80 : vector<1x128xbf16> to vector<1x128xf32>
    %83 = arith.mulf %82, %81 : vector<1x128xf32>
    %84 = arith.addf %77, %83 : vector<1x128xf32>
    %c0_60 = arith.constant 0 : index
    %c3_61 = arith.constant 3 : index
    %c0_62 = arith.constant 0 : index
    %c0_63 = arith.constant 0 : index
    %85 = vector.load %arg1[%c0_60, %c3_61, %c0_62, %c0_63] : memref<1x4x4x128xbf16, #tpu.memory_space<vmem>>, vector<1x1x1x128xbf16>
    %86 = vector.shape_cast %85 : vector<1x1x1x128xbf16> to vector<1x1x128xbf16>
    %87 = vector.shape_cast %86 : vector<1x1x128xbf16> to vector<1x128xbf16>
    %c12 = arith.constant 12 : index
    %c0_64 = arith.constant 0 : index
    %88 = vector.load %arg2[%c12, %c0_64] : memref<16x128xf32, #tpu.memory_space<vmem>>, vector<1x128xf32>
    %89 = arith.extf %87 : vector<1x128xbf16> to vector<1x128xf32>
    %90 = arith.mulf %89, %88 : vector<1x128xf32>
    %91 = arith.addf %84, %90 : vector<1x128xf32>
    %c0_65 = arith.constant 0 : index
    %c3_66 = arith.constant 3 : index
    %c1_67 = arith.constant 1 : index
    %c0_68 = arith.constant 0 : index
    %92 = vector.load %arg1[%c0_65, %c3_66, %c1_67, %c0_68] : memref<1x4x4x128xbf16, #tpu.memory_space<vmem>>, vector<1x1x1x128xbf16>
    %93 = vector.shape_cast %92 : vector<1x1x1x128xbf16> to vector<1x1x128xbf16>
    %94 = vector.shape_cast %93 : vector<1x1x128xbf16> to vector<1x128xbf16>
    %c13 = arith.constant 13 : index
    %c0_69 = arith.constant 0 : index
    %95 = vector.load %arg2[%c13, %c0_69] : memref<16x128xf32, #tpu.memory_space<vmem>>, vector<1x128xf32>
    %96 = arith.extf %94 : vector<1x128xbf16> to vector<1x128xf32>
    %97 = arith.mulf %96, %95 : vector<1x128xf32>
    %98 = arith.addf %91, %97 : vector<1x128xf32>
    %c0_70 = arith.constant 0 : index
    %c3_71 = arith.constant 3 : index
    %c2_72 = arith.constant 2 : index
    %c0_73 = arith.constant 0 : index
    %99 = vector.load %arg1[%c0_70, %c3_71, %c2_72, %c0_73] : memref<1x4x4x128xbf16, #tpu.memory_space<vmem>>, vector<1x1x1x128xbf16>
    %100 = vector.shape_cast %99 : vector<1x1x1x128xbf16> to vector<1x1x128xbf16>
    %101 = vector.shape_cast %100 : vector<1x1x128xbf16> to vector<1x128xbf16>
    %c14 = arith.constant 14 : index
    %c0_74 = arith.constant 0 : index
    %102 = vector.load %arg2[%c14, %c0_74] : memref<16x128xf32, #tpu.memory_space<vmem>>, vector<1x128xf32>
    %103 = arith.extf %101 : vector<1x128xbf16> to vector<1x128xf32>
    %104 = arith.mulf %103, %102 : vector<1x128xf32>
    %105 = arith.addf %98, %104 : vector<1x128xf32>
    %c0_75 = arith.constant 0 : index
    %c3_76 = arith.constant 3 : index
    %c3_77 = arith.constant 3 : index
    %c0_78 = arith.constant 0 : index
    %106 = vector.load %arg1[%c0_75, %c3_76, %c3_77, %c0_78] : memref<1x4x4x128xbf16, #tpu.memory_space<vmem>>, vector<1x1x1x128xbf16>
    %107 = vector.shape_cast %106 : vector<1x1x1x128xbf16> to vector<1x1x128xbf16>
    %108 = vector.shape_cast %107 : vector<1x1x128xbf16> to vector<1x128xbf16>
    %c15 = arith.constant 15 : index
    %c0_79 = arith.constant 0 : index
    %109 = vector.load %arg2[%c15, %c0_79] : memref<16x128xf32, #tpu.memory_space<vmem>>, vector<1x128xf32>
    %110 = arith.extf %108 : vector<1x128xbf16> to vector<1x128xf32>
    %111 = arith.mulf %110, %109 : vector<1x128xf32>
    %112 = arith.addf %105, %111 : vector<1x128xf32>
    %cst_80 = arith.constant dense<0.000000e+00> : vector<1xf32>
    %113 = vector.multi_reduction <add>, %112, %cst_80 [1] : vector<1x128xf32> to vector<1xf32>
    %114 = vector.shape_cast %113 : vector<1xf32> to vector<1x1xf32>
    %c0_81 = arith.constant 0 : index
    %c0_82 = arith.constant 0 : index
    %115 = vector.load %arg3[%c0_81, %c0_82] : memref<1x1xf32, #tpu.memory_space<vmem>>, vector<1x1xf32>
    %116 = arith.addf %114, %115 : vector<1x1xf32>
    %117 = vector.shape_cast %116 : vector<1x1xf32> to vector<1x1x1xf32>
    %c0_83 = arith.constant 0 : index
    %c0_84 = arith.constant 0 : index
    %c0_85 = arith.constant 0 : index
    %c0_86 = arith.constant 0 : index
    %118 = vector.load %arg4[%c0_83, %c0_84, %c0_85, %c0_86] : memref<1x1x1x1xf32, #tpu.memory_space<vmem>>, vector<1x1x1x1xf32>
    %119 = vector.shape_cast %118 : vector<1x1x1x1xf32> to vector<1x1x1xf32>
    %120 = vector.shape_cast %117 : vector<1x1x1xf32> to vector<1x1x1x1xf32>
    tpu.vector_store %arg4[%c0_83, %c0_84, %c0_85, %c0_86], %120 {strides = array<i32>} : memref<1x1x1x1xf32, #tpu.memory_space<vmem>>, vector<1x1x1x1xf32>,
    return
  }
  func.func @transform_0(%arg0: i32) -> (i32, i32, i32, i32) {
    %c0_i32 = arith.constant 0 : i32
    %c0_i32_0 = arith.constant 0 : i32
    %c0_i32_1 = arith.constant 0 : i32
    %c0_i32_2 = arith.constant 0 : i32
    return %arg0, %c0_i32, %c0_i32_0, %c0_i32_1 : i32, i32, i32, i32
  }
  func.func @transform_1(%arg0: i32) -> (i32, i32) {
    %c0_i32 = arith.constant 0 : i32
    %c0_i32_0 = arith.constant 0 : i32
    %c0_i32_1 = arith.constant 0 : i32
    return %c0_i32, %c0_i32_0 : i32, i32
  }
  func.func @transform_2(%arg0: i32) -> (i32, i32) {
    %c0_i32 = arith.constant 0 : i32
    %c0_i32_0 = arith.constant 0 : i32
    %c0_i32_1 = arith.constant 0 : i32
    return %c0_i32, %c0_i32_0 : i32, i32
  }
  func.func @transform_3(%arg0: i32) -> (i32, i32, i32, i32) {
    %c0_i32 = arith.constant 0 : i32
    %c0_i32_0 = arith.constant 0 : i32
    %c0_i32_1 = arith.constant 0 : i32
    %c0_i32_2 = arith.constant 0 : i32
    return %arg0, %c0_i32, %c0_i32_0, %c0_i32_1 : i32, i32, i32, i32
  }
}

module attributes {stable_mosaic.version = 11 : i64} {
  func.func @kernel(%arg0: i32, %arg1: i32, %arg2: memref<1x5x5x512xbf16, #tpu.memory_space<vmem>>, %arg3: memref<4x512x128xbf16, #tpu.memory_space<vmem>>, %arg4: memref<1x128xf32, #tpu.memory_space<vmem>>, %arg5: memref<1x128xf32, #tpu.memory_space<vmem>>, %arg6: memref<1x4x4x128xbf16, #tpu.memory_space<vmem>>) attributes {dimension_semantics = [#tpu.dimension_semantics<parallel>, #tpu.dimension_semantics<parallel>], iteration_bounds = array<i64: 2, 1>, scalar_prefetch = 0 : i64, scratch_operands = 0 : i64, tpu.core_type = #tpu.core_type<tc>, window_params = [{transform_indices = @transform_0, window_bounds = array<i64: 1, 5, 5, 512>}, {transform_indices = @transform_1, window_bounds = array<i64: 4, 512, 128>}, {transform_indices = @transform_2, window_bounds = array<i64: 1, 128>}, {transform_indices = @transform_3, window_bounds = array<i64: 1, 128>}, {transform_indices = @transform_4, window_bounds = array<i64: 1, 4, 4, 128>}]} {
    %cst = arith.constant 0.000000e+00 : f32
    %0 = vector.broadcast %cst : f32 to vector<16x128xf32>
    %c0 = arith.constant 0 : index
    %c0_0 = arith.constant 0 : index
    %c0_1 = arith.constant 0 : index
    %c0_2 = arith.constant 0 : index
    %1 = vector.load %arg2[%c0, %c0_0, %c0_1, %c0_2] : memref<1x5x5x512xbf16, #tpu.memory_space<vmem>>, vector<1x4x4x512xbf16>
    %2 = vector.shape_cast %1 : vector<1x4x4x512xbf16> to vector<4x4x512xbf16>
    %3 = vector.shape_cast %2 : vector<4x4x512xbf16> to vector<16x512xbf16>
    %c0_3 = arith.constant 0 : index
    %c0_4 = arith.constant 0 : index
    %c0_5 = arith.constant 0 : index
    %4 = vector.load %arg3[%c0_3, %c0_4, %c0_5] : memref<4x512x128xbf16, #tpu.memory_space<vmem>>, vector<1x512x128xbf16>
    %5 = vector.shape_cast %4 : vector<1x512x128xbf16> to vector<512x128xbf16>
    %cst_6 = arith.constant dense<0.000000e+00> : vector<16x128xf32>
    %6 = tpu.matmul %3, %5, %cst_6 {dimension_numbers = #tpu.dot_dimension_numbers<[1], [0], [0], [1], [0, 0, 1, 1], [], []>} : vector<16x512xbf16>, vector<512x128xbf16>, vector<16x128xf32> -> vector<16x128xf32>
    %7 = arith.addf %0, %6 : vector<16x128xf32>
    %c0_7 = arith.constant 0 : index
    %c0_8 = arith.constant 0 : index
    %c1 = arith.constant 1 : index
    %c0_9 = arith.constant 0 : index
    %8 = vector.load %arg2[%c0_7, %c0_8, %c1, %c0_9] : memref<1x5x5x512xbf16, #tpu.memory_space<vmem>>, vector<1x4x4x512xbf16>
    %9 = vector.shape_cast %8 : vector<1x4x4x512xbf16> to vector<4x4x512xbf16>
    %10 = vector.shape_cast %9 : vector<4x4x512xbf16> to vector<16x512xbf16>
    %c1_10 = arith.constant 1 : index
    %c0_11 = arith.constant 0 : index
    %c0_12 = arith.constant 0 : index
    %11 = vector.load %arg3[%c1_10, %c0_11, %c0_12] : memref<4x512x128xbf16, #tpu.memory_space<vmem>>, vector<1x512x128xbf16>
    %12 = vector.shape_cast %11 : vector<1x512x128xbf16> to vector<512x128xbf16>
    %cst_13 = arith.constant dense<0.000000e+00> : vector<16x128xf32>
    %13 = tpu.matmul %10, %12, %cst_13 {dimension_numbers = #tpu.dot_dimension_numbers<[1], [0], [0], [1], [0, 0, 1, 1], [], []>} : vector<16x512xbf16>, vector<512x128xbf16>, vector<16x128xf32> -> vector<16x128xf32>
    %14 = arith.addf %7, %13 : vector<16x128xf32>
    %c0_14 = arith.constant 0 : index
    %c1_15 = arith.constant 1 : index
    %c0_16 = arith.constant 0 : index
    %c0_17 = arith.constant 0 : index
    %15 = vector.load %arg2[%c0_14, %c1_15, %c0_16, %c0_17] : memref<1x5x5x512xbf16, #tpu.memory_space<vmem>>, vector<1x4x4x512xbf16>
    %16 = vector.shape_cast %15 : vector<1x4x4x512xbf16> to vector<4x4x512xbf16>
    %17 = vector.shape_cast %16 : vector<4x4x512xbf16> to vector<16x512xbf16>
    %c2 = arith.constant 2 : index
    %c0_18 = arith.constant 0 : index
    %c0_19 = arith.constant 0 : index
    %18 = vector.load %arg3[%c2, %c0_18, %c0_19] : memref<4x512x128xbf16, #tpu.memory_space<vmem>>, vector<1x512x128xbf16>
    %19 = vector.shape_cast %18 : vector<1x512x128xbf16> to vector<512x128xbf16>
    %cst_20 = arith.constant dense<0.000000e+00> : vector<16x128xf32>
    %20 = tpu.matmul %17, %19, %cst_20 {dimension_numbers = #tpu.dot_dimension_numbers<[1], [0], [0], [1], [0, 0, 1, 1], [], []>} : vector<16x512xbf16>, vector<512x128xbf16>, vector<16x128xf32> -> vector<16x128xf32>
    %21 = arith.addf %14, %20 : vector<16x128xf32>
    %c0_21 = arith.constant 0 : index
    %c1_22 = arith.constant 1 : index
    %c1_23 = arith.constant 1 : index
    %c0_24 = arith.constant 0 : index
    %22 = vector.load %arg2[%c0_21, %c1_22, %c1_23, %c0_24] : memref<1x5x5x512xbf16, #tpu.memory_space<vmem>>, vector<1x4x4x512xbf16>
    %23 = vector.shape_cast %22 : vector<1x4x4x512xbf16> to vector<4x4x512xbf16>
    %24 = vector.shape_cast %23 : vector<4x4x512xbf16> to vector<16x512xbf16>
    %c3 = arith.constant 3 : index
    %c0_25 = arith.constant 0 : index
    %c0_26 = arith.constant 0 : index
    %25 = vector.load %arg3[%c3, %c0_25, %c0_26] : memref<4x512x128xbf16, #tpu.memory_space<vmem>>, vector<1x512x128xbf16>
    %26 = vector.shape_cast %25 : vector<1x512x128xbf16> to vector<512x128xbf16>
    %cst_27 = arith.constant dense<0.000000e+00> : vector<16x128xf32>
    %27 = tpu.matmul %24, %26, %cst_27 {dimension_numbers = #tpu.dot_dimension_numbers<[1], [0], [0], [1], [0, 0, 1, 1], [], []>} : vector<16x512xbf16>, vector<512x128xbf16>, vector<16x128xf32> -> vector<16x128xf32>
    %28 = arith.addf %21, %27 : vector<16x128xf32>
    %cst_28 = arith.constant dense<0.000000e+00> : vector<128xf32>
    %29 = vector.multi_reduction <add>, %28, %cst_28 [0] : vector<16x128xf32> to vector<128xf32>
    %30 = vector.shape_cast %29 : vector<128xf32> to vector<1x128xf32>
    %cst_29 = arith.constant 6.250000e-02 : f32
    %31 = vector.broadcast %cst_29 : f32 to vector<1x128xf32>
    %32 = arith.mulf %30, %31 : vector<1x128xf32>
    %33 = vector.broadcast %32 : vector<1x128xf32> to vector<16x128xf32>
    %34 = arith.subf %28, %33 : vector<16x128xf32>
    %35 = arith.mulf %34, %34 : vector<16x128xf32>
    %cst_30 = arith.constant dense<0.000000e+00> : vector<128xf32>
    %36 = vector.multi_reduction <add>, %35, %cst_30 [0] : vector<16x128xf32> to vector<128xf32>
    %37 = vector.shape_cast %36 : vector<128xf32> to vector<1x128xf32>
    %cst_31 = arith.constant 6.250000e-02 : f32
    %38 = vector.broadcast %cst_31 : f32 to vector<1x128xf32>
    %39 = arith.mulf %37, %38 : vector<1x128xf32>
    %cst_32 = arith.constant 9.99999974E-6 : f32
    %40 = vector.broadcast %cst_32 : f32 to vector<1x128xf32>
    %41 = arith.addf %39, %40 : vector<1x128xf32>
    %42 = math.rsqrt %41 : vector<1x128xf32>
    %c0_33 = arith.constant 0 : index
    %c0_34 = arith.constant 0 : index
    %43 = vector.load %arg4[%c0_33, %c0_34] : memref<1x128xf32, #tpu.memory_space<vmem>>, vector<1x128xf32>
    %44 = arith.mulf %42, %43 : vector<1x128xf32>
    %45 = vector.broadcast %44 : vector<1x128xf32> to vector<16x128xf32>
    %46 = arith.mulf %34, %45 : vector<16x128xf32>
    %c0_35 = arith.constant 0 : index
    %c0_36 = arith.constant 0 : index
    %47 = vector.load %arg5[%c0_35, %c0_36] : memref<1x128xf32, #tpu.memory_space<vmem>>, vector<1x128xf32>
    %48 = vector.broadcast %47 : vector<1x128xf32> to vector<16x128xf32>
    %49 = arith.addf %46, %48 : vector<16x128xf32>
    %cst_37 = arith.constant 0.000000e+00 : f32
    %50 = vector.broadcast %cst_37 : f32 to vector<16x128xf32>
    %51 = arith.cmpf oge, %49, %50 : vector<16x128xf32>
    %cst_38 = arith.constant 2.000000e-01 : f32
    %52 = vector.broadcast %cst_38 : f32 to vector<16x128xf32>
    %53 = arith.mulf %52, %49 : vector<16x128xf32>
    %54 = arith.select %51, %49, %53 : vector<16x128xi1>, vector<16x128xf32>
    %55 = vector.shape_cast %54 : vector<16x128xf32> to vector<4x4x128xf32>
    %56 = arith.truncf %55 : vector<4x4x128xf32> to vector<4x4x128xbf16>
    %c0_39 = arith.constant 0 : index
    %c0_40 = arith.constant 0 : index
    %c0_41 = arith.constant 0 : index
    %c0_42 = arith.constant 0 : index
    %57 = vector.load %arg6[%c0_39, %c0_40, %c0_41, %c0_42] : memref<1x4x4x128xbf16, #tpu.memory_space<vmem>>, vector<1x4x4x128xbf16>
    %58 = vector.shape_cast %57 : vector<1x4x4x128xbf16> to vector<4x4x128xbf16>
    %59 = vector.shape_cast %56 : vector<4x4x128xbf16> to vector<1x4x4x128xbf16>
    tpu.vector_store %arg6[%c0_39, %c0_40, %c0_41, %c0_42], %59 {strides = array<i32>} : memref<1x4x4x128xbf16, #tpu.memory_space<vmem>>, vector<1x4x4x128xbf16>,
    return
  }
  func.func @transform_0(%arg0: i32, %arg1: i32) -> (i32, i32, i32, i32) {
    %c0_i32 = arith.constant 0 : i32
    %c0_i32_0 = arith.constant 0 : i32
    %c0_i32_1 = arith.constant 0 : i32
    %c0_i32_2 = arith.constant 0 : i32
    return %arg0, %c0_i32, %c0_i32_0, %c0_i32_1 : i32, i32, i32, i32
  }
  func.func @transform_1(%arg0: i32, %arg1: i32) -> (i32, i32, i32) {
    %c0_i32 = arith.constant 0 : i32
    %c0_i32_0 = arith.constant 0 : i32
    %c0_i32_1 = arith.constant 0 : i32
    return %c0_i32, %c0_i32_0, %arg1 : i32, i32, i32
  }
  func.func @transform_2(%arg0: i32, %arg1: i32) -> (i32, i32) {
    %c0_i32 = arith.constant 0 : i32
    %c0_i32_0 = arith.constant 0 : i32
    return %c0_i32, %arg1 : i32, i32
  }
  func.func @transform_3(%arg0: i32, %arg1: i32) -> (i32, i32) {
    %c0_i32 = arith.constant 0 : i32
    %c0_i32_0 = arith.constant 0 : i32
    return %c0_i32, %arg1 : i32, i32
  }
  func.func @transform_4(%arg0: i32, %arg1: i32) -> (i32, i32, i32, i32) {
    %c0_i32 = arith.constant 0 : i32
    %c0_i32_0 = arith.constant 0 : i32
    %c0_i32_1 = arith.constant 0 : i32
    return %arg0, %c0_i32, %c0_i32_0, %arg1 : i32, i32, i32, i32
  }
}

</mosaic_0001>

<bundles_post_ra>
// kernel: critic_forward.4
= control target key start
LH: loop header
LB: loop body
LE: loop exit
PB: predicated region body
PF: predicated region fallthrough
CT: control target
= control target key end

     0   :  { %s5203_s12 = smov 0   ;;  %s5205_s13 = smov 0   ;;  %s6604_s0 = inlined_call_operand.vmem [shape: bf16[2,18,18,4], index: 0, kind: input, shape index: {}]   ;;  %s6605_s1 = inlined_call_operand.vmem [shape: bf16[9,4,128], index: 1, kind: input, shape index: {}]   ;;  %s6606_s2 = inlined_call_operand.vmem [shape: f32[1,128], index: 2, kind: input, shape index: {}]   ;;  %s6607_s3 = inlined_call_operand.vmem [shape: bf16[2,16,16,128], index: 3, kind: output, shape index: {}]  }
   0x1   :  { %s5207_s14 = smov 0  }
   0x2 LB: > { %s25_s15 = sadd.s32 1, %s5177_s13  ;;  %p4345_p0 = scmp.ge.s32.totalorder %s5181_s14, 1  ;;  %s5181_s14 = sphi %s5207_s14, %s13_s14   ;;  %s5177_s13 = sphi %s5205_s13, %s6621_s13   ;;  %s5173_s12 = sphi %s5203_s12, %s6620_s12  }
   0x3   : > { %p27_p1 = scmp.ge.s32.totalorder %s25_s15, 2  ;;  %p168_p2 = scmp.lt.s32.totalorder %s5181_s14, 3 }
   0x5   : > { %s6623_s15 = smov (%p27_p1, %s25_s15), 0  ;;  %p169_p3 = pnand %p4345_p0, %p168_p2 }
   0x7   : > { %172 = sbr.rel (%p169_p3) target bundleno = 759 (0x2f7), region = 32 }
   0xc   : > { %v4349_v0 = vld [vmem:[%s6605_s1 + $0x2] sm:$0x3]  ;;  %vm758_vm0 = vcmask 1041408   ;;  %p202_p4 = scmp.lt.s32.totalorder %s5173_s12, 1  ;;  %v4462_v2 = vld [vmem:[%s6605_s1 + $0x4] sm:$0x3] }
   0xd   : > { %v760_v1 = vsel %vm758_vm0, %v4349_v0, 0  ;;  %v1333_v3 = vsel %vm758_vm0, %v4462_v2, 0  ;;  %v4511_v4 = vld [vmem:[%s6605_s1 + $0x6] sm:$0x3]  ;;  %v255_v5 = vld [vmem:[%s6605_s1] sm:$0x3] }
   0xe   : > { %5079 = vmatpush.bf16.msra.mxu1 %v760_v1  ;;  %5080 = vmatpush.bf16.msra.mxu2 %v760_v1  ;;  %s6625_s12 = smov (!%p202_p4, %s5173_s12), 1  ;;  %v4640_v6 = vld [vmem:[%s6605_s1 + $0x8] sm:$0x3]  ;;  %v1620_v7 = vsel %vm758_vm0, %v4511_v4, 0  ;;  %v980_v8 = vsel %vm758_vm0, %v255_v5, 0  ;;  %vm709_vm4 = vcmask 31744  }
   0xf   : > { %5081 = vmatpush.bf16.msra.mxu3 %v760_v1  ;;  %769 = vmatpush.bf16.msra.mxu0 %v760_v1  ;;  %s5082_s26 = smul.u32 216, %s6625_s12  ;;  %v2274_v9 = vsel %vm758_vm0, %v4640_v6, 0  ;;  %vm272_vm1 = vsmask.f32 3328  ;;  %vm273_vm2 = vsmask.f32 7440 }
  0x10   : > { %vm5259_vm3 = vmor %vm272_vm1, %vm273_vm2  ;;  %vm1119_vm5 = vcmask 1042432   ;;  %vm1120_vm6 = vcmask 1046532   ;;  %s4935_s17 = sshll.u32 %s6625_s12, 7 }
  0x11   : > { %s5247_s29 = scalar_lea.vmem %s6604_s0, %s5082_s26  ;;  %vm5433_vm7 = vmor %vm1119_vm5, %vm1120_vm6  ;;  %s6333_s19 = scalar_lea.vmem %s6607_s3, %s4935_s17 }
  0x12   : > { %1342 = vmatpush.bf16.msrb.mxu2 %v1333_v3  ;;  %989 = vmatpush.bf16.msrb.mxu1 %v980_v8  ;;  %v231_v10 = vld [vmem:[%s5247_s29 + $0x30] sm:$0xf]  ;;  %v232_v11 = vld [vmem:[%s5247_s29 + $0x34] sm:$0xf]  ;;  %v260_v12 = vld [vmem:[%s5247_s29 + $0x38] sm:$0x1] }
  0x13   : > { %1629 = vmatpush.bf16.msrb.mxu3 %v1620_v7  ;;  %2283 = vmatpush.bf16.msrb.mxu0 %v2274_v9  ;;  %v372_v13 = vshrl.u32 %v231_v10, 16  ;;  %v375_v14 = vshll.u32 %v231_v10, 16  ;;  %v381_v15 = vshll.u32 %v232_v11, 16  ;;  %v385_v16 = vshrl.u32 %v232_v11, 16  ;;  %v239_v17 = vld [vmem:[%s5247_s29 + $0x60] sm:$0xf] }
  0x14   : > { %v391_v18 = vshll.u32 %v260_v12, 16  ;;  %v240_v19 = vld [vmem:[%s5247_s29 + $0x64] sm:$0xf]  ;;  %v264_v20 = vld [vmem:[%s5247_s29 + $0x68] sm:$0x1]  ;;  %v468_v21 = vshrl.u32 %v239_v17, 16 }
  0x15   : > { %v374_v22 = vrot.slane %v372_v13, 4  ;;  %v377_v23 = vrot.slane %v375_v14, 5  ;;  %v383_v24 = vrot.slane %v381_v15, 5  ;;  %v387_v25 = vrot.slane %v385_v16, 4  ;;  %v247_v26 = vld [vmem:[%s5247_s29 + $0x90] sm:$0xf] }
  0x16   : > { %v393_v27 = vrot.slane %v391_v18, 5  ;;  %v470_v28 = vrot.slane %v468_v21, 4  ;;  %v471_v29 = vshll.u32 %v239_v17, 16  ;;  %v477_v30 = vshll.u32 %v240_v19, 16  ;;  %v248_v35 = vld [vmem:[%s5247_s29 + $0x94] sm:$0xf] }
  0x17   : > { %v378_v31 = vor.u32 %v377_v23, %v374_v22  ;;  %v388_v32 = vor.u32 %v387_v25, %v383_v24  ;;  %v481_v33 = vshrl.u32 %v240_v19, 16  ;;  %v487_v34 = vshll.u32 %v264_v20, 16  ;;  %v268_v45 = vld [vmem:[%s5247_s29 + $0x98] sm:$0x1]  ;;  %v223_v61 = vld [vmem:[%s5247_s29] sm:$0xf] }
  0x18   : > { %v473_v37 = vrot.slane %v471_v29, 5  ;;  %v479_v38 = vrot.slane %v477_v30, 5  ;;  %v564_v39 = vshrl.u32 %v247_v26, 16  ;;  %v567_v47 = vshll.u32 %v247_v26, 16  ;;  %v5272_v1 = vld [vmem:[%s5247_s29 + $0x4] sm:$0xf] }
  0x19   : > { %v379_v40 = vrot.slane %v378_v31, 4  ;;  %v389_v41 = vrot.slane %v388_v32, 4  ;;  %v483_v42 = vrot.slane %v481_v33, 4  ;;  %v489_v43 = vrot.slane %v487_v34, 5  ;;  %v5275_v2 = vld [vmem:[%s5247_s29 + $0x8] sm:$0x1] }
  0x1a   : > { %v474_v44 = vor.u32 %v473_v37, %v470_v28  ;;  %v566_v46 = vrot.slane %v564_v39, 4  ;;  %v573_v48 = vshll.u32 %v248_v35, 16  ;;  %v577_v52 = vshrl.u32 %v248_v35, 16  ;;  %v233_v19 = vld [vmem:[%s5247_s29 + $0x3c] sm:$0xf] }
  0x1b   : > { %v384_v49 = vsel %vm5259_vm3, %v379_v40, %v383_v24  ;;  %v394_v50 = vsel %vm5259_vm3, %v389_v41, %v393_v27  ;;  %v484_v51 = vor.u32 %v483_v42, %v479_v38  ;;  %v569_v56 = vrot.slane %v567_v47, 5  ;;  %v5287_v20 = vld [vmem:[%s5247_s29 + $0x40] sm:$0xf]  ;;  %v5292_v25 = vld [vmem:[%s5247_s29 + $0x44] sm:$0x1] }
  0x1c   : > { %v669_v53 = vunpack.c.l.b16 %v384_v49  ;;  %v670_v54 = vunpack.c.l.b16 %v394_v50  ;;  %v475_v55 = vrot.slane %v474_v44, 4  ;;  %v575_v58 = vrot.slane %v573_v48, 5  ;;  %v241_v33 = vld [vmem:[%s5247_s29 + $0x6c] sm:$0xf]  ;;  %v265_v47 = vld [vmem:[%s5247_s29 + $0x74] sm:$0x1] }
  0x1d   : > { %v485_v57 = vrot.slane %v484_v51, 4  ;;  %v579_v59 = vrot.slane %v577_v52, 4  ;;  %v583_v60 = vshll.u32 %v268_v45, 16  ;;  %v570_v0 = vor.u32 %v569_v56, %v566_v46 }
  0x1e   : > { %v697_v62 = vpack.c.b16 %v670_v54, %v669_v53  ;;  %v480_v63 = vsel %vm5259_vm3, %v475_v55, %v479_v38  ;;  %v276_v9 = vshrl.u32 %v223_v61, 16  ;;  %v279_v10 = vshll.u32 %v223_v61, 16  ;;  %v249_v61 = vld [vmem:[%s5247_s29 + $0x9c] sm:$0xf] }
  0x1f   : > { %v490_v3 = vsel %vm5259_vm3, %v485_v57, %v489_v43  ;;  %v677_v4 = vunpack.c.l.b16 %v480_v63  ;;  %v580_v5 = vor.u32 %v579_v59, %v575_v58  ;;  %v585_v6 = vrot.slane %v583_v60, 5  ;;  %v242_v43 = vld [vmem:[%s5247_s29 + $0x70] sm:$0xf] }
  0x20   : > { %4354 = vmatmul.msk.bf16.vlgmr.msra.gmra.mxu1 %vm709_vm4, %v697_v62  ;;  %v678_v7 = vunpack.c.l.b16 %v490_v3  ;;  %v571_v8 = vrot.slane %v570_v0, 4  ;;  %v285_v12 = vshll.u32 %v5272_v1, 16  ;;  %v289_v13 = vshrl.u32 %v5272_v1, 16  ;;  %v250_v3 = vld [vmem:[%s5247_s29 + $0xa0] sm:$0xf] }
  0x21   : > { %v581_v11 = vrot.slane %v580_v5, 4  ;;  %v295_v14 = vshll.u32 %v5275_v2, 16  ;;  %v278_v17 = vrot.slane %v276_v9, 4  ;;  %v281_v18 = vrot.slane %v279_v10, 5 }
  0x22   : > { %v701_v15 = vpack.c.b16 %v678_v7, %v677_v4  ;;  %v576_v16 = vsel %vm5259_vm3, %v571_v8, %v575_v58  ;;  %v287_v23 = vrot.slane %v285_v12, 5  ;;  %v291_v24 = vrot.slane %v289_v13, 4  ;;  %v269_v8 = vld [vmem:[%s5247_s29 + $0xa4] sm:$0x1] }
  0x23   : > { %v586_v21 = vsel %vm5259_vm3, %v581_v11, %v585_v6  ;;  %v685_v22 = vunpack.c.l.b16 %v576_v16  ;;  %v282_v27 = vor.u32 %v281_v18, %v278_v17  ;;  %v297_v28 = vrot.slane %v295_v14, 5 }
  0x24   : > { %4358 = vmatmul.msk.bf16.vlgmr.msra.gmra.mxu2 %vm709_vm4, %v701_v15  ;;  %v686_v26 = vunpack.c.l.b16 %v586_v21  ;;  %v292_v29 = vor.u32 %v291_v24, %v287_v23  ;;  %v396_v30 = vshrl.u32 %v233_v19, 16  ;;  %v399_v31 = vshll.u32 %v233_v19, 16 }
  0x25   : > { %v405_v32 = vshll.u32 %v5287_v20, 16  ;;  %v283_v35 = vrot.slane %v282_v27, 4  ;;  %v409_v37 = vshrl.u32 %v5287_v20, 16  ;;  %v415_v38 = vshll.u32 %v5292_v25, 16 }
  0x26   : > { %v705_v34 = vpack.c.b16 %v686_v26, %v685_v22  ;;  %v293_v39 = vrot.slane %v292_v29, 4  ;;  %v398_v40 = vrot.slane %v396_v30, 4  ;;  %v401_v41 = vrot.slane %v399_v31, 5  ;;  %v225_v22 = vld [vmem:[%s5247_s29 + $0xc] sm:$0xf] }
  0x27   : > { %v407_v42 = vrot.slane %v405_v32, 5  ;;  %v288_v44 = vsel %vm5259_vm3, %v283_v35, %v287_v23  ;;  %v411_v45 = vrot.slane %v409_v37, 4  ;;  %v417_v46 = vrot.slane %v415_v38, 5  ;;  %v5321_v32 = vld [vmem:[%s5247_s29 + $0x14] sm:$0x1] }
  0x28   : > { %4362 = vmatmul.msk.bf16.vlgmr.msra.gmra.mxu3 %vm709_vm4, %v705_v34  ;;  %v492_v48 = vshrl.u32 %v241_v33, 16  ;;  %v298_v49 = vsel %vm5259_vm3, %v293_v39, %v297_v28  ;;  %v661_v50 = vunpack.c.l.b16 %v288_v44  ;;  %v402_v51 = vor.u32 %v401_v41, %v398_v40  ;;  %v5318_v28 = vld [vmem:[%s5247_s29 + $0x10] sm:$0xf] }
  0x29   : > { %v495_v52 = vshll.u32 %v241_v33, 16  ;;  %v662_v53 = vunpack.c.l.b16 %v298_v49  ;;  %v412_v54 = vor.u32 %v411_v45, %v407_v42  ;;  %v501_v56 = vshll.u32 %v242_v43, 16 }
  0x2a   : > { %v494_v55 = vrot.slane %v492_v48, 4  ;;  %v403_v57 = vrot.slane %v402_v51, 4  ;;  %v505_v59 = vshrl.u32 %v242_v43, 16  ;;  %v511_v60 = vshll.u32 %v265_v47, 16  ;;  %v5331_v47 = vld [vmem:[%s5247_s29 + $0x4c] sm:$0xf] }
  0x2b   : > { %v497_v58 = vrot.slane %v495_v52, 5  ;;  %v693_v62 = vpack.c.b16 %v662_v53, %v661_v50  ;;  %v413_v63 = vrot.slane %v412_v54, 4  ;;  %v503_v0 = vrot.slane %v501_v56, 5  ;;  %v5336_v56 = vld [vmem:[%s5247_s29 + $0x50] sm:$0x1] }
  0x2c   : > { %v408_v4 = vsel %vm5259_vm3, %v403_v57, %v407_v42  ;;  %v507_v6 = vrot.slane %v505_v59, 4  ;;  %v513_v7 = vrot.slane %v511_v60, 5  ;;  %v588_v11 = vshrl.u32 %v249_v61, 16  ;;  %v235_v42 = vld [vmem:[%s5247_s29 + $0x48] sm:$0xf] }
  0x2d   : > { %v498_v5 = vor.u32 %v497_v58, %v494_v55  ;;  %4350 = vmatmul.msk.bf16.vlgmr.msra.gmra.mxu0 %vm709_vm4, %v693_v62  ;;  %v418_v9 = vsel %vm5259_vm3, %v413_v63, %v417_v46  ;;  %v671_v10 = vunpack.c.l.b16 %v408_v4  ;;  %v591_v12 = vshll.u32 %v249_v61, 16 }
  0x2e   : > { %v672_v13 = vunpack.c.l.b16 %v418_v9  ;;  %v508_v15 = vor.u32 %v507_v6, %v503_v0  ;;  %v597_v16 = vshll.u32 %v250_v3, 16  ;;  %v590_v17 = vrot.slane %v588_v11, 4 }
  0x2f   : > { %v499_v14 = vrot.slane %v498_v5, 4  ;;  %v593_v18 = vrot.slane %v591_v12, 5  ;;  %v601_v19 = vshrl.u32 %v250_v3, 16  ;;  %v607_v21 = vshll.u32 %v269_v8, 16  ;;  %v243_v3 = vld [vmem:[%s5247_s29 + $0x78] sm:$0xf] }
  0x30   : > { %v698_v23 = vpack.c.b16 %v672_v13, %v671_v10  ;;  %v509_v26 = vrot.slane %v508_v15, 4  ;;  %v599_v27 = vrot.slane %v597_v16, 5  ;;  %v300_v35 = vshrl.u32 %v225_v22, 16  ;;  %v244_v8 = vld [vmem:[%s5247_s29 + $0x7c] sm:$0xf] }
  0x31   : > { %v504_v24 = vsel %vm5259_vm3, %v499_v14, %v503_v0  ;;  %v594_v30 = vor.u32 %v593_v18, %v590_v17  ;;  %v603_v31 = vrot.slane %v601_v19, 4  ;;  %v609_v34 = vrot.slane %v607_v21, 5  ;;  %v266_v16 = vld [vmem:[%s5247_s29 + $0x80] sm:$0x1] }
  0x32   : > { %v679_v29 = vunpack.c.l.b16 %v504_v24  ;;  %4355 = vmatmul.msk.bf16.gmra.mxu1 %vm709_vm4, %v698_v23  ;;  %v514_v33 = vsel %vm5259_vm3, %v509_v26, %v513_v7  ;;  %v303_v37 = vshll.u32 %v225_v22, 16  ;;  %v309_v41 = vshll.u32 %v5318_v28, 16 }
  0x33   : > { %v680_v38 = vunpack.c.l.b16 %v514_v33  ;;  %v595_v39 = vrot.slane %v594_v30, 4  ;;  %v604_v40 = vor.u32 %v603_v31, %v599_v27  ;;  %v302_v43 = vrot.slane %v300_v35, 4 }
  0x34   : > { %v305_v44 = vrot.slane %v303_v37, 5  ;;  %v313_v45 = vshrl.u32 %v5318_v28, 16  ;;  %v319_v46 = vshll.u32 %v5321_v32, 16  ;;  %v311_v51 = vrot.slane %v309_v41, 5 }
  0x35   : > { %v702_v48 = vpack.c.b16 %v680_v38, %v679_v29  ;;  %v600_v49 = vsel %vm5259_vm3, %v595_v39, %v599_v27  ;;  %v605_v50 = vrot.slane %v604_v40, 4  ;;  %v420_v58 = vshrl.u32 %v235_v42, 16  ;;  %v252_v39 = vld [vmem:[%s5247_s29 + $0xac] sm:$0xf]  ;;  %v270_v40 = vld [vmem:[%s5247_s29 + $0xb0] sm:$0x1] }
  0x36   : > { %v687_v52 = vunpack.c.l.b16 %v600_v49  ;;  %v306_v53 = vor.u32 %v305_v44, %v302_v43  ;;  %v315_v54 = vrot.slane %v313_v45, 4  ;;  %v321_v55 = vrot.slane %v319_v46, 5 }
  0x37   : > { %4359 = vmatmul.msk.bf16.gmra.mxu2 %vm709_vm4, %v702_v48  ;;  %v610_v57 = vsel %vm5259_vm3, %v605_v50, %v609_v34  ;;  %v423_v59 = vshll.u32 %v235_v42, 16  ;;  %v429_v60 = vshll.u32 %v5331_v47, 16  ;;  %v433_v0 = vshrl.u32 %v5331_v47, 16  ;;  %v251_v34 = vld [vmem:[%s5247_s29 + $0xa8] sm:$0xf] }
  0x38   : > { %v688_v61 = vunpack.c.l.b16 %v610_v57  ;;  %v307_v62 = vrot.slane %v306_v53, 4  ;;  %v316_v63 = vor.u32 %v315_v54, %v311_v51  ;;  %v422_v4 = vrot.slane %v420_v58, 4 }
  0x39   : > { %v425_v5 = vrot.slane %v423_v59, 5  ;;  %v431_v6 = vrot.slane %v429_v60, 5  ;;  %v439_v7 = vshll.u32 %v5336_v56, 16  ;;  %v435_v12 = vrot.slane %v433_v0, 4  ;;  %v227_v59 = vld [vmem:[%s5247_s29 + $0x18] sm:$0xf] }
  0x3a   : > { %v706_v9 = vpack.c.b16 %v688_v61, %v687_v52  ;;  %v312_v10 = vsel %vm5259_vm3, %v307_v62, %v311_v51  ;;  %v317_v11 = vrot.slane %v316_v63, 4  ;;  %v516_v17 = vshrl.u32 %v243_v3, 16  ;;  %v5364_v63 = vld [vmem:[%s5247_s29 + $0x1c] sm:$0xf]  ;;  %v5367_v0 = vld [vmem:[%s5247_s29 + $0x20] sm:$0x1] }
  0x3b   : > { %v663_v13 = vunpack.c.l.b16 %v312_v10  ;;  %v426_v14 = vor.u32 %v425_v5, %v422_v4  ;;  %v441_v15 = vrot.slane %v439_v7, 5  ;;  %v436_v19 = vor.u32 %v435_v12, %v431_v6 }
  0x3c   : > { %4363 = vmatmul.msk.bf16.gmra.mxu3 %vm709_vm4, %v706_v9  ;;  %v322_v18 = vsel %vm5259_vm3, %v317_v11, %v321_v55  ;;  %v519_v21 = vshll.u32 %v243_v3, 16  ;;  %v525_v22 = vshll.u32 %v244_v8, 16  ;;  %v518_v26 = vrot.slane %v516_v17, 4 }
  0x3d   : > { %v664_v23 = vunpack.c.l.b16 %v322_v18  ;;  %v427_v24 = vrot.slane %v426_v14, 4  ;;  %v529_v27 = vshrl.u32 %v244_v8, 16  ;;  %v437_v29 = vrot.slane %v436_v19, 4 }
  0x3e   : > { %v521_v30 = vrot.slane %v519_v21, 5  ;;  %v527_v31 = vrot.slane %v525_v22, 5  ;;  %v535_v33 = vshll.u32 %v266_v16, 16  ;;  %v612_v48 = vshrl.u32 %v251_v34, 16  ;;  %v5377_v21 = vld [vmem:[%s5247_s29 + $0x58] sm:$0xf] }
  0x3f   : > { %v694_v35 = vpack.c.b16 %v664_v23, %v663_v13  ;;  %v432_v37 = vsel %vm5259_vm3, %v427_v24, %v431_v6  ;;  %v531_v38 = vrot.slane %v529_v27, 4  ;;  %v442_v41 = vsel %vm5259_vm3, %v437_v29, %v441_v15  ;;  %v237_v15 = vld [vmem:[%s5247_s29 + $0x54] sm:$0xf]  ;;  %v5382_v27 = vld [vmem:[%s5247_s29 + $0x5c] sm:$0x1] }
  0x40   : > { %v673_v42 = vunpack.c.l.b16 %v432_v37  ;;  %v522_v43 = vor.u32 %v521_v30, %v518_v26  ;;  %v537_v44 = vrot.slane %v535_v33, 5  ;;  %v674_v45 = vunpack.c.l.b16 %v442_v41 }
  0x41   : > { %4351 = vmatmul.msk.bf16.gmra.mxu0 %vm709_vm4, %v694_v35  ;;  %v532_v46 = vor.u32 %v531_v38, %v527_v31  ;;  %v615_v49 = vshll.u32 %v251_v34, 16  ;;  %v621_v51 = vshll.u32 %v252_v39, 16  ;;  %v625_v52 = vshrl.u32 %v252_v39, 16  ;;  %v245_v39 = vld [vmem:[%s5247_s29 + $0x84] sm:$0xf] }
  0x42   : > { %v523_v50 = vrot.slane %v522_v43, 4  ;;  %v631_v53 = vshll.u32 %v270_v40, 16  ;;  %v699_v54 = vpack.c.b16 %v674_v45, %v673_v42  ;;  %v614_v57 = vrot.slane %v612_v48, 4 }
  0x43   : > { %v533_v55 = vrot.slane %v532_v46, 4  ;;  %v617_v58 = vrot.slane %v615_v49, 5  ;;  %v623_v61 = vrot.slane %v621_v51, 5  ;;  %v627_v62 = vrot.slane %v625_v52, 4  ;;  %v246_v49 = vld [vmem:[%s5247_s29 + $0x88] sm:$0xf] }
  0x44   : > { %v528_v60 = vsel %vm5259_vm3, %v523_v50, %v527_v31  ;;  %4356 = vmatmul.msk.bf16.gmra.mxu1 %vm709_vm4, %v699_v54  ;;  %v633_v6 = vrot.slane %v631_v53, 5  ;;  %v324_v9 = vshrl.u32 %v227_v59, 16  ;;  %v327_v10 = vshll.u32 %v227_v59, 16  ;;  %v267_v53 = vld [vmem:[%s5247_s29 + $0x8c] sm:$0x1] }
  0x45   : > { %v538_v3 = vsel %vm5259_vm3, %v533_v55, %v537_v44  ;;  %v681_v4 = vunpack.c.l.b16 %v528_v60  ;;  %v618_v5 = vor.u32 %v617_v58, %v614_v57  ;;  %v628_v8 = vor.u32 %v627_v62, %v623_v61 }
  0x46   : > { %v682_v7 = vunpack.c.l.b16 %v538_v3  ;;  %v333_v12 = vshll.u32 %v5364_v63, 16  ;;  %v337_v13 = vshrl.u32 %v5364_v63, 16  ;;  %v343_v14 = vshll.u32 %v5367_v0, 16 }
  0x47   : > { %v619_v11 = vrot.slane %v618_v5, 4  ;;  %v629_v17 = vrot.slane %v628_v8, 4  ;;  %v326_v18 = vrot.slane %v324_v9, 4  ;;  %v329_v19 = vrot.slane %v327_v10, 5  ;;  %v253_v8 = vld [vmem:[%s5247_s29 + $0xb4] sm:$0xf] }
  0x48   : > { %v703_v16 = vpack.c.b16 %v682_v7, %v681_v4  ;;  %v335_v23 = vrot.slane %v333_v12, 5  ;;  %v339_v24 = vrot.slane %v337_v13, 4  ;;  %v345_v26 = vrot.slane %v343_v14, 5  ;;  %v254_v12 = vld [vmem:[%s5247_s29 + $0xb8] sm:$0xf] }
  0x49   : > { %v624_v22 = vsel %vm5259_vm3, %v619_v11, %v623_v61  ;;  %v634_v29 = vsel %vm5259_vm3, %v629_v17, %v633_v6  ;;  %v330_v31 = vor.u32 %v329_v19, %v326_v18  ;;  %v444_v33 = vshrl.u32 %v237_v15, 16  ;;  %v271_v17 = vld [vmem:[%s5247_s29 + $0xbc] sm:$0x1] }
  0x4a   : > { %4360 = vmatmul.msk.bf16.gmra.mxu2 %vm709_vm4, %v703_v16  ;;  %v689_v30 = vunpack.c.l.b16 %v624_v22  ;;  %v690_v34 = vunpack.c.l.b16 %v634_v29  ;;  %v340_v35 = vor.u32 %v339_v24, %v335_v23  ;;  %v447_v37 = vshll.u32 %v237_v15, 16 }
  0x4b   : > { %v453_v38 = vshll.u32 %v5377_v21, 16  ;;  %v331_v40 = vrot.slane %v330_v31, 4  ;;  %v446_v41 = vrot.slane %v444_v33, 4  ;;  %v457_v42 = vshrl.u32 %v5377_v21, 16 }
  0x4c   : > { %v463_v43 = vshll.u32 %v5382_v27, 16  ;;  %v707_v44 = vpack.c.b16 %v690_v34, %v689_v30  ;;  %v341_v45 = vrot.slane %v340_v35, 4  ;;  %v449_v46 = vrot.slane %v447_v37, 5  ;;  %v229_v37 = vld [vmem:[%s5247_s29 + $0x24] sm:$0xf] }
  0x4d   : > { %v455_v48 = vrot.slane %v453_v38, 5  ;;  %v336_v50 = vsel %vm5259_vm3, %v331_v40, %v335_v23  ;;  %v459_v51 = vrot.slane %v457_v42, 4  ;;  %v540_v54 = vshrl.u32 %v245_v39, 16  ;;  %v5410_v42 = vld [vmem:[%s5247_s29 + $0x28] sm:$0xf] }
  0x4e   : > { %v465_v52 = vrot.slane %v463_v43, 5  ;;  %4364 = vmatmul.msk.bf16.gmra.mxu3 %vm709_vm4, %v707_v44  ;;  %v346_v55 = vsel %vm5259_vm3, %v341_v45, %v345_v26  ;;  %v665_v57 = vunpack.c.l.b16 %v336_v50  ;;  %v450_v58 = vor.u32 %v449_v46, %v446_v41 }
  0x4f   : > { %v543_v59 = vshll.u32 %v245_v39, 16  ;;  %v666_v60 = vunpack.c.l.b16 %v346_v55  ;;  %v460_v61 = vor.u32 %v459_v51, %v455_v48  ;;  %v542_v62 = vrot.slane %v540_v54, 4 }
  0x50   : > { %v549_v3 = vshll.u32 %v246_v49, 16  ;;  %v451_v4 = vrot.slane %v450_v58, 4  ;;  %v553_v6 = vshrl.u32 %v246_v49, 16  ;;  %v559_v7 = vshll.u32 %v267_v53, 16 }
  0x51   : > { %v545_v5 = vrot.slane %v543_v59, 5  ;;  %v695_v9 = vpack.c.b16 %v666_v60, %v665_v57  ;;  %v461_v10 = vrot.slane %v460_v61, 4  ;;  %v636_v22 = vshrl.u32 %v253_v8, 16  ;;  %v1071_v61 = vld [vmem:[%s5247_s29] sm:$0xe] }
  0x52   : > { %v551_v11 = vrot.slane %v549_v3, 5  ;;  %v456_v13 = vsel %vm5259_vm3, %v451_v4, %v455_v48  ;;  %v555_v15 = vrot.slane %v553_v6, 4  ;;  %v561_v16 = vrot.slane %v559_v7, 5  ;;  %v5414_v48 = vld [vmem:[%s5247_s29 + $0x2c] sm:$0x1] }
  0x53   : > { %v546_v14 = vor.u32 %v545_v5, %v542_v62  ;;  %4352 = vmatmul.msk.bf16.gmra.mxu0 %vm709_vm4, %v695_v9  ;;  %v466_v18 = vsel %vm5259_vm3, %v461_v10, %v465_v52  ;;  %v675_v19 = vunpack.c.l.b16 %v456_v13  ;;  %v639_v23 = vshll.u32 %v253_v8, 16  ;;  %v4592_v6 = vld [vmem:[%s5247_s29 + $0xc] sm:$0xf] }
  0x54   : > { %v676_v24 = vunpack.c.l.b16 %v466_v18  ;;  %v556_v29 = vor.u32 %v555_v15, %v551_v11  ;;  %v645_v30 = vshll.u32 %v254_v12, 16  ;;  %v638_v31 = vrot.slane %v636_v22, 4 }
  0x55   : > { %v547_v26 = vrot.slane %v546_v14, 4  ;;  %v641_v33 = vrot.slane %v639_v23, 5  ;;  %v649_v34 = vshrl.u32 %v254_v12, 16  ;;  %v655_v35 = vshll.u32 %v271_v17, 16  ;;  %v4593_v12 = vld [vmem:[%s5247_s29 + $0x10] sm:$0xf] }
  0x56   : > { %v700_v38 = vpack.c.b16 %v676_v24, %v675_v19  ;;  %v557_v40 = vrot.slane %v556_v29, 4  ;;  %v647_v41 = vrot.slane %v645_v30, 5  ;;  %v1127_v43 = vrot.slane %v5275_v2, 5 }
  0x57   : > { %v552_v39 = vsel %vm5259_vm3, %v547_v26, %v551_v11  ;;  %v642_v45 = vor.u32 %v641_v33, %v638_v31  ;;  %v651_v46 = vrot.slane %v649_v34, 4  ;;  %v657_v50 = vrot.slane %v655_v35, 5  ;;  %v4738_v11 = vld [vmem:[%s6605_s1 + $0xc] sm:$0x3] }
  0x58   : > { %v683_v44 = vunpack.c.l.b16 %v552_v39  ;;  %4357 = vmatmul.msk.bf16.gmra.mxu1 %vm709_vm4, %v700_v38  ;;  %v562_v49 = vsel %vm5259_vm3, %v557_v40, %v561_v16  ;;  %v348_v51 = vshrl.u32 %v229_v37, 16  ;;  %v351_v52 = vshll.u32 %v229_v37, 16  ;;  %v4594_v38 = vld [vmem:[%s5247_s29 + $0x14] sm:$0x1] }
  0x59   : > { %v684_v53 = vunpack.c.l.b16 %v562_v49  ;;  %v643_v54 = vrot.slane %v642_v45, 4  ;;  %v652_v55 = vor.u32 %v651_v46, %v647_v41  ;;  %v357_v2 = vshll.u32 %v5410_v42, 16  ;;  %v4867_v45 = vld [vmem:[%s6605_s1 + $0xe] sm:$0x3] }
  0x5a   : > { %v350_v57 = vrot.slane %v348_v51, 4  ;;  %v353_v58 = vrot.slane %v351_v52, 5  ;;  %v361_v59 = vshrl.u32 %v5410_v42, 16  ;;  %v367_v60 = vshll.u32 %v5414_v48, 16  ;;  %v4936_v51 = vld [vmem:[%s5247_s29] sm:$0xff] }
  0x5b   : > { %v704_v62 = vpack.c.b16 %v684_v53, %v683_v44  ;;  %v648_v3 = vsel %vm5259_vm3, %v643_v54, %v647_v41  ;;  %v653_v4 = vrot.slane %v652_v55, 4  ;;  %v359_v5 = vrot.slane %v357_v2, 5  ;;  %v4916_v2 = vld [vmem:[%s6605_s1 + $0x10] sm:$0x3] }
  0x5c   : > { %v691_v7 = vunpack.c.l.b16 %v648_v3  ;;  %v354_v8 = vor.u32 %v353_v58, %v350_v57  ;;  %v363_v9 = vrot.slane %v361_v59, 4  ;;  %v369_v10 = vrot.slane %v367_v60, 5 }
  0x5d   : > { %4361 = vmatmul.msk.bf16.gmra.mxu2 %vm709_vm4, %v704_v62  ;;  %v658_v13 = vsel %vm5259_vm3, %v653_v4, %v657_v50  ;;  %v4446_v14 = vrot.slane %v1071_v61, 9  ;;  %v1124_v19 = vrot.slane %v5272_v1, 5  ;;  %v2959_v22 = vsel %vm758_vm0, %v4738_v11, 0  ;;  %v4689_v50 = vld [vmem:[%s6605_s1 + $0xa] sm:$0x3] }
  0x5e   : > { %v692_v15 = vunpack.c.l.b16 %v658_v13  ;;  %v355_v16 = vrot.slane %v354_v8, 4  ;;  %v364_v17 = vor.u32 %v363_v9, %v359_v5  ;;  %v1792_v23 = vshrl.u32 %v4592_v6, 16  ;;  %2968 = vmatpush.bf16.msra.mxu2 %v2959_v22  ;;  %v1072_v8 = vld [vmem:[%s5247_s29 + $0xc] sm:$0xe] }
  0x5f   : > { %v1795_v24 = vshll.u32 %v4592_v6, 16  ;;  %v1801_v26 = vshll.u32 %v4593_v12, 16  ;;  %v1125_v33 = vsel %vm5433_vm7, %v4446_v14, %v1124_v19  ;;  %v1126_v35 = vrot.slane %v1124_v19, 4  ;;  %v4596_v6 = vld [vmem:[%s5247_s29 + $0x1c] sm:$0xf] }
  0x60   : > { %v708_v29 = vpack.c.b16 %v692_v15, %v691_v7  ;;  %v360_v30 = vsel %vm5259_vm3, %v355_v16, %v359_v5  ;;  %v365_v31 = vrot.slane %v364_v17, 4  ;;  %v1236_v37 = vunpack.c.l.b16 %v1125_v33  ;;  %v4595_v5 = vld [vmem:[%s5247_s29 + $0x18] sm:$0xf]  ;;  %v4952_v15 = vld [vmem:[%s5247_s29 + $0xc] sm:$0xff] }
  0x61   : > { %v667_v34 = vunpack.c.l.b16 %v360_v30  ;;  %v1794_v1 = vrot.slane %v1792_v23, 4  ;;  %v1797_v40 = vrot.slane %v1795_v24, 5  ;;  %v1803_v41 = vrot.slane %v1801_v26, 5  ;;  %v4597_v30 = vld [vmem:[%s5247_s29 + $0x20] sm:$0x1] }
  0x62   : > { %4365 = vmatmul.msk.bf16.gmra.mxu3 %vm709_vm4, %v708_v29  ;;  %v370_v39 = vsel %vm5259_vm3, %v365_v31, %v369_v10  ;;  %v1805_v44 = vshrl.u32 %v4593_v12, 16  ;;  %v1128_v49 = vsel %vm5433_vm7, %v1126_v35, %v1127_v43  ;;  %v1811_v55 = vshll.u32 %v4594_v38, 16  ;;  %v4937_v35 = vld [vmem:[%s5247_s29 + $0xc] sm:$0xff] }
  0x63   : > { %v668_v46 = vunpack.c.l.b16 %v370_v39  ;;  %v1237_v52 = vunpack.c.l.b16 %v1128_v49  ;;  %v1798_v53 = vor.u32 %v1797_v40, %v1794_v1  ;;  %v3613_v58 = vsel %vm758_vm0, %v4867_v45, 0 }
  0x64   : > { %v1807_v54 = vrot.slane %v1805_v44, 4  ;;  %3622 = vmatpush.bf16.msra.mxu3 %v3613_v58  ;;  %v2672_v60 = vsel %vm758_vm0, %v4689_v50, 0  ;;  %v4011_v61 = vsel %vm758_vm0, %v4916_v2, 0  ;;  %v1813_v4 = vrot.slane %v1811_v55, 5  ;;  %v1073_v50 = vld [vmem:[%s5247_s29 + $0x18] sm:$0xe] }
  0x65   : > { %v696_v57 = vpack.c.b16 %v668_v46, %v667_v34  ;;  %v1268_v43 = vpack.c.b16 %v1237_v52, %v1236_v37  ;;  %2681 = vmatpush.bf16.msra.mxu1 %v2672_v60  ;;  %v1799_v62 = vrot.slane %v1798_v53, 4  ;;  %4020 = vmatpush.bf16.msra.mxu0 %v4011_v61  ;;  %v1131_v7 = vrot.slane %v5318_v28, 5  ;;  %v4599_v46 = vld [vmem:[%s5247_s29 + $0x28] sm:$0xf] }
  0x66   : > { %v1808_v59 = vor.u32 %v1807_v54, %v1803_v41  ;;  %v1816_v9 = vshrl.u32 %v4595_v5, 16  ;;  %v1819_v10 = vshll.u32 %v4595_v5, 16  ;;  %v1825_v13 = vshll.u32 %v4596_v6, 16 }
  0x67   : > { %4353 = vmatmul.msk.bf16.gmra.mxu0 %vm709_vm4, %v696_v57  ;;  %v1804_v11 = vsel %vm5259_vm3, %v1799_v62, %v1803_v41  ;;  %v1829_v14 = vshrl.u32 %v4596_v6, 16  ;;  %v4447_v16 = vrot.slane %v1072_v8, 9  ;;  %v1133_v17 = vrot.slane %v1131_v7, 4  ;;  %v4598_v41 = vld [vmem:[%s5247_s29 + $0x24] sm:$0xf] }
  0x68   : > { %4430 = vmatmul.msk.bf16.vlgmr.msrb.gmra.mxu1 %vm709_vm4, %v4936_v51  ;;  %v1809_v3 = vrot.slane %v1808_v59, 4  ;;  %v1134_v28 = vrot.slane %v5321_v32, 5  ;;  %v2177_v19 = vunpack.c.l.b16 %v1804_v11  ;;  %v1818_v23 = vrot.slane %v1816_v9, 4  ;;  %v4600_v6 = vld [vmem:[%s5247_s29 + $0x2c] sm:$0x1] }
  0x69   : > { %v1821_v24 = vrot.slane %v1819_v10, 5  ;;  %v1827_v26 = vrot.slane %v1825_v13, 5  ;;  %v1831_v29 = vrot.slane %v1829_v14, 4  ;;  %v1132_v31 = vsel %vm5433_vm7, %v4447_v16, %v1131_v7 }
  0x6a   : > { %v1814_v12 = vsel %vm5259_vm3, %v1809_v3, %v1813_v4  ;;  %v1135_v33 = vsel %vm5433_vm7, %v1133_v17, %v1134_v28  ;;  %v1835_v38 = vshll.u32 %v4597_v30, 16  ;;  %v1238_v1 = vunpack.c.l.b16 %v1132_v31 }
  0x6b   : > { %v2178_v22 = vunpack.c.l.b16 %v1814_v12  ;;  %v1822_v32 = vor.u32 %v1821_v24, %v1818_v23  ;;  %v1832_v37 = vor.u32 %v1831_v29, %v1827_v26  ;;  %v1239_v39 = vunpack.c.l.b16 %v1135_v33  ;;  %v4938_v12 = vld [vmem:[%s5247_s29 + $0x18] sm:$0xff]  ;;  %v1074_v29 = vld [vmem:[%s5247_s29 + $0x24] sm:$0xe] }
  0x6c   : > { %v1837_v45 = vrot.slane %v1835_v38, 5  ;;  %v1138_v51 = vrot.slane %v5364_v63, 5  ;;  %v1840_v52 = vshrl.u32 %v4598_v41, 16  ;;  %v1843_v54 = vshll.u32 %v4598_v41, 16 }
  0x6d   : > { %4463 = vmatmul.msk.bf16.vlgmr.msrb.gmra.mxu2 %vm709_vm4, %v1268_v43  ;;  %v2209_v34 = vpack.c.b16 %v2178_v22, %v2177_v19  ;;  %v1823_v40 = vrot.slane %v1822_v32, 4  ;;  %v1833_v44 = vrot.slane %v1832_v37, 4  ;;  %v1269_v49 = vpack.c.b16 %v1239_v39, %v1238_v1  ;;  %v4953_v43 = vld [vmem:[%s5247_s29 + $0x18] sm:$0xff]  ;;  %v4601_v19 = vld [vmem:[%s5247_s29 + $0x30] sm:$0xf]  ;;  %v4954_v32 = vld [vmem:[%s5247_s29 + $0x24] sm:$0xff] }
  0x6e   : > { %v1849_v55 = vshll.u32 %v4599_v46, 16  ;;  %v1853_v2 = vshrl.u32 %v4599_v46, 16  ;;  %v4448_v58 = vrot.slane %v1073_v50, 9  ;;  %v1140_v60 = vrot.slane %v1138_v51, 4  ;;  %v4602_v22 = vld [vmem:[%s5247_s29 + $0x34] sm:$0xf] }
  0x6f   : > { %v1828_v53 = vsel %vm5259_vm3, %v1823_v40, %v1827_v26  ;;  %v1838_v57 = vsel %vm5259_vm3, %v1833_v44, %v1837_v45  ;;  %v1141_v63 = vrot.slane %v5367_v0, 5  ;;  %v1842_v61 = vrot.slane %v1840_v52, 4  ;;  %v4603_v45 = vld [vmem:[%s5247_s29 + $0x38] sm:$0x1] }
  0x70   : > { %v2179_v59 = vunpack.c.l.b16 %v1828_v53  ;;  %v2180_v62 = vunpack.c.l.b16 %v1838_v57  ;;  %v1845_v3 = vrot.slane %v1843_v54, 5  ;;  %v1851_v4 = vrot.slane %v1849_v55, 5  ;;  %v4605_v57 = vld [vmem:[%s5247_s29 + $0x40] sm:$0xf] }
  0x71   : > { %v1855_v5 = vrot.slane %v1853_v2, 4  ;;  %v1139_v7 = vsel %vm5433_vm7, %v4448_v58, %v1138_v51  ;;  %v1142_v8 = vsel %vm5433_vm7, %v1140_v60, %v1141_v63  ;;  %v1859_v0 = vshll.u32 %v4600_v6, 16  ;;  %v4604_v2 = vld [vmem:[%s5247_s29 + $0x3c] sm:$0xf]  ;;  %v5108_v63 = vld [vmem:[%s5247_s29 + $0x34] sm:$0xf] }
  0x72   : > { %4576 = vmatmul.msk.bf16.vlgmr.msrb.gmra.mxu3 %vm709_vm4, %v4952_v15  ;;  %v2210_v9 = vpack.c.b16 %v2180_v62, %v2179_v59  ;;  %v1846_v10 = vor.u32 %v1845_v3, %v1842_v61  ;;  %v1240_v13 = vunpack.c.l.b16 %v1139_v7  ;;  %v1241_v14 = vunpack.c.l.b16 %v1142_v8  ;;  %v1075_v62 = vld [vmem:[%s5247_s29 + $0x30] sm:$0xe] }
  0x73   : > { %v1856_v11 = vor.u32 %v1855_v5, %v1851_v4  ;;  %v1861_v17 = vrot.slane %v1859_v0, 5  ;;  %v1145_v23 = vrot.slane %v5410_v42, 5  ;;  %v1864_v30 = vshrl.u32 %v4601_v19, 16  ;;  %v5109_v0 = vld [vmem:[%s5247_s29 + $0x38] sm:$0x1] }
  0x74   : > { %v1847_v15 = vrot.slane %v1846_v10, 4  ;;  %v1270_v28 = vpack.c.b16 %v1241_v14, %v1240_v13  ;;  %v1867_v31 = vshll.u32 %v4601_v19, 16  ;;  %v1873_v33 = vshll.u32 %v4602_v22, 16  ;;  %v4955_v13 = vld [vmem:[%s5247_s29 + $0x30] sm:$0xff] }
  0x75   : > { %v1857_v16 = vrot.slane %v1856_v11, 4  ;;  %v1147_v37 = vrot.slane %v1145_v23, 4  ;;  %v1148_v42 = vrot.slane %v5414_v48, 5  ;;  %v1866_v39 = vrot.slane %v1864_v30, 4  ;;  %v4939_v48 = vld [vmem:[%s5247_s29 + $0x24] sm:$0xff] }
  0x76   : > { %v1852_v24 = vsel %vm5259_vm3, %v1847_v15, %v1851_v4  ;;  %v1869_v40 = vrot.slane %v1867_v31, 5  ;;  %v1875_v41 = vrot.slane %v1873_v33, 5  ;;  %v1883_v53 = vshll.u32 %v4603_v45, 16  ;;  %v4940_v33 = vld [vmem:[%s5247_s29 + $0x30] sm:$0xff] }
  0x77   : > { %4641 = vmatmul.msk.bf16.vlgmr.msrb.gmra.mxu0 %vm709_vm4, %v2209_v34  ;;  %v1862_v26 = vsel %vm5259_vm3, %v1857_v16, %v1861_v17  ;;  %v1877_v34 = vshrl.u32 %v4602_v22, 16  ;;  %v2181_v38 = vunpack.c.l.b16 %v1852_v24  ;;  %v1152_v61 = vrot.slane %v5108_v63, 5  ;;  %v4606_v22 = vld [vmem:[%s5247_s29 + $0x44] sm:$0x1] }
  0x78   : > { %4431 = vmatmul.msk.bf16.gmra.mxu1 %vm709_vm4, %v4937_v35  ;;  %v4449_v35 = vrot.slane %v1074_v29, 9  ;;  %v2182_v1 = vunpack.c.l.b16 %v1862_v26  ;;  %v1870_v51 = vor.u32 %v1869_v40, %v1866_v39  ;;  %v1885_v59 = vrot.slane %v1883_v53, 5  ;;  %v4607_v39 = vld [vmem:[%s5247_s29 + $0x48] sm:$0xf]  ;;  %v4608_v40 = vld [vmem:[%s5247_s29 + $0x4c] sm:$0xf] }
  0x79   : > { %v1879_v44 = vrot.slane %v1877_v34, 4  ;;  %v1888_v3 = vshrl.u32 %v4604_v2, 16  ;;  %v1891_v4 = vshll.u32 %v4604_v2, 16  ;;  %v1897_v5 = vshll.u32 %v4605_v57, 16  ;;  %v4956_v2 = vld [vmem:[%s5247_s29 + $0x3c] sm:$0xff] }
  0x7a   : > { %v1146_v46 = vsel %vm5433_vm7, %v4449_v35, %v1145_v23  ;;  %v2211_v50 = vpack.c.b16 %v2182_v1, %v2181_v38  ;;  %v1871_v58 = vrot.slane %v1870_v51, 4  ;;  %v1901_v6 = vshrl.u32 %v4605_v57, 16 }
  0x7b   : > { %v1880_v52 = vor.u32 %v1879_v44, %v1875_v41  ;;  %v1242_v54 = vunpack.c.l.b16 %v1146_v46  ;;  %v4450_v10 = vrot.slane %v1075_v62, 9  ;;  %v1154_v11 = vrot.slane %v1152_v61, 4 }
  0x7c   : > { %v1876_v8 = vsel %vm5259_vm3, %v1871_v58, %v1875_v41  ;;  %v1890_v14 = vrot.slane %v1888_v3, 4  ;;  %v1893_v15 = vrot.slane %v1891_v4, 5  ;;  %v1899_v16 = vrot.slane %v1897_v5, 5  ;;  %v4609_v4 = vld [vmem:[%s5247_s29 + $0x50] sm:$0x1] }
  0x7d   : > { %4464 = vmatmul.msk.bf16.gmra.mxu2 %vm709_vm4, %v1269_v49  ;;  %v1149_v49 = vsel %vm5433_vm7, %v1147_v37, %v1148_v42  ;;  %v1903_v17 = vrot.slane %v1901_v6, 4  ;;  %v1153_v23 = vsel %vm5433_vm7, %v4450_v10, %v1152_v61  ;;  %v1907_v30 = vshll.u32 %v4606_v22, 16 }
  0x7e   : > { %v1243_v55 = vunpack.c.l.b16 %v1149_v49  ;;  %v1894_v26 = vor.u32 %v1893_v15, %v1890_v14  ;;  %v1912_v51 = vshrl.u32 %v4607_v39, 16  ;;  %v1921_v53 = vshll.u32 %v4608_v40, 16 }
  0x7f   : > { %v1904_v29 = vor.u32 %v1903_v17, %v1899_v16  ;;  %v1909_v1 = vrot.slane %v1907_v30, 5 }
  0x80   : > { %v1271_v60 = vpack.c.b16 %v1243_v55, %v1242_v54  ;;  %v1895_v42 = vrot.slane %v1894_v26, 4  ;;  %v1925_v54 = vshrl.u32 %v4608_v40, 16  ;;  %v1923_v62 = vrot.slane %v1921_v53, 5 }
  0x81   : > { %v1905_v38 = vrot.slane %v1904_v29, 4  ;;  %v1166_v26 = vrot.slane %v5331_v47, 5 }
  0x82   : > { %4577 = vmatmul.msk.bf16.gmra.mxu3 %vm709_vm4, %v4953_v43  ;;  %v1881_v43 = vrot.slane %v1880_v52, 4  ;;  %v1900_v45 = vsel %vm5259_vm3, %v1895_v42, %v1899_v16  ;;  %v1915_v52 = vshll.u32 %v4607_v39, 16  ;;  %v1927_v3 = vrot.slane %v1925_v54, 4  ;;  %v4612_v54 = vld [vmem:[%s5247_s29 + $0x5c] sm:$0x1] }
  0x83   : > { %v1910_v46 = vsel %vm5259_vm3, %v1905_v38, %v1909_v1  ;;  %v2185_v55 = vunpack.c.l.b16 %v1900_v45  ;;  %v4957_v1 = vld [vmem:[%s5247_s29 + $0x48] sm:$0xff]  ;;  %v1168_v40 = vrot.slane %v1166_v26, 4 }
  0x84   : > { %v2186_v57 = vunpack.c.l.b16 %v1910_v46  ;;  %v1917_v61 = vrot.slane %v1915_v52, 5  ;;  %v1928_v10 = vor.u32 %v1927_v3, %v1923_v62 }
  0x86   : > { %v1929_v16 = vrot.slane %v1928_v10, 4 }
  0x87   : > { %4642 = vmatmul.msk.bf16.gmra.mxu0 %vm709_vm4, %v2210_v9  ;;  %v1886_v9 = vsel %vm5259_vm3, %v1881_v43, %v1885_v59 }
  0x88   : > { %4432 = vmatmul.msk.bf16.gmra.mxu1 %vm709_vm4, %v4938_v12  ;;  %v1155_v12 = vrot.slane %v5109_v0, 5  ;;  %v2184_v19 = vunpack.c.l.b16 %v1886_v9 }
  0x8a   : > { %v1156_v24 = vsel %vm5433_vm7, %v1154_v11, %v1155_v12  ;;  %v1931_v11 = vshll.u32 %v4609_v4, 16  ;;  %v4941_v12 = vld [vmem:[%s5247_s29 + $0x3c] sm:$0xff] }
  0x8b   : > { %v1245_v35 = vunpack.c.l.b16 %v1156_v24  ;;  %v4611_v24 = vld [vmem:[%s5247_s29 + $0x58] sm:$0xf]  ;;  %v4613_v4 = vld [vmem:[%s5247_s29 + $0x60] sm:$0xf] }
  0x8c   : > { %v1933_v17 = vrot.slane %v1931_v11, 5  ;;  %v1949_v42 = vshrl.u32 %v4611_v24, 16 }
  0x8d   : > { %4465 = vmatmul.msk.bf16.gmra.mxu2 %vm709_vm4, %v1270_v28  ;;  %v2183_v28 = vunpack.c.l.b16 %v1876_v8  ;;  %v2213_v8 = vpack.c.b16 %v2186_v57, %v2185_v55 }
  0x8e   : > { %v1934_v30 = vsel %vm5259_vm3, %v1929_v16, %v1933_v17  ;;  %v1951_v52 = vrot.slane %v1949_v42, 4 }
  0x8f   : > { %v2212_v31 = vpack.c.b16 %v2184_v19, %v2183_v28  ;;  %v2188_v46 = vunpack.c.l.b16 %v1934_v30 }
  0x92   : > { %4578 = vmatmul.msk.bf16.gmra.mxu3 %vm709_vm4, %v4954_v32  ;;  %v1244_v32 = vunpack.c.l.b16 %v1153_v23  ;;  %v4610_v23 = vld [vmem:[%s5247_s29 + $0x54] sm:$0xf] }
  0x94   : > { %v1272_v44 = vpack.c.b16 %v1245_v35, %v1244_v32  ;;  %v1939_v32 = vshll.u32 %v4610_v23, 16  ;;  %v1945_v35 = vshll.u32 %v4611_v24, 16 }
  0x97   : > { %4643 = vmatmul.msk.bf16.gmra.mxu0 %vm709_vm4, %v2211_v50  ;;  %v1159_v50 = vrot.slane %v5287_v20, 5  ;;  %v1914_v20 = vrot.slane %v1912_v51, 4  ;;  %v1947_v51 = vrot.slane %v1945_v35, 5  ;;  %v1176_v35 = vrot.slane %v5382_v27, 5 }
  0x98   : > { %4433 = vmatmul.msk.bf16.gmra.mxu1 %vm709_vm4, %v4939_v48  ;;  %v1076_v48 = vld [vmem:[%s5247_s29 + $0x3c] sm:$0xe] }
  0x99   : > { %v4451_v43 = vrot.slane %v1076_v48, 9  ;;  %v1161_v59 = vrot.slane %v1159_v50, 4  ;;  %v1941_v48 = vrot.slane %v1939_v32, 5 }
  0x9b   : > { %v1160_v5 = vsel %vm5433_vm7, %v4451_v43, %v1159_v50  ;;  %v4942_v43 = vld [vmem:[%s5247_s29 + $0x48] sm:$0xff] }
  0x9d   : > { %v5528_v7 = vpop.f32.mrf.mxu1  ;;  %4466 = vmatmul.msk.bf16.gmra.mxu2 %vm709_vm4, %v1271_v60  ;;  %v1162_v60 = vrot.slane %v5292_v25, 5  ;;  %v1918_v25 = vor.u32 %v1917_v61, %v1914_v20  ;;  %v1955_v20 = vshll.u32 %v4612_v54, 16  ;;  %v4943_v54 = vld [vmem:[%s5247_s29 + $0x54] sm:$0xff] }
  0x9f   : > { %v1163_v6 = vsel %vm5433_vm7, %v1161_v59, %v1162_v60  ;;  %v1919_v15 = vrot.slane %v1918_v25, 4  ;;  %v1952_v60 = vor.u32 %v1951_v52, %v1947_v51  ;;  %v1957_v10 = vrot.slane %v1955_v20, 5 }
  0xa0   : > { %v1247_v14 = vunpack.c.l.b16 %v1163_v6 }
  0xa1   : > { %v1924_v29 = vsel %vm5259_vm3, %v1919_v15, %v1923_v62  ;;  %v1953_v25 = vrot.slane %v1952_v60, 4  ;;  %v1173_v15 = vrot.slane %v5377_v21, 5 }
  0xa2   : > { %4579 = vmatmul.msk.bf16.gmra.mxu3 %vm709_vm4, %v4955_v13  ;;  %v1246_v13 = vunpack.c.l.b16 %v1160_v5  ;;  %v2187_v45 = vunpack.c.l.b16 %v1924_v29  ;;  %v4614_v5 = vld [vmem:[%s5247_s29 + $0x64] sm:$0xf] }
  0xa3   : > { %v1973_v16 = vshrl.u32 %v4614_v5, 16  ;;  %v1958_v24 = vsel %vm5259_vm3, %v1953_v25, %v1957_v10  ;;  %v1175_v32 = vrot.slane %v1173_v15, 4  ;;  %v5110_v10 = vld [vmem:[%s5247_s29 + $0x64] sm:$0xf] }
  0xa4   : > { %v1273_v19 = vpack.c.b16 %v1247_v14, %v1246_v13  ;;  %v2214_v57 = vpack.c.b16 %v2188_v46, %v2187_v45  ;;  %v1963_v13 = vshll.u32 %v4613_v4, 16  ;;  %v1969_v14 = vshll.u32 %v4614_v5, 16 }
  0xa5   : > { %v5544_v34 = vpop.f32.mrf.mxu1  ;;  %v1975_v42 = vrot.slane %v1973_v16, 4 }
  0xa6   : > { %v1965_v30 = vrot.slane %v1963_v13, 5  ;;  %v1079_v13 = vld [vmem:[%s5247_s29 + $0x60] sm:$0xe] }
  0xa7   : > { %v5546_v37 = vpop.f32.mrf.mxu2  ;;  %4644 = vmatmul.msk.bf16.gmra.mxu0 %vm709_vm4, %v2212_v31  ;;  %v1077_v31 = vld [vmem:[%s5247_s29 + $0x48] sm:$0xe] }
  0xa8   : > { %4434 = vmatmul.msk.bf16.gmra.mxu1 %vm709_vm4, %v4940_v33  ;;  %v1936_v33 = vshrl.u32 %v4610_v23, 16  ;;  %v4452_v47 = vrot.slane %v1077_v31, 9  ;;  %v1971_v31 = vrot.slane %v1969_v14, 5 }
  0xaa   : > { %v5552_v41 = vpop.f32.mrf.mxu0  ;;  %v1938_v50 = vrot.slane %v1936_v33, 4  ;;  %v4958_v33 = vld [vmem:[%s5247_s29 + $0x54] sm:$0xff]  ;;  %v1976_v27 = vor.u32 %v1975_v42, %v1971_v31 }
  0xab   : > { %v5558_v49 = vpop.f32.mrf.mxu3 }
  0xac   : > { %v1942_v59 = vor.u32 %v1941_v48, %v1938_v50  ;;  %v1177_v48 = vsel %vm5433_vm7, %v1175_v32, %v1176_v35  ;;  %v1977_v60 = vrot.slane %v1976_v27, 4 }
  0xad   : > { %4467 = vmatmul.msk.bf16.gmra.mxu2 %vm709_vm4, %v1272_v44  ;;  %v1169_v44 = vrot.slane %v5336_v56, 5 }
  0xaf   : > { %v5564_v58 = vpop.f32.mrf.mxu1  ;;  %v5567_v63 = vpop.f32.mrf.mxu2  ;;  %v1170_v56 = vsel %vm5433_vm7, %v1168_v40, %v1169_v44  ;;  %v4615_v40 = vld [vmem:[%s5247_s29 + $0x68] sm:$0x1] }
  0xb0   : > { %v1249_v62 = vunpack.c.l.b16 %v1170_v56 }
  0xb2   : > { %4580 = vmatmul.msk.bf16.gmra.mxu3 %vm709_vm4, %v4956_v2  ;;  %v5575_v9 = vpop.f32.mrf.mxu0  ;;  %v1167_v2 = vsel %vm5433_vm7, %v4452_v47, %v1166_v26  ;;  %v2190_v47 = vunpack.c.l.b16 %v1958_v24 }
  0xb3   : > { %v5577_v0 = vpop.f32.mrf.mxu3  ;;  %v1248_v61 = vunpack.c.l.b16 %v1167_v2 }
  0xb5   : > { %v1274_v11 = vpack.c.b16 %v1249_v62, %v1248_v61  ;;  %v4616_v61 = vld [vmem:[%s5247_s29 + $0x6c] sm:$0xf]  ;;  %v4617_v62 = vld [vmem:[%s5247_s29 + $0x70] sm:$0xf] }
  0xb6   : > { %v1984_v14 = vshrl.u32 %v4616_v61, 16  ;;  %v1993_v16 = vshll.u32 %v4617_v62, 16 }
  0xb7   : > { %4645 = vmatmul.msk.bf16.gmra.mxu0 %vm709_vm4, %v2213_v8  ;;  %v5581_v28 = vpop.f32.mrf.mxu1  ;;  %v1943_v8 = vrot.slane %v1942_v59, 4 }
  0xb8   : > { %4435 = vmatmul.msk.bf16.gmra.mxu1 %vm709_vm4, %v4941_v12  ;;  %v1960_v12 = vshrl.u32 %v4613_v4, 16  ;;  %v1986_v35 = vrot.slane %v1984_v14, 4  ;;  %v4620_v14 = vld [vmem:[%s5247_s29 + $0x7c] sm:$0xf] }
  0xb9   : > { %v1948_v23 = vsel %vm5259_vm3, %v1943_v8, %v1947_v51  ;;  %v1979_v51 = vshll.u32 %v4615_v40, 16 }
  0xba   : > { %v5584_v22 = vpop.f32.mrf.mxu2  ;;  %v1962_v29 = vrot.slane %v1960_v12, 4 }
  0xbb   : > { %v1981_v20 = vrot.slane %v1979_v51, 5 }
  0xbc   : > { %v1966_v46 = vor.u32 %v1965_v30, %v1962_v29  ;;  %v4959_v30 = vld [vmem:[%s5247_s29 + $0x60] sm:$0xff] }
  0xbd   : > { %4468 = vmatmul.msk.bf16.gmra.mxu2 %vm709_vm4, %v1273_v19  ;;  %v1078_v19 = vld [vmem:[%s5247_s29 + $0x54] sm:$0xe]  ;;  %v1982_v25 = vsel %vm5259_vm3, %v1977_v60, %v1981_v20 }
  0xbe   : > { %v5594_v38 = vpop.f32.mrf.mxu0  ;;  %v4453_v21 = vrot.slane %v1078_v19, 9  ;;  %v1967_v59 = vrot.slane %v1966_v46, 4  ;;  %v1997_v19 = vshrl.u32 %v4617_v62, 16  ;;  %v4618_v46 = vld [vmem:[%s5247_s29 + $0x74] sm:$0x1] }
  0xbf   : > { %v5598_v39 = vpop.f32.mrf.mxu3 }
  0xc0   : > { %v1174_v50 = vsel %vm5433_vm7, %v4453_v21, %v1173_v15  ;;  %v1972_v8 = vsel %vm5259_vm3, %v1967_v59, %v1971_v31  ;;  %v1987_v15 = vshll.u32 %v4616_v61, 16  ;;  %v4454_v21 = vrot.slane %v1079_v13, 9  ;;  %v4619_v13 = vld [vmem:[%s5247_s29 + $0x78] sm:$0xf] }
  0xc1   : > { %v5601_v53 = vpop.f32.mrf.mxu1  ;;  %v1250_v56 = vunpack.c.l.b16 %v1174_v50  ;;  %v2191_v31 = vunpack.c.l.b16 %v1972_v8 }
  0xc2   : > { %4581 = vmatmul.msk.bf16.gmra.mxu3 %vm709_vm4, %v4957_v1  ;;  %v5605_v55 = vpop.f32.mrf.mxu2  ;;  %v2189_v1 = vunpack.c.l.b16 %v1948_v23  ;;  %v5111_v23 = vld [vmem:[%s5247_s29 + $0x68] sm:$0x1]  ;;  %v1989_v42 = vrot.slane %v1987_v15, 5  ;;  %v5112_v15 = vld [vmem:[%s5247_s29 + $0x70] sm:$0xf] }
  0xc3   : > { %v1183_v24 = vrot.slane %v5111_v23, 5  ;;  %v1080_v23 = vld [vmem:[%s5247_s29 + $0x6c] sm:$0xe] }
  0xc4   : > { %v2215_v52 = vpack.c.b16 %v2190_v47, %v2189_v1  ;;  %v1995_v1 = vrot.slane %v1993_v16, 5  ;;  %v1999_v47 = vrot.slane %v1997_v19, 4  ;;  %v1990_v51 = vor.u32 %v1989_v42, %v1986_v35  ;;  %v5113_v42 = vld [vmem:[%s5247_s29 + $0x74] sm:$0x1] }
  0xc5   : > { %v1187_v16 = vrot.slane %v5112_v15, 5 }
  0xc6   : > { %v5612_v3 = vpop.f32.mrf.mxu0 }
  0xc7   : > { %4646 = vmatmul.msk.bf16.gmra.mxu0 %vm709_vm4, %v2214_v57  ;;  %v5617_v6 = vpop.f32.mrf.mxu3  ;;  %v1251_v57 = vunpack.c.l.b16 %v1177_v48 }
  0xc8   : > { %4436 = vmatmul.msk.bf16.gmra.mxu1 %vm709_vm4, %v4942_v43 }
  0xc9   : > { %v5621_v17 = vpop.f32.mrf.mxu1  ;;  %v1275_v4 = vpack.c.b16 %v1251_v57, %v1250_v56  ;;  %v4944_v57 = vld [vmem:[%s5247_s29 + $0x60] sm:$0xff] }
  0xcd   : > { %v5628_v26 = vpop.f32.mrf.mxu2  ;;  %4469 = vmatmul.msk.bf16.gmra.mxu2 %vm709_vm4, %v1274_v11  ;;  %v1180_v11 = vrot.slane %v5110_v10, 5 }
  0xcf   : > { %v1182_v32 = vrot.slane %v1180_v11, 4  ;;  %v1181_v50 = vsel %vm5433_vm7, %v4454_v21, %v1180_v11  ;;  %v2021_v21 = vshrl.u32 %v4620_v14, 16 }
  0xd0   : > { %v5634_v44 = vpop.f32.mrf.mxu0  ;;  %v1252_v20 = vunpack.c.l.b16 %v1181_v50  ;;  %v4455_v50 = vrot.slane %v1080_v23, 9 }
  0xd1   : > { %v5636_v45 = vpop.f32.mrf.mxu3  ;;  %v1184_v48 = vsel %vm5433_vm7, %v1182_v32, %v1183_v24 }
  0xd2   : > { %4582 = vmatmul.msk.bf16.gmra.mxu3 %vm709_vm4, %v4958_v33  ;;  %v2192_v33 = vunpack.c.l.b16 %v1982_v25  ;;  %v1253_v61 = vunpack.c.l.b16 %v1184_v48  ;;  %v1189_v48 = vrot.slane %v1187_v16, 4 }
  0xd4   : > { %v2216_v27 = vpack.c.b16 %v2192_v33, %v2191_v31  ;;  %v1276_v11 = vpack.c.b16 %v1253_v61, %v1252_v20  ;;  %v2011_v31 = vshll.u32 %v4619_v13, 16  ;;  %v2017_v33 = vshll.u32 %v4620_v14, 16 }
  0xd5   : > { %v5644_v2 = vpop.f32.mrf.mxu1  ;;  %v5646_v43 = vpop.f32.mrf.mxu2  ;;  %v2023_v20 = vrot.slane %v2021_v21, 4 }
  0xd7   : > { %4647 = vmatmul.msk.bf16.gmra.mxu0 %vm709_vm4, %v2215_v52  ;;  %v2000_v52 = vor.u32 %v1999_v47, %v1995_v1  ;;  %v1190_v47 = vrot.slane %v5113_v42, 5 }
  0xd8   : > { %4437 = vmatmul.msk.bf16.gmra.mxu1 %vm709_vm4, %v4943_v54  ;;  %v5652_v5 = vpop.f32.mrf.mxu0  ;;  %v2003_v54 = vshll.u32 %v4618_v46, 16  ;;  %v4960_v46 = vld [vmem:[%s5247_s29 + $0x6c] sm:$0xff] }
  0xd9   : > { %v5659_v12 = vpop.f32.mrf.mxu3  ;;  %v2001_v8 = vrot.slane %v2000_v52, 4 }
  0xda   : > { %v2005_v25 = vrot.slane %v2003_v54, 5 }
  0xdd   : > { %4470 = vmatmul.msk.bf16.gmra.mxu2 %vm709_vm4, %v1275_v4  ;;  %v5664_v29 = vpop.f32.mrf.mxu1  ;;  %v1991_v4 = vrot.slane %v1990_v51, 4 }
  0xdf   : > { %v1996_v19 = vsel %vm5259_vm3, %v1991_v4, %v1995_v1  ;;  %v4621_v4 = vld [vmem:[%s5247_s29 + $0x80] sm:$0x1] }
  0xe0   : > { %v5667_v40 = vpop.f32.mrf.mxu2 }
  0xe2   : > { %4583 = vmatmul.msk.bf16.gmra.mxu3 %vm709_vm4, %v4959_v30  ;;  %v2008_v30 = vshrl.u32 %v4619_v13, 16  ;;  %v4945_v13 = vld [vmem:[%s5247_s29 + $0x6c] sm:$0xff] }
  0xe4   : > { %v5675_v56 = vpop.f32.mrf.mxu0  ;;  %v2010_v54 = vrot.slane %v2008_v30, 4 }
  0xe5   : > { %v5678_v59 = vpop.f32.mrf.mxu3  ;;  %v991_v60 = vpop.f32.mrf.mxu1 }
  0xe6   : > { %v992_v62 = vadd.f32 %v991_v60, %v5552_v41  ;;  %v2006_v41 = vsel %vm5259_vm3, %v2001_v8, %v2005_v25  ;;  %v2019_v60 = vrot.slane %v2017_v33, 5  ;;  %v1188_v8 = vsel %vm5433_vm7, %v4455_v50, %v1187_v16 }
  0xe7   : > { %4648 = vmatmul.msk.bf16.gmra.mxu0 %vm709_vm4, %v2216_v27  ;;  %v2193_v27 = vunpack.c.l.b16 %v1996_v19  ;;  %v2194_v51 = vunpack.c.l.b16 %v2006_v41  ;;  %v2027_v19 = vshll.u32 %v4621_v4, 16 }
  0xe8   : > { %v5682_v10 = vpop.f32.mrf.mxu2  ;;  %4438 = vmatmul.msk.bf16.gmra.mxu1 %vm709_vm4, %v4944_v57  ;;  %v2013_v57 = vrot.slane %v2011_v31, 5  ;;  %v2024_v15 = vor.u32 %v2023_v20, %v2019_v60 }
  0xe9   : > { %v2217_v25 = vpack.c.b16 %v2194_v51, %v2193_v27  ;;  %v2029_v42 = vrot.slane %v2027_v19, 5  ;;  %v4623_v27 = vld [vmem:[%s5247_s29 + $0x88] sm:$0xf]  ;;  %v5114_v51 = vld [vmem:[%s5247_s29 + $0x7c] sm:$0xf] }
  0xea   : > { %v2014_v14 = vor.u32 %v2013_v57, %v2010_v54  ;;  %v1081_v54 = vld [vmem:[%s5247_s29 + $0x78] sm:$0xe] }
  0xec   : > { %v5693_v24 = vpop.f32.mrf.mxu0  ;;  %v2015_v21 = vrot.slane %v2014_v14, 4 }
  0xed   : > { %v5695_v32 = vpop.f32.mrf.mxu3  ;;  %4471 = vmatmul.msk.bf16.gmra.mxu2 %vm709_vm4, %v1276_v11  ;;  %v993_v35 = vpop.f32.mrf.mxu1 }
  0xee   : > { %v994_v1 = vadd.f32 %v993_v35, %v5575_v9  ;;  %v1191_v9 = vsel %vm5433_vm7, %v1189_v48, %v1190_v47  ;;  %v2025_v35 = vrot.slane %v2024_v15, 4  ;;  %v4622_v47 = vld [vmem:[%s5247_s29 + $0x84] sm:$0xf]  ;;  %v4961_v15 = vld [vmem:[%s5247_s29 + $0x78] sm:$0xff] }
  0xef   : > { %v1255_v30 = vunpack.c.l.b16 %v1191_v9  ;;  %v2035_v57 = vshll.u32 %v4622_v47, 16  ;;  %v2045_v9 = vshrl.u32 %v4623_v27, 16 }
  0xf0   : > { %v1344_v52 = vpop.f32.mrf.mxu2  ;;  %v2030_v4 = vsel %vm5259_vm3, %v2025_v35, %v2029_v42 }
  0xf1   : > { %v1424_v61 = vadd.f32 %v1344_v52, %v992_v62  ;;  %v1254_v62 = vunpack.c.l.b16 %v1188_v8  ;;  %v1194_v52 = vrot.slane %v5114_v51, 5  ;;  %v2041_v8 = vshll.u32 %v4623_v27, 16 }
  0xf2   : > { %4584 = vmatmul.msk.bf16.gmra.mxu3 %vm709_vm4, %v4960_v46  ;;  %v2047_v35 = vrot.slane %v2045_v9, 4 }
  0xf3   : > { %v1277_v48 = vpack.c.b16 %v1255_v30, %v1254_v62 }
  0xf4   : > { %v2285_v11 = vpop.f32.mrf.mxu0 }
  0xf5   : > { %v1631_v41 = vpop.f32.mrf.mxu3  ;;  %v996_v23 = vpop.f32.mrf.mxu1 }
  0xf6   : > { %v1711_v31 = vadd.f32 %v1631_v41, %v1424_v61  ;;  %v997_v16 = vadd.f32 %v996_v23, %v5594_v38  ;;  %v2032_v38 = vshrl.u32 %v4622_v47, 16  ;;  %v2020_v61 = vsel %vm5259_vm3, %v2015_v21, %v2019_v60 }
  0xf7   : > { %4649 = vmatmul.msk.bf16.gmra.mxu0 %vm709_vm4, %v2217_v25  ;;  %v5115_v25 = vld [vmem:[%s5247_s29 + $0x80] sm:$0x1]  ;;  %v4456_v41 = vrot.slane %v1081_v54, 9  ;;  %v1196_v23 = vrot.slane %v1194_v52, 4  ;;  %v2195_v62 = vunpack.c.l.b16 %v2020_v61  ;;  %v2196_v60 = vunpack.c.l.b16 %v2030_v4 }
  0xf8   : > { %v1346_v33 = vpop.f32.mrf.mxu2  ;;  %4439 = vmatmul.msk.bf16.gmra.mxu1 %vm709_vm4, %v4945_v13  ;;  %v5712_v46 = vadd.f32 %v2285_v11, %v1711_v31  ;;  %v1197_v11 = vrot.slane %v5115_v25, 5  ;;  %v2034_v30 = vrot.slane %v2032_v38, 4  ;;  %v2037_v31 = vrot.slane %v2035_v57, 5  ;;  %v4946_v38 = vld [vmem:[%s5247_s29 + $0x78] sm:$0xff] }
  0xf9   : > { %v1425_v50 = vadd.f32 %v1346_v33, %v994_v1  ;;  %v2043_v21 = vrot.slane %v2041_v8, 5  ;;  %v2218_v27 = vpack.c.b16 %v2196_v60, %v2195_v62  ;;  %v4626_v62 = vld [vmem:[%s5247_s29 + $0x94] sm:$0xf]  ;;  %v5116_v60 = vld [vmem:[%s5247_s29 + $0x88] sm:$0xf] }
  0xfa   : > { %v2038_v51 = vor.u32 %v2037_v31, %v2034_v30  ;;  %v1201_v30 = vrot.slane %v5116_v60, 5  ;;  %v1082_v31 = vld [vmem:[%s5247_s29 + $0x84] sm:$0xe] }
  0xfb   : > { %v2048_v57 = vor.u32 %v2047_v35, %v2043_v21 }
  0xfc   : > { %v2287_v20 = vpop.f32.mrf.mxu0  ;;  %v2039_v25 = vrot.slane %v2038_v51, 4 }
  0xfd   : > { %v1633_v1 = vpop.f32.mrf.mxu3  ;;  %4472 = vmatmul.msk.bf16.gmra.mxu2 %vm709_vm4, %v1277_v48  ;;  %v998_v13 = vpop.f32.mrf.mxu1  ;;  %v4624_v48 = vld [vmem:[%s5247_s29 + $0x8c] sm:$0x1] }
  0xfe   : > { %v1712_v14 = vadd.f32 %v1633_v1, %v1425_v50  ;;  %v999_v19 = vadd.f32 %v998_v13, %v5612_v3  ;;  %v1195_v50 = vsel %vm5433_vm7, %v4456_v41, %v1194_v52  ;;  %v1198_v3 = vsel %vm5433_vm7, %v1196_v23, %v1197_v11 }
  0xff   : > { %v2051_v61 = vshll.u32 %v4624_v48, 16  ;;  %v1257_v8 = vunpack.c.l.b16 %v1198_v3  ;;  %v2049_v1 = vrot.slane %v2048_v57, 4  ;;  %v2069_v3 = vshrl.u32 %v4626_v62, 16  ;;  %v4962_v57 = vld [vmem:[%s5247_s29 + $0x84] sm:$0xff] }
 0x100   : > { %v1349_v33 = vpop.f32.mrf.mxu2  ;;  %v5725_v42 = vadd.f32 %v2287_v20, %v1712_v14  ;;  %v4625_v14 = vld [vmem:[%s5247_s29 + $0x90] sm:$0xf] }
 0x101   : > { %v1426_v47 = vadd.f32 %v1349_v33, %v997_v16  ;;  %v1256_v16 = vunpack.c.l.b16 %v1195_v50  ;;  %v2053_v13 = vrot.slane %v2051_v61, 5  ;;  %v2056_v33 = vshrl.u32 %v4625_v14, 16 }
 0x102   : > { %4585 = vmatmul.msk.bf16.gmra.mxu3 %vm709_vm4, %v4961_v15  ;;  %v2059_v48 = vshll.u32 %v4625_v14, 16  ;;  %v2065_v50 = vshll.u32 %v4626_v62, 16  ;;  %v4457_v61 = vrot.slane %v1082_v31, 9 }
 0x103   : > { %v1278_v23 = vpack.c.b16 %v1257_v8, %v1256_v16  ;;  %v2058_v8 = vrot.slane %v2056_v33, 4 }
 0x104   : > { %v2290_v54 = vpop.f32.mrf.mxu0 }
 0x105   : > { %v1636_v4 = vpop.f32.mrf.mxu3  ;;  %v1001_v20 = vpop.f32.mrf.mxu1 }
 0x106   : > { %v1713_v9 = vadd.f32 %v1636_v4, %v1426_v47  ;;  %v1002_v52 = vadd.f32 %v1001_v20, %v5634_v44  ;;  %v2044_v44 = vsel %vm5259_vm3, %v2039_v25, %v2043_v21  ;;  %v2054_v47 = vsel %vm5259_vm3, %v2049_v1, %v2053_v13 }
 0x107   : > { %4650 = vmatmul.msk.bf16.gmra.mxu0 %vm709_vm4, %v2218_v27  ;;  %v5117_v27 = vld [vmem:[%s5247_s29 + $0x8c] sm:$0x1]  ;;  %v1203_v4 = vrot.slane %v1201_v30, 4  ;;  %v2197_v20 = vunpack.c.l.b16 %v2044_v44  ;;  %v2198_v16 = vunpack.c.l.b16 %v2054_v47  ;;  %v2061_v25 = vrot.slane %v2059_v48, 5  ;;  %v4947_v44 = vld [vmem:[%s5247_s29 + $0x84] sm:$0xff] }
 0x108   : > { %v1351_v11 = vpop.f32.mrf.mxu2  ;;  %4440 = vmatmul.msk.bf16.gmra.mxu1 %vm709_vm4, %v4946_v38  ;;  %v5738_v15 = vadd.f32 %v2290_v54, %v1713_v9  ;;  %v1204_v51 = vrot.slane %v5117_v27, 5  ;;  %v2071_v1 = vrot.slane %v2069_v3, 4 }
 0x109   : > { %v1427_v41 = vadd.f32 %v1351_v11, %v999_v19  ;;  %v2067_v11 = vrot.slane %v2065_v50, 5  ;;  %v2219_v62 = vpack.c.b16 %v2198_v16, %v2197_v20  ;;  %v2062_v31 = vor.u32 %v2061_v25, %v2058_v8  ;;  %v4629_v20 = vld [vmem:[%s5247_s29 + $0xa0] sm:$0xf]  ;;  %v5118_v16 = vld [vmem:[%s5247_s29 + $0x94] sm:$0xf] }
 0x10a   : > { %v1208_v8 = vrot.slane %v5118_v16, 5 }
 0x10b   : > { %v2072_v33 = vor.u32 %v2071_v1, %v2067_v11 }
 0x10c   : > { %v2292_v35 = vpop.f32.mrf.mxu0 }
 0x10d   : > { %v1638_v19 = vpop.f32.mrf.mxu3  ;;  %4473 = vmatmul.msk.bf16.gmra.mxu2 %vm709_vm4, %v1278_v23  ;;  %v1003_v54 = vpop.f32.mrf.mxu1  ;;  %v4627_v23 = vld [vmem:[%s5247_s29 + $0x98] sm:$0x1] }
 0x10e   : > { %v1714_v38 = vadd.f32 %v1638_v19, %v1427_v41  ;;  %v1004_v21 = vadd.f32 %v1003_v54, %v5652_v5  ;;  %v1202_v41 = vsel %vm5433_vm7, %v4457_v61, %v1201_v30  ;;  %v1205_v5 = vsel %vm5433_vm7, %v1203_v4, %v1204_v51 }
 0x10f   : > { %v2075_v47 = vshll.u32 %v4627_v23, 16  ;;  %v1259_v50 = vunpack.c.l.b16 %v1205_v5  ;;  %v2063_v51 = vrot.slane %v2062_v31, 4  ;;  %v2073_v19 = vrot.slane %v2072_v33, 4  ;;  %v4963_v33 = vld [vmem:[%s5247_s29 + $0x90] sm:$0xff] }
 0x110   : > { %v1354_v9 = vpop.f32.mrf.mxu2  ;;  %v5751_v13 = vadd.f32 %v2292_v35, %v1714_v38  ;;  %v4628_v38 = vld [vmem:[%s5247_s29 + $0x9c] sm:$0xf]  ;;  %v2093_v5 = vshrl.u32 %v4629_v20, 16 }
 0x111   : > { %v1428_v14 = vadd.f32 %v1354_v9, %v1002_v52  ;;  %v1258_v52 = vunpack.c.l.b16 %v1202_v41  ;;  %v2077_v54 = vrot.slane %v2075_v47, 5  ;;  %v1083_v9 = vld [vmem:[%s5247_s29 + $0x90] sm:$0xe]  ;;  %v2083_v25 = vshll.u32 %v4628_v38, 16 }
 0x112   : > { %4586 = vmatmul.msk.bf16.gmra.mxu3 %vm709_vm4, %v4962_v57  ;;  %v2089_v41 = vshll.u32 %v4629_v20, 16 }
 0x113   : > { %v1279_v4 = vpack.c.b16 %v1259_v50, %v1258_v52  ;;  %v2078_v23 = vsel %vm5259_vm3, %v2073_v19, %v2077_v54  ;;  %v2095_v19 = vrot.slane %v2093_v5, 4 }
 0x114   : > { %v2295_v60 = vpop.f32.mrf.mxu0 }
 0x115   : > { %v1641_v48 = vpop.f32.mrf.mxu3  ;;  %v1006_v35 = vpop.f32.mrf.mxu1 }
 0x116   : > { %v1715_v3 = vadd.f32 %v1641_v48, %v1428_v14  ;;  %v1007_v30 = vadd.f32 %v1006_v35, %v5675_v56  ;;  %v2080_v56 = vshrl.u32 %v4628_v38, 16  ;;  %v2068_v14 = vsel %vm5259_vm3, %v2063_v51, %v2067_v11 }
 0x117   : > { %4651 = vmatmul.msk.bf16.gmra.mxu0 %vm709_vm4, %v2219_v62  ;;  %v5119_v62 = vld [vmem:[%s5247_s29 + $0x98] sm:$0x1]  ;;  %v4458_v48 = vrot.slane %v1083_v9, 9  ;;  %v1210_v35 = vrot.slane %v1208_v8, 4  ;;  %v2199_v52 = vunpack.c.l.b16 %v2068_v14  ;;  %v2200_v11 = vunpack.c.l.b16 %v2078_v23 }
 0x118   : > { %v1356_v27 = vpop.f32.mrf.mxu2  ;;  %4441 = vmatmul.msk.bf16.gmra.mxu1 %vm709_vm4, %v4947_v44  ;;  %v5764_v57 = vadd.f32 %v2295_v60, %v1715_v3  ;;  %v1211_v60 = vrot.slane %v5119_v62, 5  ;;  %v2082_v50 = vrot.slane %v2080_v56, 4  ;;  %v2085_v3 = vrot.slane %v2083_v25, 5  ;;  %v4948_v56 = vld [vmem:[%s5247_s29 + $0x90] sm:$0xff] }
 0x119   : > { %v1429_v61 = vadd.f32 %v1356_v27, %v1004_v21  ;;  %v2091_v51 = vrot.slane %v2089_v41, 5  ;;  %v2220_v20 = vpack.c.b16 %v2200_v11, %v2199_v52  ;;  %v4632_v11 = vld [vmem:[%s5247_s29 + $0xac] sm:$0xf] }
 0x11a   : > { %v2086_v16 = vor.u32 %v2085_v3, %v2082_v50  ;;  %v1084_v50 = vld [vmem:[%s5247_s29 + $0x9c] sm:$0xe] }
 0x11b   : > { %v2096_v25 = vor.u32 %v2095_v19, %v2091_v51 }
 0x11c   : > { %v2297_v1 = vpop.f32.mrf.mxu0 }
 0x11d   : > { %v1643_v21 = vpop.f32.mrf.mxu3  ;;  %4474 = vmatmul.msk.bf16.gmra.mxu2 %vm709_vm4, %v1279_v4  ;;  %v1008_v44 = vpop.f32.mrf.mxu1  ;;  %v4630_v4 = vld [vmem:[%s5247_s29 + $0xa4] sm:$0x1] }
 0x11e   : > { %v1716_v31 = vadd.f32 %v1643_v21, %v1429_v61  ;;  %v1009_v47 = vadd.f32 %v1008_v44, %v5693_v24  ;;  %v1209_v61 = vsel %vm5433_vm7, %v4458_v48, %v1208_v8  ;;  %v1212_v24 = vsel %vm5433_vm7, %v1210_v35, %v1211_v60  ;;  %v4631_v44 = vld [vmem:[%s5247_s29 + $0xa8] sm:$0xf]  ;;  %v5120_v35 = vld [vmem:[%s5247_s29 + $0xa0] sm:$0xf] }
 0x11f   : > { %v2099_v14 = vshll.u32 %v4630_v4, 16  ;;  %v1261_v41 = vunpack.c.l.b16 %v1212_v24  ;;  %v2087_v8 = vrot.slane %v2086_v16, 4  ;;  %v2097_v60 = vrot.slane %v2096_v25, 4 }
 0x120   : > { %v1359_v27 = vpop.f32.mrf.mxu2  ;;  %v5777_v54 = vadd.f32 %v2297_v1, %v1716_v31  ;;  %v1215_v52 = vrot.slane %v5120_v35, 5  ;;  %v2107_v19 = vshll.u32 %v4631_v44, 16  ;;  %v2117_v24 = vshrl.u32 %v4632_v11, 16 }
 0x121   : > { %v1430_v38 = vadd.f32 %v1359_v27, %v1007_v30  ;;  %v1260_v30 = vunpack.c.l.b16 %v1209_v61  ;;  %v2101_v21 = vrot.slane %v2099_v14, 5  ;;  %v2092_v3 = vsel %vm5259_vm3, %v2087_v8, %v2091_v51 }
 0x122   : > { %4587 = vmatmul.msk.bf16.gmra.mxu3 %vm709_vm4, %v4963_v33  ;;  %v2104_v27 = vshrl.u32 %v4631_v44, 16  ;;  %v2113_v61 = vshll.u32 %v4632_v11, 16  ;;  %v1217_v25 = vrot.slane %v1215_v52, 4  ;;  %v2201_v51 = vunpack.c.l.b16 %v2092_v3  ;;  %v4633_v11 = vld [vmem:[%s5247_s29 + $0xb0] sm:$0x1]  ;;  %v4949_v3 = vld [vmem:[%s5247_s29 + $0x9c] sm:$0xff] }
 0x123   : > { %v1280_v48 = vpack.c.b16 %v1261_v41, %v1260_v30  ;;  %v2102_v4 = vsel %vm5259_vm3, %v2097_v60, %v2101_v21  ;;  %v2109_v8 = vrot.slane %v2107_v19, 5  ;;  %v2119_v21 = vrot.slane %v2117_v24, 4 }
 0x124   : > { %v2300_v9 = vpop.f32.mrf.mxu0  ;;  %v2202_v41 = vunpack.c.l.b16 %v2102_v4  ;;  %v2115_v60 = vrot.slane %v2113_v61, 5  ;;  %v2123_v4 = vshll.u32 %v4633_v11, 16 }
 0x125   : > { %v1646_v1 = vpop.f32.mrf.mxu3  ;;  %v1011_v23 = vpop.f32.mrf.mxu1 }
 0x126   : > { %v1717_v5 = vadd.f32 %v1646_v1, %v1430_v38  ;;  %v4964_v1 = vld [vmem:[%s5247_s29 + $0x9c] sm:$0xff]  ;;  %v1012_v30 = vadd.f32 %v1011_v23, %v5528_v7  ;;  %v2221_v7 = vpack.c.b16 %v2202_v41, %v2201_v51  ;;  %v2125_v51 = vrot.slane %v2123_v4, 5 }
 0x127   : > { %4652 = vmatmul.msk.bf16.gmra.mxu0 %vm709_vm4, %v2220_v20  ;;  %v5121_v20 = vld [vmem:[%s5247_s29 + $0xa4] sm:$0x1] }
 0x128   : > { %v1361_v62 = vpop.f32.mrf.mxu2  ;;  %4442 = vmatmul.msk.bf16.gmra.mxu1 %vm709_vm4, %v4948_v56  ;;  %v5789_v31 = vadd.f32 %v2300_v9, %v1717_v5  ;;  %v1218_v16 = vrot.slane %v5121_v20, 5  ;;  %v4459_v56 = vrot.slane %v1084_v50, 9  ;;  %v2106_v5 = vrot.slane %v2104_v27, 4 }
 0x129   : > { %v1431_v33 = vadd.f32 %v1361_v62, %v1009_v47 }
 0x12a   : > { %v2110_v23 = vor.u32 %v2109_v8, %v2106_v5 }
 0x12c   : > { %v2302_v38 = vpop.f32.mrf.mxu0 }
 0x12d   : > { %v1648_v47 = vpop.f32.mrf.mxu3  ;;  %4475 = vmatmul.msk.bf16.gmra.mxu2 %vm709_vm4, %v1280_v48  ;;  %v1013_v9 = vpop.f32.mrf.mxu1  ;;  %v1216_v48 = vsel %vm5433_vm7, %v4459_v56, %v1215_v52  ;;  %v4634_v52 = vld [vmem:[%s5247_s29 + $0xb4] sm:$0xf]  ;;  %v2111_v56 = vrot.slane %v2110_v23, 4 }
 0x12e   : > { %v1718_v14 = vadd.f32 %v1648_v47, %v1431_v33  ;;  %v1219_v33 = vsel %vm5433_vm7, %v1217_v25, %v1218_v16  ;;  %v1262_v27 = vunpack.c.l.b16 %v1216_v48  ;;  %v4635_v47 = vld [vmem:[%s5247_s29 + $0xb8] sm:$0xf]  ;;  %v1014_v16 = vadd.f32 %v1013_v9, %v5544_v34 }
 0x12f   : > { %v1263_v19 = vunpack.c.l.b16 %v1219_v33  ;;  %v2128_v5 = vshrl.u32 %v4634_v52, 16  ;;  %v2131_v8 = vshll.u32 %v4634_v52, 16  ;;  %v2141_v48 = vshrl.u32 %v4635_v47, 16  ;;  %v1085_v33 = vld [vmem:[%s5247_s29 + $0xa8] sm:$0xe] }
 0x130   : > { %v1364_v62 = vpop.f32.mrf.mxu2  ;;  %v5802_v44 = vadd.f32 %v2302_v38, %v1718_v14  ;;  %v2120_v38 = vor.u32 %v2119_v21, %v2115_v60  ;;  %v5122_v21 = vld [vmem:[%s5247_s29 + $0xac] sm:$0xf]  ;;  %v2116_v9 = vsel %vm5259_vm3, %v2111_v56, %v2115_v60 }
 0x131   : > { %v1432_v35 = vadd.f32 %v1364_v62, %v1012_v30  ;;  %v1281_v14 = vpack.c.b16 %v1263_v19, %v1262_v27  ;;  %v2137_v62 = vshll.u32 %v4635_v47, 16  ;;  %v2130_v27 = vrot.slane %v2128_v5, 4 }
 0x132   : > { %4588 = vmatmul.msk.bf16.gmra.mxu3 %vm709_vm4, %v4964_v1  ;;  %v2121_v1 = vrot.slane %v2120_v38, 4  ;;  %v2133_v19 = vrot.slane %v2131_v8, 5  ;;  %v2143_v47 = vrot.slane %v2141_v48, 4  ;;  %v4950_v48 = vld [vmem:[%s5247_s29 + $0xa8] sm:$0xff] }
 0x133   : > { %v2139_v38 = vrot.slane %v2137_v62, 5 }
 0x134   : > { %v2305_v50 = vpop.f32.mrf.mxu0  ;;  %v2126_v11 = vsel %vm5259_vm3, %v2121_v1, %v2125_v51 }
 0x135   : > { %v1651_v61 = vpop.f32.mrf.mxu3  ;;  %v1016_v24 = vpop.f32.mrf.mxu1  ;;  %v2204_v56 = vunpack.c.l.b16 %v2126_v11  ;;  %v2144_v8 = vor.u32 %v2143_v47, %v2139_v38 }
 0x136   : > { %v1719_v20 = vadd.f32 %v1651_v61, %v1432_v35  ;;  %v1222_v35 = vrot.slane %v5122_v21, 5  ;;  %v4965_v61 = vld [vmem:[%s5247_s29 + $0xa8] sm:$0xff]  ;;  %v1017_v60 = vadd.f32 %v1016_v24, %v5564_v58 }
 0x137   : > { %4653 = vmatmul.msk.bf16.gmra.mxu0 %vm709_vm4, %v2221_v7  ;;  %v5123_v7 = vld [vmem:[%s5247_s29 + $0xb0] sm:$0x1] }
 0x138   : > { %v1366_v25 = vpop.f32.mrf.mxu2  ;;  %4443 = vmatmul.msk.bf16.gmra.mxu1 %vm709_vm4, %v4949_v3  ;;  %v5816_v30 = vadd.f32 %v2305_v50, %v1719_v20  ;;  %v1225_v23 = vrot.slane %v5123_v7, 5  ;;  %v4460_v20 = vrot.slane %v1085_v33, 9  ;;  %v1224_v52 = vrot.slane %v1222_v35, 4 }
 0x139   : > { %v1433_v41 = vadd.f32 %v1366_v25, %v1014_v16  ;;  %v2203_v16 = vunpack.c.l.b16 %v2116_v9  ;;  %v4636_v25 = vld [vmem:[%s5247_s29 + $0xbc] sm:$0x1] }
 0x13a   : > { %v1226_v5 = vsel %vm5433_vm7, %v1224_v52, %v1225_v23  ;;  %v2147_v58 = vshll.u32 %v4636_v25, 16  ;;  %v4638_v52 = vld [vmem:[%s5247_s29 + $0xc4] sm:$0xf] }
 0x13b   : > { %v2222_v24 = vpack.c.b16 %v2204_v56, %v2203_v16  ;;  %v1265_v11 = vunpack.c.l.b16 %v1226_v5  ;;  %v1086_v16 = vld [vmem:[%s5247_s29 + $0xb4] sm:$0xe]  ;;  %v5125_v56 = vld [vmem:[%s5247_s29 + $0xb8] sm:$0xf]  ;;  %v2165_v5 = vshrl.u32 %v4638_v52, 16 }
 0x13c   : > { %v2307_v34 = vpop.f32.mrf.mxu0  ;;  %v1229_v25 = vrot.slane %v5125_v56, 5 }
 0x13d   : > { %v1653_v50 = vpop.f32.mrf.mxu3  ;;  %4476 = vmatmul.msk.bf16.gmra.mxu2 %vm709_vm4, %v1281_v14  ;;  %v1018_v3 = vpop.f32.mrf.mxu1  ;;  %v2134_v14 = vor.u32 %v2133_v19, %v2130_v27  ;;  %v2149_v27 = vrot.slane %v2147_v58, 5  ;;  %v4637_v19 = vld [vmem:[%s5247_s29 + $0xc0] sm:$0xf]  ;;  %v5126_v58 = vld [vmem:[%s5247_s29 + $0x14] sm:$0x1] }
 0x13e   : > { %v1720_v4 = vadd.f32 %v1653_v50, %v1433_v41  ;;  %v1223_v41 = vsel %vm5433_vm7, %v4460_v20, %v1222_v35  ;;  %v2145_v35 = vrot.slane %v2144_v8, 4  ;;  %v1019_v23 = vadd.f32 %v1018_v3, %v5581_v28 }
 0x13f   : > { %v1264_v9 = vunpack.c.l.b16 %v1223_v41  ;;  %v2135_v50 = vrot.slane %v2134_v14, 4  ;;  %v2152_v3 = vshrl.u32 %v4637_v19, 16  ;;  %v2155_v14 = vshll.u32 %v4637_v19, 16  ;;  %v4966_v19 = vld [vmem:[%s5247_s29 + $0xb4] sm:$0xff] }
 0x140   : > { %v1369_v1 = vpop.f32.mrf.mxu2  ;;  %v5829_v51 = vadd.f32 %v2307_v34, %v1720_v4  ;;  %v5124_v4 = vld [vmem:[%s5247_s29 + $0x10] sm:$0xf]  ;;  %v2150_v28 = vsel %vm5259_vm3, %v2145_v35, %v2149_v27  ;;  %v2161_v41 = vshll.u32 %v4638_v52, 16  ;;  %v1231_v35 = vrot.slane %v1229_v25, 4  ;;  %v4657_v27 = vld [vmem:[%s5247_s29 + $0xc] sm:$0xe] }
 0x141   : > { %v1434_v21 = vadd.f32 %v1369_v1, %v1017_v60  ;;  %v1282_v60 = vpack.c.b16 %v1265_v11, %v1264_v9  ;;  %v5127_v9 = vld [vmem:[%s5247_s29 + $0xbc] sm:$0x1]  ;;  %v4673_v52 = vrot.slane %v4657_v27, 9 }
 0x142   : > { %4589 = vmatmul.msk.bf16.gmra.mxu3 %vm709_vm4, %v4965_v61  ;;  %v2463_v61 = vrot.slane %v5124_v4, 5  ;;  %v2154_v4 = vrot.slane %v2152_v3, 4 }
 0x144   : > { %v2310_v62 = vpop.f32.mrf.mxu0  ;;  %v2465_v8 = vrot.slane %v2463_v61, 4 }
 0x145   : > { %v1656_v33 = vpop.f32.mrf.mxu3  ;;  %v1021_v34 = vpop.f32.mrf.mxu1 }
 0x146   : > { %v1721_v7 = vadd.f32 %v1656_v33, %v1434_v21  ;;  %v2140_v21 = vsel %vm5259_vm3, %v2135_v50, %v2139_v38  ;;  %v4461_v33 = vrot.slane %v1086_v16, 9  ;;  %v1022_v56 = vadd.f32 %v1021_v34, %v5601_v53 }
 0x147   : > { %4654 = vmatmul.msk.bf16.gmra.mxu0 %vm709_vm4, %v2222_v24  ;;  %v2466_v24 = vrot.slane %v5126_v58, 5  ;;  %v2205_v38 = vunpack.c.l.b16 %v2140_v21  ;;  %v2163_v16 = vrot.slane %v2161_v41, 5  ;;  %v2167_v58 = vrot.slane %v2165_v5, 4  ;;  %v4639_v21 = vld [vmem:[%s5247_s29 + $0xc8] sm:$0x1] }
 0x148   : > { %v1371_v20 = vpop.f32.mrf.mxu2  ;;  %4444 = vmatmul.msk.bf16.gmra.mxu1 %vm709_vm4, %v4950_v48  ;;  %v5845_v1 = vadd.f32 %v2310_v62, %v1721_v7  ;;  %v1232_v62 = vrot.slane %v5127_v9, 5  ;;  %v2206_v7 = vunpack.c.l.b16 %v2150_v28  ;;  %v2464_v28 = vsel %vm5433_vm7, %v4673_v52, %v2463_v61  ;;  %v4819_v41 = vld [vmem:[%s5247_s29 + $0x18] sm:$0xf] }
 0x149   : > { %v1435_v47 = vadd.f32 %v1371_v20, %v1019_v23  ;;  %v2157_v20 = vrot.slane %v2155_v14, 5  ;;  %v2575_v53 = vunpack.c.l.b16 %v2464_v28  ;;  %v2171_v27 = vshll.u32 %v4639_v21, 16 }
 0x14a   : > { %v1233_v14 = vsel %vm5433_vm7, %v1231_v35, %v1232_v62  ;;  %v2223_v5 = vpack.c.b16 %v2206_v7, %v2205_v38  ;;  %v3131_v62 = vshrl.u32 %v4819_v41, 16  ;;  %v3134_v35 = vshll.u32 %v4819_v41, 16 }
 0x14c   : > { %v2312_v48 = vpop.f32.mrf.mxu0  ;;  %v3133_v21 = vrot.slane %v3131_v62, 4 }
 0x14d   : > { %v1658_v11 = vpop.f32.mrf.mxu3  ;;  %4477 = vmatmul.msk.bf16.gmra.mxu2 %vm709_vm4, %v1282_v60  ;;  %v1023_v50 = vpop.f32.mrf.mxu1  ;;  %v1230_v60 = vsel %vm5433_vm7, %v4461_v33, %v1229_v25  ;;  %v5869_v25 = vld [vmem:[%s5247_s29 + $0x1c] sm:$0xf]  ;;  %v2168_v33 = vor.u32 %v2167_v58, %v2163_v16 }
 0x14e   : > { %v1722_v23 = vadd.f32 %v1658_v11, %v1435_v47  ;;  %v2467_v47 = vsel %vm5433_vm7, %v2465_v8, %v2466_v24  ;;  %v2158_v11 = vor.u32 %v2157_v20, %v2154_v4  ;;  %v4951_v24 = vld [vmem:[%s5247_s29 + $0xb4] sm:$0xff]  ;;  %v3144_v38 = vshrl.u32 %v5869_v25, 16 }
 0x14f   : > { %v2576_v34 = vunpack.c.l.b16 %v2467_v47  ;;  %v1024_v4 = vadd.f32 %v1023_v50, %v5621_v17 }
 0x150   : > { %v1374_v9 = vpop.f32.mrf.mxu2  ;;  %v5873_v52 = vadd.f32 %v2312_v48, %v1722_v23  ;;  %v2159_v48 = vrot.slane %v2158_v11, 4  ;;  %v2169_v23 = vrot.slane %v2168_v33, 4  ;;  %v3146_v41 = vrot.slane %v3144_v38, 4 }
 0x151   : > { %v1436_v3 = vadd.f32 %v1374_v9, %v1022_v56  ;;  %v5871_v61 = vpack.c.b16 %v2576_v34, %v2575_v53  ;;  %v1266_v56 = vunpack.c.l.b16 %v1230_v60  ;;  %v1267_v9 = vunpack.c.l.b16 %v1233_v14 }
 0x152   : > { %4590 = vmatmul.msk.bf16.gmra.mxu3 %vm709_vm4, %v4966_v19  ;;  %6612 = vst [vmem:[#allocation2_spill] sm:$0xff] %v5873_v52  ;;  %v3140_v19 = vshll.u32 %v5869_v25, 16  ;;  %v2173_v60 = vrot.slane %v2171_v27, 5  ;;  %v3136_v14 = vrot.slane %v3134_v35, 5  ;;  %v2164_v17 = vsel %vm5259_vm3, %v2159_v48, %v2163_v16  ;;  %v4884_v48 = vld [vmem:[%s5247_s29 + $0x18] sm:$0xe] }
 0x153   : > { %v1283_v58 = vpack.c.b16 %v1267_v9, %v1266_v56  ;;  %v4967_v9 = vld [vmem:[%s5247_s29 + $0xc0] sm:$0xff]  ;;  %v2207_v16 = vunpack.c.l.b16 %v2164_v17 }
 0x154   : > { %v2315_v8 = vpop.f32.mrf.mxu0  ;;  %v3142_v34 = vrot.slane %v3140_v19, 5  ;;  %v2174_v50 = vsel %vm5259_vm3, %v2169_v23, %v2173_v60  ;;  %v3137_v27 = vor.u32 %v3136_v14, %v3133_v21  ;;  %v4822_v23 = vld [vmem:[%s5247_s29 + $0x24] sm:$0xf]  ;;  %v5899_v60 = vld [vmem:[%s5247_s29 + $0x28] sm:$0xf] }
 0x155   : > { %v1661_v28 = vpop.f32.mrf.mxu3  ;;  %v1026_v47 = vpop.f32.mrf.mxu1  ;;  %v2208_v35 = vunpack.c.l.b16 %v2174_v50 }
 0x156   : > { %v1723_v7 = vadd.f32 %v1661_v28, %v1436_v3  ;;  %v5884_v3 = vld [vmem:[%s5247_s29 + $0x20] sm:$0x1]  ;;  %v1027_v62 = vadd.f32 %v1026_v47, %v5644_v2  ;;  %v3138_v38 = vrot.slane %v3137_v27, 4  ;;  %v5128_v47 = vld [vmem:[%s5247_s29 + $0x1c] sm:$0xf] }
 0x157   : > { %4655 = vmatmul.msk.bf16.gmra.mxu0 %vm709_vm4, %v2223_v5  ;;  %v2470_v14 = vrot.slane %v5128_v47, 5  ;;  %v4658_v27 = vld [vmem:[%s5247_s29 + $0x18] sm:$0xe] }
 0x158   : > { %v1376_v20 = vpop.f32.mrf.mxu2  ;;  %4445 = vmatmul.msk.bf16.gmra.mxu1 %vm709_vm4, %v4951_v24  ;;  %v5881_v52 = vadd.f32 %v2315_v8, %v1723_v7  ;;  %v3147_v24 = vor.u32 %v3146_v41, %v3142_v34  ;;  %v3150_v8 = vshll.u32 %v5884_v3, 16  ;;  %v3143_v17 = vsel %vm5259_vm3, %v3138_v38, %v3142_v34 }
 0x159   : > { %v1437_v53 = vadd.f32 %v1376_v20, %v1024_v4  ;;  %v2224_v20 = vpack.c.b16 %v2208_v35, %v2207_v16  ;;  %v3805_v34 = vrot.slane %v5884_v3, 5  ;;  %v5129_v16 = vld [vmem:[%s5247_s29 + $0x20] sm:$0x1]  ;;  %v4674_v38 = vrot.slane %v4658_v27, 9 }
 0x15a   : > { %v3148_v7 = vrot.slane %v3147_v24, 4  ;;  %v3152_v4 = vrot.slane %v3150_v8, 5  ;;  %v3155_v24 = vshrl.u32 %v4822_v23, 16  ;;  %v3158_v8 = vshll.u32 %v4822_v23, 16 }
 0x15b   : > { %v2473_v35 = vrot.slane %v5129_v16, 5  ;;  %v2471_v27 = vsel %vm5433_vm7, %v4674_v38, %v2470_v14  ;;  %v4825_v38 = vld [vmem:[%s5247_s29 + $0x30] sm:$0xf] }
 0x15c   : > { %v2317_v5 = vpop.f32.mrf.mxu0  ;;  %v3153_v50 = vsel %vm5259_vm3, %v3148_v7, %v3152_v4  ;;  %v2472_v7 = vrot.slane %v2470_v14, 4  ;;  %v3160_v3 = vrot.slane %v3158_v8, 5 }
 0x15d   : > { %v1663_v11 = vpop.f32.mrf.mxu3  ;;  %4478 = vmatmul.msk.bf16.gmra.mxu2 %vm709_vm4, %v1283_v58  ;;  %v1028_v33 = vpop.f32.mrf.mxu1  ;;  %v3802_v58 = vrot.slane %v5869_v25, 5  ;;  %v3517_v23 = vunpack.c.l.b16 %v3153_v50 }
 0x15e   : > { %v1724_v56 = vadd.f32 %v1663_v11, %v1437_v53  ;;  %v4900_v11 = vrot.slane %v4884_v48, 9  ;;  %v4968_v48 = vld [vmem:[%s5247_s29 + $0x18] sm:$0xff]  ;;  %v2474_v50 = vsel %vm5433_vm7, %v2472_v7, %v2473_v35  ;;  %v5939_v7 = vld [vmem:[%s5247_s29 + $0x34] sm:$0xf] }
 0x160   : > { %v1379_v28 = vpop.f32.mrf.mxu2  ;;  %v5901_v21 = vadd.f32 %v2317_v5, %v1724_v56  ;;  %v3164_v5 = vshll.u32 %v5899_v60, 16  ;;  %v3168_v56 = vshrl.u32 %v5899_v60, 16 }
 0x161   : > { %v1438_v19 = vadd.f32 %v1379_v28, %v1027_v62  ;;  %v3804_v62 = vrot.slane %v3802_v58, 4 }
 0x162   : > { %4591 = vmatmul.msk.bf16.gmra.mxu3 %vm709_vm4, %v4967_v9  ;;  %v1029_v9 = vadd.f32 %v1028_v33, %v5664_v29  ;;  %v3157_v33 = vrot.slane %v3155_v24, 4  ;;  %v5922_v47 = vrot.slane %v3164_v5, 5 }
 0x164   : > { %v2320_v2 = vpop.f32.mrf.mxu0  ;;  %v3161_v5 = vor.u32 %v3160_v3, %v3157_v33  ;;  %v4885_v33 = vld [vmem:[%s5247_s29 + $0x24] sm:$0xe] }
 0x165   : > { %v1666_v53 = vpop.f32.mrf.mxu3  ;;  %v1031_v41 = vpop.f32.mrf.mxu1 }
 0x166   : > { %v1725_v25 = vadd.f32 %v1666_v53, %v1438_v19  ;;  %v3516_v19 = vunpack.c.l.b16 %v3143_v17  ;;  %v3170_v53 = vrot.slane %v3168_v56, 4  ;;  %v1032_v14 = vadd.f32 %v1031_v41, %v5546_v37 }
 0x167   : > { %4656 = vmatmul.msk.bf16.gmra.mxu0 %vm709_vm4, %v2224_v20  ;;  %v3803_v20 = vsel %vm5433_vm7, %v4900_v11, %v3802_v58  ;;  %v3809_v37 = vrot.slane %v5899_v60, 5 }
 0x168   : > { %v1381_v28 = vpop.f32.mrf.mxu2  ;;  %4690 = vmatmul.msk.bf16.vlgmr.msra.gmra.mxu1 %vm709_vm4, %v5871_v61  ;;  %v5920_v29 = vadd.f32 %v2320_v2, %v1725_v25  ;;  %v3806_v61 = vsel %vm5433_vm7, %v3804_v62, %v3805_v34  ;;  %v3548_v2 = vpack.c.b16 %v3517_v23, %v3516_v19  ;;  %v3914_v11 = vunpack.c.l.b16 %v3803_v20 }
 0x169   : > { %v1439_v4 = vadd.f32 %v1381_v28, %v1029_v9  ;;  %v5931_v9 = vld [vmem:[%s5247_s29 + $0x2c] sm:$0x1]  ;;  %v3915_v8 = vunpack.c.l.b16 %v3806_v61  ;;  %v3171_v56 = vor.u32 %v3170_v53, %v5922_v47  ;;  %v2577_v62 = vunpack.c.l.b16 %v2471_v27 }
 0x16a   : > { %v2578_v34 = vunpack.c.l.b16 %v2474_v50  ;;  %v3174_v16 = vshll.u32 %v5931_v9, 16  ;;  %v3179_v53 = vshrl.u32 %v4825_v38, 16  ;;  %v3182_v61 = vshll.u32 %v4825_v38, 16 }
 0x16b   : > { %v3946_v19 = vpack.c.b16 %v3915_v8, %v3914_v11  ;;  %v3188_v27 = vshll.u32 %v5939_v7, 16  ;;  %v3192_v50 = vshrl.u32 %v5939_v7, 16  ;;  %v5130_v11 = vld [vmem:[%s5247_s29 + $0x28] sm:$0xf]  ;;  %v3812_v60 = vrot.slane %v5931_v9, 5 }
 0x16c   : > { %v2322_v17 = vpop.f32.mrf.mxu0  ;;  %v2608_v23 = vpack.c.b16 %v2578_v34, %v2577_v62  ;;  %v3176_v20 = vrot.slane %v3174_v16, 5  ;;  %v2477_v8 = vrot.slane %v5130_v11, 5  ;;  %v4901_v62 = vrot.slane %v4885_v33, 9  ;;  %v4969_v11 = vld [vmem:[%s5247_s29 + $0x24] sm:$0xff] }
 0x16d   : > { %v1668_v58 = vpop.f32.mrf.mxu3  ;;  %4803 = vmatmul.msk.bf16.vlgmr.msra.gmra.mxu2 %vm709_vm4, %v4968_v48  ;;  %v1033_v24 = vpop.f32.mrf.mxu1  ;;  %v3172_v48 = vrot.slane %v3171_v56, 4  ;;  %v3184_v33 = vrot.slane %v3182_v61, 5  ;;  %v5960_v9 = vrot.slane %v3188_v27, 5 }
 0x16e   : > { %v1726_v25 = vadd.f32 %v1668_v58, %v1439_v4  ;;  %v3162_v4 = vrot.slane %v3161_v5, 4  ;;  %v5131_v5 = vld [vmem:[%s5247_s29 + $0x2c] sm:$0x1] }
 0x16f   : > { %v2480_v56 = vrot.slane %v5131_v5, 5  ;;  %v3177_v16 = vsel %vm5259_vm3, %v3172_v48, %v3176_v20  ;;  %v3810_v20 = vsel %vm5433_vm7, %v4901_v62, %v3809_v37 }
 0x170   : > { %v1384_v35 = vpop.f32.mrf.mxu2  ;;  %v5944_v41 = vadd.f32 %v2322_v17, %v1726_v25  ;;  %v4659_v17 = vld [vmem:[%s5247_s29 + $0x24] sm:$0xe]  ;;  %v1034_v25 = vadd.f32 %v1033_v24, %v5567_v63  ;;  %v3167_v34 = vsel %vm5259_vm3, %v3162_v4, %v5922_v47  ;;  %v2479_v24 = vrot.slane %v2477_v8, 4 }
 0x171   : > { %v1440_v28 = vadd.f32 %v1384_v35, %v1032_v14  ;;  %v3811_v35 = vrot.slane %v3809_v37, 4  ;;  %v4675_v63 = vrot.slane %v4659_v17, 9  ;;  %v3518_v47 = vunpack.c.l.b16 %v3167_v34 }
 0x172   : > { %4868 = vmatmul.msk.bf16.vlgmr.msra.gmra.mxu3 %vm709_vm4, %v3548_v2  ;;  %6613 = vst [vmem:[#allocation3_spill] sm:$0xff] %v5944_v41  ;;  %v3519_v4 = vunpack.c.l.b16 %v3177_v16  ;;  %v5966_v41 = vld [vmem:[%s5247_s29 + $0x38] sm:$0x1] }
 0x173   : > { %v3198_v37 = vshll.u32 %v5966_v41, 16 }
 0x174   : > { %v2325_v3 = vpop.f32.mrf.mxu0  ;;  %v3549_v17 = vpack.c.b16 %v3519_v4, %v3518_v47  ;;  %v5132_v4 = vld [vmem:[%s5247_s29 + $0x34] sm:$0xf] }
 0x175   : > { %v1671_v58 = vpop.f32.mrf.mxu3  ;;  %v1036_v2 = vpop.f32.mrf.mxu1 }
 0x176   : > { %v1727_v14 = vadd.f32 %v1671_v58, %v1440_v28  ;;  %v3181_v28 = vrot.slane %v3179_v53, 4  ;;  %v3194_v58 = vrot.slane %v3192_v50, 4  ;;  %v2481_v50 = vsel %vm5433_vm7, %v2479_v24, %v2480_v56  ;;  %v5985_v24 = vld [vmem:[%s5247_s29 + $0x40] sm:$0xf] }
 0x177   : > { %4917 = vmatmul.msk.bf16.vlgmr.msra.gmra.mxu0 %vm709_vm4, %v3946_v19 }
 0x178   : > { %v1386_v38 = vpop.f32.mrf.mxu2  ;;  %4691 = vmatmul.msk.bf16.gmra.mxu1 %vm709_vm4, %v2608_v23  ;;  %v5963_v5 = vadd.f32 %v2325_v3, %v1727_v14  ;;  %v3813_v23 = vsel %vm5433_vm7, %v3811_v35, %v3812_v60  ;;  %v3185_v53 = vor.u32 %v3184_v33, %v3181_v28  ;;  %v2478_v3 = vsel %vm5433_vm7, %v4675_v63, %v2477_v8 }
 0x179   : > { %v1441_v19 = vadd.f32 %v1386_v38, %v1034_v25  ;;  %v3195_v14 = vor.u32 %v3194_v58, %v5960_v9  ;;  %v1037_v60 = vadd.f32 %v1036_v2, %v5584_v22  ;;  %v3916_v25 = vunpack.c.l.b16 %v3810_v20  ;;  %v4886_v58 = vld [vmem:[%s5247_s29 + $0x30] sm:$0xe] }
 0x17a   : > { %v3917_v34 = vunpack.c.l.b16 %v3813_v23  ;;  %v2579_v35 = vunpack.c.l.b16 %v2478_v3  ;;  %v2580_v8 = vunpack.c.l.b16 %v2481_v50  ;;  %v3186_v28 = vrot.slane %v3185_v53, 4 }
 0x17b   : > { %v3196_v56 = vrot.slane %v3195_v14, 4  ;;  %v3200_v33 = vrot.slane %v3198_v37, 5  ;;  %v3816_v63 = vrot.slane %v5939_v7, 5  ;;  %v2484_v20 = vrot.slane %v5132_v4, 5  ;;  %v4660_v7 = vld [vmem:[%s5247_s29 + $0x30] sm:$0xe] }
 0x17c   : > { %v2327_v48 = vpop.f32.mrf.mxu0  ;;  %v2609_v47 = vpack.c.b16 %v2580_v8, %v2579_v35  ;;  %v4902_v50 = vrot.slane %v4886_v58, 9 }
 0x17d   : > { %v1673_v61 = vpop.f32.mrf.mxu3  ;;  %4804 = vmatmul.msk.bf16.gmra.mxu2 %vm709_vm4, %v4969_v11  ;;  %v1038_v27 = vpop.f32.mrf.mxu1  ;;  %v4828_v11 = vld [vmem:[%s5247_s29 + $0x3c] sm:$0xf]  ;;  %v3201_v3 = vsel %vm5259_vm3, %v3196_v56, %v3200_v33  ;;  %v4970_v33 = vld [vmem:[%s5247_s29 + $0x30] sm:$0xff] }
 0x17e   : > { %v1728_v62 = vadd.f32 %v1673_v61, %v1441_v19  ;;  %v3947_v19 = vpack.c.b16 %v3917_v34, %v3916_v25  ;;  %v3191_v61 = vsel %vm5259_vm3, %v3186_v28, %v5960_v9  ;;  %v3203_v14 = vshrl.u32 %v4828_v11, 16  ;;  %v5133_v34 = vld [vmem:[%s5247_s29 + $0x38] sm:$0x1] }
 0x17f   : > { %v3818_v25 = vrot.slane %v3816_v63, 4  ;;  %v3819_v9 = vrot.slane %v5966_v41, 5  ;;  %v3520_v8 = vunpack.c.l.b16 %v3191_v61  ;;  %v2486_v28 = vrot.slane %v2484_v20, 4 }
 0x180   : > { %v1389_v16 = vpop.f32.mrf.mxu2  ;;  %v5987_v22 = vadd.f32 %v2327_v48, %v1728_v62  ;;  %v3206_v48 = vshll.u32 %v4828_v11, 16  ;;  %v3212_v62 = vshll.u32 %v5985_v24, 16  ;;  %v3521_v58 = vunpack.c.l.b16 %v3201_v3 }
 0x181   : > { %v1442_v38 = vadd.f32 %v1389_v16, %v1037_v60  ;;  %v1039_v60 = vadd.f32 %v1038_v27, %v5605_v55  ;;  %v2487_v16 = vrot.slane %v5133_v34, 5  ;;  %v3817_v11 = vsel %vm5433_vm7, %v4902_v50, %v3816_v63 }
 0x182   : > { %4869 = vmatmul.msk.bf16.gmra.mxu3 %vm709_vm4, %v3549_v17  ;;  %v3216_v17 = vshrl.u32 %v5985_v24, 16  ;;  %v3205_v55 = vrot.slane %v3203_v14, 4  ;;  %v3208_v27 = vrot.slane %v3206_v48, 5  ;;  %v6008_v41 = vrot.slane %v3212_v62, 5 }
 0x183   : > { %v2488_v3 = vsel %vm5433_vm7, %v2486_v28, %v2487_v16  ;;  %v3918_v50 = vunpack.c.l.b16 %v3817_v11  ;;  %v4887_v11 = vld [vmem:[%s5247_s29 + $0x3c] sm:$0xe] }
 0x184   : > { %v2330_v2 = vpop.f32.mrf.mxu0  ;;  %v3218_v4 = vrot.slane %v3216_v17, 4  ;;  %v3209_v62 = vor.u32 %v3208_v27, %v3205_v55 }
 0x185   : > { %v1676_v23 = vpop.f32.mrf.mxu3  ;;  %v1041_v53 = vpop.f32.mrf.mxu1 }
 0x186   : > { %v1729_v37 = vadd.f32 %v1676_v23, %v1442_v38  ;;  %v4676_v38 = vrot.slane %v4660_v7, 9  ;;  %v6017_v7 = vld [vmem:[%s5247_s29 + $0x44] sm:$0x1]  ;;  %v3219_v17 = vor.u32 %v3218_v4, %v6008_v41  ;;  %v3210_v28 = vrot.slane %v3209_v62, 4 }
 0x187   : > { %4918 = vmatmul.msk.bf16.gmra.mxu0 %vm709_vm4, %v3947_v19 }
 0x188   : > { %v1391_v35 = vpop.f32.mrf.mxu2  ;;  %4692 = vmatmul.msk.bf16.gmra.mxu1 %vm709_vm4, %v2609_v47  ;;  %v6006_v19 = vadd.f32 %v2330_v2, %v1729_v37  ;;  %v3820_v47 = vsel %vm5433_vm7, %v3818_v25, %v3819_v9  ;;  %v2485_v61 = vsel %vm5433_vm7, %v4676_v38, %v2484_v20  ;;  %v3550_v2 = vpack.c.b16 %v3521_v58, %v3520_v8  ;;  %v6025_v38 = vld [vmem:[%s5247_s29 + $0x4c] sm:$0xf] }
 0x189   : > { %v1443_v56 = vadd.f32 %v1391_v35, %v1039_v60  ;;  %v3919_v48 = vunpack.c.l.b16 %v3820_v47  ;;  %v1042_v20 = vadd.f32 %v1041_v53, %v5628_v26  ;;  %v2581_v60 = vunpack.c.l.b16 %v2485_v61  ;;  %v4831_v35 = vld [vmem:[%s5247_s29 + $0x48] sm:$0xf] }
 0x18a   : > { %v2582_v25 = vunpack.c.l.b16 %v2488_v3  ;;  %v3222_v9 = vshll.u32 %v6017_v7, 16  ;;  %v3823_v26 = vrot.slane %v5985_v24, 5  ;;  %v3227_v27 = vshrl.u32 %v4831_v35, 16 }
 0x18b   : > { %v3948_v8 = vpack.c.b16 %v3919_v48, %v3918_v50  ;;  %v3230_v4 = vshll.u32 %v4831_v35, 16  ;;  %v3236_v47 = vshll.u32 %v6025_v38, 16  ;;  %v3240_v61 = vshrl.u32 %v6025_v38, 16  ;;  %v5135_v48 = vld [vmem:[%s5247_s29 + $0x44] sm:$0x1] }
 0x18c   : > { %v2332_v23 = vpop.f32.mrf.mxu0  ;;  %v3224_v58 = vrot.slane %v3222_v9, 5  ;;  %v2494_v62 = vrot.slane %v5135_v48, 5  ;;  %v3826_v24 = vrot.slane %v6017_v7, 5  ;;  %v3825_v9 = vrot.slane %v3823_v26, 4  ;;  %v6052_v48 = vld [vmem:[%s5247_s29 + $0x50] sm:$0x1] }
 0x18d   : > { %v1678_v63 = vpop.f32.mrf.mxu3  ;;  %4805 = vmatmul.msk.bf16.gmra.mxu2 %vm709_vm4, %v4970_v33  ;;  %v1043_v14 = vpop.f32.mrf.mxu1  ;;  %v2610_v33 = vpack.c.b16 %v2582_v25, %v2581_v60  ;;  %v3215_v60 = vsel %vm5259_vm3, %v3210_v28, %v6008_v41  ;;  %v3232_v35 = vrot.slane %v3230_v4, 5  ;;  %v6046_v7 = vrot.slane %v3236_v47, 5 }
 0x18e   : > { %v1730_v37 = vadd.f32 %v1678_v63, %v1443_v56  ;;  %v3220_v56 = vrot.slane %v3219_v17, 4  ;;  %v3522_v41 = vunpack.c.l.b16 %v3215_v60 }
 0x190   : > { %v1394_v34 = vpop.f32.mrf.mxu2  ;;  %v6030_v53 = vadd.f32 %v2332_v23, %v1730_v37  ;;  %v4661_v23 = vld [vmem:[%s5247_s29 + $0x3c] sm:$0xe]  ;;  %v1044_v37 = vadd.f32 %v1043_v14, %v5646_v43  ;;  %v3225_v25 = vsel %vm5259_vm3, %v3220_v56, %v3224_v58 }
 0x191   : > { %v1444_v16 = vadd.f32 %v1394_v34, %v1042_v20  ;;  %v4903_v20 = vrot.slane %v4887_v11, 9  ;;  %v3242_v11 = vrot.slane %v3240_v61, 4  ;;  %v4677_v43 = vrot.slane %v4661_v23, 9 }
 0x192   : > { %4870 = vmatmul.msk.bf16.gmra.mxu3 %vm709_vm4, %v3550_v2  ;;  %v5134_v2 = vld [vmem:[%s5247_s29 + $0x40] sm:$0xf]  ;;  %v3523_v28 = vunpack.c.l.b16 %v3225_v25 }
 0x193   : > { %v2491_v50 = vrot.slane %v5134_v2, 5  ;;  %v3824_v58 = vsel %vm5433_vm7, %v4903_v20, %v3823_v26  ;;  %v3246_v26 = vshll.u32 %v6052_v48, 16 }
 0x194   : > { %v2335_v55 = vpop.f32.mrf.mxu0  ;;  %v3551_v23 = vpack.c.b16 %v3523_v28, %v3522_v41  ;;  %v5136_v28 = vld [vmem:[%s5247_s29 + $0x4c] sm:$0xf] }
 0x195   : > { %v1681_v3 = vpop.f32.mrf.mxu3  ;;  %v1046_v63 = vpop.f32.mrf.mxu1  ;;  %v2493_v14 = vrot.slane %v2491_v50, 4 }
 0x196   : > { %v1731_v17 = vadd.f32 %v1681_v3, %v1444_v16  ;;  %v3229_v16 = vrot.slane %v3227_v27, 4  ;;  %v4971_v3 = vld [vmem:[%s5247_s29 + $0x3c] sm:$0xff] }
 0x197   : > { %4919 = vmatmul.msk.bf16.gmra.mxu0 %vm709_vm4, %v3948_v8  ;;  %v2495_v61 = vsel %vm5433_vm7, %v2493_v14, %v2494_v62  ;;  %v6071_v14 = vld [vmem:[%s5247_s29 + $0x58] sm:$0xf] }
 0x198   : > { %v1396_v34 = vpop.f32.mrf.mxu2  ;;  %4693 = vmatmul.msk.bf16.gmra.mxu1 %vm709_vm4, %v2610_v33  ;;  %v6049_v2 = vadd.f32 %v2335_v55, %v1731_v17  ;;  %v3827_v33 = vsel %vm5433_vm7, %v3825_v9, %v3826_v24  ;;  %v3233_v27 = vor.u32 %v3232_v35, %v3229_v16  ;;  %v2492_v55 = vsel %vm5433_vm7, %v4677_v43, %v2491_v50 }
 0x199   : > { %v1445_v8 = vadd.f32 %v1396_v34, %v1044_v37  ;;  %v3243_v17 = vor.u32 %v3242_v11, %v6046_v7  ;;  %v1047_v24 = vadd.f32 %v1046_v63, %v5667_v40  ;;  %v3920_v37 = vunpack.c.l.b16 %v3824_v58  ;;  %v4888_v11 = vld [vmem:[%s5247_s29 + $0x48] sm:$0xe] }
 0x19a   : > { %v3921_v60 = vunpack.c.l.b16 %v3827_v33  ;;  %v2583_v9 = vunpack.c.l.b16 %v2492_v55  ;;  %v2584_v50 = vunpack.c.l.b16 %v2495_v61  ;;  %v3234_v16 = vrot.slane %v3233_v27, 4 }
 0x19b   : > { %v3244_v62 = vrot.slane %v3243_v17, 4  ;;  %v3248_v35 = vrot.slane %v3246_v26, 5  ;;  %v3830_v43 = vrot.slane %v6025_v38, 5  ;;  %v2498_v58 = vrot.slane %v5136_v28, 5  ;;  %v4662_v38 = vld [vmem:[%s5247_s29 + $0x48] sm:$0xe] }
 0x19c   : > { %v2337_v56 = vpop.f32.mrf.mxu0  ;;  %v2611_v41 = vpack.c.b16 %v2584_v50, %v2583_v9  ;;  %v4904_v61 = vrot.slane %v4888_v11, 9 }
 0x19d   : > { %v1683_v4 = vpop.f32.mrf.mxu3  ;;  %4806 = vmatmul.msk.bf16.gmra.mxu2 %vm709_vm4, %v4971_v3  ;;  %v1048_v47 = vpop.f32.mrf.mxu1  ;;  %v4834_v3 = vld [vmem:[%s5247_s29 + $0x54] sm:$0xf]  ;;  %v3249_v55 = vsel %vm5259_vm3, %v3244_v62, %v3248_v35  ;;  %v4972_v35 = vld [vmem:[%s5247_s29 + $0x48] sm:$0xff] }
 0x19e   : > { %v1732_v20 = vadd.f32 %v1683_v4, %v1445_v8  ;;  %v3949_v8 = vpack.c.b16 %v3921_v60, %v3920_v37  ;;  %v3239_v4 = vsel %vm5259_vm3, %v3234_v16, %v6046_v7  ;;  %v3251_v17 = vshrl.u32 %v4834_v3, 16  ;;  %v5137_v60 = vld [vmem:[%s5247_s29 + $0x50] sm:$0x1] }
 0x19f   : > { %v3832_v37 = vrot.slane %v3830_v43, 4  ;;  %v3833_v7 = vrot.slane %v6052_v48, 5  ;;  %v3524_v50 = vunpack.c.l.b16 %v3239_v4  ;;  %v2500_v16 = vrot.slane %v2498_v58, 4 }
 0x1a0   : > { %v1399_v25 = vpop.f32.mrf.mxu2  ;;  %v6073_v40 = vadd.f32 %v2337_v56, %v1732_v20  ;;  %v3254_v56 = vshll.u32 %v4834_v3, 16  ;;  %v3260_v20 = vshll.u32 %v6071_v14, 16  ;;  %v3525_v11 = vunpack.c.l.b16 %v3249_v55 }
 0x1a1   : > { %v1446_v34 = vadd.f32 %v1399_v25, %v1047_v24  ;;  %v1049_v24 = vadd.f32 %v1048_v47, %v5682_v10  ;;  %v2501_v25 = vrot.slane %v5137_v60, 5  ;;  %v3831_v3 = vsel %vm5433_vm7, %v4904_v61, %v3830_v43 }
 0x1a2   : > { %4871 = vmatmul.msk.bf16.gmra.mxu3 %vm709_vm4, %v3551_v23  ;;  %v3264_v23 = vshrl.u32 %v6071_v14, 16  ;;  %v3253_v10 = vrot.slane %v3251_v17, 4  ;;  %v3256_v47 = vrot.slane %v3254_v56, 5  ;;  %v6094_v48 = vrot.slane %v3260_v20, 5 }
 0x1a3   : > { %v2502_v55 = vsel %vm5433_vm7, %v2500_v16, %v2501_v25  ;;  %v3922_v61 = vunpack.c.l.b16 %v3831_v3  ;;  %v4889_v3 = vld [vmem:[%s5247_s29 + $0x54] sm:$0xe] }
 0x1a4   : > { %v2340_v63 = vpop.f32.mrf.mxu0  ;;  %v3266_v28 = vrot.slane %v3264_v23, 4  ;;  %v3257_v20 = vor.u32 %v3256_v47, %v3253_v10 }
 0x1a5   : > { %v1686_v33 = vpop.f32.mrf.mxu3  ;;  %v1051_v27 = vpop.f32.mrf.mxu1 }
 0x1a6   : > { %v1733_v26 = vadd.f32 %v1686_v33, %v1446_v34  ;;  %v4678_v34 = vrot.slane %v4662_v38, 9  ;;  %v6103_v38 = vld [vmem:[%s5247_s29 + $0x5c] sm:$0x1]  ;;  %v3267_v23 = vor.u32 %v3266_v28, %v6094_v48  ;;  %v3258_v16 = vrot.slane %v3257_v20, 4 }
 0x1a7   : > { %4920 = vmatmul.msk.bf16.gmra.mxu0 %vm709_vm4, %v3949_v8 }
 0x1a8   : > { %v1401_v9 = vpop.f32.mrf.mxu2  ;;  %4694 = vmatmul.msk.bf16.gmra.mxu1 %vm709_vm4, %v2611_v41  ;;  %v6092_v8 = vadd.f32 %v2340_v63, %v1733_v26  ;;  %v3834_v41 = vsel %vm5433_vm7, %v3832_v37, %v3833_v7  ;;  %v2499_v4 = vsel %vm5433_vm7, %v4678_v34, %v2498_v58  ;;  %v3552_v63 = vpack.c.b16 %v3525_v11, %v3524_v50  ;;  %v6111_v34 = vld [vmem:[%s5247_s29 + $0x64] sm:$0xf] }
 0x1a9   : > { %v1447_v62 = vadd.f32 %v1401_v9, %v1049_v24  ;;  %v3923_v56 = vunpack.c.l.b16 %v3834_v41  ;;  %v1052_v58 = vadd.f32 %v1051_v27, %v5558_v49  ;;  %v2585_v24 = vunpack.c.l.b16 %v2499_v4  ;;  %v4837_v9 = vld [vmem:[%s5247_s29 + $0x60] sm:$0xf] }
 0x1aa   : > { %v2586_v37 = vunpack.c.l.b16 %v2502_v55  ;;  %v3270_v7 = vshll.u32 %v6103_v38, 16  ;;  %v3837_v49 = vrot.slane %v6071_v14, 5  ;;  %v3275_v47 = vshrl.u32 %v4837_v9, 16 }
 0x1ab   : > { %v3950_v50 = vpack.c.b16 %v3923_v56, %v3922_v61  ;;  %v3278_v28 = vshll.u32 %v4837_v9, 16  ;;  %v3284_v41 = vshll.u32 %v6111_v34, 16  ;;  %v3288_v4 = vshrl.u32 %v6111_v34, 16  ;;  %v5139_v56 = vld [vmem:[%s5247_s29 + $0x5c] sm:$0x1] }
 0x1ac   : > { %v2342_v33 = vpop.f32.mrf.mxu0  ;;  %v3272_v11 = vrot.slane %v3270_v7, 5  ;;  %v2508_v20 = vrot.slane %v5139_v56, 5  ;;  %v3840_v14 = vrot.slane %v6103_v38, 5  ;;  %v3839_v7 = vrot.slane %v3837_v49, 4  ;;  %v6138_v56 = vld [vmem:[%s5247_s29 + $0x68] sm:$0x1] }
 0x1ad   : > { %v1688_v43 = vpop.f32.mrf.mxu3  ;;  %4807 = vmatmul.msk.bf16.gmra.mxu2 %vm709_vm4, %v4972_v35  ;;  %v1053_v17 = vpop.f32.mrf.mxu1  ;;  %v2612_v35 = vpack.c.b16 %v2586_v37, %v2585_v24  ;;  %v3263_v24 = vsel %vm5259_vm3, %v3258_v16, %v6094_v48  ;;  %v3280_v9 = vrot.slane %v3278_v28, 5  ;;  %v6132_v38 = vrot.slane %v3284_v41, 5 }
 0x1ae   : > { %v1734_v26 = vadd.f32 %v1688_v43, %v1447_v62  ;;  %v3268_v62 = vrot.slane %v3267_v23, 4  ;;  %v3526_v48 = vunpack.c.l.b16 %v3263_v24 }
 0x1b0   : > { %v1404_v60 = vpop.f32.mrf.mxu2  ;;  %v6116_v27 = vadd.f32 %v2342_v33, %v1734_v26  ;;  %v4663_v33 = vld [vmem:[%s5247_s29 + $0x54] sm:$0xe]  ;;  %v1054_v26 = vadd.f32 %v1053_v17, %v5577_v0  ;;  %v3273_v37 = vsel %vm5259_vm3, %v3268_v62, %v3272_v11 }
 0x1b1   : > { %v1448_v25 = vadd.f32 %v1404_v60, %v1052_v58  ;;  %v4905_v58 = vrot.slane %v4889_v3, 9  ;;  %v3290_v3 = vrot.slane %v3288_v4, 4  ;;  %v4679_v0 = vrot.slane %v4663_v33, 9 }
 0x1b2   : > { %4872 = vmatmul.msk.bf16.gmra.mxu3 %vm709_vm4, %v3552_v63  ;;  %v5138_v63 = vld [vmem:[%s5247_s29 + $0x58] sm:$0xf]  ;;  %v3527_v16 = vunpack.c.l.b16 %v3273_v37 }
 0x1b3   : > { %v2505_v61 = vrot.slane %v5138_v63, 5  ;;  %v3838_v11 = vsel %vm5433_vm7, %v4905_v58, %v3837_v49  ;;  %v3294_v49 = vshll.u32 %v6138_v56, 16 }
 0x1b4   : > { %v2345_v10 = vpop.f32.mrf.mxu0  ;;  %v3553_v33 = vpack.c.b16 %v3527_v16, %v3526_v48 }
 0x1b5   : > { %v1691_v55 = vpop.f32.mrf.mxu3  ;;  %v1056_v43 = vpop.f32.mrf.mxu1  ;;  %v2507_v17 = vrot.slane %v2505_v61, 4 }
 0x1b6   : > { %v1735_v23 = vadd.f32 %v1691_v55, %v1448_v25  ;;  %v3277_v25 = vrot.slane %v3275_v47, 4  ;;  %v4973_v55 = vld [vmem:[%s5247_s29 + $0x54] sm:$0xff] }
 0x1b7   : > { %4921 = vmatmul.msk.bf16.gmra.mxu0 %vm709_vm4, %v3950_v50  ;;  %v2509_v4 = vsel %vm5433_vm7, %v2507_v17, %v2508_v20  ;;  %v3296_v20 = vrot.slane %v3294_v49, 5  ;;  %v6157_v17 = vld [vmem:[%s5247_s29 + $0x70] sm:$0xf]  ;;  %v4664_v49 = vld [vmem:[%s5247_s29 + $0x60] sm:$0xe] }
 0x1b8   : > { %v1406_v60 = vpop.f32.mrf.mxu2  ;;  %4695 = vmatmul.msk.bf16.gmra.mxu1 %vm709_vm4, %v2612_v35  ;;  %v6135_v63 = vadd.f32 %v2345_v10, %v1735_v23  ;;  %v3841_v35 = vsel %vm5433_vm7, %v3839_v7, %v3840_v14  ;;  %v3281_v47 = vor.u32 %v3280_v9, %v3277_v25  ;;  %v2506_v10 = vsel %vm5433_vm7, %v4679_v0, %v2505_v61 }
 0x1b9   : > { %v1449_v50 = vadd.f32 %v1406_v60, %v1054_v26  ;;  %v3291_v23 = vor.u32 %v3290_v3, %v6132_v38  ;;  %v1057_v14 = vadd.f32 %v1056_v43, %v5598_v39  ;;  %v3924_v26 = vunpack.c.l.b16 %v3838_v11  ;;  %v4840_v3 = vld [vmem:[%s5247_s29 + $0x6c] sm:$0xf] }
 0x1ba   : > { %v3925_v24 = vunpack.c.l.b16 %v3841_v35  ;;  %v2587_v7 = vunpack.c.l.b16 %v2506_v10  ;;  %v2588_v60 = vunpack.c.l.b16 %v2509_v4  ;;  %v3282_v25 = vrot.slane %v3281_v47, 4  ;;  %v5140_v10 = vld [vmem:[%s5247_s29 + $0x64] sm:$0xf] }
 0x1bb   : > { %v3292_v9 = vrot.slane %v3291_v23, 4  ;;  %v3844_v0 = vrot.slane %v6111_v34, 5  ;;  %v2512_v4 = vrot.slane %v5140_v10, 5  ;;  %v3299_v34 = vshrl.u32 %v4840_v3, 16 }
 0x1bc   : > { %v2347_v62 = vpop.f32.mrf.mxu0  ;;  %v2613_v48 = vpack.c.b16 %v2588_v60, %v2587_v7  ;;  %v3287_v47 = vsel %vm5259_vm3, %v3282_v25, %v6132_v38  ;;  %v3847_v38 = vrot.slane %v6138_v56, 5 }
 0x1bd   : > { %v1693_v28 = vpop.f32.mrf.mxu3  ;;  %4808 = vmatmul.msk.bf16.gmra.mxu2 %vm709_vm4, %v4973_v55  ;;  %v1058_v41 = vpop.f32.mrf.mxu1  ;;  %v4890_v55 = vld [vmem:[%s5247_s29 + $0x60] sm:$0xe]  ;;  %v3528_v60 = vunpack.c.l.b16 %v3287_v47  ;;  %v6185_v47 = vld [vmem:[%s5247_s29 + $0x74] sm:$0x1] }
 0x1be   : > { %v1736_v58 = vadd.f32 %v1693_v28, %v1449_v50  ;;  %v3951_v50 = vpack.c.b16 %v3925_v24, %v3924_v26  ;;  %v4906_v16 = vrot.slane %v4890_v55, 9  ;;  %v3297_v28 = vsel %vm5259_vm3, %v3292_v9, %v3296_v20  ;;  %v5141_v24 = vld [vmem:[%s5247_s29 + $0x68] sm:$0x1]  ;;  %v4974_v20 = vld [vmem:[%s5247_s29 + $0x60] sm:$0xff] }
 0x1bf   : > { %v3846_v26 = vrot.slane %v3844_v0, 4  ;;  %v4680_v55 = vrot.slane %v4664_v49, 9 }
 0x1c0   : > { %v1409_v37 = vpop.f32.mrf.mxu2  ;;  %v6159_v39 = vadd.f32 %v2347_v62, %v1736_v58  ;;  %v3302_v62 = vshll.u32 %v4840_v3, 16  ;;  %v3308_v58 = vshll.u32 %v6157_v17, 16  ;;  %v3845_v25 = vsel %vm5433_vm7, %v4906_v16, %v3844_v0 }
 0x1c1   : > { %v1450_v61 = vadd.f32 %v1409_v37, %v1057_v14  ;;  %v1059_v14 = vadd.f32 %v1058_v41, %v5617_v6  ;;  %v2515_v37 = vrot.slane %v5141_v24, 5  ;;  %v2514_v3 = vrot.slane %v2512_v4, 4 }
 0x1c2   : > { %4873 = vmatmul.msk.bf16.gmra.mxu3 %vm709_vm4, %v3553_v33  ;;  %v3312_v33 = vshrl.u32 %v6157_v17, 16  ;;  %v3301_v6 = vrot.slane %v3299_v34, 4  ;;  %v3304_v41 = vrot.slane %v3302_v62, 5  ;;  %v6180_v56 = vrot.slane %v3308_v58, 5 }
 0x1c3   : > { %v3848_v10 = vsel %vm5433_vm7, %v3846_v26, %v3847_v38  ;;  %v3926_v16 = vunpack.c.l.b16 %v3845_v25  ;;  %v2513_v34 = vsel %vm5433_vm7, %v4680_v55, %v2512_v4  ;;  %v3318_v26 = vshll.u32 %v6185_v47, 16  ;;  %v6197_v25 = vld [vmem:[%s5247_s29 + $0x7c] sm:$0xf]  ;;  %v4891_v55 = vld [vmem:[%s5247_s29 + $0x6c] sm:$0xe] }
 0x1c4   : > { %v2350_v43 = vpop.f32.mrf.mxu0  ;;  %v3927_v62 = vunpack.c.l.b16 %v3848_v10  ;;  %v3305_v58 = vor.u32 %v3304_v41, %v3301_v6  ;;  %v2589_v24 = vunpack.c.l.b16 %v2513_v34  ;;  %v3332_v10 = vshll.u32 %v6197_v25, 16 }
 0x1c5   : > { %v1696_v11 = vpop.f32.mrf.mxu3  ;;  %v1061_v35 = vpop.f32.mrf.mxu1 }
 0x1c6   : > { %v1737_v23 = vadd.f32 %v1696_v11, %v1450_v61  ;;  %v3529_v61 = vunpack.c.l.b16 %v3297_v28  ;;  %v3314_v11 = vrot.slane %v3312_v33, 4  ;;  %v3952_v4 = vpack.c.b16 %v3927_v62, %v3926_v16  ;;  %v4665_v16 = vld [vmem:[%s5247_s29 + $0x6c] sm:$0xe] }
 0x1c7   : > { %4922 = vmatmul.msk.bf16.gmra.mxu0 %vm709_vm4, %v3951_v50 }
 0x1c8   : > { %v1411_v7 = vpop.f32.mrf.mxu2  ;;  %4696 = vmatmul.msk.bf16.gmra.mxu1 %vm709_vm4, %v2613_v48  ;;  %v6178_v50 = vadd.f32 %v2350_v43, %v1737_v23  ;;  %v3554_v0 = vpack.c.b16 %v3529_v61, %v3528_v60  ;;  %v2516_v23 = vsel %vm5433_vm7, %v2514_v3, %v2515_v37  ;;  %v3315_v33 = vor.u32 %v3314_v11, %v6180_v56  ;;  %v4843_v60 = vld [vmem:[%s5247_s29 + $0x78] sm:$0xf] }
 0x1c9   : > { %v1451_v9 = vadd.f32 %v1411_v7, %v1059_v14  ;;  %v1062_v14 = vadd.f32 %v1061_v35, %v5636_v45  ;;  %v2590_v7 = vunpack.c.l.b16 %v2516_v23  ;;  %v3306_v37 = vrot.slane %v3305_v58, 4  ;;  %v5142_v23 = vld [vmem:[%s5247_s29 + $0x70] sm:$0xf] }
 0x1ca   : > { %v3851_v45 = vrot.slane %v6157_v17, 5  ;;  %v3323_v35 = vshrl.u32 %v4843_v60, 16  ;;  %v3326_v11 = vshll.u32 %v4843_v60, 16  ;;  %v2519_v62 = vrot.slane %v5142_v23, 5 }
 0x1cb   : > { %v2614_v41 = vpack.c.b16 %v2590_v7, %v2589_v24  ;;  %v3311_v17 = vsel %vm5259_vm3, %v3306_v37, %v6180_v56  ;;  %v4681_v7 = vrot.slane %v4665_v16, 9  ;;  %v3334_v56 = vrot.slane %v3332_v10, 5 }
 0x1cc   : > { %v2352_v48 = vpop.f32.mrf.mxu0  ;;  %v3328_v60 = vrot.slane %v3326_v11, 5 }
 0x1cd   : > { %v1698_v28 = vpop.f32.mrf.mxu3  ;;  %4809 = vmatmul.msk.bf16.gmra.mxu2 %vm709_vm4, %v4974_v20  ;;  %v1063_v43 = vpop.f32.mrf.mxu1  ;;  %v3320_v20 = vrot.slane %v3318_v26, 5  ;;  %v3853_v26 = vrot.slane %v3851_v45, 4 }
 0x1ce   : > { %v1738_v49 = vadd.f32 %v1698_v28, %v1451_v9  ;;  %v3316_v9 = vrot.slane %v3315_v33, 4  ;;  %v3336_v28 = vshrl.u32 %v6197_v25, 16  ;;  %v1064_v33 = vadd.f32 %v1063_v43, %v5659_v12 }
 0x1cf   : > { %v3530_v12 = vunpack.c.l.b16 %v3311_v17 }
 0x1d0   : > { %v1414_v38 = vpop.f32.mrf.mxu2  ;;  %v6202_v3 = vadd.f32 %v2352_v48, %v1738_v49  ;;  %v4907_v48 = vrot.slane %v4891_v55, 9  ;;  %v3854_v49 = vrot.slane %v6185_v47, 5  ;;  %v4975_v55 = vld [vmem:[%s5247_s29 + $0x6c] sm:$0xff]  ;;  %v2521_v47 = vrot.slane %v2519_v62, 4 }
 0x1d1   : > { %v1452_v61 = vadd.f32 %v1414_v38, %v1062_v14  ;;  %v3321_v14 = vsel %vm5259_vm3, %v3316_v9, %v3320_v20  ;;  %v3325_v38 = vrot.slane %v3323_v35, 4  ;;  %v6222_v9 = vld [vmem:[%s5247_s29 + $0x80] sm:$0x1] }
 0x1d2   : > { %4874 = vmatmul.msk.bf16.gmra.mxu3 %vm709_vm4, %v3554_v0  ;;  %v3531_v43 = vunpack.c.l.b16 %v3321_v14  ;;  %v3852_v35 = vsel %vm5433_vm7, %v4907_v48, %v3851_v45  ;;  %v3342_v17 = vshll.u32 %v6222_v9, 16 }
 0x1d3   : > { %v3329_v11 = vor.u32 %v3328_v60, %v3325_v38 }
 0x1d4   : > { %v2355_v6 = vpop.f32.mrf.mxu0  ;;  %v3555_v48 = vpack.c.b16 %v3531_v43, %v3530_v12 }
 0x1d5   : > { %v1701_v0 = vpop.f32.mrf.mxu3  ;;  %v1066_v34 = vpop.f32.mrf.mxu1 }
 0x1d6   : > { %v1739_v58 = vadd.f32 %v1701_v0, %v1452_v61  ;;  %v3338_v61 = vrot.slane %v3336_v28, 4  ;;  %v5143_v0 = vld [vmem:[%s5247_s29 + $0x74] sm:$0x1] }
 0x1d7   : > { %4923 = vmatmul.msk.bf16.gmra.mxu0 %vm709_vm4, %v3952_v4  ;;  %v2522_v4 = vrot.slane %v5143_v0, 5 }
 0x1d8   : > { %v1416_v24 = vpop.f32.mrf.mxu2  ;;  %4697 = vmatmul.msk.bf16.gmra.mxu1 %vm709_vm4, %v2614_v41  ;;  %v6219_v23 = vadd.f32 %v2355_v6, %v1739_v58  ;;  %v3855_v41 = vsel %vm5433_vm7, %v3853_v26, %v3854_v49  ;;  %v2520_v6 = vsel %vm5433_vm7, %v4681_v7, %v2519_v62  ;;  %v3339_v58 = vor.u32 %v3338_v61, %v3334_v56 }
 0x1d9   : > { %v1453_v37 = vadd.f32 %v1416_v24, %v1064_v33  ;;  %v2523_v16 = vsel %vm5433_vm7, %v2521_v47, %v2522_v4  ;;  %v1067_v49 = vadd.f32 %v1066_v34, %v5678_v59  ;;  %v3928_v33 = vunpack.c.l.b16 %v3852_v35  ;;  %v4892_v47 = vld [vmem:[%s5247_s29 + $0x78] sm:$0xe]  ;;  %v6240_v4 = vld [vmem:[%s5247_s29 + $0x88] sm:$0xf] }
 0x1da   : > { %v3929_v14 = vunpack.c.l.b16 %v3855_v41  ;;  %v2591_v38 = vunpack.c.l.b16 %v2520_v6  ;;  %v2592_v24 = vunpack.c.l.b16 %v2523_v16  ;;  %v3330_v62 = vrot.slane %v3329_v11, 4  ;;  %v5144_v41 = vld [vmem:[%s5247_s29 + $0x7c] sm:$0xf] }
 0x1db   : > { %v3340_v60 = vrot.slane %v3339_v58, 4  ;;  %v3858_v61 = vrot.slane %v6197_v25, 5  ;;  %v4908_v35 = vrot.slane %v4892_v47, 9  ;;  %v2526_v11 = vrot.slane %v5144_v41, 5  ;;  %v4848_v41 = vld [vmem:[%s5247_s29 + $0x8c] sm:$0x1] }
 0x1dc   : > { %v2357_v20 = vpop.f32.mrf.mxu0  ;;  %v3953_v0 = vpack.c.b16 %v3929_v14, %v3928_v33  ;;  %v2615_v12 = vpack.c.b16 %v2592_v24, %v2591_v38  ;;  %v3335_v43 = vsel %vm5259_vm3, %v3330_v62, %v3334_v56  ;;  %v3861_v58 = vrot.slane %v6222_v9, 5  ;;  %v5145_v62 = vld [vmem:[%s5247_s29 + $0x80] sm:$0x1] }
 0x1dd   : > { %v1703_v10 = vpop.f32.mrf.mxu3  ;;  %4810 = vmatmul.msk.bf16.gmra.mxu2 %vm709_vm4, %v4975_v55  ;;  %v1068_v28 = vpop.f32.mrf.mxu1  ;;  %v3344_v55 = vrot.slane %v3342_v17, 5  ;;  %v3860_v16 = vrot.slane %v3858_v61, 4  ;;  %v4666_v17 = vld [vmem:[%s5247_s29 + $0x78] sm:$0xe]  ;;  %v3360_v56 = vshrl.u32 %v6240_v4, 16  ;;  %v3532_v14 = vunpack.c.l.b16 %v3335_v43 }
 0x1de   : > { %v1740_v45 = vadd.f32 %v1703_v10, %v1453_v37  ;;  %v4846_v37 = vld [vmem:[%s5247_s29 + $0x84] sm:$0xf]  ;;  %v1069_v33 = vadd.f32 %v1068_v28, %v5695_v32  ;;  %v3859_v9 = vsel %vm5433_vm7, %v4908_v35, %v3858_v61  ;;  %v4682_v38 = vrot.slane %v4666_v17, 9 }
 0x1df   : > { %v3345_v25 = vsel %vm5259_vm3, %v3340_v60, %v3344_v55  ;;  %v2528_v24 = vrot.slane %v2526_v11, 4  ;;  %v4976_v55 = vld [vmem:[%s5247_s29 + $0x78] sm:$0xff] }
 0x1e0   : > { %v1419_v26 = vpop.f32.mrf.mxu2  ;;  %v6242_v59 = vadd.f32 %v2357_v20, %v1740_v45  ;;  %v3347_v20 = vshrl.u32 %v4846_v37, 16  ;;  %v3533_v47 = vunpack.c.l.b16 %v3345_v25  ;;  %v2527_v35 = vsel %vm5433_vm7, %v4682_v38, %v2526_v11  ;;  %v4893_v11 = vld [vmem:[%s5247_s29 + $0x84] sm:$0xe] }
 0x1e1   : > { %v1454_v7 = vadd.f32 %v1419_v26, %v1067_v49  ;;  %v3356_v49 = vshll.u32 %v6240_v4, 16 }
 0x1e2   : > { %4875 = vmatmul.msk.bf16.gmra.mxu3 %vm709_vm4, %v3555_v48  ;;  %v3350_v48 = vshll.u32 %v4846_v37, 16  ;;  %v3862_v37 = vsel %vm5433_vm7, %v3860_v16, %v3861_v58  ;;  %v3349_v32 = vrot.slane %v3347_v20, 4  ;;  %v3930_v16 = vunpack.c.l.b16 %v3859_v9 }
 0x1e3   : > { %v6264_v43 = vrot.slane %v3356_v49, 5  ;;  %v3931_v58 = vunpack.c.l.b16 %v3862_v37  ;;  %v3366_v49 = vshll.u32 %v4848_v41, 16 }
 0x1e4   : > { %v2360_v34 = vpop.f32.mrf.mxu0  ;;  %v3352_v28 = vrot.slane %v3350_v48, 5 }
 0x1e5   : > { %v1706_v10 = vpop.f32.mrf.mxu3  ;;  %v2683_v6 = vpop.f32.mrf.mxu1 }
 0x1e6   : > { %v1741_v45 = vadd.f32 %v1706_v10, %v1454_v7  ;;  %v2529_v7 = vrot.slane %v5145_v62, 5  ;;  %v4849_v62 = vld [vmem:[%s5247_s29 + $0x90] sm:$0xf] }
 0x1e7   : > { %4924 = vmatmul.msk.bf16.gmra.mxu0 %vm709_vm4, %v3953_v0 }
 0x1e8   : > { %v1421_v26 = vpop.f32.mrf.mxu2  ;;  %4698 = vmatmul.msk.bf16.gmra.mxu1 %vm709_vm4, %v2615_v12  ;;  %v6262_v0 = vadd.f32 %v2360_v34, %v1741_v45  ;;  %v3362_v12 = vrot.slane %v3360_v56, 4  ;;  %v2530_v10 = vsel %vm5433_vm7, %v2528_v24, %v2529_v7  ;;  %v3556_v34 = vpack.c.b16 %v3533_v47, %v3532_v14  ;;  %v6277_v7 = vld [vmem:[%s5247_s29 + $0x94] sm:$0xf] }
 0x1e9   : > { %v1455_v60 = vadd.f32 %v1421_v26, %v1069_v33  ;;  %v3353_v45 = vor.u32 %v3352_v28, %v3349_v32  ;;  %v2593_v56 = vunpack.c.l.b16 %v2527_v35  ;;  %v2594_v33 = vunpack.c.l.b16 %v2530_v10 }
 0x1ea   : > { %6614 = vst [vmem:[#allocation4_spill] sm:$0xff] %v6262_v0  ;;  %v3363_v48 = vor.u32 %v3362_v12, %v6264_v43  ;;  %v3865_v26 = vrot.slane %v6240_v4, 5  ;;  %v3954_v24 = vpack.c.b16 %v3931_v58, %v3930_v16  ;;  %v3868_v32 = vrot.slane %v4848_v41, 5  ;;  %v5146_v58 = vld [vmem:[%s5247_s29 + $0x88] sm:$0xf] }
 0x1eb   : > { %v3354_v14 = vrot.slane %v3353_v45, 4  ;;  %v2616_v47 = vpack.c.b16 %v2594_v33, %v2593_v56  ;;  %v2763_v4 = vadd.f32 %v2683_v6, %v5712_v46  ;;  %v3371_v35 = vshrl.u32 %v4849_v62, 16  ;;  %v4667_v41 = vld [vmem:[%s5247_s29 + $0x84] sm:$0xe]  ;;  %v4855_v0 = vld [vmem:[%s5247_s29 + $0xa8] sm:$0xf] }
 0x1ec   : > { %v2362_v61 = vpop.f32.mrf.mxu0  ;;  %v3364_v9 = vrot.slane %v3363_v48, 4  ;;  %v3867_v37 = vrot.slane %v3865_v26, 4  ;;  %v3374_v10 = vshll.u32 %v4849_v62, 16  ;;  %v2533_v45 = vrot.slane %v5146_v58, 5 }
 0x1ed   : > { %v1708_v25 = vpop.f32.mrf.mxu3  ;;  %4811 = vmatmul.msk.bf16.gmra.mxu2 %vm709_vm4, %v4976_v55  ;;  %v2685_v17 = vpop.f32.mrf.mxu1  ;;  %v4909_v55 = vrot.slane %v4893_v11, 9  ;;  %v3384_v48 = vshrl.u32 %v6277_v7, 16  ;;  %v3359_v46 = vsel %vm5259_vm3, %v3354_v14, %v6264_v43  ;;  %v3373_v11 = vrot.slane %v3371_v35, 4  ;;  %v4977_v43 = vld [vmem:[%s5247_s29 + $0x84] sm:$0xff] }
 0x1ee   : > { %v1742_v20 = vadd.f32 %v1708_v25, %v1455_v60  ;;  %v3368_v60 = vrot.slane %v3366_v49, 5  ;;  %v3380_v25 = vshll.u32 %v6277_v7, 16  ;;  %v2764_v56 = vadd.f32 %v2685_v17, %v5725_v42 }
 0x1ef   : > { %v4683_v62 = vrot.slane %v4667_v41, 9  ;;  %v2535_v14 = vrot.slane %v2533_v45, 4  ;;  %v3534_v58 = vunpack.c.l.b16 %v3359_v46  ;;  %v6317_v46 = vld [vmem:[%s6606_s2] ss:$0 sm:$0xff] }
 0x1f0   : > { %v2970_v38 = vpop.f32.mrf.mxu2  ;;  %v6280_v28 = vadd.f32 %v2362_v61, %v1742_v20  ;;  %v3369_v6 = vsel %vm5259_vm3, %v3364_v9, %v3368_v60  ;;  %v3866_v61 = vsel %vm5433_vm7, %v4909_v55, %v3865_v26  ;;  %v3869_v20 = vsel %vm5433_vm7, %v3867_v37, %v3868_v32  ;;  %v5147_v9 = vld [vmem:[%s5247_s29 + $0x8c] sm:$0x1]  ;;  %v6306_v32 = vld [vmem:[%s5247_s29 + $0x98] sm:$0x1] }
 0x1f1   : > { %v3050_v49 = vadd.f32 %v2970_v38, %v2763_v4  ;;  %v3376_v38 = vrot.slane %v3374_v10, 5  ;;  %v2536_v60 = vrot.slane %v5147_v9, 5  ;;  %v3386_v4 = vrot.slane %v3384_v48, 4 }
 0x1f2   : > { %4876 = vmatmul.msk.bf16.gmra.mxu3 %vm709_vm4, %v3556_v34  ;;  %6615 = vst [vmem:[#allocation5_spill] sm:$0xff] %v6280_v28  ;;  %v3535_v37 = vunpack.c.l.b16 %v3369_v6  ;;  %v3932_v17 = vunpack.c.l.b16 %v3866_v61 }
 0x1f3   : > { %v3377_v48 = vor.u32 %v3376_v38, %v3373_v11  ;;  %v6323_v11 = vld [vmem:[%s5247_s29 + $0xa0] sm:$0xf] }
 0x1f4   : > { %v4022_v12 = vpop.f32.mrf.mxu0  ;;  %v3557_v61 = vpack.c.b16 %v3535_v37, %v3534_v58 }
 0x1f5   : > { %v3624_v16 = vpop.f32.mrf.mxu3  ;;  %v6284_v34 = vpop.f32.mrf.mxu1 }
 0x1f6   : > { %v3704_v26 = vadd.f32 %v3624_v16, %v3050_v49  ;;  %v2537_v16 = vsel %vm5433_vm7, %v2535_v14, %v2536_v60 }
 0x1f7   : > { %4925 = vmatmul.msk.bf16.gmra.mxu0 %vm709_vm4, %v3954_v24  ;;  %v6301_v24 = vrot.slane %v3380_v25, 5  ;;  %v2534_v25 = vsel %vm5433_vm7, %v4683_v62, %v2533_v45  ;;  %v4852_v62 = vld [vmem:[%s5247_s29 + $0x9c] sm:$0xf] }
 0x1f8   : > { %v2972_v33 = vpop.f32.mrf.mxu2  ;;  %4699 = vmatmul.msk.bf16.gmra.mxu1 %vm709_vm4, %v2616_v47  ;;  %v3933_v47 = vunpack.c.l.b16 %v3869_v20  ;;  %v4102_v41 = vadd.f32 %v4022_v12, %v3704_v26  ;;  %v3390_v20 = vshll.u32 %v6306_v32, 16  ;;  %v3378_v12 = vrot.slane %v3377_v48, 4  ;;  %v4894_v26 = vld [vmem:[%s5247_s29 + $0x90] sm:$0xe] }
 0x1f9   : > { %v3051_v55 = vadd.f32 %v2972_v33, %v2764_v56  ;;  %v3387_v49 = vor.u32 %v3386_v4, %v6301_v24  ;;  %v2595_v33 = vunpack.c.l.b16 %v2534_v25  ;;  %v3395_v58 = vshrl.u32 %v4852_v62, 16 }
 0x1fa   : > { %v3955_v38 = vpack.c.b16 %v3933_v47, %v3932_v17  ;;  %v4138_v9 = vadd.f32 %v6317_v46, %v4102_v41  ;;  %v3392_v4 = vrot.slane %v3390_v20, 5  ;;  %v3398_v37 = vshll.u32 %v4852_v62, 16 }
 0x1fb   : > { %v3388_v14 = vrot.slane %v3387_v49, 4  ;;  %v3408_v17 = vshrl.u32 %v6323_v11, 16  ;;  %v4910_v49 = vrot.slane %v4894_v26, 9  ;;  %v3875_v41 = vrot.slane %v6306_v32, 5  ;;  %v6356_v26 = vld [vmem:[%s5247_s29 + $0xa4] sm:$0x1] }
 0x1fc   : > { %v4024_v42 = vpop.f32.mrf.mxu0  ;;  %v3400_v32 = vrot.slane %v3398_v37, 5 }
 0x1fd   : > { %v3626_v35 = vpop.f32.mrf.mxu3  ;;  %4812 = vmatmul.msk.bf16.gmra.mxu2 %vm709_vm4, %v4977_v43  ;;  %v2690_v10 = vpop.f32.mrf.mxu1  ;;  %v2596_v43 = vunpack.c.l.b16 %v2537_v16 }
 0x1fe   : > { %v3705_v6 = vadd.f32 %v3626_v35, %v3051_v55  ;;  %v3872_v55 = vrot.slane %v6277_v7, 5  ;;  %v2765_v35 = vadd.f32 %v6284_v34, %v5738_v15  ;;  %v3393_v15 = vsel %vm5259_vm3, %v3388_v14, %v3392_v4 }
 0x1ff   : > { %v2617_v16 = vpack.c.b16 %v2596_v43, %v2595_v33  ;;  %v4668_v33 = vld [vmem:[%s5247_s29 + $0x90] sm:$0xe]  ;;  %v3397_v43 = vrot.slane %v3395_v58, 4  ;;  %v3537_v58 = vunpack.c.l.b16 %v3393_v15 }
 0x200   : > { %v4103_v56 = vadd.f32 %v4024_v42, %v3705_v6  ;;  %v2975_v45 = vpop.f32.mrf.mxu2  ;;  %v3404_v42 = vshll.u32 %v6323_v11, 16  ;;  %v5148_v6 = vld [vmem:[%s5247_s29 + $0x94] sm:$0xf]  ;;  %v3874_v34 = vrot.slane %v3872_v55, 4  ;;  %v4684_v14 = vrot.slane %v4668_v33, 9 }
 0x201   : > { %v3052_v20 = vadd.f32 %v2975_v45, %v2765_v35  ;;  %v3873_v37 = vsel %vm5433_vm7, %v4910_v49, %v3872_v55 }
 0x202   : > { %v4139_v60 = vadd.f32 %v6317_v46, %v4103_v56  ;;  %4877 = vmatmul.msk.bf16.gmra.mxu3 %vm709_vm4, %v3557_v61  ;;  %v2540_v61 = vrot.slane %v5148_v6, 5  ;;  %v3383_v56 = vsel %vm5259_vm3, %v3378_v12, %v6301_v24  ;;  %v6351_v62 = vrot.slane %v3404_v42, 5  ;;  %v4978_v24 = vld [vmem:[%s5247_s29 + $0x90] sm:$0xff] }
 0x203   : > { %v3536_v12 = vunpack.c.l.b16 %v3383_v56  ;;  %v3934_v33 = vunpack.c.l.b16 %v3873_v37 }
 0x204   : > { %v4987_v47 = vpack.c.bf16 %v4139_v60, %v4138_v9  ;;  %v4027_v25 = vpop.f32.mrf.mxu0  ;;  %v3410_v9 = vrot.slane %v3408_v17, 4  ;;  %v2766_v60 = vadd.f32 %v2690_v10, %v5751_v13  ;;  %v2542_v4 = vrot.slane %v2540_v61, 4 }
 0x205   : > { %v3629_v7 = vpop.f32.mrf.mxu3  ;;  %v6339_v48 = vpop.f32.mrf.mxu1  ;;  %v3876_v13 = vsel %vm5433_vm7, %v3874_v34, %v3875_v41  ;;  %v3401_v10 = vor.u32 %v3400_v32, %v3397_v43  ;;  %v3414_v17 = vshll.u32 %v6356_v26, 16  ;;  %v3558_v15 = vpack.c.b16 %v3537_v58, %v3536_v12 }
 0x206   : > { %4988 = vst [vmem:[%s6333_s19] sm:$0xff] %v4987_v47   ;;  %v5149_v47 = vld [vmem:[%s5247_s29 + $0x98] sm:$0x1]  ;;  %v3706_v6 = vadd.f32 %v3629_v7, %v3052_v20  ;;  %v3411_v42 = vor.u32 %v3410_v9, %v6351_v62  ;;  %v2541_v20 = vsel %vm5433_vm7, %v4684_v14, %v2540_v61  ;;  %v3935_v34 = vunpack.c.l.b16 %v3876_v13 }
 0x207   : > { %4926 = vmatmul.msk.bf16.gmra.mxu0 %vm709_vm4, %v3955_v38  ;;  %v2543_v35 = vrot.slane %v5149_v47, 5  ;;  %v3402_v43 = vrot.slane %v3401_v10, 4  ;;  %v3416_v9 = vrot.slane %v3414_v17, 5  ;;  %v2597_v37 = vunpack.c.l.b16 %v2541_v20 }
 0x208   : > { %v2977_v45 = vpop.f32.mrf.mxu2  ;;  %4700 = vmatmul.msk.bf16.gmra.mxu1 %vm709_vm4, %v2617_v16  ;;  %v4104_v49 = vadd.f32 %v4027_v25, %v3706_v6  ;;  %v3412_v32 = vrot.slane %v3411_v42, 4  ;;  %v3956_v25 = vpack.c.b16 %v3935_v34, %v3934_v33  ;;  %v3882_v6 = vrot.slane %v6356_v26, 5  ;;  %v5150_v33 = vld [vmem:[%s5247_s29 + $0xa0] sm:$0xf] }
 0x209   : > { %v3053_v38 = vadd.f32 %v2977_v45, %v2766_v60  ;;  %v2544_v55 = vsel %vm5433_vm7, %v2542_v4, %v2543_v35  ;;  %v4895_v60 = vld [vmem:[%s5247_s29 + $0x9c] sm:$0xe]  ;;  %v3879_v45 = vrot.slane %v6323_v11, 5  ;;  %v3407_v4 = vsel %vm5259_vm3, %v3402_v43, %v6351_v62 }
 0x20a   : > { %v2598_v28 = vunpack.c.l.b16 %v2544_v55  ;;  %v4140_v61 = vadd.f32 %v6317_v46, %v4104_v49  ;;  %v4911_v12 = vrot.slane %v4895_v60, 9  ;;  %v3417_v11 = vsel %vm5259_vm3, %v3412_v32, %v3416_v9  ;;  %v4669_v49 = vld [vmem:[%s5247_s29 + $0x9c] sm:$0xe] }
 0x20b   : > { %v3881_v35 = vrot.slane %v3879_v45, 4  ;;  %v2767_v13 = vadd.f32 %v6339_v48, %v5764_v57  ;;  %v3419_v17 = vshrl.u32 %v4855_v0, 16  ;;  %v2547_v62 = vrot.slane %v5150_v33, 5  ;;  %v4979_v32 = vld [vmem:[%s5247_s29 + $0x9c] sm:$0xff] }
 0x20c   : > { %v4029_v16 = vpop.f32.mrf.mxu0  ;;  %v2618_v42 = vpack.c.b16 %v2598_v28, %v2597_v37  ;;  %v3422_v20 = vshll.u32 %v4855_v0, 16  ;;  %v3538_v57 = vunpack.c.l.b16 %v3407_v4  ;;  %v3539_v48 = vunpack.c.l.b16 %v3417_v11 }
 0x20d   : > { %v3631_v56 = vpop.f32.mrf.mxu3  ;;  %4813 = vmatmul.msk.bf16.gmra.mxu2 %vm709_vm4, %v4978_v24  ;;  %v2695_v7 = vpop.f32.mrf.mxu1  ;;  %v3880_v0 = vsel %vm5433_vm7, %v4911_v12, %v3879_v45  ;;  %v3883_v34 = vsel %vm5433_vm7, %v3881_v35, %v3882_v6  ;;  %v3421_v43 = vrot.slane %v3419_v17, 4  ;;  %v4685_v9 = vrot.slane %v4669_v49, 9 }
 0x20e   : > { %v3707_v41 = vadd.f32 %v3631_v56, %v3053_v38  ;;  %v6384_v38 = vld [vmem:[%s5247_s29 + $0xac] sm:$0xf]  ;;  %v2768_v28 = vadd.f32 %v2695_v7, %v5777_v54  ;;  %v2549_v60 = vrot.slane %v2547_v62, 4  ;;  %v3424_v37 = vrot.slane %v3422_v20, 5 }
 0x20f   : > { %v3428_v26 = vshll.u32 %v6384_v38, 16  ;;  %v3559_v11 = vpack.c.b16 %v3539_v48, %v3538_v57  ;;  %v3936_v45 = vunpack.c.l.b16 %v3880_v0  ;;  %v3937_v35 = vunpack.c.l.b16 %v3883_v34  ;;  %v4858_v57 = vld [vmem:[%s5247_s29 + $0xb4] sm:$0xf]  ;;  %v6416_v48 = vld [vmem:[%s5247_s29 + $0xb8] sm:$0xf] }
 0x210   : > { %v4105_v24 = vadd.f32 %v4029_v16, %v3707_v41  ;;  %v2980_v47 = vpop.f32.mrf.mxu2  ;;  %v3432_v41 = vshrl.u32 %v6384_v38, 16 }
 0x211   : > { %v3054_v55 = vadd.f32 %v2980_v47, %v2767_v13  ;;  %v6402_v54 = vrot.slane %v3428_v26, 5 }
 0x212   : > { %v4141_v14 = vadd.f32 %v6317_v46, %v4105_v24  ;;  %4878 = vmatmul.msk.bf16.gmra.mxu3 %vm709_vm4, %v3558_v15  ;;  %v5151_v24 = vld [vmem:[%s5247_s29 + $0xa4] sm:$0x1]  ;;  %v3434_v7 = vrot.slane %v3432_v41, 4 }
 0x213   : > { %v2550_v47 = vrot.slane %v5151_v24, 5  ;;  %v3456_v24 = vshrl.u32 %v6416_v48, 16 }
 0x214   : > { %v4992_v58 = vpack.c.bf16 %v4141_v14, %v4140_v61  ;;  %v4032_v10 = vpop.f32.mrf.mxu0  ;;  %v3435_v33 = vor.u32 %v3434_v7, %v6402_v54  ;;  %v3886_v7 = vrot.slane %v6384_v38, 5 }
 0x215   : > { %v3634_v16 = vpop.f32.mrf.mxu3  ;;  %v2698_v56 = vpop.f32.mrf.mxu1  ;;  %v2551_v13 = vsel %vm5433_vm7, %v2549_v60, %v2550_v47  ;;  %v3452_v60 = vshll.u32 %v6416_v48, 16 }
 0x216   : > { %5064 = vst [vmem:[%s6333_s19 + $0x8] sm:$0xff] %v4992_v58   ;;  %v3708_v61 = vadd.f32 %v3634_v16, %v3054_v55  ;;  %v2548_v58 = vsel %vm5433_vm7, %v4685_v9, %v2547_v62  ;;  %v2600_v41 = vunpack.c.l.b16 %v2551_v13  ;;  %v3446_v9 = vshll.u32 %v4858_v57, 16 }
 0x217   : > { %4927 = vmatmul.msk.bf16.gmra.mxu0 %vm709_vm4, %v3956_v25  ;;  %v6405_v25 = vld [vmem:[%s5247_s29 + $0xb0] sm:$0x1]  ;;  %v2599_v26 = vunpack.c.l.b16 %v2548_v58 }
 0x218   : > { %v2982_v15 = vpop.f32.mrf.mxu2  ;;  %4701 = vmatmul.msk.bf16.gmra.mxu1 %vm709_vm4, %v2618_v42  ;;  %v3425_v42 = vor.u32 %v3424_v37, %v3421_v43  ;;  %v4106_v17 = vadd.f32 %v4032_v10, %v3708_v61  ;;  %v3438_v20 = vshll.u32 %v6405_v25, 16  ;;  %v3436_v10 = vrot.slane %v3435_v33, 4  ;;  %v4896_v43 = vld [vmem:[%s5247_s29 + $0xa8] sm:$0xe] }
 0x219   : > { %v3055_v14 = vadd.f32 %v2982_v15, %v2768_v28  ;;  %v3957_v28 = vpack.c.b16 %v3937_v35, %v3936_v45  ;;  %v2769_v37 = vadd.f32 %v2698_v56, %v5789_v31  ;;  %v5152_v45 = vld [vmem:[%s5247_s29 + $0xac] sm:$0xf]  ;;  %v4912_v31 = vrot.slane %v4896_v43, 9  ;;  %v4670_v56 = vld [vmem:[%s5247_s29 + $0xa8] sm:$0xe] }
 0x21a   : > { %v3426_v62 = vrot.slane %v3425_v42, 4  ;;  %v4142_v15 = vadd.f32 %v6317_v46, %v4106_v17  ;;  %v3440_v34 = vrot.slane %v3438_v20, 5  ;;  %v3448_v42 = vrot.slane %v3446_v9, 5 }
 0x21b   : > { %v6435_v17 = vrot.slane %v3452_v60, 5 }
 0x21c   : > { %v4034_v4 = vpop.f32.mrf.mxu0  ;;  %v3431_v58 = vsel %vm5259_vm3, %v3426_v62, %v6402_v54  ;;  %v3441_v13 = vsel %vm5259_vm3, %v3436_v10, %v3440_v34  ;;  %v3889_v54 = vrot.slane %v6405_v25, 5  ;;  %v5153_v62 = vld [vmem:[%s5247_s29 + $0xb0] sm:$0x1] }
 0x21d   : > { %v3636_v12 = vpop.f32.mrf.mxu3  ;;  %4814 = vmatmul.msk.bf16.gmra.mxu2 %vm709_vm4, %v4979_v32  ;;  %v2700_v6 = vpop.f32.mrf.mxu1  ;;  %v3443_v32 = vshrl.u32 %v4858_v57, 16  ;;  %v3540_v10 = vunpack.c.l.b16 %v3431_v58  ;;  %v3541_v34 = vunpack.c.l.b16 %v3441_v13 }
 0x21e   : > { %v3709_v16 = vadd.f32 %v3636_v12, %v3055_v14  ;;  %v2619_v14 = vpack.c.b16 %v2600_v41, %v2599_v26  ;;  %v2554_v12 = vrot.slane %v5152_v45, 5  ;;  %v2770_v33 = vadd.f32 %v2700_v6, %v5802_v44  ;;  %v4980_v26 = vld [vmem:[%s5247_s29 + $0xa8] sm:$0xff] }
 0x21f   : > { %v3445_v38 = vrot.slane %v3443_v32, 4  ;;  %v4686_v41 = vrot.slane %v4670_v56, 9  ;;  %v3887_v44 = vsel %vm5433_vm7, %v4912_v31, %v3886_v7 }
 0x220   : > { %v4107_v55 = vadd.f32 %v4034_v4, %v3709_v16  ;;  %v2985_v49 = vpop.f32.mrf.mxu2  ;;  %v3458_v16 = vrot.slane %v3456_v24, 4  ;;  %v2556_v57 = vrot.slane %v2554_v12, 4  ;;  %v3938_v45 = vunpack.c.l.b16 %v3887_v44 }
 0x221   : > { %v3056_v35 = vadd.f32 %v2985_v49, %v2769_v37  ;;  %v6441_v49 = vld [vmem:[%s5247_s29 + $0xbc] sm:$0x1]  ;;  %v3449_v6 = vor.u32 %v3448_v42, %v3445_v38 }
 0x222   : > { %v4143_v0 = vadd.f32 %v6317_v46, %v4107_v55  ;;  %4879 = vmatmul.msk.bf16.gmra.mxu3 %vm709_vm4, %v3559_v11  ;;  %v3888_v55 = vrot.slane %v3886_v7, 4  ;;  %v3459_v43 = vor.u32 %v3458_v16, %v6435_v17  ;;  %v3462_v32 = vshll.u32 %v6441_v49, 16 }
 0x223   : > { %v3450_v58 = vrot.slane %v3449_v6, 4  ;;  %v5154_v6 = vld [vmem:[%s5247_s29 + $0xb8] sm:$0xf] }
 0x224   : > { %v4997_v47 = vpack.c.bf16 %v4143_v0, %v4142_v15  ;;  %v4037_v61 = vpop.f32.mrf.mxu0  ;;  %v3890_v9 = vsel %vm5433_vm7, %v3888_v55, %v3889_v54  ;;  %v3460_v13 = vrot.slane %v3459_v43, 4  ;;  %v3464_v31 = vrot.slane %v3462_v32, 5 }
 0x225   : > { %v3639_v4 = vpop.f32.mrf.mxu3  ;;  %v2703_v11 = vpop.f32.mrf.mxu1  ;;  %v3455_v55 = vsel %vm5259_vm3, %v3450_v58, %v6435_v17  ;;  %v2561_v43 = vrot.slane %v5154_v6, 5 }
 0x226   : > { %5065 = vst [vmem:[%s6333_s19 + $0x10] sm:$0xff] %v4997_v47   ;;  %v3710_v15 = vadd.f32 %v3639_v4, %v3056_v35  ;;  %v2555_v47 = vsel %vm5433_vm7, %v4686_v41, %v2554_v12  ;;  %v3560_v4 = vpack.c.b16 %v3541_v34, %v3540_v10  ;;  %v3939_v35 = vunpack.c.l.b16 %v3890_v9  ;;  %v6467_v41 = vld [vmem:[%s5247_s29 + $0xc4] sm:$0xf] }
 0x227   : > { %4928 = vmatmul.msk.bf16.gmra.mxu0 %vm709_vm4, %v3957_v28  ;;  %v2557_v28 = vrot.slane %v5153_v62, 5  ;;  %v2601_v42 = vunpack.c.l.b16 %v2555_v47  ;;  %v3465_v54 = vsel %vm5259_vm3, %v3460_v13, %v3464_v31  ;;  %v2771_v62 = vadd.f32 %v2703_v11, %v5816_v30  ;;  %v5155_v13 = vld [vmem:[%s5247_s29 + $0xbc] sm:$0x1] }
 0x228   : > { %v2987_v20 = vpop.f32.mrf.mxu2  ;;  %4702 = vmatmul.msk.bf16.gmra.mxu1 %vm709_vm4, %v2619_v14  ;;  %v4108_v14 = vadd.f32 %v4037_v61, %v3710_v15  ;;  %v3958_v61 = vpack.c.b16 %v3939_v35, %v3938_v45  ;;  %v3480_v9 = vshrl.u32 %v6467_v41, 16  ;;  %v3542_v30 = vunpack.c.l.b16 %v3455_v55  ;;  %v4981_v45 = vld [vmem:[%s5247_s29 + $0xb4] sm:$0xff] }
 0x229   : > { %v3057_v0 = vadd.f32 %v2987_v20, %v2770_v33  ;;  %v2558_v37 = vsel %vm5433_vm7, %v2556_v57, %v2557_v28  ;;  %v4861_v33 = vld [vmem:[%s5247_s29 + $0xc0] sm:$0xf]  ;;  %v3543_v11 = vunpack.c.l.b16 %v3465_v54  ;;  %v2563_v58 = vrot.slane %v2561_v43, 4 }
 0x22a   : > { %v2602_v16 = vunpack.c.l.b16 %v2558_v37  ;;  %v4144_v12 = vadd.f32 %v6317_v46, %v4108_v14  ;;  %v3467_v10 = vshrl.u32 %v4861_v33, 16  ;;  %v3470_v17 = vshll.u32 %v4861_v33, 16 }
 0x22b   : > { %v2564_v31 = vrot.slane %v5155_v13, 5  ;;  %v3482_v33 = vrot.slane %v3480_v9, 4 }
 0x22c   : > { %v4039_v25 = vpop.f32.mrf.mxu0  ;;  %v2620_v15 = vpack.c.b16 %v2602_v16, %v2601_v42 }
 0x22d   : > { %v3641_v60 = vpop.f32.mrf.mxu3  ;;  %4815 = vmatmul.msk.bf16.gmra.mxu2 %vm709_vm4, %v4980_v26  ;;  %v2705_v24 = vpop.f32.mrf.mxu1  ;;  %v3893_v26 = vrot.slane %v6416_v48, 5  ;;  %v3476_v48 = vshll.u32 %v6467_v41, 16 }
 0x22e   : > { %v3711_v7 = vadd.f32 %v3641_v60, %v3057_v0  ;;  %v4897_v0 = vld [vmem:[%s5247_s29 + $0xb4] sm:$0xe]  ;;  %v2772_v47 = vadd.f32 %v2705_v24, %v5829_v51 }
 0x22f   : > { %v4913_v60 = vrot.slane %v4897_v0, 9  ;;  %v3895_v14 = vrot.slane %v3893_v26, 4  ;;  %v3478_v16 = vrot.slane %v3476_v48, 5 }
 0x230   : > { %v4109_v56 = vadd.f32 %v4039_v25, %v3711_v7  ;;  %v2990_v38 = vpop.f32.mrf.mxu2  ;;  %v4671_v25 = vld [vmem:[%s5247_s29 + $0xb4] sm:$0xe]  ;;  %v3896_v7 = vrot.slane %v6441_v49, 5 }
 0x231   : > { %v3058_v32 = vadd.f32 %v2990_v38, %v2771_v62  ;;  %v4687_v35 = vrot.slane %v4671_v25, 9  ;;  %v3894_v24 = vsel %vm5433_vm7, %v4913_v60, %v3893_v26 }
 0x232   : > { %v4145_v20 = vadd.f32 %v6317_v46, %v4109_v56  ;;  %4880 = vmatmul.msk.bf16.gmra.mxu3 %vm709_vm4, %v3560_v4  ;;  %v3469_v4 = vrot.slane %v3467_v10, 4  ;;  %v3472_v56 = vrot.slane %v3470_v17, 5  ;;  %v3897_v49 = vsel %vm5433_vm7, %v3895_v14, %v3896_v7 }
 0x233   : > { %v2562_v54 = vsel %vm5433_vm7, %v4687_v35, %v2561_v43  ;;  %v3483_v10 = vor.u32 %v3482_v33, %v3478_v16  ;;  %v3941_v6 = vunpack.c.l.b16 %v3897_v49  ;;  %v4864_v35 = vld [vmem:[%s5247_s29 + $0xcc] sm:$0xf] }
 0x234   : > { %v5002_v57 = vpack.c.bf16 %v4145_v20, %v4144_v12  ;;  %v4042_v28 = vpop.f32.mrf.mxu0  ;;  %v6483_v12 = vld [vmem:[%s5247_s29 + $0xc8] sm:$0x1]  ;;  %v3473_v62 = vor.u32 %v3472_v56, %v3469_v4  ;;  %v2603_v25 = vunpack.c.l.b16 %v2562_v54  ;;  %v5156_v56 = vld [vmem:[%s5247_s29 + $0xc4] sm:$0xf] }
 0x235   : > { %v3644_v34 = vpop.f32.mrf.mxu3  ;;  %v2708_v44 = vpop.f32.mrf.mxu1  ;;  %v3486_v26 = vshll.u32 %v6483_v12, 16 }
 0x236   : > { %5066 = vst [vmem:[%s6333_s19 + $0x18] sm:$0xff] %v5002_v57   ;;  %v3712_v38 = vadd.f32 %v3644_v34, %v3058_v32  ;;  %v2565_v57 = vsel %vm5433_vm7, %v2563_v58, %v2564_v31  ;;  %v3940_v34 = vunpack.c.l.b16 %v3894_v24  ;;  %v3474_v9 = vrot.slane %v3473_v62, 4  ;;  %v6503_v58 = vld [vmem:[%s5247_s29 + $0xd0] sm:$0xf] }
 0x237   : > { %4929 = vmatmul.msk.bf16.gmra.mxu0 %vm709_vm4, %v3958_v61  ;;  %v3561_v61 = vpack.c.b16 %v3543_v11, %v3542_v30  ;;  %v2604_v48 = vunpack.c.l.b16 %v2565_v57  ;;  %v3488_v11 = vrot.slane %v3486_v26, 5  ;;  %v2773_v14 = vadd.f32 %v2708_v44, %v5845_v1 }
 0x238   : > { %v2992_v37 = vpop.f32.mrf.mxu2  ;;  %4703 = vmatmul.msk.bf16.gmra.mxu1 %vm709_vm4, %v2620_v15  ;;  %v4110_v15 = vadd.f32 %v4042_v28, %v3712_v38  ;;  %v3484_v28 = vrot.slane %v3483_v10, 4  ;;  %v3959_v60 = vpack.c.b16 %v3941_v6, %v3940_v34  ;;  %v2568_v38 = vrot.slane %v5156_v56, 5  ;;  %v5157_v34 = vld [vmem:[%s5247_s29 + $0xc8] sm:$0x1] }
 0x239   : > { %v3059_v42 = vadd.f32 %v2992_v37, %v2772_v47  ;;  %v4898_v47 = vld [vmem:[%s5247_s29 + $0xc0] sm:$0xe]  ;;  %v2621_v4 = vpack.c.b16 %v2604_v48, %v2603_v25  ;;  %v3479_v33 = vsel %vm5259_vm3, %v3474_v9, %v3478_v16  ;;  %v3494_v24 = vshll.u32 %v4864_v35, 16 }
 0x23a   : > { %v4146_v43 = vadd.f32 %v6317_v46, %v4110_v15  ;;  %v3489_v1 = vsel %vm5259_vm3, %v3484_v28, %v3488_v11  ;;  %v4914_v44 = vrot.slane %v4898_v47, 9  ;;  %v3500_v49 = vshll.u32 %v6503_v58, 16  ;;  %v4982_v15 = vld [vmem:[%s5247_s29 + $0xc0] sm:$0xff]  ;;  %v4866_v11 = vld [vmem:[%s5247_s29 + $0xd4] sm:$0x1] }
 0x23b   : > { %v3903_v62 = vrot.slane %v6483_v12, 5  ;;  %v2570_v26 = vrot.slane %v2568_v38, 4  ;;  %v2571_v6 = vrot.slane %v5157_v34, 5  ;;  %v3545_v25 = vunpack.c.l.b16 %v3489_v1  ;;  %v4899_v34 = vld [vmem:[%s5247_s29 + $0xcc] sm:$0xe] }
 0x23c   : > { %v4044_v51 = vpop.f32.mrf.mxu0  ;;  %v3496_v9 = vrot.slane %v3494_v24, 5  ;;  %v3510_v1 = vshll.u32 %v4866_v11, 16 }
 0x23d   : > { %v3646_v20 = vpop.f32.mrf.mxu3  ;;  %4816 = vmatmul.msk.bf16.gmra.mxu2 %vm709_vm4, %v4981_v45  ;;  %v2710_v55 = vpop.f32.mrf.mxu1  ;;  %v3900_v45 = vrot.slane %v6467_v41, 5  ;;  %v3491_v41 = vshrl.u32 %v4864_v35, 16 }
 0x23e   : > { %v3713_v0 = vadd.f32 %v3646_v20, %v3059_v42  ;;  %v3504_v20 = vshrl.u32 %v6503_v58, 16 }
 0x23f   : > { %v3902_v16 = vrot.slane %v3900_v45, 4  ;;  %v3901_v48 = vsel %vm5433_vm7, %v4914_v44, %v3900_v45 }
 0x240   : > { %v4111_v17 = vadd.f32 %v4044_v51, %v3713_v0  ;;  %v2995_v32 = vpop.f32.mrf.mxu2  ;;  %v4672_v51 = vld [vmem:[%s5247_s29 + $0xc0] sm:$0xe]  ;;  %v3544_v0 = vunpack.c.l.b16 %v3479_v33 }
 0x241   : > { %v3060_v42 = vadd.f32 %v2995_v32, %v2773_v14  ;;  %v4688_v10 = vrot.slane %v4672_v51, 9  ;;  %v3904_v12 = vsel %vm5433_vm7, %v3902_v16, %v3903_v62  ;;  %v2572_v14 = vsel %vm5433_vm7, %v2570_v26, %v2571_v6 }
 0x242   : > { %v4147_v30 = vadd.f32 %v6317_v46, %v4111_v17  ;;  %4881 = vmatmul.msk.bf16.gmra.mxu3 %vm709_vm4, %v3561_v61  ;;  %v6616_v61 = vld [vmem:[#allocation2_spill] sm:$0xff]  ;;  %v3562_v35 = vpack.c.b16 %v3545_v25, %v3544_v0  ;;  %v3943_v56 = vunpack.c.l.b16 %v3904_v12  ;;  %v2606_v24 = vunpack.c.l.b16 %v2572_v14 }
 0x243   : > { %v2774_v54 = vadd.f32 %v2710_v55, %v6616_v61  ;;  %v3493_v55 = vrot.slane %v3491_v41, 4  ;;  %v3907_v0 = vrot.slane %v6503_v58, 5  ;;  %v4915_v25 = vrot.slane %v4899_v34, 9 }
 0x244   : > { %v5007_v37 = vpack.c.bf16 %v4147_v30, %v4146_v43  ;;  %v4047_v7 = vpop.f32.mrf.mxu0  ;;  %v3502_v43 = vrot.slane %v3500_v49, 5  ;;  %v3506_v30 = vrot.slane %v3504_v20, 4 }
 0x245   : > { %v3649_v13 = vpop.f32.mrf.mxu3  ;;  %v2713_v31 = vpop.f32.mrf.mxu1  ;;  %v3909_v58 = vrot.slane %v3907_v0, 4 }
 0x246   : > { %5067 = vst [vmem:[%s6333_s19 + $0x20] sm:$0xff] %v5007_v37   ;;  %v3714_v17 = vadd.f32 %v3649_v13, %v3060_v42  ;;  %v2569_v37 = vsel %vm5433_vm7, %v4688_v10, %v2568_v38  ;;  %v3942_v13 = vunpack.c.l.b16 %v3901_v48  ;;  %v3497_v42 = vor.u32 %v3496_v9, %v3493_v55  ;;  %v4983_v55 = vld [vmem:[%s5247_s29 + $0xcc] sm:$0xff] }
 0x247   : > { %4930 = vmatmul.msk.bf16.gmra.mxu0 %vm709_vm4, %v3959_v60  ;;  %v3507_v33 = vor.u32 %v3506_v30, %v3502_v43  ;;  %v2605_v41 = vunpack.c.l.b16 %v2569_v37  ;;  %v2775_v16 = vadd.f32 %v2713_v31, %v5881_v52  ;;  %v3910_v48 = vrot.slane %v4866_v11, 5 }
 0x248   : > { %v2997_v57 = vpop.f32.mrf.mxu2  ;;  %4704 = vmatmul.msk.bf16.gmra.mxu1 %vm709_vm4, %v2621_v4  ;;  %v4112_v4 = vadd.f32 %v4047_v7, %v3714_v17  ;;  %v3960_v7 = vpack.c.b16 %v3943_v56, %v3942_v13  ;;  %v3498_v20 = vrot.slane %v3497_v42, 4 }
 0x249   : > { %v3061_v32 = vadd.f32 %v2997_v57, %v2774_v54  ;;  %v3508_v61 = vrot.slane %v3507_v33, 4  ;;  %v3512_v54 = vrot.slane %v3510_v1, 5  ;;  %v3911_v36 = vsel %vm5433_vm7, %v3909_v58, %v3910_v48 }
 0x24a   : > { %v4148_v49 = vadd.f32 %v6317_v46, %v4112_v4  ;;  %v3503_v17 = vsel %vm5259_vm3, %v3498_v20, %v3502_v43  ;;  %v3908_v43 = vsel %vm5433_vm7, %v4915_v25, %v3907_v0 }
 0x24b   : > { %v3944_v4 = vunpack.c.l.b16 %v3908_v43 }
 0x24c   : > { %v4049_v28 = vpop.f32.mrf.mxu0 }
 0x24d   : > { %v3651_v60 = vpop.f32.mrf.mxu3  ;;  %4817 = vmatmul.msk.bf16.gmra.mxu2 %vm709_vm4, %v4982_v15  ;;  %v2715_v47 = vpop.f32.mrf.mxu1  ;;  %v2622_v15 = vpack.c.b16 %v2606_v24, %v2605_v41 }
 0x24e   : > { %v3715_v45 = vadd.f32 %v3651_v60, %v3061_v32  ;;  %v3513_v32 = vsel %vm5259_vm3, %v3508_v61, %v3512_v54  ;;  %v2776_v52 = vadd.f32 %v2715_v47, %v5901_v21 }
 0x24f   : > { %v3547_v12 = vunpack.c.l.b16 %v3513_v32 }
 0x250   : > { %v4113_v44 = vadd.f32 %v4049_v28, %v3715_v45  ;;  %v3000_v51 = vpop.f32.mrf.mxu2  ;;  %v3546_v28 = vunpack.c.l.b16 %v3503_v17  ;;  %v3945_v45 = vunpack.c.l.b16 %v3911_v36 }
 0x251   : > { %v3062_v6 = vadd.f32 %v3000_v51, %v2775_v16 }
 0x252   : > { %v4149_v38 = vadd.f32 %v6317_v46, %v4113_v44  ;;  %4882 = vmatmul.msk.bf16.gmra.mxu3 %vm709_vm4, %v3562_v35  ;;  %v3563_v11 = vpack.c.b16 %v3547_v12, %v3546_v28  ;;  %v3961_v18 = vpack.c.b16 %v3945_v45, %v3944_v4 }
 0x254   : > { %v5012_v57 = vpack.c.bf16 %v4149_v38, %v4148_v49  ;;  %v4052_v62 = vpop.f32.mrf.mxu0  ;;  %v6617_v49 = vld [vmem:[#allocation3_spill] sm:$0xff] }
 0x255   : > { %v3654_v10 = vpop.f32.mrf.mxu3  ;;  %v2718_v26 = vpop.f32.mrf.mxu1 }
 0x256   : > { %5068 = vst [vmem:[%s6333_s19 + $0x28] sm:$0xff] %v5012_v57   ;;  %v3716_v9 = vadd.f32 %v3654_v10, %v3062_v6  ;;  %v2777_v1 = vadd.f32 %v2718_v26, %v5920_v29 }
 0x257   : > { %4931 = vmatmul.msk.bf16.gmra.mxu0 %vm709_vm4, %v3960_v7 }
 0x258   : > { %v3002_v31 = vpop.f32.mrf.mxu2  ;;  %4705 = vmatmul.msk.bf16.gmra.mxu1 %vm709_vm4, %v2622_v15  ;;  %v4114_v47 = vadd.f32 %v4052_v62, %v3716_v9 }
 0x259   : > { %v3063_v30 = vadd.f32 %v3002_v31, %v2776_v52 }
 0x25a   : > { %v4150_v56 = vadd.f32 %v6317_v46, %v4114_v47 }
 0x25c   : > { %v4054_v60 = vpop.f32.mrf.mxu0 }
 0x25d   : > { %v3656_v37 = vpop.f32.mrf.mxu3  ;;  %4818 = vmatmul.msk.bf16.gmra.mxu2 %vm709_vm4, %v4983_v55  ;;  %v2720_v21 = vpop.f32.mrf.mxu1 }
 0x25e   : > { %v3717_v14 = vadd.f32 %v3656_v37, %v3063_v30  ;;  %v2778_v38 = vadd.f32 %v2720_v21, %v6617_v49 }
 0x260   : > { %v4115_v35 = vadd.f32 %v4054_v60, %v3717_v14  ;;  %v3005_v13 = vpop.f32.mrf.mxu2 }
 0x261   : > { %v3064_v24 = vadd.f32 %v3005_v13, %v2777_v1 }
 0x262   : > { %v4151_v42 = vadd.f32 %v6317_v46, %v4115_v35  ;;  %4883 = vmatmul.msk.bf16.gmra.mxu3 %vm709_vm4, %v3563_v11 }
 0x264   : > { %v5017_v33 = vpack.c.bf16 %v4151_v42, %v4150_v56  ;;  %v4057_v44 = vpop.f32.mrf.mxu0 }
 0x265   : > { %v3659_v51 = vpop.f32.mrf.mxu3  ;;  %v2723_v41 = vpop.f32.mrf.mxu1 }
 0x266   : > { %5069 = vst [vmem:[%s6333_s19 + $0x30] sm:$0xff] %v5017_v33   ;;  %v3718_v20 = vadd.f32 %v3659_v51, %v3064_v24  ;;  %v2779_v6 = vadd.f32 %v2723_v41, %v5963_v5 }
 0x267   : > { %4932 = vmatmul.msk.bf16.gmra.mxu0 %vm709_vm4, %v3961_v18 }
 0x268   : > { %v3007_v7 = vpop.f32.mrf.mxu2  ;;  %v4116_v62 = vadd.f32 %v4057_v44, %v3718_v20 }
 0x269   : > { %v3065_v61 = vadd.f32 %v3007_v7, %v2778_v38 }
 0x26a   : > { %v4152_v10 = vadd.f32 %v6317_v46, %v4116_v62 }
 0x26c   : > { %v4059_v54 = vpop.f32.mrf.mxu0 }
 0x26d   : > { %v3661_v57 = vpop.f32.mrf.mxu3  ;;  %v2725_v16 = vpop.f32.mrf.mxu1 }
 0x26e   : > { %v3719_v15 = vadd.f32 %v3661_v57, %v3065_v61  ;;  %v2780_v25 = vadd.f32 %v2725_v16, %v5987_v22 }
 0x270   : > { %v4117_v0 = vadd.f32 %v4059_v54, %v3719_v15  ;;  %v3010_v29 = vpop.f32.mrf.mxu2 }
 0x271   : > { %v3066_v31 = vadd.f32 %v3010_v29, %v2779_v6 }
 0x272   : > { %v4153_v26 = vadd.f32 %v6317_v46, %v4117_v0 }
 0x274   : > { %v5022_v34 = vpack.c.bf16 %v4153_v26, %v4152_v10  ;;  %v4062_v17 = vpop.f32.mrf.mxu0 }
 0x275   : > { %v3664_v32 = vpop.f32.mrf.mxu3  ;;  %v2728_v52 = vpop.f32.mrf.mxu1 }
 0x276   : > { %5070 = vst [vmem:[%s6333_s19 + $0x38] sm:$0xff] %v5022_v34   ;;  %v3720_v48 = vadd.f32 %v3664_v32, %v3066_v31  ;;  %v2781_v47 = vadd.f32 %v2728_v52, %v6006_v19 }
 0x278   : > { %v3012_v58 = vpop.f32.mrf.mxu2  ;;  %v4118_v12 = vadd.f32 %v4062_v17, %v3720_v48 }
 0x279   : > { %v3067_v55 = vadd.f32 %v3012_v58, %v2780_v25 }
 0x27a   : > { %v4154_v5 = vadd.f32 %v6317_v46, %v4118_v12 }
 0x27c   : > { %v4064_v9 = vpop.f32.mrf.mxu0 }
 0x27d   : > { %v3666_v30 = vpop.f32.mrf.mxu3  ;;  %v2730_v28 = vpop.f32.mrf.mxu1 }
 0x27e   : > { %v3721_v60 = vadd.f32 %v3666_v30, %v3067_v55  ;;  %v2782_v45 = vadd.f32 %v2730_v28, %v6030_v53 }
 0x280   : > { %v4119_v43 = vadd.f32 %v4064_v9, %v3721_v60  ;;  %v3015_v36 = vpop.f32.mrf.mxu2 }
 0x281   : > { %v3068_v4 = vadd.f32 %v3015_v36, %v2781_v47 }
 0x282   : > { %v4155_v37 = vadd.f32 %v6317_v46, %v4119_v43 }
 0x284   : > { %v5027_v21 = vpack.c.bf16 %v4155_v37, %v4154_v5  ;;  %v4067_v14 = vpop.f32.mrf.mxu0 }
 0x285   : > { %v3669_v22 = vpop.f32.mrf.mxu3  ;;  %v2733_v11 = vpop.f32.mrf.mxu1 }
 0x286   : > { %5071 = vst [vmem:[%s6333_s19 + $0x40] sm:$0xff] %v5027_v21   ;;  %v3722_v13 = vadd.f32 %v3669_v22, %v3068_v4  ;;  %v2783_v38 = vadd.f32 %v2733_v11, %v6049_v2 }
 0x288   : > { %v3017_v35 = vpop.f32.mrf.mxu2  ;;  %v4120_v1 = vadd.f32 %v4067_v14, %v3722_v13 }
 0x289   : > { %v3069_v56 = vadd.f32 %v3017_v35, %v2782_v45 }
 0x28a   : > { %v4156_v19 = vadd.f32 %v6317_v46, %v4120_v1 }
 0x28c   : > { %v4069_v42 = vpop.f32.mrf.mxu0 }
 0x28d   : > { %v3671_v18 = vpop.f32.mrf.mxu3  ;;  %v2735_v33 = vpop.f32.mrf.mxu1 }
 0x28e   : > { %v3723_v44 = vadd.f32 %v3671_v18, %v3069_v56  ;;  %v2784_v54 = vadd.f32 %v2735_v33, %v6073_v40 }
 0x290   : > { %v4121_v51 = vadd.f32 %v4069_v42, %v3723_v44  ;;  %v3020_v41 = vpop.f32.mrf.mxu2 }
 0x291   : > { %v3070_v61 = vadd.f32 %v3020_v41, %v2783_v38 }
 0x292   : > { %v4157_v24 = vadd.f32 %v6317_v46, %v4121_v51 }
 0x294   : > { %v5032_v49 = vpack.c.bf16 %v4157_v24, %v4156_v19  ;;  %v4072_v7 = vpop.f32.mrf.mxu0 }
 0x295   : > { %v3674_v53 = vpop.f32.mrf.mxu3  ;;  %v2738_v20 = vpop.f32.mrf.mxu1 }
 0x296   : > { %5072 = vst [vmem:[%s6333_s19 + $0x48] sm:$0xff] %v5032_v49   ;;  %v3724_v16 = vadd.f32 %v3674_v53, %v3070_v61  ;;  %v2785_v52 = vadd.f32 %v2738_v20, %v6092_v8 }
 0x298   : > { %v3022_v57 = vpop.f32.mrf.mxu2  ;;  %v4122_v10 = vadd.f32 %v4072_v7, %v3724_v16 }
 0x299   : > { %v3071_v62 = vadd.f32 %v3022_v57, %v2784_v54 }
 0x29a   : > { %v4158_v2 = vadd.f32 %v6317_v46, %v4122_v10 }
 0x29c   : > { %v4074_v15 = vpop.f32.mrf.mxu0 }
 0x29d   : > { %v3676_v0 = vpop.f32.mrf.mxu3  ;;  %v2740_v29 = vpop.f32.mrf.mxu1 }
 0x29e   : > { %v3725_v26 = vadd.f32 %v3676_v0, %v3071_v62  ;;  %v2786_v48 = vadd.f32 %v2740_v29, %v6116_v27 }
 0x2a0   : > { %v4123_v34 = vadd.f32 %v4074_v15, %v3725_v26  ;;  %v3025_v6 = vpop.f32.mrf.mxu2 }
 0x2a1   : > { %v3072_v58 = vadd.f32 %v3025_v6, %v2785_v52 }
 0x2a2   : > { %v4159_v17 = vadd.f32 %v6317_v46, %v4123_v34 }
 0x2a4   : > { %v5037_v32 = vpack.c.bf16 %v4159_v17, %v4158_v2  ;;  %v4077_v31 = vpop.f32.mrf.mxu0 }
 0x2a5   : > { %v3679_v40 = vpop.f32.mrf.mxu3  ;;  %v2743_v25 = vpop.f32.mrf.mxu1 }
 0x2a6   : > { %5073 = vst [vmem:[%s6333_s19 + $0x50] sm:$0xff] %v5037_v32   ;;  %v3726_v9 = vadd.f32 %v3679_v40, %v3072_v58  ;;  %v2787_v14 = vadd.f32 %v2743_v25, %v6135_v63  ;;  %v5158_v63 = vld [vmem:[%s6606_s2] ss:$0 sm:$0xff] }
 0x2a8   : > { %v3027_v55 = vpop.f32.mrf.mxu2  ;;  %v4124_v43 = vadd.f32 %v4077_v31, %v3726_v9 }
 0x2a9   : > { %v3073_v30 = vadd.f32 %v3027_v55, %v2786_v48 }
 0x2aa   : > { %v4160_v8 = vadd.f32 %v6317_v46, %v4124_v43 }
 0x2ac   : > { %v4079_v28 = vpop.f32.mrf.mxu0 }
 0x2ad   : > { %v3681_v12 = vpop.f32.mrf.mxu3  ;;  %v2745_v60 = vpop.f32.mrf.mxu1 }
 0x2ae   : > { %v3727_v36 = vadd.f32 %v3681_v12, %v3073_v30  ;;  %v2788_v45 = vadd.f32 %v2745_v60, %v6159_v39 }
 0x2b0   : > { %v4125_v5 = vadd.f32 %v4079_v28, %v3727_v36  ;;  %v3030_v37 = vpop.f32.mrf.mxu2  ;;  %v6618_v36 = vld [vmem:[#allocation4_spill] sm:$0xff] }
 0x2b1   : > { %v3074_v4 = vadd.f32 %v3030_v37, %v2787_v14 }
 0x2b2   : > { %v4161_v21 = vadd.f32 %v6317_v46, %v4125_v5 }
 0x2b4   : > { %v5042_v47 = vpack.c.bf16 %v4161_v21, %v4160_v8  ;;  %v4082_v22 = vpop.f32.mrf.mxu0 }
 0x2b5   : > { %v3684_v27 = vpop.f32.mrf.mxu3  ;;  %v2748_v11 = vpop.f32.mrf.mxu1 }
 0x2b6   : > { %5074 = vst [vmem:[%s6333_s19 + $0x58] sm:$0xff] %v5042_v47   ;;  %v3728_v13 = vadd.f32 %v3684_v27, %v3074_v4  ;;  %v2789_v39 = vadd.f32 %v2748_v11, %v6178_v50  ;;  %v6619_v47 = vld [vmem:[#allocation5_spill] sm:$0xff] }
 0x2b8   : > { %v3032_v35 = vpop.f32.mrf.mxu2  ;;  %v4126_v1 = vadd.f32 %v4082_v22, %v3728_v13 }
 0x2b9   : > { %v3075_v56 = vadd.f32 %v3032_v35, %v2788_v45 }
 0x2ba   : > { %v4162_v41 = vadd.f32 %v5158_v63, %v4126_v1 }
 0x2bc   : > { %v4084_v42 = vpop.f32.mrf.mxu0 }
 0x2bd   : > { %v3686_v18 = vpop.f32.mrf.mxu3  ;;  %v2750_v33 = vpop.f32.mrf.mxu1 }
 0x2be   : > { %v3729_v44 = vadd.f32 %v3686_v18, %v3075_v56  ;;  %v2790_v20 = vadd.f32 %v2750_v33, %v6202_v3 }
 0x2c0   : > { %v4127_v46 = vadd.f32 %v4084_v42, %v3729_v44  ;;  %v3035_v51 = vpop.f32.mrf.mxu2 }
 0x2c1   : > { %v3076_v7 = vadd.f32 %v3035_v51, %v2789_v39 }
 0x2c2   : > { %v4163_v19 = vadd.f32 %v5158_v63, %v4127_v46 }
 0x2c4   : > { %v5047_v24 = vpack.c.bf16 %v4163_v19, %v4162_v41  ;;  %v4087_v49 = vpop.f32.mrf.mxu0 }
 0x2c5   : > { %v3689_v38 = vpop.f32.mrf.mxu3  ;;  %v2753_v53 = vpop.f32.mrf.mxu1 }
 0x2c6   : > { %5075 = vst [vmem:[%s6333_s19 + $0x60] sm:$0xff] %v5047_v24   ;;  %v3730_v54 = vadd.f32 %v3689_v38, %v3076_v7  ;;  %v2791_v2 = vadd.f32 %v2753_v53, %v6219_v23 }
 0x2c8   : > { %v3037_v61 = vpop.f32.mrf.mxu2  ;;  %v4128_v15 = vadd.f32 %v4087_v49, %v3730_v54 }
 0x2c9   : > { %v3077_v57 = vadd.f32 %v3037_v61, %v2790_v20 }
 0x2ca   : > { %v4164_v34 = vadd.f32 %v5158_v63, %v4128_v15 }
 0x2cc   : > { %v4089_v16 = vpop.f32.mrf.mxu0 }
 0x2cd   : > { %v3691_v62 = vpop.f32.mrf.mxu3  ;;  %v2755_v26 = vpop.f32.mrf.mxu1 }
 0x2ce   : > { %v3731_v0 = vadd.f32 %v3691_v62, %v3077_v57  ;;  %v2792_v52 = vadd.f32 %v2755_v26, %v6242_v59 }
 0x2d0   : > { %v4129_v29 = vadd.f32 %v4089_v16, %v3731_v0  ;;  %v3040_v10 = vpop.f32.mrf.mxu2 }
 0x2d1   : > { %v3078_v3 = vadd.f32 %v3040_v10, %v2791_v2 }
 0x2d2   : > { %v4165_v50 = vadd.f32 %v5158_v63, %v4129_v29 }
 0x2d4   : > { %v5052_v6 = vpack.c.bf16 %v4165_v50, %v4164_v34  ;;  %v4092_v17 = vpop.f32.mrf.mxu0 }
 0x2d5   : > { %v3694_v32 = vpop.f32.mrf.mxu3  ;;  %v2758_v58 = vpop.f32.mrf.mxu1 }
 0x2d6   : > { %5076 = vst [vmem:[%s6333_s19 + $0x68] sm:$0xff] %v5052_v6   ;;  %v3732_v40 = vadd.f32 %v3694_v32, %v3078_v3  ;;  %v2793_v5 = vadd.f32 %v2758_v58, %v6618_v36 }
 0x2d8   : > { %v3042_v31 = vpop.f32.mrf.mxu2  ;;  %v4130_v9 = vadd.f32 %v4092_v17, %v3732_v40 }
 0x2d9   : > { %v3079_v25 = vadd.f32 %v3042_v31, %v2792_v52 }
 0x2da   : > { %v4166_v60 = vadd.f32 %v5158_v63, %v4130_v9 }
 0x2dc   : > { %v4094_v48 = vpop.f32.mrf.mxu0 }
 0x2dd   : > { %v3696_v55 = vpop.f32.mrf.mxu3  ;;  %v2760_v37 = vpop.f32.mrf.mxu1 }
 0x2de   : > { %v3733_v30 = vadd.f32 %v3696_v55, %v3079_v25  ;;  %v2794_v14 = vadd.f32 %v2760_v37, %v6619_v47 }
 0x2e0   : > { %v4131_v28 = vadd.f32 %v4094_v48, %v3733_v30  ;;  %v3045_v12 = vpop.f32.mrf.mxu2 }
 0x2e1   : > { %v3080_v21 = vadd.f32 %v3045_v12, %v2793_v5 }
 0x2e2   : > { %v4167_v43 = vadd.f32 %v5158_v63, %v4131_v28 }
 0x2e4   : > { %v5057_v23 = vpack.c.bf16 %v4167_v43, %v4166_v60  ;;  %v4097_v8 = vpop.f32.mrf.mxu0 }
 0x2e5   : > { %v3699_v59 = vpop.f32.mrf.mxu3 }
 0x2e6   : > { %5077 = vst [vmem:[%s6333_s19 + $0x70] sm:$0xff] %v5057_v23   ;;  %v3734_v27 = vadd.f32 %v3699_v59, %v3080_v21 }
 0x2e8   : > { %v3047_v22 = vpop.f32.mrf.mxu2  ;;  %v4132_v45 = vadd.f32 %v4097_v8, %v3734_v27 }
 0x2e9   : > { %v3081_v11 = vadd.f32 %v3047_v22, %v2794_v14 }
 0x2ea   : > { %v4168_v42 = vadd.f32 %v5158_v63, %v4132_v45 }
 0x2ec   : > { %v4099_v13 = vpop.f32.mrf.mxu0 }
 0x2ed   : > { %v3701_v4 = vpop.f32.mrf.mxu3 }
 0x2ee   : > { %v3735_v35 = vadd.f32 %v3701_v4, %v3081_v11 }
 0x2f0   : > { %v4133_v56 = vadd.f32 %v4099_v13, %v3735_v35 }
 0x2f2   : > { %v4169_v18 = vadd.f32 %v5158_v63, %v4133_v56 }
 0x2f4   : > { %v5062_v33 = vpack.c.bf16 %v4169_v18, %v4168_v42 }
 0x2f6   : > { %5078 = vst [vmem:[%s6333_s19 + $0x78] sm:$0xff] %v5062_v33  }
 0x2f7 PF: > { %s13_s14 = sadd.s32 1, %s5181_s14   ;;  %s6620_s12 = smov %s5177_s13 }
 0x2f8   : > { %p10_p5 = scmp.ge.s32.totalorder %s13_s14, 4   ;;  %s6621_s13 = smov %s6623_s15 }
 0x2fa   :  { %12 = sbr.rel (!%p10_p5) target bundleno = 2 (0x2), region = 78 }

// kernel: critic_forward.7
= control target key start
LH: loop header
LB: loop body
LE: loop exit
PB: predicated region body
PF: predicated region fallthrough
CT: control target
= control target key end

     0   :  { %s442_s14 = smov 0   ;;  %s521_s0 = inlined_call_operand.vmem [shape: bf16[2,4,4,128], index: 0, kind: input, shape index: {}]   ;;  %s522_s1 = inlined_call_operand.vmem [shape: f32[16,128], index: 1, kind: input, shape index: {}]   ;;  %s523_s2 = inlined_call_operand.<no memory space> [shape: f32[1,1], index: 2, kind: input, shape index: {}]   ;;  %s524_s3 = inlined_call_operand.vmem [shape: f32[2,1,1,1], index: 3, kind: output, shape index: {}]  }
   0x1   :  { %v8_v0 = vstv %s523_s2 }
   0x2   :  { %9 = vst [vmem:[#allocation2] sm:$0x1] %v8_v0 }
   0x3 LB: > { %s375_s15 = sadd.s32 4294967295, %s417_s14   ;;  %p379_p0 = scmp.ge.s32.totalorder %s417_s14, 1  ;;  %s417_s14 = sphi %s442_s14, %s15_s14  }
   0x4   : > { %p139_p1 = scmp.lt.s32.totalorder %s417_s14, 3 }
   0x6   : > { %p140_p2 = pnand %p379_p0, %p139_p1 }
   0x7   : > { %p161_p3 = scmp.lt.s32.totalorder (!%p140_p2), %s375_s15, 1 }
   0x8   : > { %143 = sbr.rel (%p140_p2) target bundleno = 173 (0xad), region = 32 }
   0xd   : > { %v174_v1 = vld [vmem:[%s522_s1 + $0x1] sm:$0x1]  ;;  %s526_s15 = smov (!%p161_p3, %s375_s15), 1  ;;  %v185_v2 = vld [vmem:[%s522_s1 + $0x2] sm:$0x1]  ;;  %vm320_vm0 = vcmask 1040384  }
   0xe   : > { %v196_v3 = vld [vmem:[%s522_s1 + $0x3] sm:$0x1]  ;;  %s402_s21 = sshll.u32 %s526_s15, 3  ;;  %v170_v4 = vld [vmem:[%s522_s1] sm:$0x1]  ;;  %v176_v5 = vrot.slane %v174_v1, 7  ;;  %s168_s27 = scalar_lea.vmem %s524_s3, %s526_s15 }
   0xf   : > { %s468_s26 = scalar_lea.vmem %s521_s0, %s402_s21  ;;  %v188_v6 = vrot.slane %v185_v2, 6  ;;  %v198_v7 = vrot.slane %v196_v3, 5  ;;  %v212_v8 = vld [vmem:[%s522_s1 + $0x5] sm:$0x1]  ;;  %v223_v17 = vld [vmem:[%s522_s1 + $0x6] sm:$0x1] }
  0x10   : > { %v169_v9 = vld [vmem:[%s468_s26] sm:$0x1]  ;;  %v184_v10 = vld [vmem:[%s468_s26] sm:$0x2]  ;;  %v385_v11 = vld [vmem:[%s468_s26 + $0x2] sm:$0x1] }
  0x11   : > { %v171_v12 = vunpack.c.l.bf16 %v169_v9  ;;  %v186_v13 = vunpack.c.l.bf16 %v184_v10  ;;  %v209_v14 = vunpack.c.l.bf16 %v385_v11  ;;  %v214_v15 = vrot.slane %v212_v8, 7  ;;  %v387_v16 = vld [vmem:[%s468_s26 + $0x2] sm:$0x2]  ;;  %v234_v22 = vld [vmem:[%s522_s1 + $0x7] sm:$0x1] }
  0x12   : > { %v224_v25 = vunpack.c.l.bf16 %v387_v16  ;;  %v226_v26 = vrot.slane %v223_v17, 6  ;;  %v208_v27 = vld [vmem:[%s522_s1 + $0x4] sm:$0x1]  ;;  %v236_v31 = vrot.slane %v234_v22, 5  ;;  %v250_v32 = vld [vmem:[%s522_s1 + $0x9] sm:$0x1] }
  0x13   : > { %v172_v18 = vmul.f32 %v171_v12, %v170_v4  ;;  %v178_v19 = vmul.f32 %v176_v5, %v171_v12  ;;  %v190_v20 = vmul.f32 %v188_v6, %v186_v13  ;;  %v200_v21 = vmul.f32 %v198_v7, %v186_v13  ;;  %v390_v33 = vld [vmem:[%s468_s26 + $0x4] sm:$0x1]  ;;  %v392_v38 = vld [vmem:[%s468_s26 + $0x4] sm:$0x2]  ;;  %v261_v39 = vld [vmem:[%s522_s1 + $0xa] sm:$0x1] }
  0x14   : > { %v216_v30 = vmul.f32 %v214_v15, %v209_v14  ;;  %v210_v35 = vmul.f32 %v209_v14, %v208_v27  ;;  %v228_v36 = vmul.f32 %v226_v26, %v224_v25  ;;  %v252_v37 = vrot.slane %v250_v32, 7  ;;  %v272_v44 = vld [vmem:[%s522_s1 + $0xb] sm:$0x1]  ;;  %v246_v49 = vld [vmem:[%s522_s1 + $0x8] sm:$0x1] }
  0x15   : > { %v382_v23 = vrot.slane %v178_v19, 9  ;;  %v383_v24 = vrot.slane %v190_v20, 10  ;;  %v384_v29 = vrot.slane %v200_v21, 11  ;;  %v238_v42 = vmul.f32 %v236_v31, %v224_v25  ;;  %v395_v54 = vld [vmem:[%s468_s26 + $0x6] sm:$0x1] }
  0x16   : > { %v386_v41 = vrot.slane %v216_v30, 9  ;;  %v247_v43 = vunpack.c.l.bf16 %v390_v33  ;;  %v388_v46 = vrot.slane %v228_v36, 10  ;;  %v262_v47 = vunpack.c.l.bf16 %v392_v38  ;;  %v288_v55 = vld [vmem:[%s522_s1 + $0xd] sm:$0x1]  ;;  %v397_v60 = vld [vmem:[%s468_s26 + $0x6] sm:$0x2] }
  0x17   : > { %v183_v28 = vadd.f32 %v382_v23, %v172_v18  ;;  %v264_v48 = vrot.slane %v261_v39, 6  ;;  %v389_v51 = vrot.slane %v238_v42, 11  ;;  %v274_v53 = vrot.slane %v272_v44, 5  ;;  %v299_v61 = vld [vmem:[%s522_s1 + $0xe] sm:$0x1] }
  0x18   : > { %v254_v52 = vmul.f32 %v252_v37, %v247_v43  ;;  %v248_v57 = vmul.f32 %v247_v43, %v246_v49  ;;  %v285_v59 = vunpack.c.l.bf16 %v395_v54  ;;  %v290_v1 = vrot.slane %v288_v55, 7  ;;  %v310_v2 = vld [vmem:[%s522_s1 + $0xf] sm:$0x1]  ;;  %v284_v7 = vld [vmem:[%s522_s1 + $0xc] sm:$0x1] }
  0x19   : > { %v195_v34 = vadd.f32 %v383_v24, %v183_v28  ;;  %v266_v58 = vmul.f32 %v264_v48, %v262_v47  ;;  %v276_v0 = vmul.f32 %v274_v53, %v262_v47  ;;  %v300_v5 = vunpack.c.l.bf16 %v397_v60  ;;  %v324_v25 = vld [vmem:[#allocation2] sm:$0x1] }
  0x1a   : > { %v391_v63 = vrot.slane %v254_v52, 9  ;;  %v302_v6 = vrot.slane %v299_v61, 6  ;;  %v292_v10 = vmul.f32 %v290_v1, %v285_v59  ;;  %v312_v11 = vrot.slane %v310_v2, 5 }
  0x1b   : > { %v205_v40 = vadd.f32 %v384_v29, %v195_v34  ;;  %v393_v4 = vrot.slane %v266_v58, 10  ;;  %v394_v9 = vrot.slane %v276_v0, 11  ;;  %v286_v13 = vmul.f32 %v285_v59, %v284_v7 }
  0x1c   : > { %v304_v14 = vmul.f32 %v302_v6, %v300_v5  ;;  %v396_v16 = vrot.slane %v292_v10, 9  ;;  %v314_v17 = vmul.f32 %v312_v11, %v300_v5  ;;  %vm326_vm1 = vcmask 0  }
  0x1d   : > { %v211_v45 = vadd.f32 %v210_v35, %v205_v40 }
  0x1e   : > { %v398_v19 = vrot.slane %v304_v14, 10  ;;  %v399_v21 = vrot.slane %v314_v17, 11 }
  0x1f   : > { %v221_v50 = vadd.f32 %v386_v41, %v211_v45 }
  0x21   : > { %v233_v56 = vadd.f32 %v388_v46, %v221_v50 }
  0x23   : > { %v243_v62 = vadd.f32 %v389_v51, %v233_v56 }
  0x25   : > { %v249_v3 = vadd.f32 %v248_v57, %v243_v62 }
  0x27   : > { %v259_v8 = vadd.f32 %v391_v63, %v249_v3 }
  0x29   : > { %v271_v12 = vadd.f32 %v393_v4, %v259_v8 }
  0x2b   : > { %v281_v15 = vadd.f32 %v394_v9, %v271_v12 }
  0x2d   : > { %v287_v18 = vadd.f32 %v286_v13, %v281_v15 }
  0x2f   : > { %v297_v20 = vadd.f32 %v396_v16, %v287_v18 }
  0x31   : > { %v309_v22 = vadd.f32 %v398_v19, %v297_v20 }
  0x33   : > { %v319_v23 = vadd.f32 %v399_v21, %v309_v22 }
  0x35   : > { %v321_v24 = vsel %vm320_vm0, %v319_v23, 0.0 }
  0x36   : > { %322 = vadd.xlane.f32.xlu0 %v321_v24 }
  0xa9   : > { %v323_v26 = vpop.xlane.xlu0 %322 }
  0xaa   : > { %v325_v27 = vadd.f32 %v324_v25, %v323_v26 }
  0xac   : > { %327 = vst.msk [vmem:[%s168_s27] sm:$0x1] %vm326_vm1, %v325_v27 }
  0xad PF: > { %s15_s14 = sadd.s32 1, %s417_s14  }
  0xae   : > { %p12_p4 = scmp.ge.s32.totalorder %s15_s14, 4  }
  0xb0   :  { %14 = sbr.rel (!%p12_p4) target bundleno = 3 (0x3), region = 65 }

// kernel: critic_forward.5
= control target key start
LH: loop header
LB: loop body
LE: loop exit
PB: predicated region body
PF: predicated region fallthrough
CT: control target
= control target key end

     0   :  { %s3979_s15 = smov 0   ;;  %s3981_s16 = smov 0   ;;  %s4688_s0 = inlined_call_operand.vmem [shape: bf16[2,9,9,512], index: 0, kind: input, shape index: {}]   ;;  %s4689_s1 = inlined_call_operand.vmem [shape: bf16[4,512,128], index: 1, kind: input, shape index: {}]   ;;  %s4690_s2 = inlined_call_operand.vmem [shape: f32[1,128], index: 2, kind: input, shape index: {}]   ;;  %s4691_s3 = inlined_call_operand.vmem [shape: f32[1,128], index: 3, kind: input, shape index: {}]   ;;  %s4692_s4 = inlined_call_operand.vmem [shape: bf16[2,8,8,128], index: 4, kind: output, shape index: {}]  }
   0x1   :  { %s3983_s17 = smov 0  }
   0x2 LB: > { %s26_s18 = sadd.s32 1, %s3948_s16  ;;  %p2832_p0 = scmp.ge.s32.totalorder %s3952_s17, 1  ;;  %s3952_s17 = sphi %s3983_s17, %s14_s17   ;;  %s3948_s16 = sphi %s3981_s16, %s4696_s16   ;;  %s3944_s15 = sphi %s3979_s15, %s4695_s15  }
   0x3   : > { %p28_p1 = scmp.ge.s32.totalorder %s26_s18, 2  ;;  %p201_p2 = scmp.lt.s32.totalorder %s3952_s17, 3 }
   0x5   : > { %s4698_s18 = smov (%p28_p1, %s26_s18), 0  ;;  %p202_p3 = pnand %p2832_p0, %p201_p2 }
   0x6   : > { %p240_p4 = scmp.lt.s32.totalorder (!%p202_p3), %s3944_s15, 1 }
   0x7   : > { %205 = sbr.rel (%p202_p3) target bundleno = 520 (0x208), region = 36 }
   0xc   : > { %v3774_v0 = vld [vmem:[%s4689_s1 + $0x138] sm:$0xff]  ;;  %v3773_v4 = vld [vmem:[%s4689_s1 + $0x130] sm:$0xff]  ;;  %s4700_s15 = smov (!%p240_p4, %s3944_s15), 1  ;;  %v3772_v8 = vld [vmem:[%s4689_s1 + $0x128] sm:$0xff]  ;;  %vm359_vm0 = vsmask.f32 3328 }
   0xd   : > { %v3782_v1 = vld [vmem:[%s4689_s1 + $0x178] sm:$0xff]  ;;  %907 = vmatpush.bf16.msra.mxu0 %v3774_v0  ;;  %v3781_v5 = vld [vmem:[%s4689_s1 + $0x170] sm:$0xff]  ;;  %s3902_s9 = smul.u32 288, %s4700_s15  ;;  %v3780_v9 = vld [vmem:[%s4689_s1 + $0x168] sm:$0xff]  ;;  %vm360_vm1 = vsmask.f32 7440 }
   0xe   : > { %v3790_v2 = vld [vmem:[%s4689_s1 + $0x1b8] sm:$0xff]  ;;  %936 = vmatpush.bf16.msra.mxu1 %v3782_v1  ;;  %v3789_v6 = vld [vmem:[%s4689_s1 + $0x1b0] sm:$0xff]  ;;  %v3788_v10 = vld [vmem:[%s4689_s1 + $0x1a8] sm:$0xff]  ;;  %s3718_s29 = sshll.u32 %s4700_s15, 5 }
   0xf   : > { %v3798_v3 = vld [vmem:[%s4689_s1 + $0x1f8] sm:$0xff]  ;;  %965 = vmatpush.bf16.msra.mxu2 %v3790_v2  ;;  %v3797_v7 = vld [vmem:[%s4689_s1 + $0x1f0] sm:$0xff]  ;;  %v3796_v11 = vld [vmem:[%s4689_s1 + $0x1e8] sm:$0xff]  ;;  %s4039_s24 = scalar_lea.vmem %s4688_s0, %s3902_s9  ;;  %s262_s15 = scalar_lea.vmem %s4692_s4, %s3718_s29 }
  0x10   : > { %994 = vmatpush.bf16.msra.mxu3 %v3798_v3  ;;  %v3771_v12 = vld [vmem:[%s4689_s1 + $0x120] sm:$0xff]  ;;  %v343_v18 = vld [vmem:[%s4039_s24 + $0x10] sm:$0x11]  ;;  %v264_v25 = vld [vmem:[%s4039_s24 + $0x8] sm:$0xff] }
  0x11   : > { %908 = vmatpush.bf16.msra.mxu0 %v3773_v4  ;;  %v3779_v13 = vld [vmem:[%s4689_s1 + $0x160] sm:$0xff]  ;;  %v345_v19 = vld [vmem:[%s4039_s24 + $0x30] sm:$0x11]  ;;  %v372_v22 = vshll.u32 %v343_v18, 16  ;;  %v3770_v26 = vld [vmem:[%s4689_s1 + $0x118] sm:$0xff]  ;;  %v377_v39 = vshrl.u32 %v264_v25, 16 }
  0x12   : > { %937 = vmatpush.bf16.msra.mxu1 %v3781_v5  ;;  %v3787_v14 = vld [vmem:[%s4689_s1 + $0x1a0] sm:$0xff]  ;;  %v400_v28 = vshll.u32 %v345_v19, 16  ;;  %v266_v29 = vld [vmem:[%s4039_s24 + $0x28] sm:$0xff]  ;;  %v344_v30 = vld [vmem:[%s4039_s24 + $0x18] sm:$0x11]  ;;  %v380_v40 = vshll.u32 %v264_v25, 16 }
  0x13   : > { %966 = vmatpush.bf16.msra.mxu2 %v3789_v6  ;;  %v3795_v15 = vld [vmem:[%s4689_s1 + $0x1e0] sm:$0xff]  ;;  %v3778_v31 = vld [vmem:[%s4689_s1 + $0x158] sm:$0xff]  ;;  %v374_v38 = vrot.slane %v372_v22, 5  ;;  %v386_v41 = vshll.u32 %v344_v30, 16  ;;  %v405_v44 = vshrl.u32 %v266_v29, 16  ;;  %v408_v45 = vshll.u32 %v266_v29, 16  ;;  %vm4075_vm2 = vmor %vm359_vm0, %vm360_vm1 }
  0x14   : > { %995 = vmatpush.bf16.msra.mxu3 %v3797_v7  ;;  %v263_v16 = vld [vmem:[%s4039_s24] sm:$0xff]  ;;  %v346_v35 = vld [vmem:[%s4039_s24 + $0x38] sm:$0x11]  ;;  %v402_v47 = vrot.slane %v400_v28, 5  ;;  %v379_v48 = vrot.slane %v377_v39, 4  ;;  %v382_v49 = vrot.slane %v380_v40, 5 }
  0x15   : > { %909 = vmatpush.bf16.msra.mxu0 %v3772_v8  ;;  %v265_v17 = vld [vmem:[%s4039_s24 + $0x20] sm:$0xff]  ;;  %v363_v20 = vshrl.u32 %v263_v16, 16  ;;  %v366_v21 = vshll.u32 %v263_v16, 16  ;;  %v3786_v36 = vld [vmem:[%s4689_s1 + $0x198] sm:$0xff]  ;;  %v414_v50 = vshll.u32 %v346_v35, 16  ;;  %v3769_v52 = vld [vmem:[%s4689_s1 + $0x110] sm:$0xff] }
  0x16   : > { %938 = vmatpush.bf16.msra.mxu1 %v3780_v9  ;;  %v391_v23 = vshrl.u32 %v265_v17, 16  ;;  %v394_v24 = vshll.u32 %v265_v17, 16  ;;  %v3794_v37 = vld [vmem:[%s4689_s1 + $0x1d8] sm:$0xff]  ;;  %v267_v51 = vld [vmem:[%s4039_s24 + $0x40] sm:$0xff]  ;;  %v3777_v53 = vld [vmem:[%s4689_s1 + $0x150] sm:$0xff]  ;;  %v407_v56 = vrot.slane %v405_v44, 4  ;;  %v383_v60 = vor.u32 %v382_v49, %v379_v48 }
  0x17   : > { %967 = vmatpush.bf16.msra.mxu2 %v3788_v10  ;;  %v365_v27 = vrot.slane %v363_v20, 4  ;;  %v368_v32 = vrot.slane %v366_v21, 5  ;;  %v410_v57 = vrot.slane %v408_v45, 5  ;;  %v3785_v58 = vld [vmem:[%s4689_s1 + $0x190] sm:$0xff]  ;;  %v388_v61 = vrot.slane %v386_v41, 5  ;;  %v269_v2 = vld [vmem:[%s4039_s24 + $0x60] sm:$0xff] }
  0x18   : > { %996 = vmatpush.bf16.msra.mxu3 %v3796_v11  ;;  %v393_v33 = vrot.slane %v391_v23, 4  ;;  %v396_v34 = vrot.slane %v394_v24, 5  ;;  %v3793_v59 = vld [vmem:[%s4689_s1 + $0x1d0] sm:$0xff]  ;;  %v419_v62 = vshrl.u32 %v267_v51, 16  ;;  %v416_v1 = vrot.slane %v414_v50, 5  ;;  %v3768_v5 = vld [vmem:[%s4689_s1 + $0x108] sm:$0xff] }
  0x19   : > { %910 = vmatpush.bf16.msra.mxu0 %v3771_v12  ;;  %v369_v42 = vor.u32 %v368_v32, %v365_v27  ;;  %v411_v0 = vor.u32 %v410_v57, %v407_v56  ;;  %v422_v3 = vshll.u32 %v267_v51, 16  ;;  %v3776_v6 = vld [vmem:[%s4689_s1 + $0x148] sm:$0xff]  ;;  %v384_v7 = vrot.slane %v383_v60, 4  ;;  %v347_v18 = vld [vmem:[%s4039_s24 + $0x50] sm:$0x11]  ;;  %v3767_v21 = vld [vmem:[%s4689_s1 + $0x100] sm:$0xff] }
  0x1a   : > { %939 = vmatpush.bf16.msra.mxu1 %v3779_v13  ;;  %v397_v43 = vor.u32 %v396_v34, %v393_v33  ;;  %v3784_v9 = vld [vmem:[%s4689_s1 + $0x188] sm:$0xff]  ;;  %v421_v12 = vrot.slane %v419_v62, 4  ;;  %v450_v19 = vshll.u32 %v269_v2, 16  ;;  %v3775_v22 = vld [vmem:[%s4689_s1 + $0x140] sm:$0xff]  ;;  %v349_v27 = vld [vmem:[%s4039_s24 + $0x70] sm:$0x11] }
  0x1b   : > { %968 = vmatpush.bf16.msra.mxu2 %v3787_v14  ;;  %v370_v54 = vrot.slane %v369_v42, 4  ;;  %v412_v8 = vrot.slane %v411_v0, 4  ;;  %v3792_v10 = vld [vmem:[%s4689_s1 + $0x1c8] sm:$0xff]  ;;  %v424_v13 = vrot.slane %v422_v3, 5  ;;  %v447_v14 = vshrl.u32 %v269_v2, 16  ;;  %v3783_v28 = vld [vmem:[%s4689_s1 + $0x180] sm:$0xff] }
  0x1c   : > { %997 = vmatpush.bf16.msra.mxu3 %v3795_v15  ;;  %v398_v55 = vrot.slane %v397_v43, 4  ;;  %v389_v16 = vsel %vm4075_vm2, %v384_v7, %v388_v61  ;;  %v268_v20 = vld [vmem:[%s4039_s24 + $0x48] sm:$0xff]  ;;  %v3791_v29 = vld [vmem:[%s4689_s1 + $0x1c0] sm:$0xff]  ;;  %v452_v33 = vrot.slane %v450_v19, 5  ;;  %v3758_v39 = vld [vmem:[%s4689_s1 + $0xb8] sm:$0xff]  ;;  %v456_v42 = vshll.u32 %v349_v27, 16 }
  0x1d   : > { %911 = vmatpush.bf16.msra.mxu0 %v3770_v26  ;;  %v375_v63 = vsel %vm4075_vm2, %v370_v54, %v374_v38  ;;  %v417_v17 = vsel %vm4075_vm2, %v412_v8, %v416_v1  ;;  %v653_v25 = vunpack.c.l.b16 %v389_v16  ;;  %v654_v30 = vunpack.c.h.b16 %v389_v16  ;;  %v270_v34 = vld [vmem:[%s4039_s24 + $0x68] sm:$0xff]  ;;  %v3766_v40 = vld [vmem:[%s4689_s1 + $0xf8] sm:$0xff]  ;;  %v3757_v60 = vld [vmem:[%s4689_s1 + $0xb0] sm:$0xff] }
  0x1e   : > { %940 = vmatpush.bf16.msra.mxu1 %v3778_v31  ;;  %v403_v4 = vsel %vm4075_vm2, %v398_v55, %v402_v47  ;;  %v651_v11 = vunpack.c.l.b16 %v375_v63  ;;  %v652_v23 = vunpack.c.h.b16 %v375_v63  ;;  %v657_v26 = vunpack.c.l.b16 %v417_v17  ;;  %v350_v43 = vld [vmem:[%s4039_s24 + $0x78] sm:$0x11]  ;;  %v3765_v61 = vld [vmem:[%s4689_s1 + $0xf0] sm:$0xff]  ;;  %v271_v3 = vld [vmem:[%s4039_s24 + $0x80] sm:$0xff] }
  0x1f   : > { %969 = vmatpush.bf16.msra.mxu2 %v3786_v36  ;;  %v655_v15 = vunpack.c.l.b16 %v403_v4  ;;  %v656_v24 = vunpack.c.h.b16 %v403_v4  ;;  %v658_v31 = vunpack.c.h.b16 %v417_v17  ;;  %v449_v32 = vrot.slane %v447_v14, 4  ;;  %v3742_v54 = vld [vmem:[%s4689_s1 + $0x38] sm:$0xff]  ;;  %v3741_v7 = vld [vmem:[%s4689_s1 + $0x30] sm:$0xff]  ;;  %v3756_v14 = vld [vmem:[%s4689_s1 + $0xa8] sm:$0xff] }
  0x20   : > { %998 = vmatpush.bf16.msra.mxu3 %v3794_v37  ;;  %v425_v35 = vor.u32 %v424_v13, %v421_v12  ;;  %v428_v36 = vshll.u32 %v347_v18, 16  ;;  %v348_v37 = vld [vmem:[%s4039_s24 + $0x58] sm:$0x11]  ;;  %v433_v38 = vshrl.u32 %v268_v20, 16  ;;  %v436_v44 = vshll.u32 %v268_v20, 16  ;;  %v3749_v8 = vld [vmem:[%s4689_s1 + $0x70] sm:$0xff] }
  0x21   : > { %912 = vmatpush.bf16.msra.mxu0 %v3769_v52  ;;  %v453_v41 = vor.u32 %v452_v33, %v449_v32  ;;  %v683_v45 = vpack.c.b16 %v655_v15, %v651_v11  ;;  %v684_v47 = vpack.c.b16 %v656_v24, %v652_v23  ;;  %v685_v48 = vpack.c.b16 %v657_v26, %v653_v25  ;;  %v3750_v55 = vld [vmem:[%s4689_s1 + $0x78] sm:$0xff]  ;;  %v272_v12 = vld [vmem:[%s4039_s24 + $0x88] sm:$0xff]  ;;  %v3755_v32 = vld [vmem:[%s4689_s1 + $0xa0] sm:$0xff] }
  0x22   : > { %941 = vmatpush.bf16.msra.mxu1 %v3777_v53  ;;  %v435_v49 = vrot.slane %v433_v38, 4  ;;  %v686_v50 = vpack.c.b16 %v658_v31, %v654_v30  ;;  %v438_v51 = vrot.slane %v436_v44, 5  ;;  %v442_v52 = vshll.u32 %v348_v37, 16  ;;  %v3764_v15 = vld [vmem:[%s4689_s1 + $0xe8] sm:$0xff]  ;;  %v3763_v33 = vld [vmem:[%s4689_s1 + $0xe0] sm:$0xff] }
  0x23   : > { %970 = vmatpush.bf16.msra.mxu2 %v3785_v58  ;;  %v461_v53 = vshrl.u32 %v270_v34, 16  ;;  %v426_v56 = vrot.slane %v425_v35, 4  ;;  %v430_v57 = vrot.slane %v428_v36, 5  ;;  %v464_v58 = vshll.u32 %v270_v34, 16  ;;  %v353_v44 = vld [vmem:[%s4039_s24 + $0xb0] sm:$0x11] }
  0x24   : > { %999 = vmatpush.bf16.msra.mxu3 %v3793_v59  ;;  %v470_v59 = vshll.u32 %v350_v43, 16  ;;  %v454_v62 = vrot.slane %v453_v41, 4  ;;  %v458_v63 = vrot.slane %v456_v42, 5  ;;  %v439_v0 = vor.u32 %v438_v51, %v435_v49  ;;  %v3747_v49 = vld [vmem:[%s4689_s1 + $0x60] sm:$0xff] }
  0x25   : > { %913 = vmatpush.bf16.msra.mxu0 %v3768_v5  ;;  %v463_v1 = vrot.slane %v461_v53, 4  ;;  %v466_v2 = vrot.slane %v464_v58, 5  ;;  %v444_v5 = vrot.slane %v442_v52, 5  ;;  %v475_v16 = vshrl.u32 %v271_v3, 16  ;;  %v3762_v58 = vld [vmem:[%s4689_s1 + $0xd8] sm:$0xff] }
  0x26   : > { %942 = vmatpush.bf16.msra.mxu1 %v3776_v6  ;;  %v440_v4 = vrot.slane %v439_v0, 4  ;;  %v273_v6 = vld [vmem:[%s4039_s24 + $0xa0] sm:$0xff]  ;;  %v472_v11 = vrot.slane %v470_v59, 5  ;;  %v459_v13 = vsel %vm4075_vm2, %v454_v62, %v458_v63  ;;  %v478_v17 = vshll.u32 %v271_v3, 16 }
  0x27   : > { %971 = vmatpush.bf16.msra.mxu2 %v3784_v9  ;;  %v431_v9 = vsel %vm4075_vm2, %v426_v56, %v430_v57  ;;  %v503_v19 = vshrl.u32 %v273_v6, 16  ;;  %v506_v20 = vshll.u32 %v273_v6, 16  ;;  %v489_v24 = vshrl.u32 %v272_v12, 16  ;;  %v3754_v57 = vld [vmem:[%s4689_s1 + $0x98] sm:$0xff] }
  0x28   : > { %1000 = vmatpush.bf16.msra.mxu3 %v3792_v10  ;;  %v467_v10 = vor.u32 %v466_v2, %v463_v1  ;;  %v445_v23 = vsel %vm4075_vm2, %v440_v4, %v444_v5  ;;  %v663_v25 = vunpack.c.l.b16 %v459_v13  ;;  %v660_v26 = vunpack.c.h.b16 %v431_v9  ;;  %v3738_v4 = vld [vmem:[%s4689_s1 + $0x18] sm:$0xff] }
  0x29   : > { %914 = vmatpush.bf16.msra.mxu0 %v3767_v21  ;;  %v274_v21 = vld [vmem:[%s4039_s24 + $0xa8] sm:$0xff]  ;;  %v492_v30 = vshll.u32 %v272_v12, 16  ;;  %v664_v31 = vunpack.c.h.b16 %v459_v13  ;;  %v477_v34 = vrot.slane %v475_v16, 4  ;;  %v480_v35 = vrot.slane %v478_v17, 5  ;;  %v3746_v5 = vld [vmem:[%s4689_s1 + $0x58] sm:$0xff]  ;;  %v275_v16 = vld [vmem:[%s4039_s24 + $0xc0] sm:$0xff] }
  0x2a   : > { %943 = vmatpush.bf16.msra.mxu1 %v3775_v22  ;;  %v468_v18 = vrot.slane %v467_v10, 4  ;;  %v659_v22 = vunpack.c.l.b16 %v431_v9  ;;  %v517_v36 = vshrl.u32 %v274_v21, 16  ;;  %v661_v37 = vunpack.c.l.b16 %v445_v23 }
  0x2b   : > { %972 = vmatpush.bf16.msra.mxu2 %v3783_v28  ;;  %v3740_v28 = vld [vmem:[%s4689_s1 + $0x28] sm:$0xff]  ;;  %v662_v38 = vunpack.c.h.b16 %v445_v23  ;;  %v508_v41 = vrot.slane %v506_v20, 5  ;;  %v520_v51 = vshll.u32 %v274_v21, 16  ;;  %v688_v53 = vpack.c.b16 %v664_v31, %v660_v26  ;;  %v277_v20 = vld [vmem:[%s4039_s24 + $0xe0] sm:$0xff] }
  0x2c   : > { %1001 = vmatpush.bf16.msra.mxu3 %v3791_v29  ;;  %915 = vmatmul.bf16.vlgmr.msra.gmra.mxu0 %v683_v45  ;;  %v473_v27 = vsel %vm4075_vm2, %v468_v18, %v472_v11  ;;  %v3748_v29 = vld [vmem:[%s4689_s1 + $0x68] sm:$0xff]  ;;  %v491_v45 = vrot.slane %v489_v24, 4  ;;  %v687_v52 = vpack.c.b16 %v663_v25, %v659_v22  ;;  %v519_v56 = vrot.slane %v517_v36, 4 }
  0x2d   : > { %944 = vmatmul.bf16.vlgmr.msra.gmra.mxu1 %v684_v47  ;;  %1295 = vmatpush.bf16.msrb.mxu0 %v3742_v54  ;;  %v665_v42 = vunpack.c.l.b16 %v473_v27  ;;  %v666_v43 = vunpack.c.h.b16 %v473_v27  ;;  %v494_v47 = vrot.slane %v492_v30, 5  ;;  %v481_v59 = vor.u32 %v480_v35, %v477_v34  ;;  %v276_v21 = vld [vmem:[%s4039_s24 + $0xc8] sm:$0xff] }
  0x2e   : > { %973 = vmatmul.bf16.vlgmr.msra.gmra.mxu2 %v685_v48  ;;  %1324 = vmatpush.bf16.msrb.mxu1 %v3750_v55  ;;  %v3739_v48 = vld [vmem:[%s4689_s1 + $0x20] sm:$0xff]  ;;  %v354_v55 = vld [vmem:[%s4039_s24 + $0xb8] sm:$0x11]  ;;  %v522_v62 = vrot.slane %v520_v51, 5  ;;  %v278_v22 = vld [vmem:[%s4039_s24 + $0xe8] sm:$0xff]  ;;  %v531_v27 = vshrl.u32 %v275_v16, 16 }
  0x2f   : > { %1353 = vmatpush.bf16.msrb.mxu2 %v3758_v39  ;;  %1002 = vmatmul.bf16.vlgmr.msra.gmra.mxu3 %v686_v50  ;;  %v351_v39 = vld [vmem:[%s4039_s24 + $0x90] sm:$0x11]  ;;  %v352_v50 = vld [vmem:[%s4039_s24 + $0x98] sm:$0x11]  ;;  %v689_v63 = vpack.c.b16 %v665_v42, %v661_v37  ;;  %v690_v0 = vpack.c.b16 %v666_v43, %v662_v38  ;;  %v495_v1 = vor.u32 %v494_v47, %v491_v45  ;;  %v526_v3 = vshll.u32 %v354_v55, 16  ;;  %v3752_v23 = vld [vmem:[%s4689_s1 + $0x88] sm:$0xff] }
  0x30   : > { %1382 = vmatpush.bf16.msrb.mxu3 %v3766_v40  ;;  %v505_v40 = vrot.slane %v503_v19, 4  ;;  %v484_v54 = vshll.u32 %v351_v39, 16  ;;  %v498_v2 = vshll.u32 %v352_v50, 16  ;;  %v523_v6 = vor.u32 %v522_v62, %v519_v56  ;;  %v3745_v19 = vld [vmem:[%s4689_s1 + $0x50] sm:$0xff]  ;;  %v3760_v24 = vld [vmem:[%s4689_s1 + $0xc8] sm:$0xff]  ;;  %v3751_v43 = vld [vmem:[%s4689_s1 + $0x80] sm:$0xff] }
  0x31   : > { %1296 = vmatpush.bf16.msrb.mxu0 %v3741_v7  ;;  %v3753_v7 = vld [vmem:[%s4689_s1 + $0x90] sm:$0xff]  ;;  %v482_v9 = vrot.slane %v481_v59, 4  ;;  %v496_v13 = vrot.slane %v495_v1, 4  ;;  %v528_v18 = vrot.slane %v526_v3, 5  ;;  %v559_v30 = vshrl.u32 %v277_v20, 16  ;;  %v3736_v37 = vld [vmem:[%s4689_s1 + $0x8] sm:$0xff] }
  0x32   : > { %1325 = vmatpush.bf16.msrb.mxu1 %v3749_v8  ;;  %v3761_v8 = vld [vmem:[%s4689_s1 + $0xd0] sm:$0xff]  ;;  %v486_v10 = vrot.slane %v484_v54, 5  ;;  %v524_v17 = vrot.slane %v523_v6, 4  ;;  %v562_v31 = vshll.u32 %v277_v20, 16  ;;  %v548_v34 = vshll.u32 %v276_v21, 16  ;;  %v3744_v38 = vld [vmem:[%s4689_s1 + $0x48] sm:$0xff] }
  0x33   : > { %1354 = vmatpush.bf16.msrb.mxu2 %v3757_v60  ;;  %v509_v60 = vor.u32 %v508_v41, %v505_v40  ;;  %v573_v35 = vshrl.u32 %v278_v22, 16  ;;  %v576_v36 = vshll.u32 %v278_v22, 16  ;;  %v561_v54 = vrot.slane %v559_v30, 4  ;;  %v356_v62 = vld [vmem:[%s4039_s24 + $0xd8] sm:$0x11] }
  0x34   : > { %1383 = vmatpush.bf16.msrb.mxu3 %v3765_v61  ;;  %v512_v61 = vshll.u32 %v353_v44, 16  ;;  %v487_v25 = vsel %vm4075_vm2, %v482_v9, %v486_v10  ;;  %v3759_v44 = vld [vmem:[%s4689_s1 + $0xc0] sm:$0xff]  ;;  %v564_v55 = vrot.slane %v562_v31, 5  ;;  %v554_v9 = vshll.u32 %v356_v62, 16 }
  0x35   : > { %1297 = vmatpush.bf16.msrb.mxu0 %v3740_v28  ;;  %v510_v11 = vrot.slane %v509_v60, 4  ;;  %v534_v28 = vshll.u32 %v275_v16, 16  ;;  %v667_v39 = vunpack.c.l.b16 %v487_v25  ;;  %v668_v41 = vunpack.c.h.b16 %v487_v25  ;;  %v3735_v60 = vld [vmem:[%s4689_s1] sm:$0xff]  ;;  %v3838_v16 = vld [vmem:[%s4689_s1 + $0x2b8] sm:$0xff]  ;;  %v3845_v25 = vld [vmem:[%s4689_s1 + $0x2f0] sm:$0xff] }
  0x36   : > { %1326 = vmatpush.bf16.msrb.mxu1 %v3748_v29  ;;  %v514_v12 = vrot.slane %v512_v61, 5  ;;  %v578_v59 = vrot.slane %v576_v36, 5  ;;  %v3743_v61 = vld [vmem:[%s4689_s1 + $0x40] sm:$0xff]  ;;  %v565_v6 = vor.u32 %v564_v55, %v561_v54  ;;  %v556_v20 = vrot.slane %v554_v9, 5 }
  0x37   : > { %1355 = vmatpush.bf16.msrb.mxu2 %v3756_v14  ;;  %v500_v14 = vrot.slane %v498_v2, 5  ;;  %v3721_v54 = vld [vmem:[%s4039_s24 + $0x1c] sm:$0xf0]  ;;  %v3719_v55 = vld [vmem:[%s4039_s24 + $0x4] sm:$0xf] }
  0x38   : > { %1384 = vmatpush.bf16.msrb.mxu3 %v3764_v15  ;;  %v3737_v15 = vld [vmem:[%s4689_s1 + $0x10] sm:$0xff]  ;;  %v515_v26 = vsel %vm4075_vm2, %v510_v11, %v514_v12  ;;  %v3046_v9 = vld [vmem:[%s4039_s24 + $0x40] sm:$0xf] }
  0x39   : > { %1298 = vmatpush.bf16.msrb.mxu0 %v3739_v48  ;;  %v501_v29 = vsel %vm4075_vm2, %v496_v13, %v500_v14  ;;  %v671_v40 = vunpack.c.l.b16 %v515_v26  ;;  %v672_v42 = vunpack.c.h.b16 %v515_v26  ;;  %v533_v48 = vrot.slane %v531_v27, 4  ;;  %v3821_v26 = vld [vmem:[%s4689_s1 + $0x230] sm:$0xff] }
  0x3a   : > { %1327 = vmatpush.bf16.msrb.mxu1 %v3747_v49  ;;  %v669_v45 = vunpack.c.l.b16 %v501_v29  ;;  %v670_v47 = vunpack.c.h.b16 %v501_v29  ;;  %v536_v49 = vrot.slane %v534_v28, 5  ;;  %v566_v14 = vrot.slane %v565_v6, 4  ;;  %v3829_v27 = vld [vmem:[%s4689_s1 + $0x270] sm:$0xff] }
  0x3b   : > { %1356 = vmatpush.bf16.msrb.mxu2 %v3755_v32  ;;  %v545_v32 = vshrl.u32 %v276_v21, 16  ;;  %v692_v1 = vpack.c.b16 %v672_v42, %v668_v41  ;;  %v3841_v6 = vld [vmem:[%s4689_s1 + $0x2d0] sm:$0xff] }
  0x3c   : > { %1385 = vmatpush.bf16.msrb.mxu3 %v3763_v33  ;;  %920 = vmatmul.bf16.gmra.mxu0 %v687_v52  ;;  %v529_v33 = vsel %vm4075_vm2, %v524_v17, %v528_v18  ;;  %v355_v52 = vld [vmem:[%s4039_s24 + $0xd0] sm:$0x11]  ;;  %v537_v2 = vor.u32 %v536_v49, %v533_v48  ;;  %v3846_v17 = vld [vmem:[%s4689_s1 + $0x2f8] sm:$0xff]  ;;  %v3828_v48 = vld [vmem:[%s4689_s1 + $0x268] sm:$0xff] }
  0x3d   : > { %949 = vmatmul.bf16.gmra.mxu1 %v688_v53  ;;  %1299 = vmatpush.bf16.msrb.mxu0 %v3738_v4  ;;  %v673_v50 = vunpack.c.l.b16 %v529_v33  ;;  %v674_v51 = vunpack.c.h.b16 %v529_v33  ;;  %v357_v53 = vld [vmem:[%s4039_s24 + $0xf0] sm:$0x11]  ;;  %v547_v56 = vrot.slane %v545_v32, 4  ;;  %v540_v3 = vshll.u32 %v355_v52, 16  ;;  %v3822_v18 = vld [vmem:[%s4689_s1 + $0x238] sm:$0xff]  ;;  %v3835_v49 = vld [vmem:[%s4689_s1 + $0x2a0] sm:$0xff] }
  0x3e   : > { %978 = vmatmul.bf16.gmra.mxu2 %v689_v63  ;;  %1328 = vmatpush.bf16.msrb.mxu1 %v3746_v5  ;;  %v358_v63 = vld [vmem:[%s4039_s24 + $0xf8] sm:$0x11]  ;;  %v538_v13 = vrot.slane %v537_v2, 4  ;;  %v3827_v52 = vld [vmem:[%s4689_s1 + $0x260] sm:$0xff] }
  0x3f   : > { %1357 = vmatpush.bf16.msrb.mxu2 %v3754_v57  ;;  %1007 = vmatmul.bf16.gmra.mxu3 %v690_v0  ;;  %v550_v57 = vrot.slane %v548_v34, 5  ;;  %v691_v0 = vpack.c.b16 %v671_v40, %v667_v39  ;;  %v693_v4 = vpack.c.b16 %v673_v50, %v669_v45  ;;  %v694_v5 = vpack.c.b16 %v674_v51, %v670_v47  ;;  %v3844_v45 = vld [vmem:[%s4689_s1 + $0x2e8] sm:$0xff]  ;;  %v3843_v50 = vld [vmem:[%s4689_s1 + $0x2e0] sm:$0xff]  ;;  %v3842_v2 = vld [vmem:[%s4689_s1 + $0x2d8] sm:$0xff] }
  0x40   : > { %1386 = vmatpush.bf16.msrb.mxu3 %v3762_v58  ;;  %v575_v58 = vrot.slane %v573_v35, 4  ;;  %v582_v11 = vshll.u32 %v358_v63, 16  ;;  %v542_v12 = vrot.slane %v540_v3, 5  ;;  %v3820_v47 = vld [vmem:[%s4689_s1 + $0x228] sm:$0xff]  ;;  %v3819_v51 = vld [vmem:[%s4689_s1 + $0x220] sm:$0xff]  ;;  %v3818_v3 = vld [vmem:[%s4689_s1 + $0x218] sm:$0xff] }
  0x41   : > { %1300 = vmatpush.bf16.msrb.mxu0 %v3737_v15 }
  0x42   : > { %1329 = vmatpush.bf16.msrb.mxu1 %v3745_v19  ;;  %v579_v10 = vor.u32 %v578_v59, %v575_v58  ;;  %v584_v22 = vrot.slane %v582_v11, 5  ;;  %v543_v28 = vsel %vm4075_vm2, %v538_v13, %v542_v12  ;;  %v3722_v58 = vld [vmem:[%s4039_s24 + $0x24] sm:$0xf0]  ;;  %v3720_v59 = vld [vmem:[%s4039_s24 + $0xc] sm:$0xf] }
  0x43   : > { %1358 = vmatpush.bf16.msrb.mxu2 %v3753_v7  ;;  %v568_v7 = vshll.u32 %v357_v53, 16  ;;  %v675_v32 = vunpack.c.l.b16 %v543_v28  ;;  %v676_v34 = vunpack.c.h.b16 %v543_v28  ;;  %v3030_v53 = vld [vmem:[%s4039_s24] sm:$0xf]  ;;  %v3723_v11 = vld [vmem:[%s4039_s24 + $0x44] sm:$0xf] }
  0x44   : > { %1387 = vmatpush.bf16.msrb.mxu3 %v3761_v8  ;;  %v551_v8 = vor.u32 %v550_v57, %v547_v56  ;;  %v580_v21 = vrot.slane %v579_v10, 4  ;;  %v3032_v56 = vld [vmem:[%s4039_s24 + $0x20] sm:$0xf0]  ;;  %v3038_v57 = vld [vmem:[%s4039_s24 + $0x8] sm:$0xf] }
  0x45   : > { %1301 = vmatpush.bf16.msrb.mxu0 %v3736_v37  ;;  %v570_v15 = vrot.slane %v568_v7, 5  ;;  %v3035_v62 = vor.u32 %v3719_v55, %v3032_v56  ;;  %v3039_v63 = vor.u32 %v3722_v58, %v3038_v57  ;;  %v3817_v7 = vld [vmem:[%s4689_s1 + $0x210] sm:$0xff]  ;;  %v3725_v10 = vld [vmem:[%s4039_s24 + $0x5c] sm:$0xf0]  ;;  %v3048_v12 = vld [vmem:[%s4039_s24 + $0x60] sm:$0xf0] }
  0x46   : > { %1330 = vmatpush.bf16.msrb.mxu1 %v3744_v38  ;;  %v552_v19 = vrot.slane %v551_v8, 4  ;;  %v585_v31 = vsel %vm4075_vm2, %v580_v21, %v584_v22  ;;  %v3825_v8 = vld [vmem:[%s4689_s1 + $0x250] sm:$0xff]  ;;  %v3054_v13 = vld [vmem:[%s4039_s24 + $0x48] sm:$0xf]  ;;  %v3823_v28 = vld [vmem:[%s4689_s1 + $0x240] sm:$0xff] }
  0x47   : > { %1359 = vmatpush.bf16.msrb.mxu2 %v3752_v23  ;;  %v3830_v23 = vld [vmem:[%s4689_s1 + $0x278] sm:$0xff]  ;;  %v571_v29 = vsel %vm4075_vm2, %v566_v14, %v570_v15  ;;  %v681_v37 = vunpack.c.l.b16 %v585_v31  ;;  %v682_v39 = vunpack.c.h.b16 %v585_v31  ;;  %v3726_v14 = vld [vmem:[%s4039_s24 + $0x64] sm:$0xf0]  ;;  %v3724_v15 = vld [vmem:[%s4039_s24 + $0x4c] sm:$0xf] }
  0x48   : > { %1388 = vmatpush.bf16.msrb.mxu3 %v3760_v24  ;;  %v3837_v24 = vld [vmem:[%s4689_s1 + $0x2b0] sm:$0xff]  ;;  %v557_v30 = vsel %vm4075_vm2, %v552_v19, %v556_v20  ;;  %v679_v33 = vunpack.c.l.b16 %v571_v29  ;;  %v680_v35 = vunpack.c.h.b16 %v571_v29  ;;  %v3055_v19 = vor.u32 %v3726_v14, %v3054_v13  ;;  %v3832_v21 = vld [vmem:[%s4689_s1 + $0x288] sm:$0xff]  ;;  %v3062_v29 = vld [vmem:[%s4039_s24 + $0x80] sm:$0xf] }
  0x49   : > { %1302 = vmatpush.bf16.msrb.mxu0 %v3735_v60  ;;  %v677_v36 = vunpack.c.l.b16 %v557_v30  ;;  %v678_v38 = vunpack.c.h.b16 %v557_v30  ;;  %v3040_v60 = vld [vmem:[%s4039_s24 + $0x28] sm:$0xf0]  ;;  %v3729_v30 = vld [vmem:[%s4039_s24 + $0x9c] sm:$0xf0]  ;;  %v3727_v31 = vld [vmem:[%s4039_s24 + $0x84] sm:$0xf] }
  0x4a   : > { %1331 = vmatpush.bf16.msrb.mxu1 %v3743_v61  ;;  %v695_v40 = vpack.c.b16 %v679_v33, %v675_v32  ;;  %v696_v41 = vpack.c.b16 %v680_v35, %v676_v34  ;;  %v3031_v61 = vor.u32 %v3721_v54, %v3030_v53  ;;  %v3840_v22 = vld [vmem:[%s4689_s1 + $0x2c8] sm:$0xff]  ;;  %v3064_v32 = vld [vmem:[%s4039_s24 + $0xa0] sm:$0xf0] }
  0x4b   : > { %1360 = vmatpush.bf16.msrb.mxu2 %v3751_v43  ;;  %v697_v42 = vpack.c.b16 %v681_v37, %v677_v36  ;;  %v698_v43 = vpack.c.b16 %v682_v39, %v678_v38  ;;  %v3070_v33 = vld [vmem:[%s4039_s24 + $0x88] sm:$0xf]  ;;  %v3728_v35 = vld [vmem:[%s4039_s24 + $0x8c] sm:$0xf]  ;;  %v3063_v37 = vor.u32 %v3729_v30, %v3062_v29  ;;  %v3067_v38 = vor.u32 %v3727_v31, %v3064_v32  ;;  %v3850_v30 = vld [vmem:[%s4689_s1 + $0x318] sm:$0xff] }
  0x4c   : > { %1389 = vmatpush.bf16.msrb.mxu3 %v3759_v44  ;;  %925 = vmatmul.bf16.gmra.mxu0 %v691_v0  ;;  %v3836_v44 = vld [vmem:[%s4689_s1 + $0x2a8] sm:$0xff]  ;;  %v3043_v0 = vor.u32 %v3720_v59, %v3040_v60  ;;  %v3853_v60 = vld [vmem:[%s4689_s1 + $0x330] sm:$0xff]  ;;  %v3858_v31 = vld [vmem:[%s4689_s1 + $0x358] sm:$0xff] }
  0x4d   : > { %954 = vmatmul.bf16.gmra.mxu1 %v692_v1  ;;  %1765 = vmatpush.bf16.msra.mxu0 %v3822_v18  ;;  %v3834_v1 = vld [vmem:[%s4689_s1 + $0x298] sm:$0xff]  ;;  %v3051_v18 = vor.u32 %v3723_v11, %v3048_v12  ;;  %v3730_v34 = vld [vmem:[%s4039_s24 + $0xa4] sm:$0xf0]  ;;  %v3072_v36 = vld [vmem:[%s4039_s24 + $0xa8] sm:$0xf0] }
  0x4e   : > { %983 = vmatmul.bf16.gmra.mxu2 %v693_v4  ;;  %1794 = vmatpush.bf16.msra.mxu1 %v3830_v23  ;;  %v3826_v4 = vld [vmem:[%s4689_s1 + $0x258] sm:$0xff]  ;;  %v3816_v23 = vld [vmem:[%s4689_s1 + $0x208] sm:$0xff]  ;;  %v3071_v39 = vor.u32 %v3730_v34, %v3070_v33  ;;  %v3865_v32 = vld [vmem:[%s4689_s1 + $0x390] sm:$0xff] }
  0x4f   : > { %1012 = vmatmul.bf16.gmra.mxu3 %v694_v5  ;;  %1823 = vmatpush.bf16.msra.mxu2 %v3838_v16  ;;  %v3833_v5 = vld [vmem:[%s4689_s1 + $0x290] sm:$0xff]  ;;  %v3056_v16 = vld [vmem:[%s4039_s24 + $0x68] sm:$0xf0]  ;;  %v3734_v53 = vld [vmem:[%s4039_s24 + $0xe4] sm:$0xf0] }
  0x50   : > { %1852 = vmatpush.bf16.msra.mxu3 %v3846_v17  ;;  %v3047_v17 = vor.u32 %v3725_v10, %v3046_v9  ;;  %v3059_v20 = vor.u32 %v3724_v15, %v3056_v16  ;;  %v3732_v54 = vld [vmem:[%s4039_s24 + $0xcc] sm:$0xf]  ;;  %v3802_v9 = vld [vmem:[%s4039_s24 + $0x44] sm:$0xf0]  ;;  %v3318_v33 = vld [vmem:[%s4039_s24 + $0x60] sm:$0xf] }
  0x51   : > { %1766 = vmatpush.bf16.msra.mxu0 %v3821_v26  ;;  %v3839_v26 = vld [vmem:[%s4689_s1 + $0x2c0] sm:$0xff]  ;;  %v3088_v55 = vld [vmem:[%s4039_s24 + $0xe8] sm:$0xf0] }
  0x52   : > { %1795 = vmatpush.bf16.msra.mxu1 %v3829_v27  ;;  %v3815_v27 = vld [vmem:[%s4689_s1 + $0x200] sm:$0xff]  ;;  %v3091_v59 = vor.u32 %v3732_v54, %v3088_v55  ;;  %v3800_v10 = vld [vmem:[%s4039_s24 + $0x2c] sm:$0xf]  ;;  %v3849_v54 = vld [vmem:[%s4689_s1 + $0x310] sm:$0xff] }
  0x53   : > { %1824 = vmatpush.bf16.msra.mxu2 %v3837_v24  ;;  %v3824_v24 = vld [vmem:[%s4689_s1 + $0x248] sm:$0xff]  ;;  %v3805_v34 = vld [vmem:[%s4039_s24 + $0x7c] sm:$0xf0]  ;;  %v3857_v55 = vld [vmem:[%s4689_s1 + $0x350] sm:$0xff] }
  0x54   : > { %1853 = vmatpush.bf16.msra.mxu3 %v3845_v25  ;;  %v3831_v25 = vld [vmem:[%s4689_s1 + $0x280] sm:$0xff]  ;;  %v3312_v11 = vld [vmem:[%s4039_s24 + $0x48] sm:$0xf0] }
  0x55   : > { %1767 = vmatpush.bf16.msra.mxu0 %v3820_v47  ;;  %v3078_v47 = vld [vmem:[%s4039_s24 + $0xc0] sm:$0xf] }
  0x56   : > { %1796 = vmatpush.bf16.msra.mxu1 %v3828_v48  ;;  %v3733_v48 = vld [vmem:[%s4039_s24 + $0xdc] sm:$0xf0] }
  0x57   : > { %1825 = vmatpush.bf16.msra.mxu2 %v3836_v44  ;;  %v3862_v44 = vld [vmem:[%s4689_s1 + $0x378] sm:$0xff]  ;;  %v3079_v56 = vor.u32 %v3733_v48, %v3078_v47 }
  0x58   : > { %1854 = vmatpush.bf16.msra.mxu3 %v3844_v45  ;;  %v3869_v45 = vld [vmem:[%s4689_s1 + $0x3b0] sm:$0xff] }
  0x59   : > { %1768 = vmatpush.bf16.msra.mxu0 %v3819_v51  ;;  %v3080_v51 = vld [vmem:[%s4039_s24 + $0xe0] sm:$0xf0] }
  0x5a   : > { %1797 = vmatpush.bf16.msra.mxu1 %v3827_v52  ;;  %v3086_v52 = vld [vmem:[%s4039_s24 + $0xc8] sm:$0xf] }
  0x5b   : > { %1826 = vmatpush.bf16.msra.mxu2 %v3835_v49  ;;  %v3877_v49 = vld [vmem:[%s4689_s1 + $0x3f0] sm:$0xff]  ;;  %v3087_v58 = vor.u32 %v3734_v53, %v3086_v52 }
  0x5c   : > { %930 = vmatmul.bf16.gmra.mxu0 %v695_v40  ;;  %1855 = vmatpush.bf16.msra.mxu3 %v3843_v50  ;;  %v3075_v40 = vor.u32 %v3728_v35, %v3072_v36  ;;  %v3731_v50 = vld [vmem:[%s4039_s24 + $0xc4] sm:$0xf]  ;;  %v3873_v35 = vld [vmem:[%s4689_s1 + $0x3d0] sm:$0xff] }
  0x5d   : > { %959 = vmatmul.bf16.gmra.mxu1 %v696_v41  ;;  %1769 = vmatpush.bf16.msra.mxu0 %v3818_v3  ;;  %v3870_v41 = vld [vmem:[%s4689_s1 + $0x3b8] sm:$0xff]  ;;  %v3083_v57 = vor.u32 %v3731_v50, %v3080_v51  ;;  %v3302_v3 = vld [vmem:[%s4039_s24 + $0x20] sm:$0xf]  ;;  %v3803_v36 = vld [vmem:[%s4039_s24 + $0x64] sm:$0xf] }
  0x5e   : > { %988 = vmatmul.bf16.gmra.mxu2 %v697_v42  ;;  %1798 = vmatpush.bf16.msra.mxu1 %v3826_v4  ;;  %v3878_v42 = vld [vmem:[%s4689_s1 + $0x3f8] sm:$0xff]  ;;  %v3801_v4 = vld [vmem:[%s4039_s24 + $0x3c] sm:$0xf0] }
  0x5f   : > { %1017 = vmatmul.bf16.gmra.mxu3 %v698_v43  ;;  %1827 = vmatpush.bf16.msra.mxu2 %v3834_v1  ;;  %v3854_v43 = vld [vmem:[%s4689_s1 + $0x338] sm:$0xff]  ;;  %v3860_v1 = vld [vmem:[%s4689_s1 + $0x368] sm:$0xff]  ;;  %v3303_v12 = vor.u32 %v3801_v4, %v3302_v3  ;;  %v3863_v3 = vld [vmem:[%s4689_s1 + $0x380] sm:$0xff] }
  0x60   : > { %1856 = vmatpush.bf16.msra.mxu3 %v3842_v2  ;;  %v3867_v2 = vld [vmem:[%s4689_s1 + $0x3a0] sm:$0xff] }
  0x61   : > { %1770 = vmatpush.bf16.msra.mxu0 %v3817_v7  ;;  %v3304_v7 = vld [vmem:[%s4039_s24 + $0x40] sm:$0xf0]  ;;  %v3334_v4 = vld [vmem:[%s4039_s24 + $0xa0] sm:$0xf] }
  0x62   : > { %1799 = vmatpush.bf16.msra.mxu1 %v3825_v8  ;;  %v3310_v8 = vld [vmem:[%s4039_s24 + $0x28] sm:$0xf] }
  0x63   : > { %1828 = vmatpush.bf16.msra.mxu2 %v3833_v5  ;;  %v3875_v5 = vld [vmem:[%s4689_s1 + $0x3e0] sm:$0xff]  ;;  %v3311_v16 = vor.u32 %v3802_v9, %v3310_v8  ;;  %v3342_v9 = vld [vmem:[%s4039_s24 + $0xa8] sm:$0xf] }
  0x64   : > { %1857 = vmatpush.bf16.msra.mxu3 %v3841_v6  ;;  %v3799_v6 = vld [vmem:[%s4039_s24 + $0x24] sm:$0xf] }
  0x65   : > { %1771 = vmatpush.bf16.msra.mxu0 %v3816_v23  ;;  %v3307_v13 = vor.u32 %v3799_v6, %v3304_v7  ;;  %v3871_v6 = vld [vmem:[%s4689_s1 + $0x3c0] sm:$0xff] }
  0x66   : > { %1800 = vmatpush.bf16.msra.mxu1 %v3824_v24  ;;  %v3807_v7 = vld [vmem:[%s4039_s24 + $0xa4] sm:$0xf] }
  0x67   : > { %1829 = vmatpush.bf16.msra.mxu2 %v3832_v21  ;;  %v3866_v21 = vld [vmem:[%s4689_s1 + $0x398] sm:$0xff]  ;;  %v3336_v8 = vld [vmem:[%s4039_s24 + $0xc0] sm:$0xf0] }
  0x68   : > { %1858 = vmatpush.bf16.msra.mxu3 %v3840_v22  ;;  %v3874_v22 = vld [vmem:[%s4689_s1 + $0x3d8] sm:$0xff] }
  0x69   : > { %1772 = vmatpush.bf16.msra.mxu0 %v3815_v27 }
  0x6a   : > { %1801 = vmatpush.bf16.msra.mxu1 %v3823_v28 }
  0x6b   : > { %1830 = vmatpush.bf16.msra.mxu2 %v3831_v25 }
  0x6c   : > { %1303 = vmatmul.bf16.vlgmr.msrb.gmra.mxu0 %v3031_v61  ;;  %1859 = vmatpush.bf16.msra.mxu3 %v3839_v26  ;;  %v3861_v61 = vld [vmem:[%s4689_s1 + $0x370] sm:$0xff] }
  0x6d   : > { %1332 = vmatmul.bf16.vlgmr.msrb.gmra.mxu1 %v3035_v62  ;;  %2466 = vmatpush.bf16.msrb.mxu0 %v3854_v43  ;;  %v3868_v62 = vld [vmem:[%s4689_s1 + $0x3a8] sm:$0xff] }
  0x6e   : > { %1361 = vmatmul.bf16.vlgmr.msrb.gmra.mxu2 %v3039_v63  ;;  %2495 = vmatpush.bf16.msrb.mxu1 %v3862_v44  ;;  %v3876_v63 = vld [vmem:[%s4689_s1 + $0x3e8] sm:$0xff]  ;;  %v3319_v44 = vor.u32 %v3805_v34, %v3318_v33 }
  0x6f   : > { %1390 = vmatmul.bf16.vlgmr.msrb.gmra.mxu3 %v3043_v0  ;;  %2524 = vmatpush.bf16.msrb.mxu2 %v3870_v41  ;;  %v3852_v0 = vld [vmem:[%s4689_s1 + $0x328] sm:$0xff] }
  0x70   : > { %2553 = vmatpush.bf16.msrb.mxu3 %v3878_v42  ;;  %v3328_v41 = vld [vmem:[%s4039_s24 + $0x88] sm:$0xf0] }
  0x71   : > { %2467 = vmatpush.bf16.msrb.mxu0 %v3853_v60  ;;  %v3497_v34 = vld [vmem:[%s4039_s24 + $0x48] sm:$0xff] }
  0x72   : > { %2496 = vmatpush.bf16.msrb.mxu1 %v3861_v61 }
  0x73   : > { %2525 = vmatpush.bf16.msrb.mxu2 %v3869_v45 }
  0x74   : > { %2554 = vmatpush.bf16.msrb.mxu3 %v3877_v49 }
  0x75   : > { %2468 = vmatpush.bf16.msrb.mxu0 %v3852_v0 }
  0x76   : > { %2497 = vmatpush.bf16.msrb.mxu1 %v3860_v1  ;;  %v3848_v1 = vld [vmem:[%s4689_s1 + $0x308] sm:$0xff] }
  0x77   : > { %2526 = vmatpush.bf16.msrb.mxu2 %v3868_v62 }
  0x78   : > { %2555 = vmatpush.bf16.msrb.mxu3 %v3876_v63 }
  0x7b   : > { %2527 = vmatpush.bf16.msrb.mxu2 %v3867_v2  ;;  %v3856_v2 = vld [vmem:[%s4689_s1 + $0x348] sm:$0xff] }
  0x7c   : > { %1308 = vmatmul.bf16.gmra.mxu0 %v3047_v17  ;;  %2556 = vmatpush.bf16.msrb.mxu3 %v3875_v5  ;;  %v3315_v17 = vor.u32 %v3800_v10, %v3312_v11  ;;  %v3809_v5 = vld [vmem:[%s4039_s24 + $0xbc] sm:$0xf0]  ;;  %v3810_v10 = vld [vmem:[%s4039_s24 + $0xc4] sm:$0xf0]  ;;  %v3808_v11 = vld [vmem:[%s4039_s24 + $0xac] sm:$0xf] }
  0x7d   : > { %1337 = vmatmul.bf16.gmra.mxu1 %v3051_v18 }
  0x7e   : > { %1366 = vmatmul.bf16.gmra.mxu2 %v3055_v19  ;;  %v3851_v19 = vld [vmem:[%s4689_s1 + $0x320] sm:$0xff] }
  0x7f   : > { %1395 = vmatmul.bf16.gmra.mxu3 %v3059_v20  ;;  %v3859_v20 = vld [vmem:[%s4689_s1 + $0x360] sm:$0xff]  ;;  %2469 = vmatpush.bf16.msrb.mxu0 %v3851_v19 }
  0x80   : > { %2498 = vmatpush.bf16.msrb.mxu1 %v3859_v20  ;;  %2528 = vmatpush.bf16.msrb.mxu2 %v3866_v21  ;;  %v3492_v19 = vld [vmem:[%s4039_s24 + $0x20] sm:$0xff] }
  0x81   : > { %2557 = vmatpush.bf16.msrb.mxu3 %v3874_v22 }
  0x83   : > { %2470 = vmatpush.bf16.msrb.mxu0 %v3850_v30  ;;  %v1925_v30 = vshll.u32 %v3492_v19, 16 }
  0x84   : > { %2499 = vmatpush.bf16.msrb.mxu1 %v3858_v31  ;;  %2529 = vmatpush.bf16.msrb.mxu2 %v3865_v32  ;;  %v3493_v31 = vld [vmem:[%s4039_s24 + $0x28] sm:$0xff] }
  0x85   : > { %2558 = vmatpush.bf16.msrb.mxu3 %v3873_v35  ;;  %v1936_v35 = vshrl.u32 %v3493_v31, 16 }
  0x87   : > { %2471 = vmatpush.bf16.msrb.mxu0 %v3849_v54 }
  0x88   : > { %2500 = vmatpush.bf16.msrb.mxu1 %v3857_v55 }
  0x8b   : > { %2472 = vmatpush.bf16.msrb.mxu0 %v3848_v1  ;;  %v3499_v1 = vld [vmem:[%s4039_s24 + $0x58] sm:$0x11] }
  0x8c   : > { %1313 = vmatmul.bf16.gmra.mxu0 %v3063_v37  ;;  %v3320_v37 = vld [vmem:[%s4039_s24 + $0x80] sm:$0xf0]  ;;  %2501 = vmatpush.bf16.msrb.mxu1 %v3856_v2 }
  0x8d   : > { %1342 = vmatmul.bf16.gmra.mxu1 %v3067_v38  ;;  %v3326_v38 = vld [vmem:[%s4039_s24 + $0x68] sm:$0xf]  ;;  %v3323_v45 = vor.u32 %v3803_v36, %v3320_v37  ;;  %v1939_v36 = vshll.u32 %v3493_v31, 16  ;;  %v3504_v31 = vld [vmem:[%s4039_s24 + $0x80] sm:$0xff] }
  0x8e   : > { %1371 = vmatmul.bf16.gmra.mxu2 %v3071_v39  ;;  %v3806_v39 = vld [vmem:[%s4039_s24 + $0x84] sm:$0xf0] }
  0x8f   : > { %1400 = vmatmul.bf16.gmra.mxu3 %v3075_v40  ;;  %v3804_v40 = vld [vmem:[%s4039_s24 + $0x6c] sm:$0xf]  ;;  %v3327_v50 = vor.u32 %v3806_v39, %v3326_v38  ;;  %v1927_v38 = vrot.slane %v1925_v30, 5  ;;  %v1964_v39 = vshrl.u32 %v3497_v34, 16  ;;  %v1941_v54 = vrot.slane %v1939_v36, 5 }
  0x90   : > { %v3331_v51 = vor.u32 %v3804_v40, %v3328_v41 }
  0x9c   : > { %1318 = vmatmul.bf16.gmra.mxu0 %v3079_v56  ;;  %v3864_v56 = vld [vmem:[%s4689_s1 + $0x388] sm:$0xff] }
  0x9d   : > { %1347 = vmatmul.bf16.gmra.mxu1 %v3083_v57  ;;  %v3872_v57 = vld [vmem:[%s4689_s1 + $0x3c8] sm:$0xff]  ;;  %2530 = vmatpush.bf16.msrb.mxu2 %v3864_v56  ;;  %v3350_v56 = vld [vmem:[%s4039_s24 + $0xe0] sm:$0xf] }
  0x9e   : > { %1376 = vmatmul.bf16.gmra.mxu2 %v3087_v58  ;;  %2559 = vmatpush.bf16.msrb.mxu3 %v3872_v57  ;;  %v3813_v57 = vld [vmem:[%s4039_s24 + $0xfc] sm:$0xf0] }
  0x9f   : > { %1405 = vmatmul.bf16.gmra.mxu3 %v3091_v59 }
  0xa1   : > { %2531 = vmatpush.bf16.msrb.mxu2 %v3863_v3  ;;  %v3811_v3 = vld [vmem:[%s4039_s24 + $0xe4] sm:$0xf] }
  0xa2   : > { %2560 = vmatpush.bf16.msrb.mxu3 %v3871_v6  ;;  %v3351_v6 = vor.u32 %v3813_v57, %v3350_v56 }
  0xa9   : > { %v916_v14 = vpop.f32.mrf.mxu0 }
  0xaa   : > { %v945_v15 = vpop.f32.mrf.mxu1 }
  0xab   : > { %v946_v18 = vadd.f32 %v945_v15, %v916_v14  ;;  %v3335_v15 = vor.u32 %v3809_v5, %v3334_v4  ;;  %v3352_v4 = vld [vmem:[%s4039_s24 + $0x100] sm:$0xf0]  ;;  %v3358_v5 = vld [vmem:[%s4039_s24 + $0xe8] sm:$0xf] }
  0xac   : > { %1773 = vmatmul.bf16.vlgmr.msra.gmra.mxu0 %v3303_v12  ;;  %v3344_v12 = vld [vmem:[%s4039_s24 + $0xc8] sm:$0xf0] }
  0xad   : > { %1802 = vmatmul.bf16.vlgmr.msra.gmra.mxu1 %v3307_v13 }
  0xae   : > { %1831 = vmatmul.bf16.vlgmr.msra.gmra.mxu2 %v3311_v16  ;;  %v3339_v16 = vor.u32 %v3807_v7, %v3336_v8  ;;  %v3814_v7 = vld [vmem:[%s4039_s24 + $0x104] sm:$0xf0]  ;;  %v3812_v8 = vld [vmem:[%s4039_s24 + $0xec] sm:$0xf] }
  0xaf   : > { %1860 = vmatmul.bf16.vlgmr.msra.gmra.mxu3 %v3315_v17  ;;  %v3847_v17 = vld [vmem:[%s4689_s1 + $0x300] sm:$0xff] }
  0xb0   : > { %2473 = vmatpush.bf16.msrb.mxu0 %v3847_v17  ;;  %v3355_v17 = vor.u32 %v3811_v3, %v3352_v4 }
  0xb1   : > { %v974_v23 = vpop.f32.mrf.mxu2  ;;  %v918_v26 = vpop.f32.mrf.mxu0 }
  0xb2   : > { %v1003_v24 = vpop.f32.mrf.mxu3  ;;  %v975_v25 = vadd.f32 %v974_v23, %v946_v18  ;;  %v947_v27 = vpop.f32.mrf.mxu1  ;;  %v3855_v18 = vld [vmem:[%s4689_s1 + $0x340] sm:$0xff]  ;;  %v3343_v23 = vor.u32 %v3810_v10, %v3342_v9  ;;  %v3360_v9 = vld [vmem:[%s4039_s24 + $0x108] sm:$0xf0] }
  0xb3   : > { %v948_v28 = vadd.f32 %v947_v27, %v918_v26  ;;  %2502 = vmatpush.bf16.msrb.mxu1 %v3855_v18 }
  0xb4   : > { %v4457_v29 = vadd.f32 %v1003_v24, %v975_v25  ;;  %v3347_v24 = vor.u32 %v3808_v11, %v3344_v12  ;;  %v3496_v25 = vld [vmem:[%s4039_s24 + $0x40] sm:$0xff] }
  0xb5   : > { %v1950_v32 = vshrl.u32 %v3496_v25, 16  ;;  %v1953_v33 = vshll.u32 %v3496_v25, 16  ;;  %v3363_v25 = vor.u32 %v3812_v8, %v3360_v9 }
  0xb9   : > { %v976_v42 = vpop.f32.mrf.mxu2  ;;  %v921_v48 = vpop.f32.mrf.mxu0 }
  0xba   : > { %v1005_v43 = vpop.f32.mrf.mxu3  ;;  %v977_v47 = vadd.f32 %v976_v42, %v948_v28  ;;  %v950_v49 = vpop.f32.mrf.mxu1  ;;  %v1922_v28 = vshrl.u32 %v3492_v19, 16  ;;  %v3494_v42 = vld [vmem:[%s4039_s24 + $0x30] sm:$0x11] }
  0xbb   : > { %v951_v52 = vadd.f32 %v950_v49, %v921_v48 }
  0xbc   : > { %v4479_v53 = vadd.f32 %v1005_v43, %v977_v47  ;;  %1778 = vmatmul.bf16.gmra.mxu0 %v3319_v44  ;;  %v1924_v37 = vrot.slane %v1922_v28, 4  ;;  %v1952_v43 = vrot.slane %v1950_v32, 4  ;;  %v1955_v44 = vrot.slane %v1953_v33, 5 }
  0xbd   : > { %1807 = vmatmul.bf16.gmra.mxu1 %v3323_v45  ;;  %v1967_v45 = vshll.u32 %v3497_v34, 16 }
  0xbe   : > { %1836 = vmatmul.bf16.gmra.mxu2 %v3327_v50  ;;  %v3498_v50 = vld [vmem:[%s4039_s24 + $0x50] sm:$0x11] }
  0xbf   : > { %1865 = vmatmul.bf16.gmra.mxu3 %v3331_v51  ;;  %v1969_v2 = vrot.slane %v1967_v45, 5 }
  0xc1   : > { %v979_v58 = vpop.f32.mrf.mxu2  ;;  %v923_v61 = vpop.f32.mrf.mxu0 }
  0xc2   : > { %v1008_v59 = vpop.f32.mrf.mxu3  ;;  %v980_v60 = vadd.f32 %v979_v58, %v951_v52  ;;  %v952_v62 = vpop.f32.mrf.mxu1  ;;  %v1938_v52 = vrot.slane %v1936_v35, 4  ;;  %v1928_v58 = vor.u32 %v1927_v38, %v1924_v37 }
  0xc3   : > { %v953_v63 = vadd.f32 %v952_v62, %v923_v61  ;;  %v1956_v61 = vor.u32 %v1955_v44, %v1952_v43  ;;  %v1959_v62 = vshll.u32 %v3498_v50, 16 }
  0xc4   : > { %v4493_v0 = vadd.f32 %v1008_v59, %v980_v60  ;;  %v1931_v59 = vshll.u32 %v3494_v42, 16  ;;  %v1966_v60 = vrot.slane %v1964_v39, 4  ;;  %v1942_v10 = vor.u32 %v1941_v54, %v1938_v52  ;;  %v3501_v42 = vld [vmem:[%s4039_s24 + $0x68] sm:$0xff]  ;;  %v3502_v54 = vld [vmem:[%s4039_s24 + $0x70] sm:$0x11] }
  0xc5   : > { %v1929_v11 = vrot.slane %v1928_v58, 4  ;;  %v1957_v18 = vrot.slane %v1956_v61, 4  ;;  %v1961_v19 = vrot.slane %v1959_v62, 5  ;;  %v1992_v58 = vshrl.u32 %v3501_v42, 16  ;;  %v3506_v62 = vld [vmem:[%s4039_s24 + $0x90] sm:$0x11] }
  0xc6   : > { %v1933_v12 = vrot.slane %v1931_v59, 5  ;;  %v1943_v30 = vrot.slane %v1942_v10, 4 }
  0xc7   : > { %v1962_v36 = vsel %vm4075_vm2, %v1957_v18, %v1961_v19  ;;  %v3507_v18 = vld [vmem:[%s4039_s24 + $0x98] sm:$0x11] }
  0xc8   : > { %v1934_v33 = vsel %vm4075_vm2, %v1929_v11, %v1933_v12  ;;  %v2214_v44 = vunpack.c.l.b16 %v1962_v36  ;;  %v1987_v12 = vshll.u32 %v3502_v54, 16 }
  0xc9   : > { %v981_v13 = vpop.f32.mrf.mxu2  ;;  %v926_v21 = vpop.f32.mrf.mxu0  ;;  %v2210_v43 = vunpack.c.l.b16 %v1934_v33  ;;  %v2211_v45 = vunpack.c.h.b16 %v1934_v33 }
  0xca   : > { %v1010_v14 = vpop.f32.mrf.mxu3  ;;  %v982_v20 = vadd.f32 %v981_v13, %v953_v63  ;;  %v955_v22 = vpop.f32.mrf.mxu1  ;;  %v3495_v63 = vld [vmem:[%s4039_s24 + $0x38] sm:$0x11] }
  0xcb   : > { %v956_v26 = vadd.f32 %v955_v22, %v926_v21  ;;  %v1945_v13 = vshll.u32 %v3495_v63, 16 }
  0xcc   : > { %v4523_v27 = vadd.f32 %v1010_v14, %v982_v20  ;;  %1783 = vmatmul.bf16.gmra.mxu0 %v3335_v15  ;;  %v1973_v14 = vshll.u32 %v3499_v1, 16  ;;  %v1970_v20 = vor.u32 %v1969_v2, %v1966_v60  ;;  %v1995_v2 = vshll.u32 %v3501_v42, 16 }
  0xcd   : > { %1812 = vmatmul.bf16.gmra.mxu1 %v3339_v16  ;;  %v1947_v34 = vrot.slane %v1945_v13, 5  ;;  %v2015_v13 = vshll.u32 %v3506_v62, 16 }
  0xce   : > { %1841 = vmatmul.bf16.gmra.mxu2 %v3343_v23  ;;  %v1975_v35 = vrot.slane %v1973_v14, 5  ;;  %v1971_v37 = vrot.slane %v1970_v20, 4 }
  0xcf   : > { %1870 = vmatmul.bf16.gmra.mxu3 %v3347_v24  ;;  %v3359_v24 = vor.u32 %v3814_v7, %v3358_v5  ;;  %v2017_v33 = vrot.slane %v2015_v13, 5 }
  0xd0   : > { %v1976_v52 = vsel %vm4075_vm2, %v1971_v37, %v1975_v35  ;;  %v3512_v35 = vld [vmem:[%s4039_s24 + $0xc0] sm:$0xff] }
  0xd1   : > { %v984_v40 = vpop.f32.mrf.mxu2  ;;  %v928_v48 = vpop.f32.mrf.mxu0  ;;  %v2216_v8 = vunpack.c.l.b16 %v1976_v52  ;;  %v2217_v10 = vunpack.c.h.b16 %v1976_v52  ;;  %v3509_v52 = vld [vmem:[%s4039_s24 + $0xa8] sm:$0xff] }
  0xd2   : > { %v1013_v41 = vpop.f32.mrf.mxu3  ;;  %v985_v47 = vadd.f32 %v984_v40, %v956_v26  ;;  %v957_v49 = vpop.f32.mrf.mxu1  ;;  %v3500_v26 = vld [vmem:[%s4039_s24 + $0x60] sm:$0xff]  ;;  %v2006_v40 = vshrl.u32 %v3504_v31, 16 }
  0xd3   : > { %v958_v51 = vadd.f32 %v957_v49, %v928_v48  ;;  %v1978_v38 = vshrl.u32 %v3500_v26, 16  ;;  %v1981_v39 = vshll.u32 %v3500_v26, 16  ;;  %v1948_v48 = vsel %vm4075_vm2, %v1943_v30, %v1947_v34  ;;  %v3505_v49 = vld [vmem:[%s4039_s24 + $0x88] sm:$0xff] }
  0xd4   : > { %v4529_v55 = vadd.f32 %v1013_v41, %v985_v47  ;;  %v2009_v41 = vshll.u32 %v3504_v31, 16  ;;  %v2215_v47 = vunpack.c.h.b16 %v1962_v36  ;;  %v2008_v63 = vrot.slane %v2006_v40, 4 }
  0xd5   : > { %v1980_v56 = vrot.slane %v1978_v38, 4  ;;  %v1983_v57 = vrot.slane %v1981_v39, 5  ;;  %v2212_v4 = vunpack.c.l.b16 %v1948_v48  ;;  %v2020_v5 = vshrl.u32 %v3505_v49, 16 }
  0xd6   : > { %v2011_v1 = vrot.slane %v2009_v41, 5  ;;  %v2213_v9 = vunpack.c.h.b16 %v1948_v48  ;;  %v1989_v31 = vrot.slane %v1987_v12, 5  ;;  %v2029_v41 = vshll.u32 %v3507_v18, 16 }
  0xd7   : > { %v1984_v11 = vor.u32 %v1983_v57, %v1980_v56  ;;  %v2022_v19 = vrot.slane %v2020_v5, 4  ;;  %v2062_v48 = vshrl.u32 %v3512_v35, 16  ;;  %v3513_v57 = vld [vmem:[%s4039_s24 + $0xc8] sm:$0xff] }
  0xd8   : > { %v2012_v14 = vor.u32 %v2011_v1, %v2008_v63  ;;  %v3510_v63 = vld [vmem:[%s4039_s24 + $0xb0] sm:$0x11] }
  0xd9   : > { %v986_v15 = vpop.f32.mrf.mxu2  ;;  %v931_v22 = vpop.f32.mrf.mxu0  ;;  %v1985_v30 = vrot.slane %v1984_v11, 4  ;;  %v2064_v1 = vrot.slane %v2062_v48, 4  ;;  %v2079_v11 = vshll.u32 %v3513_v57, 16 }
  0xda   : > { %v1015_v16 = vpop.f32.mrf.mxu3  ;;  %v987_v21 = vadd.f32 %v986_v15, %v958_v51  ;;  %v960_v23 = vpop.f32.mrf.mxu1  ;;  %v3503_v15 = vld [vmem:[%s4039_s24 + $0x78] sm:$0x11]  ;;  %v2013_v39 = vrot.slane %v2012_v14, 4 }
  0xdb   : > { %v961_v28 = vadd.f32 %v960_v23, %v931_v22  ;;  %v2243_v22 = vpack.c.b16 %v2215_v47, %v2211_v45  ;;  %v2244_v23 = vpack.c.b16 %v2216_v8, %v2212_v4  ;;  %v2001_v34 = vshll.u32 %v3503_v15, 16  ;;  %v3514_v8 = vld [vmem:[%s4039_s24 + $0xd0] sm:$0x11] }
  0xdc   : > { %v4543_v32 = vadd.f32 %v1015_v16, %v987_v21  ;;  %1788 = vmatmul.bf16.gmra.mxu0 %v3351_v6  ;;  %v2023_v6 = vshll.u32 %v3505_v49, 16  ;;  %v1994_v16 = vrot.slane %v1992_v58, 4  ;;  %v2242_v21 = vpack.c.b16 %v2214_v44, %v2210_v43 }
  0xdd   : > { %1817 = vmatmul.bf16.gmra.mxu1 %v3355_v17  ;;  %v1997_v17 = vrot.slane %v1995_v2, 5  ;;  %v2065_v49 = vshll.u32 %v3512_v35, 16  ;;  %v2003_v56 = vrot.slane %v2001_v34, 5 }
  0xde   : > { %1846 = vmatmul.bf16.gmra.mxu2 %v3359_v24  ;;  %v2025_v20 = vrot.slane %v2023_v6, 5  ;;  %v2245_v24 = vpack.c.b16 %v2217_v10, %v2213_v9  ;;  %v2051_v9 = vshll.u32 %v3509_v52, 16  ;;  %v2076_v10 = vshrl.u32 %v3513_v57, 16 }
  0xdf   : > { %1875 = vmatmul.bf16.gmra.mxu3 %v3363_v25  ;;  %v3508_v25 = vld [vmem:[%s4039_s24 + $0xa0] sm:$0xff]  ;;  %v1998_v40 = vor.u32 %v1997_v17, %v1994_v16  ;;  %v2067_v2 = vrot.slane %v2065_v49, 5 }
  0xe0   : > { %v2026_v43 = vor.u32 %v2025_v20, %v2022_v19  ;;  %v2034_v44 = vshrl.u32 %v3508_v25, 16  ;;  %v2037_v45 = vshll.u32 %v3508_v25, 16  ;;  %v3511_v25 = vld [vmem:[%s4039_s24 + $0xb8] sm:$0x11] }
  0xe1   : > { %v989_v50 = vpop.f32.mrf.mxu2  ;;  %v933_v60 = vpop.f32.mrf.mxu0  ;;  %v1999_v54 = vrot.slane %v1998_v40, 4 }
  0xe2   : > { %v1018_v51 = vpop.f32.mrf.mxu3  ;;  %v990_v59 = vadd.f32 %v989_v50, %v961_v28  ;;  %v962_v61 = vpop.f32.mrf.mxu1  ;;  %v2027_v58 = vrot.slane %v2026_v43, 4 }
  0xe3   : > { %v963_v3 = vadd.f32 %v962_v61, %v933_v60  ;;  %v2036_v60 = vrot.slane %v2034_v44, 4  ;;  %v2039_v61 = vrot.slane %v2037_v45, 5  ;;  %v2004_v17 = vsel %vm4075_vm2, %v1999_v54, %v2003_v56 }
  0xe4   : > { %v4557_v7 = vadd.f32 %v1018_v51, %v990_v59  ;;  %v1990_v51 = vsel %vm4075_vm2, %v1985_v30, %v1989_v31  ;;  %v2031_v59 = vrot.slane %v2029_v41, 5  ;;  %v2053_v30 = vrot.slane %v2051_v9, 5 }
  0xe5   : > { %v2218_v62 = vunpack.c.l.b16 %v1990_v51  ;;  %v2219_v6 = vunpack.c.h.b16 %v1990_v51  ;;  %v2040_v20 = vor.u32 %v2039_v61, %v2036_v60  ;;  %v2078_v31 = vrot.slane %v2076_v10, 4 }
  0xe6   : > { %v2032_v19 = vsel %vm4075_vm2, %v2027_v58, %v2031_v59  ;;  %v2220_v34 = vunpack.c.l.b16 %v2004_v17 }
  0xe7   : > { %v2224_v35 = vunpack.c.l.b16 %v2032_v19  ;;  %v2041_v40 = vrot.slane %v2040_v20, 4 }
  0xe9   : > { %v991_v26 = vpop.f32.mrf.mxu2  ;;  %v1304_v37 = vpop.f32.mrf.mxu0  ;;  %v2248_v56 = vpack.c.b16 %v2224_v35, %v2220_v34 }
  0xea   : > { %v1020_v28 = vpop.f32.mrf.mxu3  ;;  %v992_v36 = vadd.f32 %v991_v26, %v963_v3  ;;  %v1333_v38 = vpop.f32.mrf.mxu1  ;;  %v1305_v42 = vadd.f32 %v1304_v37, %v4457_v29  ;;  %v2018_v29 = vsel %vm4075_vm2, %v2013_v39, %v2017_v33  ;;  %v2048_v3 = vshrl.u32 %v3509_v52, 16  ;;  %v3515_v37 = vld [vmem:[%s4039_s24 + $0xd8] sm:$0x11] }
  0xeb   : > { %v2222_v15 = vunpack.c.l.b16 %v2018_v29  ;;  %v2223_v16 = vunpack.c.h.b16 %v2018_v29  ;;  %v2081_v33 = vrot.slane %v2079_v11, 5  ;;  %v2057_v39 = vshll.u32 %v3511_v25, 16  ;;  %v3521_v11 = vld [vmem:[%s4039_s24 + $0x108] sm:$0xff] }
  0xec   : > { %v4564_v47 = vadd.f32 %v1020_v28, %v992_v36  ;;  %v1334_v50 = vadd.f32 %v1333_v38, %v1305_v42  ;;  %2474 = vmatmul.bf16.vlgmr.msrb.gmra.mxu0 %v2242_v21  ;;  %v2043_v21 = vshll.u32 %v3510_v63, 16  ;;  %v2050_v26 = vrot.slane %v2048_v3, 4 }
  0xed   : > { %2503 = vmatmul.bf16.vlgmr.msrb.gmra.mxu1 %v2243_v22  ;;  %v2221_v36 = vunpack.c.h.b16 %v2004_v17  ;;  %v2246_v38 = vpack.c.b16 %v2222_v15, %v2218_v62  ;;  %v2247_v48 = vpack.c.b16 %v2223_v16, %v2219_v6  ;;  %v2085_v51 = vshll.u32 %v3515_v37, 16 }
  0xee   : > { %2532 = vmatmul.bf16.vlgmr.msrb.gmra.mxu2 %v2244_v23  ;;  %v2068_v23 = vor.u32 %v2067_v2, %v2064_v1  ;;  %v2045_v41 = vrot.slane %v2043_v21, 5  ;;  %v2054_v49 = vor.u32 %v2053_v30, %v2050_v26  ;;  %v2059_v62 = vrot.slane %v2057_v39, 5  ;;  %v3518_v39 = vld [vmem:[%s4039_s24 + $0xf0] sm:$0x11] }
  0xef   : > { %2561 = vmatmul.bf16.vlgmr.msrb.gmra.mxu3 %v2245_v24  ;;  %v2071_v24 = vshll.u32 %v3514_v8, 16  ;;  %v2087_v3 = vrot.slane %v2085_v51, 5  ;;  %v2135_v30 = vshll.u32 %v3521_v11, 16  ;;  %v3523_v51 = vld [vmem:[%s4039_s24 + $0x118] sm:$0x11] }
  0xf0   : > { %v2069_v42 = vrot.slane %v2068_v23, 4  ;;  %v2046_v60 = vsel %vm4075_vm2, %v2041_v40, %v2045_v41  ;;  %v2055_v1 = vrot.slane %v2054_v49, 4  ;;  %v3522_v40 = vld [vmem:[%s4039_s24 + $0x110] sm:$0x11] }
  0xf1   : > { %v1362_v4 = vpop.f32.mrf.mxu2  ;;  %v1306_v13 = vpop.f32.mrf.mxu0  ;;  %v2073_v43 = vrot.slane %v2071_v24, 5  ;;  %v2226_v6 = vunpack.c.l.b16 %v2046_v60  ;;  %v2227_v9 = vunpack.c.h.b16 %v2046_v60 }
  0xf2   : > { %v1391_v5 = vpop.f32.mrf.mxu3  ;;  %v1363_v12 = vadd.f32 %v1362_v4, %v1334_v50  ;;  %v1335_v14 = vpop.f32.mrf.mxu1  ;;  %v1307_v18 = vadd.f32 %v1306_v13, %v4479_v53  ;;  %v2225_v53 = vunpack.c.h.b16 %v2032_v19  ;;  %v2082_v50 = vor.u32 %v2081_v33, %v2078_v31  ;;  %v3516_v4 = vld [vmem:[%s4039_s24 + $0xe0] sm:$0xff] }
  0xf3   : > { %v2074_v61 = vsel %vm4075_vm2, %v2069_v42, %v2073_v43  ;;  %v2090_v16 = vshrl.u32 %v3516_v4, 16  ;;  %v2093_v17 = vshll.u32 %v3516_v4, 16  ;;  %v3519_v43 = vld [vmem:[%s4039_s24 + $0xf8] sm:$0x11] }
  0xf4   : > { %v4579_v22 = vadd.f32 %v1391_v5, %v1363_v12  ;;  %v1336_v28 = vadd.f32 %v1335_v14, %v1307_v18  ;;  %v2249_v57 = vpack.c.b16 %v2225_v53, %v2221_v36  ;;  %v2083_v2 = vrot.slane %v2082_v50, 4  ;;  %v3517_v5 = vld [vmem:[%s4039_s24 + $0xe8] sm:$0xff] }
  0xf5   : > { %v2230_v8 = vunpack.c.l.b16 %v2074_v61  ;;  %v2231_v10 = vunpack.c.h.b16 %v2074_v61  ;;  %v2060_v14 = vsel %vm4075_vm2, %v2055_v1, %v2059_v62  ;;  %v2104_v24 = vshrl.u32 %v3517_v5, 16 }
  0xf6   : > { %v2088_v15 = vsel %vm4075_vm2, %v2083_v2, %v2087_v3  ;;  %v2107_v26 = vshll.u32 %v3517_v5, 16  ;;  %v2228_v33 = vunpack.c.l.b16 %v2060_v14  ;;  %v2229_v35 = vunpack.c.h.b16 %v2060_v14 }
  0xf7   : > { %v2232_v34 = vunpack.c.l.b16 %v2088_v15  ;;  %v2233_v53 = vunpack.c.h.b16 %v2088_v15  ;;  %v2092_v37 = vrot.slane %v2090_v16, 4  ;;  %v2250_v49 = vpack.c.b16 %v2230_v8, %v2226_v6 }
  0xf8   : > { %v2251_v50 = vpack.c.b16 %v2231_v10, %v2227_v9  ;;  %v2127_v1 = vshll.u32 %v3522_v40, 16  ;;  %v2113_v2 = vshll.u32 %v3519_v43, 16  ;;  %v2141_v5 = vshll.u32 %v3523_v51, 16 }
  0xf9   : > { %v1364_v44 = vpop.f32.mrf.mxu2  ;;  %v1309_v29 = vpop.f32.mrf.mxu0 }
  0xfa   : > { %v1393_v45 = vpop.f32.mrf.mxu3  ;;  %v1365_v52 = vadd.f32 %v1364_v44, %v1336_v28  ;;  %v1338_v54 = vpop.f32.mrf.mxu1  ;;  %v1310_v58 = vadd.f32 %v1309_v29, %v4493_v0  ;;  %v3520_v0 = vld [vmem:[%s4039_s24 + $0x100] sm:$0xff]  ;;  %v2132_v28 = vshrl.u32 %v3521_v11, 16  ;;  %v2109_v44 = vrot.slane %v2107_v26, 5 }
  0xfb   : > { %v2118_v21 = vshrl.u32 %v3520_v0, 16  ;;  %v2121_v23 = vshll.u32 %v3520_v0, 16  ;;  %v2115_v14 = vrot.slane %v2113_v2, 5  ;;  %v2143_v16 = vrot.slane %v2141_v5, 5 }
  0xfc   : > { %v4584_v59 = vadd.f32 %v1393_v45, %v1365_v52  ;;  %v1339_v63 = vadd.f32 %v1338_v54, %v1310_v58  ;;  %2479 = vmatmul.bf16.gmra.mxu0 %v2246_v38  ;;  %v2095_v38 = vrot.slane %v2093_v17, 5  ;;  %v2134_v45 = vrot.slane %v2132_v28, 4 }
  0xfd   : > { %2508 = vmatmul.bf16.gmra.mxu1 %v2247_v48  ;;  %v2120_v41 = vrot.slane %v2118_v21, 4  ;;  %v2123_v42 = vrot.slane %v2121_v23, 5  ;;  %v2137_v48 = vrot.slane %v2135_v30, 5  ;;  %v2252_v54 = vpack.c.b16 %v2232_v34, %v2228_v33 }
  0xfe   : > { %2537 = vmatmul.bf16.gmra.mxu2 %v2248_v56  ;;  %v2253_v56 = vpack.c.b16 %v2233_v53, %v2229_v35  ;;  %v2099_v58 = vshll.u32 %v3518_v39, 16 }
  0xff   : > { %2566 = vmatmul.bf16.gmra.mxu3 %v2249_v57  ;;  %v2096_v57 = vor.u32 %v2095_v38, %v2092_v37  ;;  %v2138_v0 = vor.u32 %v2137_v48, %v2134_v45 }
 0x100   : > { %v2101_v10 = vrot.slane %v2099_v58, 5 }
 0x101   : > { %v1367_v12 = vpop.f32.mrf.mxu2  ;;  %v1311_v19 = vpop.f32.mrf.mxu0  ;;  %v2097_v9 = vrot.slane %v2096_v57, 4  ;;  %v2139_v15 = vrot.slane %v2138_v0, 4 }
 0x102   : > { %v1396_v13 = vpop.f32.mrf.mxu3  ;;  %v1368_v18 = vadd.f32 %v1367_v12, %v1339_v63  ;;  %v1340_v20 = vpop.f32.mrf.mxu1  ;;  %v1312_v25 = vadd.f32 %v1311_v19, %v4523_v27  ;;  %v2106_v27 = vrot.slane %v2104_v24, 4  ;;  %v2124_v63 = vor.u32 %v2123_v42, %v2120_v41 }
 0x103   : > { %v2129_v12 = vrot.slane %v2127_v1, 5  ;;  %v2144_v26 = vsel %vm4075_vm2, %v2139_v15, %v2143_v16 }
 0x104   : > { %v4599_v31 = vadd.f32 %v1396_v13, %v1368_v18  ;;  %v1341_v36 = vadd.f32 %v1340_v20, %v1312_v25  ;;  %v2110_v4 = vor.u32 %v2109_v44, %v2106_v27  ;;  %v2125_v11 = vrot.slane %v2124_v63, 4 }
 0x105   : > { %v2102_v18 = vsel %vm4075_vm2, %v2097_v9, %v2101_v10  ;;  %v2240_v37 = vunpack.c.l.b16 %v2144_v26  ;;  %v2241_v39 = vunpack.c.h.b16 %v2144_v26 }
 0x106   : > { %v2111_v13 = vrot.slane %v2110_v4, 4  ;;  %v2130_v23 = vsel %vm4075_vm2, %v2125_v11, %v2129_v12  ;;  %v2234_v30 = vunpack.c.l.b16 %v2102_v18  ;;  %v2235_v35 = vunpack.c.h.b16 %v2102_v18 }
 0x107   : > { %v2238_v34 = vunpack.c.l.b16 %v2130_v23 }
 0x108   : > { %v2116_v25 = vsel %vm4075_vm2, %v2111_v13, %v2115_v14 }
 0x109   : > { %v1369_v52 = vpop.f32.mrf.mxu2  ;;  %v1314_v61 = vpop.f32.mrf.mxu0  ;;  %v2236_v53 = vunpack.c.l.b16 %v2116_v25  ;;  %v2237_v38 = vunpack.c.h.b16 %v2116_v25 }
 0x10a   : > { %v1398_v29 = vpop.f32.mrf.mxu3  ;;  %v1370_v60 = vadd.f32 %v1369_v52, %v1341_v36  ;;  %v1343_v62 = vpop.f32.mrf.mxu1  ;;  %v1315_v3 = vadd.f32 %v1314_v61, %v4529_v55  ;;  %v2239_v36 = vunpack.c.h.b16 %v2130_v23 }
 0x10b   : > { %v2256_v46 = vpack.c.b16 %v2240_v37, %v2236_v53  ;;  %v2257_v45 = vpack.c.b16 %v2241_v39, %v2237_v38 }
 0x10c   : > { %v4606_v6 = vadd.f32 %v1398_v29, %v1370_v60  ;;  %v1344_v8 = vadd.f32 %v1343_v62, %v1315_v3  ;;  %2484 = vmatmul.bf16.gmra.mxu0 %v2250_v49  ;;  %v2255_v42 = vpack.c.b16 %v2239_v36, %v2235_v35 }
 0x10d   : > { %2513 = vmatmul.bf16.gmra.mxu1 %v2251_v50 }
 0x10e   : > { %2542 = vmatmul.bf16.gmra.mxu2 %v2252_v54 }
 0x10f   : > { %2571 = vmatmul.bf16.gmra.mxu3 %v2253_v56 }
 0x111   : > { %v1372_v17 = vpop.f32.mrf.mxu2  ;;  %v1316_v20 = vpop.f32.mrf.mxu0 }
 0x112   : > { %v1401_v55 = vpop.f32.mrf.mxu3  ;;  %v1373_v19 = vadd.f32 %v1372_v17, %v1344_v8  ;;  %v1345_v21 = vpop.f32.mrf.mxu1  ;;  %v1317_v24 = vadd.f32 %v1316_v20, %v4543_v32  ;;  %v2254_v32 = vpack.c.b16 %v2238_v34, %v2234_v30 }
 0x114   : > { %v4617_v28 = vadd.f32 %v1401_v55, %v1373_v19  ;;  %v1346_v33 = vadd.f32 %v1345_v21, %v1317_v24 }
 0x119   : > { %v1374_v40 = vpop.f32.mrf.mxu2  ;;  %v1319_v27 = vpop.f32.mrf.mxu0 }
 0x11a   : > { %v1403_v41 = vpop.f32.mrf.mxu3  ;;  %v1375_v43 = vadd.f32 %v1374_v40, %v1346_v33  ;;  %v1348_v44 = vpop.f32.mrf.mxu1  ;;  %v1320_v48 = vadd.f32 %v1319_v27, %v4557_v7 }
 0x11c   : > { %v4620_v49 = vadd.f32 %v1403_v41, %v1375_v43  ;;  %v1349_v50 = vadd.f32 %v1348_v44, %v1320_v48  ;;  %2489 = vmatmul.bf16.gmra.mxu0 %v2254_v32 }
 0x11d   : > { %2518 = vmatmul.bf16.gmra.mxu1 %v2255_v42 }
 0x11e   : > { %2547 = vmatmul.bf16.gmra.mxu2 %v2256_v46 }
 0x11f   : > { %2576 = vmatmul.bf16.gmra.mxu3 %v2257_v45 }
 0x121   : > { %v1377_v51 = vpop.f32.mrf.mxu2  ;;  %v1321_v54 = vpop.f32.mrf.mxu0 }
 0x122   : > { %v1406_v52 = vpop.f32.mrf.mxu3  ;;  %v1378_v29 = vadd.f32 %v1377_v51, %v1349_v50  ;;  %v1350_v56 = vpop.f32.mrf.mxu1  ;;  %v1322_v57 = vadd.f32 %v1321_v54, %v4564_v47 }
 0x124   : > { %v4623_v58 = vadd.f32 %v1406_v52, %v1378_v29  ;;  %v1351_v60 = vadd.f32 %v1350_v56, %v1322_v57 }
 0x129   : > { %v1379_v61 = vpop.f32.mrf.mxu2  ;;  %v1774_v63 = vpop.f32.mrf.mxu0 }
 0x12a   : > { %v1408_v62 = vpop.f32.mrf.mxu3  ;;  %v1380_v7 = vadd.f32 %v1379_v61, %v1351_v60  ;;  %v1803_v1 = vpop.f32.mrf.mxu1 }
 0x12b   : > { %v1804_v2 = vadd.f32 %v1803_v1, %v1774_v63 }
 0x12c   : > { %v4625_v3 = vadd.f32 %v1408_v62, %v1380_v7 }
 0x131   : > { %v1832_v4 = vpop.f32.mrf.mxu2  ;;  %v1776_v8 = vpop.f32.mrf.mxu0 }
 0x132   : > { %v1861_v0 = vpop.f32.mrf.mxu3  ;;  %v1833_v5 = vadd.f32 %v1832_v4, %v1804_v2  ;;  %v1805_v9 = vpop.f32.mrf.mxu1 }
 0x133   : > { %v1806_v10 = vadd.f32 %v1805_v9, %v1776_v8 }
 0x134   : > { %v1862_v11 = vadd.f32 %v1861_v0, %v1833_v5 }
 0x136   : > { %v4628_v47 = vadd.f32 %v1862_v11, %v4579_v22 }
 0x139   : > { %v1834_v12 = vpop.f32.mrf.mxu2  ;;  %v1779_v15 = vpop.f32.mrf.mxu0 }
 0x13a   : > { %v1863_v13 = vpop.f32.mrf.mxu3  ;;  %v1835_v14 = vadd.f32 %v1834_v12, %v1806_v10  ;;  %v1808_v16 = vpop.f32.mrf.mxu1 }
 0x13b   : > { %v1809_v17 = vadd.f32 %v1808_v16, %v1779_v15 }
 0x13c   : > { %v1864_v55 = vadd.f32 %v1863_v13, %v1835_v14 }
 0x13e   : > { %v1882_v18 = vadd.f32 %v1864_v55, %v4584_v59 }
 0x141   : > { %v1837_v19 = vpop.f32.mrf.mxu2  ;;  %v1781_v23 = vpop.f32.mrf.mxu0 }
 0x142   : > { %v1866_v20 = vpop.f32.mrf.mxu3  ;;  %v1838_v21 = vadd.f32 %v1837_v19, %v1809_v17  ;;  %v1810_v24 = vpop.f32.mrf.mxu1 }
 0x143   : > { %v1811_v25 = vadd.f32 %v1810_v24, %v1781_v23 }
 0x144   : > { %v1867_v26 = vadd.f32 %v1866_v20, %v1838_v21 }
 0x146   : > { %v1883_v30 = vadd.f32 %v1867_v26, %v4599_v31 }
 0x149   : > { %v1839_v22 = vpop.f32.mrf.mxu2  ;;  %v1784_v35 = vpop.f32.mrf.mxu0 }
 0x14a   : > { %v1868_v33 = vpop.f32.mrf.mxu3  ;;  %v1840_v34 = vadd.f32 %v1839_v22, %v1811_v25  ;;  %v1813_v36 = vpop.f32.mrf.mxu1 }
 0x14b   : > { %v1814_v53 = vadd.f32 %v1813_v36, %v1784_v35 }
 0x14c   : > { %v1869_v37 = vadd.f32 %v1868_v33, %v1840_v34 }
 0x14e   : > { %v1884_v38 = vadd.f32 %v1869_v37, %v4606_v6 }
 0x151   : > { %v1842_v39 = vpop.f32.mrf.mxu2  ;;  %v1786_v41 = vpop.f32.mrf.mxu0 }
 0x152   : > { %v1871_v59 = vpop.f32.mrf.mxu3  ;;  %v1843_v40 = vadd.f32 %v1842_v39, %v1814_v53  ;;  %v1815_v32 = vpop.f32.mrf.mxu1 }
 0x153   : > { %v1816_v42 = vadd.f32 %v1815_v32, %v1786_v41 }
 0x154   : > { %v1872_v43 = vadd.f32 %v1871_v59, %v1843_v40 }
 0x156   : > { %v1885_v27 = vadd.f32 %v1872_v43, %v4617_v28 }
 0x159   : > { %v1844_v44 = vpop.f32.mrf.mxu2  ;;  %v1789_v45 = vpop.f32.mrf.mxu0 }
 0x15a   : > { %v1873_v31 = vpop.f32.mrf.mxu3  ;;  %v1845_v46 = vadd.f32 %v1844_v44, %v1816_v42  ;;  %v1818_v48 = vpop.f32.mrf.mxu1 }
 0x15b   : > { %v1819_v50 = vadd.f32 %v1818_v48, %v1789_v45 }
 0x15c   : > { %v1874_v51 = vadd.f32 %v1873_v31, %v1845_v46 }
 0x15e   : > { %v4635_v52 = vadd.f32 %v1874_v51, %v4620_v49 }
 0x161   : > { %v1847_v6 = vpop.f32.mrf.mxu2  ;;  %v4637_v56 = vpop.f32.mrf.mxu0 }
 0x162   : > { %v1876_v29 = vpop.f32.mrf.mxu3  ;;  %v1848_v54 = vadd.f32 %v1847_v6, %v1819_v50  ;;  %v4639_v57 = vpop.f32.mrf.mxu1 }
 0x164   : > { %v1877_v60 = vadd.f32 %v1876_v29, %v1848_v54 }
 0x166   : > { %v4642_v28 = vadd.f32 %v1877_v60, %v4623_v58 }
 0x169   : > { %v1849_v61 = vpop.f32.mrf.mxu2  ;;  %v2475_v7 = vpop.f32.mrf.mxu0 }
 0x16a   : > { %v4644_v62 = vpop.f32.mrf.mxu3  ;;  %v2504_v63 = vpop.f32.mrf.mxu1 }
 0x16b   : > { %v2505_v49 = vadd.f32 %v2504_v63, %v2475_v7 }
 0x171   : > { %v2533_v1 = vpop.f32.mrf.mxu2  ;;  %v2477_v4 = vpop.f32.mrf.mxu0 }
 0x172   : > { %v2562_v2 = vpop.f32.mrf.mxu3  ;;  %v2506_v0 = vpop.f32.mrf.mxu1  ;;  %v2534_v5 = vadd.f32 %v2533_v1, %v2505_v49  ;;  %v1821_v1 = vadd.f32 %v4639_v57, %v4637_v56 }
 0x173   : > { %v2507_v8 = vadd.f32 %v2506_v0, %v2477_v4 }
 0x174   : > { %v2563_v11 = vadd.f32 %v2562_v2, %v2534_v5  ;;  %v1850_v49 = vadd.f32 %v1849_v61, %v1821_v1 }
 0x176   : > { %v4647_v15 = vadd.f32 %v2563_v11, %v4628_v47 }
 0x179   : > { %v2535_v9 = vpop.f32.mrf.mxu2  ;;  %v2480_v13 = vpop.f32.mrf.mxu0 }
 0x17a   : > { %v2564_v10 = vpop.f32.mrf.mxu3  ;;  %v2536_v12 = vadd.f32 %v2535_v9, %v2507_v8  ;;  %v2509_v14 = vpop.f32.mrf.mxu1  ;;  %v1879_v8 = vadd.f32 %v4644_v62, %v1850_v49 }
 0x17b   : > { %v2510_v17 = vadd.f32 %v2509_v14, %v2480_v13 }
 0x17c   : > { %v2565_v58 = vadd.f32 %v2564_v10, %v2536_v12  ;;  %v1888_v13 = vadd.f32 %v1879_v8, %v4625_v3 }
 0x17e   : > { %v4649_v16 = vadd.f32 %v2565_v58, %v1882_v18 }
 0x180   : > { %v2590_v55 = vadd.f32 %v4649_v16, %v4647_v15 }
 0x181   : > { %v2538_v19 = vpop.f32.mrf.mxu2  ;;  %v2482_v23 = vpop.f32.mrf.mxu0 }
 0x182   : > { %v2567_v20 = vpop.f32.mrf.mxu3  ;;  %v2539_v21 = vadd.f32 %v2538_v19, %v2510_v17  ;;  %v2511_v24 = vpop.f32.mrf.mxu1 }
 0x183   : > { %v2512_v33 = vadd.f32 %v2511_v24, %v2482_v23 }
 0x184   : > { %v2568_v25 = vadd.f32 %v2567_v20, %v2539_v21 }
 0x186   : > { %v2584_v26 = vadd.f32 %v2568_v25, %v1883_v30 }
 0x188   : > { %v2591_v22 = vadd.f32 %v2590_v55, %v2584_v26 }
 0x189   : > { %v2540_v34 = vpop.f32.mrf.mxu2  ;;  %v2485_v47 = vpop.f32.mrf.mxu0 }
 0x18a   : > { %v2569_v35 = vpop.f32.mrf.mxu3  ;;  %v2541_v36 = vadd.f32 %v2540_v34, %v2512_v33  ;;  %v2514_v53 = vpop.f32.mrf.mxu1 }
 0x18b   : > { %v2515_v39 = vadd.f32 %v2514_v53, %v2485_v47 }
 0x18c   : > { %v2570_v18 = vadd.f32 %v2569_v35, %v2541_v36 }
 0x18e   : > { %v2585_v37 = vadd.f32 %v2570_v18, %v1884_v38 }
 0x190   : > { %v2592_v59 = vadd.f32 %v2591_v22, %v2585_v37 }
 0x191   : > { %v2543_v40 = vpop.f32.mrf.mxu2  ;;  %v2487_v42 = vpop.f32.mrf.mxu0 }
 0x192   : > { %v2572_v41 = vpop.f32.mrf.mxu3  ;;  %v2544_v32 = vadd.f32 %v2543_v40, %v2515_v39  ;;  %v2516_v43 = vpop.f32.mrf.mxu1 }
 0x193   : > { %v2517_v30 = vadd.f32 %v2516_v43, %v2487_v42 }
 0x194   : > { %v2573_v44 = vadd.f32 %v2572_v41, %v2544_v32 }
 0x196   : > { %v2586_v31 = vadd.f32 %v2573_v44, %v1885_v27 }
 0x198   : > { %v2593_v46 = vadd.f32 %v2592_v59, %v2586_v31 }
 0x199   : > { %v2545_v45 = vpop.f32.mrf.mxu2  ;;  %v2490_v51 = vpop.f32.mrf.mxu0 }
 0x19a   : > { %v2574_v48 = vpop.f32.mrf.mxu3  ;;  %v2546_v50 = vadd.f32 %v2545_v45, %v2517_v30  ;;  %v2519_v6 = vpop.f32.mrf.mxu1 }
 0x19b   : > { %v2520_v38 = vadd.f32 %v2519_v6, %v2490_v51 }
 0x19c   : > { %v2575_v29 = vadd.f32 %v2574_v48, %v2546_v50 }
 0x19e   : > { %v2587_v54 = vadd.f32 %v2575_v29, %v4635_v52 }
 0x1a0   : > { %v2594_v60 = vadd.f32 %v2593_v46, %v2587_v54 }
 0x1a1   : > { %v2548_v7 = vpop.f32.mrf.mxu2  ;;  %v2492_v4 = vpop.f32.mrf.mxu0 }
 0x1a2   : > { %v2577_v63 = vpop.f32.mrf.mxu3  ;;  %v2549_v2 = vadd.f32 %v2548_v7, %v2520_v38  ;;  %v2521_v0 = vpop.f32.mrf.mxu1 }
 0x1a3   : > { %v2522_v10 = vadd.f32 %v2521_v0, %v2492_v4 }
 0x1a4   : > { %v2578_v27 = vadd.f32 %v2577_v63, %v2549_v2  ;;  %v3927_v2 = vld [vmem:[%s4691_s3] ss:$0 sm:$0xff] }
 0x1a6   : > { %v2588_v5 = vadd.f32 %v2578_v27, %v4642_v28 }
 0x1a8   : > { %v2595_v9 = vadd.f32 %v2594_v60, %v2588_v5  ;;  %v2645_v60 = vld [vmem:[%s4690_s2] sm:$0x1] }
 0x1a9   : > { %v2550_v11 = vpop.f32.mrf.mxu2 }
 0x1aa   : > { %v2551_v52 = vadd.f32 %v2550_v11, %v2522_v10  ;;  %v2579_v12 = vpop.f32.mrf.mxu3 }
 0x1ac   : > { %v2580_v14 = vadd.f32 %v2579_v12, %v2551_v52 }
 0x1ae   : > { %v2589_v58 = vadd.f32 %v2580_v14, %v1888_v13 }
 0x1b0   : > { %v2596_v17 = vadd.f32 %v2595_v9, %v2589_v58 }
 0x1b2   : > { %v2597_v56 = vrot.slane %v2596_v17, 4 }
 0x1b4   : > { %v2598_v57 = vadd.f32 %v2597_v56, %v2596_v17 }
 0x1b6   : > { %v2599_v61 = vrot.slane %v2598_v57, 2 }
 0x1b8   : > { %v2600_v55 = vadd.f32 %v2599_v61, %v2598_v57 }
 0x1ba   : > { %v2601_v19 = vrot.slane %v2600_v55, 1 }
 0x1bc   : > { %v2602_v20 = vadd.f32 %v2601_v19, %v2600_v55 }
 0x1be   : > { %v2603_v21 = vmul.f32 0.015625, %v2602_v20 }
 0x1c0   : > { %v2604_v28 = vsub.f32 %v4647_v15, %v2603_v21  ;;  %v2605_v62 = vsub.f32 %v4649_v16, %v2603_v21  ;;  %v2606_v23 = vsub.f32 %v2584_v26, %v2603_v21  ;;  %v2607_v24 = vsub.f32 %v2585_v37, %v2603_v21 }
 0x1c1   : > { %v2608_v25 = vsub.f32 %v2586_v31, %v2603_v21  ;;  %v2609_v22 = vsub.f32 %v2587_v54, %v2603_v21  ;;  %v2610_v33 = vsub.f32 %v2588_v5, %v2603_v21  ;;  %v2611_v3 = vsub.f32 %v2589_v58, %v2603_v21 }
 0x1c2   : > { %v2612_v34 = vmul.f32 %v2604_v28, %v2604_v28  ;;  %v2613_v35 = vmul.f32 %v2605_v62, %v2605_v62  ;;  %v2614_v36 = vmul.f32 %v2606_v23, %v2606_v23  ;;  %v2615_v53 = vmul.f32 %v2607_v24, %v2607_v24 }
 0x1c3   : > { %v2616_v39 = vmul.f32 %v2608_v25, %v2608_v25  ;;  %v2617_v40 = vmul.f32 %v2609_v22, %v2609_v22  ;;  %v2618_v32 = vmul.f32 %v2610_v33, %v2610_v33  ;;  %v2619_v42 = vmul.f32 %v2611_v3, %v2611_v3 }
 0x1c4   : > { %v2620_v47 = vadd.f32 %v2613_v35, %v2612_v34 }
 0x1c6   : > { %v2621_v18 = vadd.f32 %v2620_v47, %v2614_v36 }
 0x1c8   : > { %v2622_v59 = vadd.f32 %v2621_v18, %v2615_v53 }
 0x1ca   : > { %v2623_v41 = vadd.f32 %v2622_v59, %v2616_v39 }
 0x1cc   : > { %v2624_v15 = vadd.f32 %v2623_v41, %v2617_v40 }
 0x1ce   : > { %v2625_v16 = vadd.f32 %v2624_v15, %v2618_v32 }
 0x1d0   : > { %v2626_v26 = vadd.f32 %v2625_v16, %v2619_v42 }
 0x1d2   : > { %v2627_v37 = vrot.slane %v2626_v26, 4 }
 0x1d4   : > { %v2628_v43 = vadd.f32 %v2627_v37, %v2626_v26 }
 0x1d6   : > { %v2629_v44 = vrot.slane %v2628_v43, 2 }
 0x1d8   : > { %v2630_v31 = vadd.f32 %v2629_v44, %v2628_v43 }
 0x1da   : > { %v2631_v46 = vrot.slane %v2630_v31, 1 }
 0x1dc   : > { %v2632_v30 = vadd.f32 %v2631_v46, %v2630_v31 }
 0x1de   : > { %v2633_v45 = vmul.f32 0.015625, %v2632_v30 }
 0x1e0   : > { %v2634_v48 = vadd.f32 1e-05, %v2633_v45 }
 0x1e2   : > { %3928 = vrsqrt.f32 %v2634_v48  ;;  %vm2641_vm4 = vweird.f32 %v2634_v48 }
 0x1e8   : > { %v3929_v50 = vpop.eup %3928 }
 0x1e9   : > { %v2636_v51 = vmul.f32 %v3929_v50, %v2634_v48  ;;  %vm2642_vm3 = vweird.f32 %v3929_v50 }
 0x1ea   : > { %vm2643_vm5 = vmor %vm2641_vm4, %vm2642_vm3 }
 0x1eb   : > { %v2637_v6 = vmul.f32 %v3929_v50, %v2636_v51 }
 0x1ed   : > { %v2638_v29 = vmul.f32 0.5, %v2637_v6 }
 0x1ef   : > { %v2639_v54 = vsub.f32 1.5, %v2638_v29 }
 0x1f1   : > { %v2640_v38 = vmul.f32 %v3929_v50, %v2639_v54 }
 0x1f3   : > { %v2644_v7 = vsel %vm2643_vm5, %v3929_v50, %v2640_v38 }
 0x1f4   : > { %v2646_v63 = vmul.f32 %v2645_v60, %v2644_v7 }
 0x1f6   : > { %v2647_v1 = vperm.slane %v2646_v63, 0 }
 0x1f8   : > { %v2648_v49 = vmul.f32 %v2647_v1, %v2604_v28  ;;  %v2649_v27 = vmul.f32 %v2647_v1, %v2605_v62  ;;  %v2650_v4 = vmul.f32 %v2647_v1, %v2606_v23  ;;  %v2651_v0 = vmul.f32 %v2647_v1, %v2607_v24 }
 0x1f9   : > { %v2652_v5 = vmul.f32 %v2647_v1, %v2608_v25  ;;  %v2653_v8 = vmul.f32 %v2647_v1, %v2609_v22  ;;  %v2654_v9 = vmul.f32 %v2647_v1, %v2610_v33  ;;  %v2655_v10 = vmul.f32 %v2647_v1, %v2611_v3 }
 0x1fa   : > { %v2660_v11 = vadd.f32 %v3927_v2, %v2648_v49  ;;  %v2661_v52 = vadd.f32 %v3927_v2, %v2649_v27  ;;  %v2662_v12 = vadd.f32 %v3927_v2, %v2650_v4  ;;  %v2663_v13 = vadd.f32 %v3927_v2, %v2651_v0 }
 0x1fb   : > { %v2664_v14 = vadd.f32 %v3927_v2, %v2652_v5  ;;  %v2665_v58 = vadd.f32 %v3927_v2, %v2653_v8  ;;  %v2666_v17 = vadd.f32 %v3927_v2, %v2654_v9  ;;  %v2667_v56 = vadd.f32 %v3927_v2, %v2655_v10 }
 0x1fc   : > { %vm2668_vm6 = vcmp.ge.f32.partialorder %v2660_v11, 0.0  ;;  %vm2669_vm7 = vcmp.ge.f32.partialorder %v2661_v52, 0.0  ;;  %vm2670_vm8 = vcmp.ge.f32.partialorder %v2662_v12, 0.0  ;;  %vm2671_vm9 = vcmp.ge.f32.partialorder %v2663_v13, 0.0 }
 0x1fd   : > { %vm2672_vm10 = vcmp.ge.f32.partialorder %v2664_v14, 0.0  ;;  %vm2673_vm11 = vcmp.ge.f32.partialorder %v2665_v58, 0.0  ;;  %vm2674_vm12 = vcmp.ge.f32.partialorder %v2666_v17, 0.0  ;;  %vm2675_vm13 = vcmp.ge.f32.partialorder %v2667_v56, 0.0 }
 0x1fe   : > { %v2676_v57 = vmul.f32 0.2, %v2660_v11  ;;  %v2677_v61 = vmul.f32 0.2, %v2661_v52  ;;  %v2678_v55 = vmul.f32 0.2, %v2662_v12 }
 0x1ff   : > { %v2679_v19 = vmul.f32 0.2, %v2663_v13  ;;  %v2680_v20 = vmul.f32 0.2, %v2664_v14  ;;  %v2681_v21 = vmul.f32 0.2, %v2665_v58 }
 0x200   : > { %v2682_v28 = vmul.f32 0.2, %v2666_v17  ;;  %v2683_v62 = vmul.f32 0.2, %v2667_v56  ;;  %v2684_v23 = vsel %vm2668_vm6, %v2660_v11, %v2676_v57  ;;  %v2685_v24 = vsel %vm2669_vm7, %v2661_v52, %v2677_v61 }
 0x201   : > { %v2686_v25 = vsel %vm2670_vm8, %v2662_v12, %v2678_v55  ;;  %v2687_v22 = vsel %vm2671_vm9, %v2663_v13, %v2679_v19  ;;  %v2688_v33 = vsel %vm2672_vm10, %v2664_v14, %v2680_v20  ;;  %v2689_v3 = vsel %vm2673_vm11, %v2665_v58, %v2681_v21 }
 0x202   : > { %v2690_v34 = vsel %vm2674_vm12, %v2666_v17, %v2682_v28  ;;  %v2691_v35 = vsel %vm2675_vm13, %v2667_v56, %v2683_v62  ;;  %v3882_v36 = vpack.c.bf16 %v2685_v24, %v2684_v23  ;;  %v3887_v47 = vpack.c.bf16 %v2687_v22, %v2686_v25 }
 0x203   : > { %v3892_v53 = vpack.c.bf16 %v2689_v3, %v2688_v33  ;;  %v3897_v18 = vpack.c.bf16 %v2691_v35, %v2690_v34 }
 0x204   : > { %3883 = vst [vmem:[%s262_s15] sm:$0xff] %v3882_v36  }
 0x205   : > { %3899 = vst [vmem:[%s262_s15 + $0x8] sm:$0xff] %v3887_v47  }
 0x206   : > { %3900 = vst [vmem:[%s262_s15 + $0x10] sm:$0xff] %v3892_v53  }
 0x207   : > { %3901 = vst [vmem:[%s262_s15 + $0x18] sm:$0xff] %v3897_v18  }
 0x208 PF: > { %s14_s17 = sadd.s32 1, %s3952_s17   ;;  %s4695_s15 = smov %s3948_s16 }
 0x209   : > { %p11_p5 = scmp.ge.s32.totalorder %s14_s17, 4   ;;  %s4696_s16 = smov %s4698_s18 }
 0x20b   :  { %13 = sbr.rel (!%p11_p5) target bundleno = 2 (0x2), region = 79 }

// kernel: critic_forward.6
= control target key start
LH: loop header
LB: loop body
LE: loop exit
PB: predicated region body
PF: predicated region fallthrough
CT: control target
= control target key end

     0   :  { %s3086_s15 = smov 0   ;;  %s3088_s16 = smov 0   ;;  %s3659_s0 = inlined_call_operand.vmem [shape: bf16[2,5,5,512], index: 0, kind: input, shape index: {}]   ;;  %s3660_s1 = inlined_call_operand.vmem [shape: bf16[4,512,128], index: 1, kind: input, shape index: {}]   ;;  %s3661_s2 = inlined_call_operand.vmem [shape: f32[1,128], index: 2, kind: input, shape index: {}]   ;;  %s3662_s3 = inlined_call_operand.vmem [shape: f32[1,128], index: 3, kind: input, shape index: {}]   ;;  %s3663_s4 = inlined_call_operand.vmem [shape: bf16[2,4,4,128], index: 4, kind: output, shape index: {}]  }
   0x1   :  { %s3090_s17 = smov 0  }
   0x2 LB: > { %s26_s18 = sadd.s32 1, %s3055_s16  ;;  %p2154_p0 = scmp.ge.s32.totalorder %s3059_s17, 1  ;;  %s3059_s17 = sphi %s3090_s17, %s14_s17   ;;  %s3055_s16 = sphi %s3088_s16, %s3671_s16   ;;  %s3051_s15 = sphi %s3086_s15, %s3670_s15  }
   0x3   : > { %p28_p1 = scmp.ge.s32.totalorder %s26_s18, 2  ;;  %p201_p2 = scmp.lt.s32.totalorder %s3059_s17, 3 }
   0x5   : > { %s3673_s18 = smov (%p28_p1, %s26_s18), 0  ;;  %p202_p3 = pnand %p2154_p0, %p201_p2 }
   0x6   : > { %p240_p4 = scmp.lt.s32.totalorder (!%p202_p3), %s3051_s15, 1 }
   0x7   : > { %205 = sbr.rel (%p202_p3) target bundleno = 361 (0x169), region = 36 }
   0xc   : > { %v2920_v0 = vld [vmem:[%s3660_s1 + $0x138] sm:$0xff]  ;;  %v2919_v4 = vld [vmem:[%s3660_s1 + $0x130] sm:$0xff]  ;;  %s3675_s15 = smov (!%p240_p4, %s3051_s15), 1  ;;  %v2918_v8 = vld [vmem:[%s3660_s1 + $0x128] sm:$0xff]  ;;  %vm291_vm0 = vcmask 1041408   ;;  %vm295_vm1 = vcmask 1045508  }
   0xd   : > { %v2928_v1 = vld [vmem:[%s3660_s1 + $0x178] sm:$0xff]  ;;  %800 = vmatpush.bf16.msra.mxu0 %v2920_v0  ;;  %v2927_v5 = vld [vmem:[%s3660_s1 + $0x170] sm:$0xff]  ;;  %v2926_v9 = vld [vmem:[%s3660_s1 + $0x168] sm:$0xff]  ;;  %s3009_s21 = smul.u32 80, %s3675_s15  ;;  %vm299_vm2 = vcmask 1043456   ;;  %vm421_vm3 = vcmask 1043458  }
   0xe   : > { %v2936_v2 = vld [vmem:[%s3660_s1 + $0x1b8] sm:$0xff]  ;;  %814 = vmatpush.bf16.msra.mxu1 %v2928_v1  ;;  %v2935_v6 = vld [vmem:[%s3660_s1 + $0x1b0] sm:$0xff]  ;;  %v2934_v10 = vld [vmem:[%s3660_s1 + $0x1a8] sm:$0xff]  ;;  %vm423_vm4 = vcmask 1045504   ;;  %vm425_vm5 = vcmask 1045506   ;;  %s2880_s24 = sshll.u32 %s3675_s15, 3 }
   0xf   : > { %v2944_v3 = vld [vmem:[%s3660_s1 + $0x1f8] sm:$0xff]  ;;  %828 = vmatpush.bf16.msra.mxu2 %v2936_v2  ;;  %v2943_v7 = vld [vmem:[%s3660_s1 + $0x1f0] sm:$0xff]  ;;  %v2942_v11 = vld [vmem:[%s3660_s1 + $0x1e8] sm:$0xff]  ;;  %s3158_s6 = scalar_lea.vmem %s3659_s0, %s3009_s21  ;;  %vm465_vm6 = vsmask.f32 1280  ;;  %s262_s27 = scalar_lea.vmem %s3663_s4, %s2880_s24 }
  0x10   : > { %842 = vmatpush.bf16.msra.mxu3 %v2944_v3  ;;  %v2917_v12 = vld [vmem:[%s3660_s1 + $0x120] sm:$0xff]  ;;  %v2916_v16 = vld [vmem:[%s3660_s1 + $0x118] sm:$0xff]  ;;  %v2915_v20 = vld [vmem:[%s3660_s1 + $0x110] sm:$0xff]  ;;  %vm466_vm7 = vsmask.f32 3336 }
  0x11   : > { %801 = vmatpush.bf16.msra.mxu0 %v2919_v4  ;;  %v2925_v13 = vld [vmem:[%s3660_s1 + $0x160] sm:$0xff]  ;;  %v2924_v17 = vld [vmem:[%s3660_s1 + $0x158] sm:$0xff]  ;;  %v2923_v21 = vld [vmem:[%s3660_s1 + $0x150] sm:$0xff]  ;;  %vm468_vm8 = vsmask.f32 5392 }
  0x12   : > { %815 = vmatpush.bf16.msra.mxu1 %v2927_v5  ;;  %v2933_v14 = vld [vmem:[%s3660_s1 + $0x1a0] sm:$0xff]  ;;  %v2932_v18 = vld [vmem:[%s3660_s1 + $0x198] sm:$0xff]  ;;  %v387_v23 = vld [vmem:[%s3158_s6 + $0x8] sm:$0x77]  ;;  %vm470_vm9 = vsmask.f32 7448 }
  0x13   : > { %829 = vmatpush.bf16.msra.mxu2 %v2935_v6  ;;  %v2941_v15 = vld [vmem:[%s3660_s1 + $0x1e0] sm:$0xff]  ;;  %v2940_v19 = vld [vmem:[%s3660_s1 + $0x1d8] sm:$0xff]  ;;  %v388_v24 = vld [vmem:[%s3158_s6 + $0x10] sm:$0x77]  ;;  %v403_v31 = vrot.slane %v387_v23, 4  ;;  %v404_v34 = vrot.slane %v387_v23, 6 }
  0x14   : > { %843 = vmatpush.bf16.msra.mxu3 %v2943_v7  ;;  %v386_v22 = vld [vmem:[%s3158_s6] sm:$0x77]  ;;  %v389_v25 = vld [vmem:[%s3158_s6 + $0x18] sm:$0x77]  ;;  %v391_v27 = vld [vmem:[%s3158_s6 + $0x28] sm:$0x77] }
  0x15   : > { %802 = vmatpush.bf16.msra.mxu0 %v2918_v8  ;;  %v390_v26 = vld [vmem:[%s3158_s6 + $0x20] sm:$0x77]  ;;  %v392_v28 = vld [vmem:[%s3158_s6 + $0x30] sm:$0x77]  ;;  %v3186_v29 = vld [vmem:[%s3158_s6 + $0x38] sm:$0x77]  ;;  %v419_v44 = vsel %vm295_vm1, %v403_v31, %v404_v34  ;;  %v424_v50 = vsel %vm423_vm4, %v404_v34, %v403_v31 }
  0x16   : > { %816 = vmatpush.bf16.msra.mxu1 %v2926_v9  ;;  %v402_v30 = vrot.slane %v386_v22, 2  ;;  %v2931_v32 = vld [vmem:[%s3660_s1 + $0x190] sm:$0xff]  ;;  %v405_v35 = vrot.slane %v388_v24, 2  ;;  %v406_v36 = vrot.slane %v389_v25, 4  ;;  %v407_v37 = vrot.slane %v389_v25, 6  ;;  %v2914_v45 = vld [vmem:[%s3660_s1 + $0x108] sm:$0xff]  ;;  %vm3243_vm10 = vmor %vm465_vm6, %vm466_vm7 }
  0x17   : > { %830 = vmatpush.bf16.msra.mxu2 %v2934_v10  ;;  %v2939_v33 = vld [vmem:[%s3660_s1 + $0x1d0] sm:$0xff]  ;;  %v408_v38 = vrot.slane %v390_v26, 2  ;;  %v409_v39 = vrot.slane %v391_v27, 4  ;;  %v410_v40 = vrot.slane %v391_v27, 6  ;;  %v411_v41 = vrot.slane %v392_v28, 2  ;;  %v2922_v46 = vld [vmem:[%s3660_s1 + $0x148] sm:$0xff]  ;;  %vm3265_vm11 = vmor %vm3243_vm10, %vm468_vm8 }
  0x18   : > { %844 = vmatpush.bf16.msra.mxu3 %v2942_v11  ;;  %v412_v42 = vrot.slane %v3186_v29, 4  ;;  %v416_v43 = vsel %vm291_vm0, %v386_v22, %v402_v30  ;;  %v413_v47 = vrot.slane %v3186_v29, 6  ;;  %v422_v49 = vsel %vm421_vm3, %v386_v22, %v402_v30  ;;  %v2930_v51 = vld [vmem:[%s3660_s1 + $0x188] sm:$0xff]  ;;  %v2913_v1 = vld [vmem:[%s3660_s1 + $0x100] sm:$0xff]  ;;  %vm3284_vm12 = vmor %vm3265_vm11, %vm470_vm9 }
  0x19   : > { %803 = vmatpush.bf16.msra.mxu0 %v2917_v12  ;;  %v420_v48 = vsel %vm299_vm2, %v416_v43, %v419_v44  ;;  %v2938_v52 = vld [vmem:[%s3660_s1 + $0x1c8] sm:$0xff]  ;;  %v426_v53 = vsel %vm425_vm5, %v422_v49, %v424_v50  ;;  %v431_v54 = vsel %vm291_vm0, %v388_v24, %v405_v35  ;;  %v434_v55 = vsel %vm295_vm1, %v406_v36, %v407_v37  ;;  %v2921_v2 = vld [vmem:[%s3660_s1 + $0x140] sm:$0xff] }
  0x1a   : > { %817 = vmatpush.bf16.msra.mxu1 %v2925_v13  ;;  %v472_v56 = vshrl.u32 %v420_v48, 16  ;;  %v428_v57 = vrot.slane %v426_v53, 2  ;;  %v435_v58 = vsel %vm299_vm2, %v431_v54, %v434_v55  ;;  %v436_v59 = vsel %vm421_vm3, %v388_v24, %v405_v35  ;;  %v2929_v3 = vld [vmem:[%s3660_s1 + $0x180] sm:$0xff]  ;;  %v2887_v35 = vld [vmem:[%s3660_s1 + $0x30] sm:$0xff] }
  0x1b   : > { %831 = vmatpush.bf16.msra.mxu2 %v2933_v14  ;;  %v437_v60 = vsel %vm423_vm4, %v407_v37, %v406_v36  ;;  %v443_v62 = vsel %vm291_vm0, %v390_v26, %v408_v38  ;;  %v446_v63 = vsel %vm295_vm1, %v409_v39, %v410_v40  ;;  %v448_v0 = vsel %vm421_vm3, %v390_v26, %v408_v38  ;;  %v2937_v8 = vld [vmem:[%s3660_s1 + $0x1c0] sm:$0xff]  ;;  %v2888_v14 = vld [vmem:[%s3660_s1 + $0x38] sm:$0xff]  ;;  %v2895_v36 = vld [vmem:[%s3660_s1 + $0x70] sm:$0xff] }
  0x1c   : > { %845 = vmatpush.bf16.msra.mxu3 %v2941_v15  ;;  %v438_v61 = vsel %vm425_vm5, %v436_v59, %v437_v60  ;;  %v447_v5 = vsel %vm299_vm2, %v443_v62, %v446_v63  ;;  %v449_v6 = vsel %vm423_vm4, %v410_v40, %v409_v39  ;;  %v455_v7 = vsel %vm291_vm0, %v392_v28, %v411_v41  ;;  %v2896_v15 = vld [vmem:[%s3660_s1 + $0x78] sm:$0xff]  ;;  %v2909_v12 = vld [vmem:[%s3660_s1 + $0xe0] sm:$0xff] }
  0x1d   : > { %804 = vmatpush.bf16.msra.mxu0 %v2916_v16  ;;  %v440_v4 = vrot.slane %v438_v61, 2  ;;  %v450_v9 = vsel %vm425_vm5, %v448_v0, %v449_v6  ;;  %v458_v10 = vsel %vm295_vm1, %v412_v42, %v413_v47  ;;  %v460_v11 = vsel %vm421_vm3, %v392_v28, %v411_v41  ;;  %v2903_v41 = vld [vmem:[%s3660_s1 + $0xb0] sm:$0xff]  ;;  %v263_v0 = vld [vmem:[%s3158_s6] sm:$0x33] }
  0x1e   : > { %818 = vmatpush.bf16.msra.mxu1 %v2924_v17  ;;  %v474_v13 = vrot.slane %v472_v56, 6  ;;  %v452_v16 = vrot.slane %v450_v9, 2  ;;  %v459_v17 = vsel %vm299_vm2, %v455_v7, %v458_v10  ;;  %v481_v23 = vshll.u32 %v428_v57, 16  ;;  %v2894_v56 = vld [vmem:[%s3660_s1 + $0x68] sm:$0xff]  ;;  %v267_v9 = vld [vmem:[%s3158_s6 + $0x20] sm:$0x33] }
  0x1f   : > { %832 = vmatpush.bf16.msra.mxu2 %v2932_v18  ;;  %v461_v18 = vsel %vm423_vm4, %v413_v47, %v412_v42  ;;  %v485_v24 = vshrl.u32 %v435_v58, 16  ;;  %v488_v25 = vshll.u32 %v435_v58, 16  ;;  %v494_v29 = vshll.u32 %v440_v4, 16  ;;  %v2911_v42 = vld [vmem:[%s3660_s1 + $0xf0] sm:$0xff]  ;;  %v2902_v57 = vld [vmem:[%s3660_s1 + $0xa8] sm:$0xff]  ;;  %v2989_v43 = vld [vmem:[%s3660_s1 + $0x360] sm:$0xff] }
  0x20   : > { %846 = vmatpush.bf16.msra.mxu3 %v2940_v19  ;;  %v475_v19 = vshll.u32 %v420_v48, 16  ;;  %v462_v22 = vsel %vm425_vm5, %v460_v11, %v461_v18  ;;  %v498_v30 = vshrl.u32 %v447_v5, 16  ;;  %v483_v31 = vrot.slane %v481_v23, 7  ;;  %v2910_v58 = vld [vmem:[%s3660_s1 + $0xe8] sm:$0xff]  ;;  %v265_v4 = vld [vmem:[%s3158_s6 + $0x10] sm:$0x33] }
  0x21   : > { %805 = vmatpush.bf16.msra.mxu0 %v2915_v20  ;;  %v2904_v20 = vld [vmem:[%s3660_s1 + $0xb8] sm:$0xff]  ;;  %v464_v26 = vrot.slane %v462_v22, 2  ;;  %v501_v34 = vshll.u32 %v447_v5, 16  ;;  %v496_v38 = vrot.slane %v494_v29, 7  ;;  %v507_v40 = vshll.u32 %v452_v16, 16  ;;  %v2901_v5 = vld [vmem:[%s3660_s1 + $0xa0] sm:$0xff] }
  0x22   : > { %819 = vmatpush.bf16.msra.mxu1 %v2923_v21  ;;  %v2912_v21 = vld [vmem:[%s3660_s1 + $0xf8] sm:$0xff]  ;;  %v477_v28 = vrot.slane %v475_v19, 7  ;;  %v500_v39 = vrot.slane %v498_v30, 6  ;;  %v514_v47 = vshll.u32 %v459_v17, 16  ;;  %v268_v10 = vld [vmem:[%s3158_s6 + $0x28] sm:$0x33] }
  0x23   : > { %833 = vmatpush.bf16.msra.mxu2 %v2931_v32  ;;  %v487_v32 = vrot.slane %v485_v24, 6  ;;  %v509_v49 = vrot.slane %v507_v40, 7  ;;  %v520_v50 = vshll.u32 %v464_v26, 16  ;;  %v269_v11 = vld [vmem:[%s3158_s6 + $0x30] sm:$0x33]  ;;  %v282_v18 = vrot.slane %v265_v4, 2 }
  0x24   : > { %847 = vmatpush.bf16.msra.mxu3 %v2939_v33  ;;  %v490_v33 = vrot.slane %v488_v25, 7  ;;  %v478_v37 = vor.u32 %v477_v28, %v474_v13  ;;  %v516_v55 = vrot.slane %v514_v47, 7  ;;  %v286_v22 = vrot.slane %v268_v10, 4  ;;  %v2884_v24 = vld [vmem:[%s3660_s1 + $0x18] sm:$0xff]  ;;  %v2907_v40 = vld [vmem:[%s3660_s1 + $0xd0] sm:$0xff] }
  0x25   : > { %806 = vmatpush.bf16.msra.mxu0 %v2914_v45  ;;  %v503_v45 = vrot.slane %v501_v34, 7  ;;  %v522_v63 = vrot.slane %v520_v50, 7  ;;  %v287_v23 = vrot.slane %v268_v10, 6  ;;  %v2892_v25 = vld [vmem:[%s3660_s1 + $0x58] sm:$0xff]  ;;  %v288_v26 = vrot.slane %v269_v11, 2 }
  0x26   : > { %820 = vmatpush.bf16.msra.mxu1 %v2922_v46  ;;  %v491_v44 = vor.u32 %v490_v33, %v487_v32  ;;  %v511_v46 = vshrl.u32 %v459_v17, 16  ;;  %v479_v48 = vrot.slane %v478_v37, 2  ;;  %v2900_v29 = vld [vmem:[%s3660_s1 + $0x98] sm:$0xff]  ;;  %v303_v33 = vsel %vm291_vm0, %v265_v4, %v282_v18 }
  0x27   : > { %834 = vmatpush.bf16.msra.mxu2 %v2930_v51  ;;  %v2886_v51 = vld [vmem:[%s3660_s1 + $0x28] sm:$0xff]  ;;  %v504_v53 = vor.u32 %v503_v45, %v500_v39  ;;  %v2908_v30 = vld [vmem:[%s3660_s1 + $0xd8] sm:$0xff]  ;;  %v313_v37 = vsel %vm295_vm1, %v286_v22, %v287_v23  ;;  %v2899_v39 = vld [vmem:[%s3660_s1 + $0x90] sm:$0xff] }
  0x28   : > { %848 = vmatpush.bf16.msra.mxu3 %v2938_v52  ;;  %v492_v52 = vrot.slane %v491_v44, 2  ;;  %v513_v54 = vrot.slane %v511_v46, 6  ;;  %v484_v59 = vsel %vm3284_vm12, %v479_v48, %v483_v31  ;;  %v2483_v4 = vld [vmem:[%s3158_s6 + $0x38] sm:$0x33] }
  0x29   : > { %807 = vmatpush.bf16.msra.mxu0 %v2913_v1  ;;  %v505_v61 = vrot.slane %v504_v53, 2  ;;  %590 = vst [vmem:[#allocation1] ss:$4 sm:$0xff] %v484_v59  ;;  %v2885_v1 = vld [vmem:[%s3660_s1 + $0x20] sm:$0xff]  ;;  %v2890_v53 = vld [vmem:[%s3660_s1 + $0x48] sm:$0xff] }
  0x2a   : > { %821 = vmatpush.bf16.msra.mxu1 %v2921_v2  ;;  %v497_v60 = vsel %vm3284_vm12, %v492_v52, %v496_v38  ;;  %v517_v62 = vor.u32 %v516_v55, %v513_v54  ;;  %v2893_v2 = vld [vmem:[%s3660_s1 + $0x60] sm:$0xff]  ;;  %v2891_v38 = vld [vmem:[%s3660_s1 + $0x50] sm:$0xff]  ;;  %v2898_v54 = vld [vmem:[%s3660_s1 + $0x88] sm:$0xff] }
  0x2b   : > { %835 = vmatpush.bf16.msra.mxu2 %v2929_v3  ;;  %593 = vst [vmem:[#allocation1 + $0x1] ss:$4 sm:$0xff] %v497_v60  ;;  %v264_v3 = vld [vmem:[%s3158_s6 + $0x8] sm:$0x33]  ;;  %v510_v6 = vsel %vm3284_vm12, %v505_v61, %v509_v49  ;;  %v2478_v55 = vld [vmem:[%s3158_s6 + $0x10] sm:$0x33] }
  0x2c   : > { %849 = vmatpush.bf16.msra.mxu3 %v2937_v8  ;;  %v518_v7 = vrot.slane %v517_v62, 2  ;;  %v266_v8 = vld [vmem:[%s3158_s6 + $0x18] sm:$0x33]  ;;  %596 = vst [vmem:[#allocation1 + $0x2] ss:$4 sm:$0xff] %v510_v6  ;;  %v280_v16 = vrot.slane %v264_v3, 4 }
  0x2d   : > { %1063 = vmatpush.bf16.msrb.mxu0 %v2888_v14  ;;  %v270_v14 = vld [vmem:[%s3158_s6 + $0x38] sm:$0x33]  ;;  %v281_v17 = vrot.slane %v264_v3, 6  ;;  %v283_v19 = vrot.slane %v266_v8, 4  ;;  %v2480_v59 = vld [vmem:[%s3158_s6 + $0x20] sm:$0x33] }
  0x2e   : > { %1077 = vmatpush.bf16.msrb.mxu1 %v2896_v15  ;;  %v523_v13 = vsel %vm3284_vm12, %v518_v7, %v522_v63  ;;  %v279_v15 = vrot.slane %v263_v0, 2  ;;  %v289_v27 = vrot.slane %v270_v14, 4  ;;  %v290_v28 = vrot.slane %v270_v14, 6  ;;  %v2481_v60 = vld [vmem:[%s3158_s6 + $0x28] sm:$0x33]  ;;  %v2881_v61 = vld [vmem:[%s3660_s1] sm:$0xff] }
  0x2f   : > { %1091 = vmatpush.bf16.msrb.mxu2 %v2904_v20  ;;  %599 = vst [vmem:[#allocation1 + $0x3] ss:$4 sm:$0xff] %v523_v13  ;;  %v284_v20 = vrot.slane %v266_v8, 6  ;;  %v298_v32 = vsel %vm295_vm1, %v280_v16, %v281_v17  ;;  %v2889_v62 = vld [vmem:[%s3660_s1 + $0x40] sm:$0xff]  ;;  %v2482_v3 = vld [vmem:[%s3158_s6 + $0x30] sm:$0x33] }
  0x30   : > { %1105 = vmatpush.bf16.msrb.mxu3 %v2912_v21  ;;  %v285_v21 = vrot.slane %v267_v9, 2  ;;  %v294_v31 = vsel %vm291_vm0, %v263_v0, %v279_v15  ;;  %v320_v44 = vsel %vm295_vm1, %v289_v27, %v290_v28  ;;  %v2897_v63 = vld [vmem:[%s3660_s1 + $0x80] sm:$0xff]  ;;  %v2485_v8 = vld [vmem:[%s3158_s6 + $0x48] sm:$0x33]  ;;  %v1141_v10 = vrot.slane %v2481_v60, 6  ;;  %v2952_v13 = vld [vmem:[%s3660_s1 + $0x238] sm:$0xff] }
  0x31   : > { %1064 = vmatpush.bf16.msrb.mxu0 %v2887_v35  ;;  %v306_v34 = vsel %vm295_vm1, %v283_v19, %v284_v20  ;;  %v2883_v35 = vld [vmem:[%s3660_s1 + $0x10] sm:$0xff]  ;;  %v2905_v7 = vld [vmem:[%s3660_s1 + $0xc0] sm:$0xff]  ;;  %v2960_v14 = vld [vmem:[%s3660_s1 + $0x278] sm:$0xff]  ;;  %v1143_v15 = vrot.slane %v2483_v4, 4  ;;  %v1144_v16 = vrot.slane %v2483_v4, 6  ;;  %v1146_v18 = vrot.slane %v2485_v8, 4 }
  0x32   : > { %1078 = vmatpush.bf16.msrb.mxu1 %v2895_v36  ;;  %v310_v36 = vsel %vm291_vm0, %v267_v9, %v285_v21  ;;  %v307_v47 = vsel %vm299_vm2, %v303_v33, %v306_v34  ;;  %v1140_v9 = vrot.slane %v2481_v60, 4  ;;  %v2968_v19 = vld [vmem:[%s3660_s1 + $0x2b8] sm:$0xff]  ;;  %v1147_v21 = vrot.slane %v2485_v8, 6  ;;  %v2685_v4 = vld [vmem:[%s3158_s6 + $0x48] sm:$0x77] }
  0x33   : > { %1092 = vmatpush.bf16.msrb.mxu2 %v2903_v41  ;;  %v300_v41 = vsel %vm299_vm2, %v294_v31, %v298_v32  ;;  %v314_v50 = vsel %vm299_vm2, %v310_v36, %v313_v37  ;;  %v2976_v20 = vld [vmem:[%s3660_s1 + $0x2f8] sm:$0xff]  ;;  %v2951_v36 = vld [vmem:[%s3660_s1 + $0x230] sm:$0xff] }
  0x34   : > { %1106 = vmatpush.bf16.msrb.mxu3 %v2911_v42  ;;  %v317_v42 = vsel %vm291_vm0, %v269_v11, %v288_v26  ;;  %v1142_v11 = vrot.slane %v2482_v3, 2  ;;  %v1160_v23 = vsel %vm295_vm1, %v1140_v9, %v1141_v10  ;;  %v1167_v26 = vsel %vm295_vm1, %v1143_v15, %v1144_v16  ;;  %v2959_v37 = vld [vmem:[%s3660_s1 + $0x270] sm:$0xff]  ;;  %v2964_v60 = vld [vmem:[%s3660_s1 + $0x298] sm:$0xff] }
  0x35   : > { %1065 = vmatpush.bf16.msrb.mxu0 %v2886_v51  ;;  %v2882_v51 = vld [vmem:[%s3660_s1 + $0x8] sm:$0xff]  ;;  %v321_v52 = vsel %vm299_vm2, %v317_v42, %v320_v44  ;;  %v1174_v31 = vsel %vm295_vm1, %v1146_v18, %v1147_v21  ;;  %v1533_v15 = vrot.slane %v2685_v4, 6 }
  0x36   : > { %1079 = vmatpush.bf16.msrb.mxu1 %v2894_v56  ;;  %v600_v45 = vld.sshfl [vmem:[#allocation1] sm:$0xff pattern:$0x73625140]  ;;  %v602_v46 = vld.sshfl [vmem:[#allocation1 + $0x10] sm:$0xff pattern:$0x73625140] }
  0x37   : > { %1093 = vmatpush.bf16.msrb.mxu2 %v2902_v57  ;;  %808 = vmatmul.bf16.vlgmr.msra.gmra.mxu0 %v600_v45  ;;  %v601_v48 = vld.sshfl [vmem:[#allocation1 + $0x8] sm:$0xff pattern:$0x73625140]  ;;  %v603_v49 = vld.sshfl [vmem:[#allocation1 + $0x18] sm:$0xff pattern:$0x73625140] }
  0x38   : > { %1107 = vmatpush.bf16.msrb.mxu3 %v2910_v58  ;;  %836 = vmatmul.bf16.vlgmr.msra.gmra.mxu2 %v602_v46  ;;  %856 = vst [vmem:[#allocation1] ss:$4 sm:$0xff] %v300_v41  ;;  %v2906_v56 = vld [vmem:[%s3660_s1 + $0xc8] sm:$0xff]  ;;  %v2479_v57 = vld [vmem:[%s3158_s6 + $0x18] sm:$0x33]  ;;  %v1136_v58 = vrot.slane %v2478_v55, 2 }
  0x39   : > { %1066 = vmatpush.bf16.msrb.mxu0 %v2885_v1  ;;  %822 = vmatmul.bf16.vlgmr.msra.gmra.mxu1 %v601_v48  ;;  %858 = vst [vmem:[#allocation1 + $0x1] ss:$4 sm:$0xff] %v307_v47  ;;  %v1137_v0 = vrot.slane %v2479_v57, 4  ;;  %v1138_v1 = vrot.slane %v2479_v57, 6  ;;  %v2958_v41 = vld [vmem:[%s3660_s1 + $0x268] sm:$0xff]  ;;  %v2949_v45 = vld [vmem:[%s3660_s1 + $0x220] sm:$0xff] }
  0x3a   : > { %1080 = vmatpush.bf16.msrb.mxu1 %v2893_v2  ;;  %850 = vmatmul.bf16.vlgmr.msra.gmra.mxu3 %v603_v49  ;;  %860 = vst [vmem:[#allocation1 + $0x2] ss:$4 sm:$0xff] %v314_v50  ;;  %v1139_v2 = vrot.slane %v2480_v59, 2  ;;  %v1150_v6 = vsel %vm291_vm0, %v2478_v55, %v1136_v58  ;;  %v2966_v42 = vld [vmem:[%s3660_s1 + $0x2a8] sm:$0xff]  ;;  %v2957_v46 = vld [vmem:[%s3660_s1 + $0x260] sm:$0xff] }
  0x3b   : > { %1094 = vmatpush.bf16.msrb.mxu2 %v2901_v5  ;;  %862 = vst [vmem:[#allocation1 + $0x3] ss:$4 sm:$0xff] %v321_v52  ;;  %v2484_v5 = vld [vmem:[%s3158_s6 + $0x40] sm:$0x33]  ;;  %v2974_v44 = vld [vmem:[%s3660_s1 + $0x2e8] sm:$0xff]  ;;  %v2948_v52 = vld [vmem:[%s3660_s1 + $0x218] sm:$0xff] }
  0x3c   : > { %1108 = vmatpush.bf16.msrb.mxu3 %v2909_v12  ;;  %v1153_v12 = vsel %vm295_vm1, %v1137_v0, %v1138_v1  ;;  %v1145_v17 = vrot.slane %v2484_v5, 2  ;;  %v1157_v22 = vsel %vm291_vm0, %v2480_v59, %v1139_v2  ;;  %v2678_v47 = vld [vmem:[%s3158_s6 + $0x10] sm:$0x77]  ;;  %v2679_v48 = vld [vmem:[%s3158_s6 + $0x18] sm:$0x77]  ;;  %v2965_v49 = vld [vmem:[%s3660_s1 + $0x2a0] sm:$0xff] }
  0x3d   : > { %1067 = vmatpush.bf16.msrb.mxu0 %v2884_v24  ;;  %v1154_v24 = vsel %vm299_vm2, %v1150_v6, %v1153_v12  ;;  %v2973_v50 = vld [vmem:[%s3660_s1 + $0x2e0] sm:$0xff]  ;;  %v1524_v55 = vrot.slane %v2679_v48, 6  ;;  %v2681_v57 = vld [vmem:[%s3158_s6 + $0x28] sm:$0x77]  ;;  %v2682_v58 = vld [vmem:[%s3158_s6 + $0x30] sm:$0x77] }
  0x3e   : > { %1081 = vmatpush.bf16.msrb.mxu1 %v2892_v25  ;;  %v1164_v25 = vsel %vm291_vm0, %v2482_v3, %v1142_v11  ;;  %v1528_v0 = vrot.slane %v2682_v58, 2  ;;  %v2683_v2 = vld [vmem:[%s3158_s6 + $0x38] sm:$0x77]  ;;  %v2684_v3 = vld [vmem:[%s3158_s6 + $0x40] sm:$0x77]  ;;  %v1532_v12 = vrot.slane %v2685_v4, 4 }
  0x3f   : > { %1095 = vmatpush.bf16.msrb.mxu2 %v2900_v29  ;;  %v1161_v29 = vsel %vm299_vm2, %v1157_v22, %v1160_v23  ;;  %v1168_v34 = vsel %vm299_vm2, %v1164_v25, %v1167_v26  ;;  %v1529_v9 = vrot.slane %v2683_v2, 4  ;;  %v1530_v10 = vrot.slane %v2683_v2, 6  ;;  %v3008_v4 = vld [vmem:[%s3660_s1 + $0x3f8] sm:$0xff] }
  0x40   : > { %1109 = vmatpush.bf16.msrb.mxu3 %v2908_v30  ;;  %v1171_v30 = vsel %vm291_vm0, %v2484_v5, %v1145_v17  ;;  %v1531_v11 = vrot.slane %v2684_v3, 2  ;;  %v1560_v26 = vsel %vm291_vm0, %v2682_v58, %v1528_v0 }
  0x41   : > { %1068 = vmatpush.bf16.msrb.mxu0 %v2883_v35  ;;  %v1175_v35 = vsel %vm299_vm2, %v1171_v30, %v1174_v31  ;;  %v1566_v31 = vsel %vm423_vm4, %v1530_v10, %v1529_v9 }
  0x42   : > { %1082 = vmatpush.bf16.msrb.mxu1 %v2891_v38  ;;  %v863_v27 = vld.sshfl [vmem:[#allocation1] sm:$0xff pattern:$0x73625140]  ;;  %v865_v28 = vld.sshfl [vmem:[#allocation1 + $0x10] sm:$0xff pattern:$0x73625140] }
  0x43   : > { %1096 = vmatpush.bf16.msrb.mxu2 %v2899_v39  ;;  %v864_v32 = vld.sshfl [vmem:[#allocation1 + $0x8] sm:$0xff pattern:$0x73625140]  ;;  %v866_v33 = vld.sshfl [vmem:[#allocation1 + $0x18] sm:$0xff pattern:$0x73625140] }
  0x44   : > { %1110 = vmatpush.bf16.msrb.mxu3 %v2907_v40  ;;  %1241 = vst [vmem:[#allocation1] ss:$4 sm:$0xff] %v1154_v24  ;;  %v2967_v38 = vld [vmem:[%s3660_s1 + $0x2b0] sm:$0xff]  ;;  %v2950_v40 = vld [vmem:[%s3660_s1 + $0x228] sm:$0xff] }
  0x45   : > { %1069 = vmatpush.bf16.msrb.mxu0 %v2882_v51  ;;  %1243 = vst [vmem:[#allocation1 + $0x1] ss:$4 sm:$0xff] %v1161_v29  ;;  %v2975_v39 = vld [vmem:[%s3660_s1 + $0x2f0] sm:$0xff]  ;;  %v2680_v51 = vld [vmem:[%s3158_s6 + $0x20] sm:$0x77] }
  0x46   : > { %1083 = vmatpush.bf16.msrb.mxu1 %v2890_v53  ;;  %1245 = vst [vmem:[#allocation1 + $0x2] ss:$4 sm:$0xff] %v1168_v34  ;;  %v1522_v53 = vrot.slane %v2678_v47, 2  ;;  %v1525_v59 = vrot.slane %v2680_v51, 2  ;;  %v2954_v34 = vld [vmem:[%s3660_s1 + $0x248] sm:$0xff] }
  0x47   : > { %1097 = vmatpush.bf16.msrb.mxu2 %v2898_v54  ;;  %1247 = vst [vmem:[#allocation1 + $0x3] ss:$4 sm:$0xff] %v1175_v35  ;;  %v1523_v54 = vrot.slane %v2679_v48, 4 }
  0x48   : > { %1111 = vmatpush.bf16.msrb.mxu3 %v2906_v56  ;;  %v2956_v56 = vld [vmem:[%s3660_s1 + $0x258] sm:$0xff]  ;;  %v1536_v1 = vsel %vm291_vm0, %v2678_v47, %v1522_v53  ;;  %v1541_v6 = vsel %vm421_vm3, %v2678_v47, %v1522_v53  ;;  %v1548_v8 = vsel %vm291_vm0, %v2680_v51, %v1525_v59  ;;  %v1553_v23 = vsel %vm421_vm3, %v2680_v51, %v1525_v59 }
  0x49   : > { %1070 = vmatpush.bf16.msrb.mxu0 %v2881_v61  ;;  %v2972_v61 = vld [vmem:[%s3660_s1 + $0x2d8] sm:$0xff]  ;;  %v1539_v5 = vsel %vm295_vm1, %v1523_v54, %v1524_v55 }
  0x4a   : > { %1084 = vmatpush.bf16.msrb.mxu1 %v2889_v62  ;;  %v1526_v62 = vrot.slane %v2681_v57, 4  ;;  %v1540_v16 = vsel %vm299_vm2, %v1536_v1, %v1539_v5 }
  0x4b   : > { %1098 = vmatpush.bf16.msrb.mxu2 %v2897_v63  ;;  %v1527_v63 = vrot.slane %v2681_v57, 6 }
  0x4c   : > { %1112 = vmatpush.bf16.msrb.mxu3 %v2905_v7  ;;  %1071 = vmatmul.bf16.vlgmr.msrb.gmra.mxu0 %v863_v27  ;;  %v1542_v7 = vsel %vm423_vm4, %v1524_v55, %v1523_v54  ;;  %v1563_v27 = vsel %vm295_vm1, %v1529_v9, %v1530_v10  ;;  %v2945_v54 = vld [vmem:[%s3660_s1 + $0x200] sm:$0xff] }
  0x4d   : > { %1448 = vmatpush.bf16.msra.mxu0 %v2952_v13  ;;  %1085 = vmatmul.bf16.vlgmr.msrb.gmra.mxu1 %v864_v32  ;;  %v2947_v13 = vld [vmem:[%s3660_s1 + $0x210] sm:$0xff]  ;;  %v1543_v17 = vsel %vm425_vm5, %v1541_v6, %v1542_v7  ;;  %v1551_v18 = vsel %vm295_vm1, %v1526_v62, %v1527_v63  ;;  %v1554_v24 = vsel %vm423_vm4, %v1527_v63, %v1526_v62  ;;  %v2953_v55 = vld [vmem:[%s3660_s1 + $0x240] sm:$0xff]  ;;  %v2992_v62 = vld [vmem:[%s3660_s1 + $0x378] sm:$0xff] }
  0x4e   : > { %1462 = vmatpush.bf16.msra.mxu1 %v2960_v14  ;;  %1099 = vmatmul.bf16.vlgmr.msrb.gmra.mxu2 %v865_v28  ;;  %v2955_v14 = vld [vmem:[%s3660_s1 + $0x250] sm:$0xff]  ;;  %v1545_v21 = vrot.slane %v1543_v17, 2  ;;  %v1552_v22 = vsel %vm299_vm2, %v1548_v8, %v1551_v18  ;;  %v1555_v25 = vsel %vm425_vm5, %v1553_v23, %v1554_v24  ;;  %v1565_v28 = vsel %vm421_vm3, %v2682_v58, %v1528_v0  ;;  %v1251_v10 = vld.sshfl [vmem:[#allocation1 + $0x18] sm:$0xff pattern:$0x73625140] }
  0x4f   : > { %1476 = vmatpush.bf16.msra.mxu2 %v2968_v19  ;;  %1113 = vmatmul.bf16.vlgmr.msrb.gmra.mxu3 %v866_v33  ;;  %v2963_v19 = vld [vmem:[%s3660_s1 + $0x290] sm:$0xff]  ;;  %v1557_v29 = vrot.slane %v1555_v25, 2  ;;  %v1564_v30 = vsel %vm299_vm2, %v1560_v26, %v1563_v27  ;;  %v1572_v32 = vsel %vm291_vm0, %v2684_v3, %v1531_v11  ;;  %v2946_v33 = vld [vmem:[%s3660_s1 + $0x208] sm:$0xff]  ;;  %v1567_v35 = vsel %vm425_vm5, %v1565_v28, %v1566_v31 }
  0x50   : > { %1490 = vmatpush.bf16.msra.mxu3 %v2976_v20  ;;  %v2971_v20 = vld [vmem:[%s3660_s1 + $0x2d0] sm:$0xff]  ;;  %v1591_v48 = vshll.u32 %v1545_v21, 16  ;;  %v1608_v58 = vshrl.u32 %v1564_v30, 16  ;;  %v1611_v59 = vshll.u32 %v1564_v30, 16 }
  0x51   : > { %1449 = vmatpush.bf16.msra.mxu0 %v2951_v36  ;;  %v1575_v36 = vsel %vm295_vm1, %v1532_v12, %v1533_v15  ;;  %v1604_v53 = vshll.u32 %v1557_v29, 16  ;;  %v1250_v9 = vld.sshfl [vmem:[#allocation1 + $0x10] sm:$0xff pattern:$0x73625140] }
  0x52   : > { %1463 = vmatpush.bf16.msra.mxu1 %v2959_v37  ;;  %v1577_v37 = vsel %vm421_vm3, %v2684_v3, %v1531_v11  ;;  %v1593_v0 = vrot.slane %v1591_v48, 7  ;;  %v3000_v3 = vld [vmem:[%s3660_s1 + $0x3b8] sm:$0xff]  ;;  %v1610_v5 = vrot.slane %v1608_v58, 6  ;;  %v1613_v6 = vrot.slane %v1611_v59, 7  ;;  %v2983_v23 = vld [vmem:[%s3660_s1 + $0x330] sm:$0xff] }
  0x53   : > { %1477 = vmatpush.bf16.msra.mxu2 %v2967_v38  ;;  %v1582_v38 = vshrl.u32 %v1540_v16, 16  ;;  %v2991_v24 = vld [vmem:[%s3660_s1 + $0x370] sm:$0xff] }
  0x54   : > { %1491 = vmatpush.bf16.msra.mxu3 %v2975_v39  ;;  %v2962_v39 = vld [vmem:[%s3660_s1 + $0x288] sm:$0xff]  ;;  %v2999_v28 = vld [vmem:[%s3660_s1 + $0x3b0] sm:$0xff] }
  0x55   : > { %1450 = vmatpush.bf16.msra.mxu0 %v2950_v40  ;;  %v2970_v40 = vld [vmem:[%s3660_s1 + $0x2c8] sm:$0xff]  ;;  %v1584_v47 = vrot.slane %v1582_v38, 6  ;;  %v3007_v29 = vld [vmem:[%s3660_s1 + $0x3f0] sm:$0xff]  ;;  %v2981_v38 = vld [vmem:[%s3660_s1 + $0x320] sm:$0xff] }
  0x56   : > { %1464 = vmatpush.bf16.msra.mxu1 %v2958_v41  ;;  %v1569_v41 = vrot.slane %v1567_v35, 2  ;;  %v2995_v48 = vld [vmem:[%s3660_s1 + $0x390] sm:$0xff] }
  0x57   : > { %1478 = vmatpush.bf16.msra.mxu2 %v2966_v42  ;;  %v1576_v42 = vsel %vm299_vm2, %v1572_v32, %v1575_v36  ;;  %v2998_v36 = vld [vmem:[%s3660_s1 + $0x3a8] sm:$0xff] }
  0x58   : > { %1492 = vmatpush.bf16.msra.mxu3 %v2974_v44  ;;  %v1578_v44 = vsel %vm423_vm4, %v1533_v15, %v1532_v12  ;;  %v1617_v2 = vshll.u32 %v1569_v41, 16  ;;  %v1621_v7 = vshrl.u32 %v1576_v42, 16  ;;  %v1624_v8 = vshll.u32 %v1576_v42, 16  ;;  %v1248_v15 = vld.sshfl [vmem:[#allocation1] sm:$0xff pattern:$0x73625140] }
  0x59   : > { %1451 = vmatpush.bf16.msra.mxu0 %v2949_v45  ;;  %v1585_v45 = vshll.u32 %v1540_v16, 16  ;;  %v1614_v16 = vor.u32 %v1613_v6, %v1610_v5  ;;  %v2980_v41 = vld [vmem:[%s3660_s1 + $0x318] sm:$0xff] }
  0x5a   : > { %1465 = vmatpush.bf16.msra.mxu1 %v2957_v46  ;;  %v1579_v46 = vsel %vm425_vm5, %v1577_v37, %v1578_v44  ;;  %v1619_v17 = vrot.slane %v1617_v2, 7  ;;  %v1623_v18 = vrot.slane %v1621_v7, 6  ;;  %v3006_v37 = vld [vmem:[%s3660_s1 + $0x3e8] sm:$0xff]  ;;  %v2988_v42 = vld [vmem:[%s3660_s1 + $0x358] sm:$0xff] }
  0x5b   : > { %1479 = vmatpush.bf16.msra.mxu2 %v2965_v49  ;;  %v1595_v49 = vshrl.u32 %v1552_v22, 16  ;;  %v1587_v51 = vrot.slane %v1585_v45, 7  ;;  %v1615_v25 = vrot.slane %v1614_v16, 2  ;;  %v2996_v44 = vld [vmem:[%s3660_s1 + $0x398] sm:$0xff] }
  0x5c   : > { %1493 = vmatpush.bf16.msra.mxu3 %v2973_v50  ;;  %v1581_v50 = vrot.slane %v1579_v46, 2  ;;  %v3004_v45 = vld [vmem:[%s3660_s1 + $0x3d8] sm:$0xff]  ;;  %v2979_v46 = vld [vmem:[%s3660_s1 + $0x310] sm:$0xff] }
  0x5d   : > { %1452 = vmatpush.bf16.msra.mxu0 %v2948_v52  ;;  %v1598_v52 = vshll.u32 %v1552_v22, 16  ;;  %v1597_v57 = vrot.slane %v1595_v49, 6  ;;  %v1588_v63 = vor.u32 %v1587_v51, %v1584_v47  ;;  %v1620_v31 = vsel %vm3284_vm12, %v1615_v25, %v1619_v17  ;;  %v2987_v47 = vld [vmem:[%s3660_s1 + $0x350] sm:$0xff]  ;;  %v2986_v51 = vld [vmem:[%s3660_s1 + $0x348] sm:$0xff] }
  0x5e   : > { %1466 = vmatpush.bf16.msra.mxu1 %v2956_v56  ;;  %v2961_v56 = vld [vmem:[%s3660_s1 + $0x280] sm:$0xff]  ;;  %v3003_v49 = vld [vmem:[%s3660_s1 + $0x3d0] sm:$0xff] }
  0x5f   : > { %1480 = vmatpush.bf16.msra.mxu2 %v2964_v60  ;;  %v2969_v60 = vld [vmem:[%s3660_s1 + $0x2c0] sm:$0xff]  ;;  %v1600_v1 = vrot.slane %v1598_v52, 7  ;;  %v1589_v11 = vrot.slane %v1588_v63, 2  ;;  %v2994_v52 = vld [vmem:[%s3660_s1 + $0x388] sm:$0xff] }
  0x60   : > { %1494 = vmatpush.bf16.msra.mxu3 %v2972_v61  ;;  %v2984_v61 = vld [vmem:[%s3660_s1 + $0x338] sm:$0xff] }
  0x61   : > { %1453 = vmatpush.bf16.msra.mxu0 %v2947_v13  ;;  %v1601_v12 = vor.u32 %v1600_v1, %v1597_v57  ;;  %v1606_v13 = vrot.slane %v1604_v53, 7  ;;  %v1594_v21 = vsel %vm3284_vm12, %v1589_v11, %v1593_v0  ;;  %v3002_v53 = vld [vmem:[%s3660_s1 + $0x3c8] sm:$0xff]  ;;  %v3001_v57 = vld [vmem:[%s3660_s1 + $0x3c0] sm:$0xff] }
  0x62   : > { %1467 = vmatpush.bf16.msra.mxu1 %v2955_v14  ;;  %v1630_v14 = vshll.u32 %v1581_v50, 16  ;;  %v2978_v50 = vld [vmem:[%s3660_s1 + $0x308] sm:$0xff] }
  0x63   : > { %1481 = vmatpush.bf16.msra.mxu2 %v2963_v19  ;;  %v1626_v19 = vrot.slane %v1624_v8, 7  ;;  %v1602_v22 = vrot.slane %v1601_v12, 2 }
  0x64   : > { %1495 = vmatpush.bf16.msra.mxu3 %v2971_v20  ;;  %v1249_v20 = vld.sshfl [vmem:[#allocation1 + $0x8] sm:$0xff pattern:$0x73625140]  ;;  %v1632_v27 = vrot.slane %v1630_v14, 7 }
  0x65   : > { %1454 = vmatpush.bf16.msra.mxu0 %v2946_v33  ;;  %v1627_v26 = vor.u32 %v1626_v19, %v1623_v18  ;;  %1700 = vst [vmem:[#allocation1] ss:$4 sm:$0xff] %v1594_v21  ;;  %v1607_v30 = vsel %vm3284_vm12, %v1602_v22, %v1606_v13  ;;  %v2982_v33 = vld [vmem:[%s3660_s1 + $0x328] sm:$0xff] }
  0x66   : > { %1468 = vmatpush.bf16.msra.mxu1 %v2954_v34  ;;  %1703 = vst [vmem:[#allocation1 + $0x1] ss:$4 sm:$0xff] %v1607_v30  ;;  %v2990_v34 = vld [vmem:[%s3660_s1 + $0x368] sm:$0xff] }
  0x67   : > { %1482 = vmatpush.bf16.msra.mxu2 %v2962_v39  ;;  %v1628_v32 = vrot.slane %v1627_v26, 2  ;;  %1706 = vst [vmem:[#allocation1 + $0x2] ss:$4 sm:$0xff] %v1620_v31  ;;  %v2997_v39 = vld [vmem:[%s3660_s1 + $0x3a0] sm:$0xff] }
  0x68   : > { %1496 = vmatpush.bf16.msra.mxu3 %v2970_v40  ;;  %v3005_v40 = vld [vmem:[%s3660_s1 + $0x3e0] sm:$0xff] }
  0x69   : > { %1455 = vmatpush.bf16.msra.mxu0 %v2945_v54  ;;  %v1633_v35 = vsel %vm3284_vm12, %v1628_v32, %v1632_v27  ;;  %v2977_v54 = vld [vmem:[%s3660_s1 + $0x300] sm:$0xff] }
  0x6a   : > { %1469 = vmatpush.bf16.msra.mxu1 %v2953_v55  ;;  %1709 = vst [vmem:[#allocation1 + $0x3] ss:$4 sm:$0xff] %v1633_v35  ;;  %v2985_v55 = vld [vmem:[%s3660_s1 + $0x340] sm:$0xff] }
  0x6b   : > { %1483 = vmatpush.bf16.msra.mxu2 %v2961_v56  ;;  %v2993_v56 = vld [vmem:[%s3660_s1 + $0x380] sm:$0xff] }
  0x6c   : > { %1497 = vmatpush.bf16.msra.mxu3 %v2969_v60  ;;  %1456 = vmatmul.bf16.vlgmr.msra.gmra.mxu0 %v1248_v15 }
  0x6d   : > { %1910 = vmatpush.bf16.msrb.mxu0 %v2984_v61  ;;  %1470 = vmatmul.bf16.vlgmr.msra.gmra.mxu1 %v1249_v20 }
  0x6e   : > { %1924 = vmatpush.bf16.msrb.mxu1 %v2992_v62  ;;  %1484 = vmatmul.bf16.vlgmr.msra.gmra.mxu2 %v1250_v9 }
  0x6f   : > { %1938 = vmatpush.bf16.msrb.mxu2 %v3000_v3  ;;  %1498 = vmatmul.bf16.vlgmr.msra.gmra.mxu3 %v1251_v10 }
  0x70   : > { %1952 = vmatpush.bf16.msrb.mxu3 %v3008_v4 }
  0x71   : > { %1911 = vmatpush.bf16.msrb.mxu0 %v2983_v23  ;;  %v1710_v58 = vld.sshfl [vmem:[#allocation1] sm:$0xff pattern:$0x73625140]  ;;  %v1711_v59 = vld.sshfl [vmem:[#allocation1 + $0x8] sm:$0xff pattern:$0x73625140] }
  0x72   : > { %1925 = vmatpush.bf16.msrb.mxu1 %v2991_v24  ;;  %v1712_v60 = vld.sshfl [vmem:[#allocation1 + $0x10] sm:$0xff pattern:$0x73625140]  ;;  %v1713_v61 = vld.sshfl [vmem:[#allocation1 + $0x18] sm:$0xff pattern:$0x73625140] }
  0x73   : > { %1939 = vmatpush.bf16.msrb.mxu2 %v2999_v28 }
  0x74   : > { %1953 = vmatpush.bf16.msrb.mxu3 %v3007_v29 }
  0x75   : > { %1912 = vmatpush.bf16.msrb.mxu0 %v2982_v33 }
  0x76   : > { %1926 = vmatpush.bf16.msrb.mxu1 %v2990_v34 }
  0x77   : > { %1940 = vmatpush.bf16.msrb.mxu2 %v2998_v36 }
  0x78   : > { %1954 = vmatpush.bf16.msrb.mxu3 %v3006_v37 }
  0x79   : > { %1913 = vmatpush.bf16.msrb.mxu0 %v2981_v38 }
  0x7a   : > { %1927 = vmatpush.bf16.msrb.mxu1 %v2989_v43 }
  0x7b   : > { %1941 = vmatpush.bf16.msrb.mxu2 %v2997_v39 }
  0x7c   : > { %1955 = vmatpush.bf16.msrb.mxu3 %v3005_v40 }
  0x7d   : > { %1914 = vmatpush.bf16.msrb.mxu0 %v2980_v41 }
  0x7e   : > { %1928 = vmatpush.bf16.msrb.mxu1 %v2988_v42 }
  0x7f   : > { %1942 = vmatpush.bf16.msrb.mxu2 %v2996_v44 }
  0x80   : > { %1956 = vmatpush.bf16.msrb.mxu3 %v3004_v45 }
  0x81   : > { %1915 = vmatpush.bf16.msrb.mxu0 %v2979_v46 }
  0x82   : > { %1929 = vmatpush.bf16.msrb.mxu1 %v2987_v47 }
  0x83   : > { %1943 = vmatpush.bf16.msrb.mxu2 %v2995_v48 }
  0x84   : > { %1957 = vmatpush.bf16.msrb.mxu3 %v3003_v49 }
  0x85   : > { %1916 = vmatpush.bf16.msrb.mxu0 %v2978_v50 }
  0x86   : > { %1930 = vmatpush.bf16.msrb.mxu1 %v2986_v51 }
  0x87   : > { %1944 = vmatpush.bf16.msrb.mxu2 %v2994_v52 }
  0x88   : > { %1958 = vmatpush.bf16.msrb.mxu3 %v3002_v53 }
  0x89   : > { %1917 = vmatpush.bf16.msrb.mxu0 %v2977_v54 }
  0x8a   : > { %1931 = vmatpush.bf16.msrb.mxu1 %v2985_v55 }
  0x8b   : > { %1945 = vmatpush.bf16.msrb.mxu2 %v2993_v56 }
  0x8c   : > { %1959 = vmatpush.bf16.msrb.mxu3 %v3001_v57  ;;  %1918 = vmatmul.bf16.vlgmr.msrb.gmra.mxu0 %v1710_v58 }
  0x8d   : > { %1932 = vmatmul.bf16.vlgmr.msrb.gmra.mxu1 %v1711_v59 }
  0x8e   : > { %1946 = vmatmul.bf16.vlgmr.msrb.gmra.mxu2 %v1712_v60 }
  0x8f   : > { %1960 = vmatmul.bf16.vlgmr.msrb.gmra.mxu3 %v1713_v61 }
  0xb4   : > { %v809_v62 = vpop.f32.mrf.mxu0 }
  0xb6   : > { %v823_v63 = vpop.f32.mrf.mxu1 }
  0xb7   : > { %v824_v18 = vadd.f32 %v823_v63, %v809_v62 }
  0xbb   : > { %v837_v0 = vpop.f32.mrf.mxu2 }
  0xbc   : > { %v811_v2 = vpop.f32.mrf.mxu0  ;;  %v838_v22 = vadd.f32 %v837_v0, %v824_v18 }
  0xbd   : > { %v851_v1 = vpop.f32.mrf.mxu3 }
  0xbe   : > { %v825_v3 = vpop.f32.mrf.mxu1  ;;  %v852_v26 = vadd.f32 %v851_v1, %v838_v22 }
  0xbf   : > { %v826_v21 = vadd.f32 %v825_v3, %v811_v2 }
  0xc3   : > { %v839_v4 = vpop.f32.mrf.mxu2 }
  0xc4   : > { %v840_v23 = vadd.f32 %v839_v4, %v826_v21 }
  0xc5   : > { %v853_v5 = vpop.f32.mrf.mxu3 }
  0xc6   : > { %v854_v29 = vadd.f32 %v853_v5, %v840_v23  ;;  %v1999_v23 = vld [vmem:[%s3661_s2] sm:$0x1] }
  0xc9   : > { %v1072_v6 = vpop.f32.mrf.mxu0 }
  0xca   : > { %v1086_v7 = vpop.f32.mrf.mxu1  ;;  %v1073_v30 = vadd.f32 %v1072_v6, %v852_v26 }
  0xcc   : > { %v1087_v36 = vadd.f32 %v1086_v7, %v1073_v30 }
  0xd1   : > { %v1100_v8 = vpop.f32.mrf.mxu2  ;;  %v1074_v10 = vpop.f32.mrf.mxu0 }
  0xd2   : > { %v1114_v9 = vpop.f32.mrf.mxu3  ;;  %v1088_v11 = vpop.f32.mrf.mxu1  ;;  %v1075_v31 = vadd.f32 %v1074_v10, %v854_v29  ;;  %v1101_v42 = vadd.f32 %v1100_v8, %v1087_v36 }
  0xd4   : > { %v1089_v38 = vadd.f32 %v1088_v11, %v1075_v31  ;;  %v1115_v50 = vadd.f32 %v1114_v9, %v1101_v42 }
  0xd9   : > { %v1102_v12 = vpop.f32.mrf.mxu2 }
  0xda   : > { %v1116_v13 = vpop.f32.mrf.mxu3  ;;  %v1103_v44 = vadd.f32 %v1102_v12, %v1089_v38 }
  0xdc   : > { %v1117_v51 = vadd.f32 %v1116_v13, %v1103_v44 }
  0xe9   : > { %v1457_v14 = vpop.f32.mrf.mxu0 }
  0xea   : > { %v1471_v15 = vpop.f32.mrf.mxu1 }
  0xeb   : > { %v1472_v32 = vadd.f32 %v1471_v15, %v1457_v14 }
  0xf1   : > { %v1485_v16 = vpop.f32.mrf.mxu2  ;;  %v1459_v19 = vpop.f32.mrf.mxu0 }
  0xf2   : > { %v1499_v17 = vpop.f32.mrf.mxu3  ;;  %v1473_v20 = vpop.f32.mrf.mxu1  ;;  %v1486_v43 = vadd.f32 %v1485_v16, %v1472_v32 }
  0xf3   : > { %v1474_v33 = vadd.f32 %v1473_v20, %v1459_v19 }
  0xf4   : > { %v1500_v46 = vadd.f32 %v1499_v17, %v1486_v43 }
  0xf6   : > { %v1504_v55 = vadd.f32 %v1500_v46, %v1115_v50 }
  0xf9   : > { %v1487_v24 = vpop.f32.mrf.mxu2 }
  0xfa   : > { %v1501_v25 = vpop.f32.mrf.mxu3  ;;  %v1488_v39 = vadd.f32 %v1487_v24, %v1474_v33 }
  0xfc   : > { %v1502_v47 = vadd.f32 %v1501_v25, %v1488_v39 }
  0xfe   : > { %v1505_v56 = vadd.f32 %v1502_v47, %v1117_v51 }
 0x109   : > { %v1919_v27 = vpop.f32.mrf.mxu0 }
 0x10a   : > { %v1933_v28 = vpop.f32.mrf.mxu1 }
 0x10b   : > { %v1934_v37 = vadd.f32 %v1933_v28, %v1919_v27  ;;  %v3034_v27 = vld [vmem:[%s3662_s3] ss:$0 sm:$0xff] }
 0x111   : > { %v1947_v34 = vpop.f32.mrf.mxu2  ;;  %v1921_v40 = vpop.f32.mrf.mxu0 }
 0x112   : > { %v1961_v35 = vpop.f32.mrf.mxu3  ;;  %v1935_v41 = vpop.f32.mrf.mxu1  ;;  %v1948_v45 = vadd.f32 %v1947_v34, %v1934_v37 }
 0x113   : > { %v1936_v48 = vadd.f32 %v1935_v41, %v1921_v40 }
 0x114   : > { %v1962_v52 = vadd.f32 %v1961_v35, %v1948_v45 }
 0x116   : > { %v1966_v58 = vadd.f32 %v1962_v52, %v1504_v55 }
 0x119   : > { %v1949_v49 = vpop.f32.mrf.mxu2 }
 0x11a   : > { %v1950_v53 = vadd.f32 %v1949_v49, %v1936_v48  ;;  %v1963_v54 = vpop.f32.mrf.mxu3 }
 0x11c   : > { %v1964_v57 = vadd.f32 %v1963_v54, %v1950_v53 }
 0x11e   : > { %v1967_v59 = vadd.f32 %v1964_v57, %v1505_v56 }
 0x120   : > { %v1968_v60 = vadd.f32 %v1967_v59, %v1966_v58 }
 0x122   : > { %v1969_v61 = vrot.slane %v1968_v60, 4 }
 0x124   : > { %v1970_v62 = vadd.f32 %v1969_v61, %v1968_v60 }
 0x126   : > { %v1971_v63 = vrot.slane %v1970_v62, 2 }
 0x128   : > { %v1972_v0 = vadd.f32 %v1971_v63, %v1970_v62 }
 0x12a   : > { %v1973_v1 = vrot.slane %v1972_v0, 1 }
 0x12c   : > { %v1974_v2 = vadd.f32 %v1973_v1, %v1972_v0 }
 0x12e   : > { %v1975_v3 = vmul.f32 0.0625, %v1974_v2 }
 0x130   : > { %v1976_v4 = vsub.f32 %v1966_v58, %v1975_v3  ;;  %v1977_v5 = vsub.f32 %v1967_v59, %v1975_v3 }
 0x132   : > { %v1978_v6 = vmul.f32 %v1976_v4, %v1976_v4  ;;  %v1979_v7 = vmul.f32 %v1977_v5, %v1977_v5 }
 0x134   : > { %v1980_v8 = vadd.f32 %v1979_v7, %v1978_v6 }
 0x136   : > { %v1981_v9 = vrot.slane %v1980_v8, 4 }
 0x138   : > { %v1982_v10 = vadd.f32 %v1981_v9, %v1980_v8 }
 0x13a   : > { %v1983_v11 = vrot.slane %v1982_v10, 2 }
 0x13c   : > { %v1984_v12 = vadd.f32 %v1983_v11, %v1982_v10 }
 0x13e   : > { %v1985_v13 = vrot.slane %v1984_v12, 1 }
 0x140   : > { %v1986_v14 = vadd.f32 %v1985_v13, %v1984_v12 }
 0x142   : > { %v1987_v15 = vmul.f32 0.0625, %v1986_v14 }
 0x144   : > { %v1988_v16 = vadd.f32 1e-05, %v1987_v15 }
 0x146   : > { %3035 = vrsqrt.f32 %v1988_v16  ;;  %vm1995_vm14 = vweird.f32 %v1988_v16 }
 0x14c   : > { %v3036_v17 = vpop.eup %3035 }
 0x14d   : > { %v1990_v18 = vmul.f32 %v3036_v17, %v1988_v16  ;;  %vm1996_vm13 = vweird.f32 %v3036_v17 }
 0x14e   : > { %vm1997_vm15 = vmor %vm1995_vm14, %vm1996_vm13 }
 0x14f   : > { %v1991_v19 = vmul.f32 %v3036_v17, %v1990_v18 }
 0x151   : > { %v1992_v20 = vmul.f32 0.5, %v1991_v19 }
 0x153   : > { %v1993_v21 = vsub.f32 1.5, %v1992_v20 }
 0x155   : > { %v1994_v22 = vmul.f32 %v3036_v17, %v1993_v21 }
 0x157   : > { %v1998_v24 = vsel %vm1997_vm15, %v3036_v17, %v1994_v22 }
 0x158   : > { %v2000_v25 = vmul.f32 %v1999_v23, %v1998_v24 }
 0x15a   : > { %v2001_v26 = vperm.slane %v2000_v25, 0 }
 0x15c   : > { %v2002_v28 = vmul.f32 %v2001_v26, %v1976_v4  ;;  %v2003_v29 = vmul.f32 %v2001_v26, %v1977_v5 }
 0x15e   : > { %v2008_v30 = vadd.f32 %v3034_v27, %v2002_v28  ;;  %v2009_v31 = vadd.f32 %v3034_v27, %v2003_v29 }
 0x160   : > { %vm2010_vm0 = vcmp.ge.f32.partialorder %v2008_v30, 0.0  ;;  %vm2011_vm1 = vcmp.ge.f32.partialorder %v2009_v31, 0.0  ;;  %v2012_v32 = vmul.f32 0.2, %v2008_v30  ;;  %v2013_v33 = vmul.f32 0.2, %v2009_v31 }
 0x162   : > { %v2014_v34 = vsel %vm2010_vm0, %v2008_v30, %v2012_v32  ;;  %v2015_v35 = vsel %vm2011_vm1, %v2009_v31, %v2013_v33 }
 0x163   : > { %v2018_v36 = vrot.slane %v2014_v34, 4  ;;  %v2019_v37 = vrot.slane %v2015_v35, 4  ;;  %v2022_v38 = vpack.c.bf16 %v2014_v34, %v2014_v34  ;;  %v2024_v43 = vpack.c.bf16 %v2015_v35, %v2015_v35 }
 0x165   : > { %v2023_v39 = vpack.c.bf16 %v2018_v36, %v2018_v36  ;;  %v2025_v40 = vpack.c.bf16 %v2019_v37, %v2019_v37  ;;  %2026 = vst [vmem:[%s262_s27] sm:$0x3] %v2022_v38 }
 0x166   : > { %2028 = vst [vmem:[%s262_s27 + $0x4] sm:$0x3] %v2024_v43 }
 0x167   : > { %2027 = vst [vmem:[%s262_s27 + $0x2] sm:$0x3] %v2023_v39 }
 0x168   : > { %2029 = vst [vmem:[%s262_s27 + $0x6] sm:$0x3] %v2025_v40 }
 0x169 PF: > { %s14_s17 = sadd.s32 1, %s3059_s17   ;;  %s3670_s15 = smov %s3055_s16 }
 0x16a   : > { %p11_p5 = scmp.ge.s32.totalorder %s14_s17, 4   ;;  %s3671_s16 = smov %s3673_s18 }
 0x16c   :  { %13 = sbr.rel (!%p11_p5) target bundleno = 2 (0x2), region = 91 }

</bundles_post_ra>
